<compile_context>
chip_gen: v7x
topology: tpu7x:2x2x1
jax: 0.10.0
libtpu: 0.0.40
codegen_flags: <defaults>
</compile_context>

<pallas_src>
import numpy as np
import jax
import jax.numpy as jnp
from jax.experimental import pallas as pl
from jax.experimental.pallas import tpu as pltpu

PRELU_ALPHA = 0.25            # nn.PReLU() default (single shared parameter)

# EmbeddingNet architecture constants (MNIST-like 1x28x28 input).
IMG = 28
K = 5
C1_OUT = 32
H1, W1 = IMG, IMG                       # conv1 input spatial
OH1, OW1 = H1 - K + 1, W1 - K + 1       # 24, 24
PH1, PW1 = OH1 // 2, OW1 // 2           # 12, 12
C2_IN, C2_OUT = C1_OUT, 64
H2, W2 = PH1, PW1                       # 12, 12
OH2, OW2 = H2 - K + 1, W2 - K + 1       # 8, 8
PH2, PW2 = OH2 // 2, OW2 // 2           # 4, 4
FLAT = PH2 * PW2 * C2_OUT               # 1024
FC_DIM = 256
EMB_DIM = 2
EMB_PAD = 128                           # fc3 output padded to one full lane group

C1_KDIM = K * W1 * 1                    # 140  (conv1 concatenated contraction dim)
C1_KPAD = 256                           # padded to one full 256-deep MXU pass
C2_KDIM = K * W2 * C2_IN                # 1920 (already a multiple of 128)
COLS1 = OW1 * C1_OUT                    # 768
COLS2 = OW2 * C2_OUT                    # 512
HALF1 = PW1 * C1_OUT                    # 384
HALF2 = PW2 * C2_OUT                    # 256


def _prelu(x):
    return jnp.where(x > 0, x, PRELU_ALPHA * x)


# --------------------------- Pallas kernel ----------------------------------

def triplet_kernel(x_ref, c1w_ref, c1b_ref, c2w_ref, c2b_ref,
                   w1_ref, b1_ref, w2_ref, b2_ref, w3_ref, b3_ref, o_ref):
    """Full EmbeddingNet forward for one (stream, batch-block) grid point.

    x_ref  : (tb, 28, 28) bf16 images
    c*w_ref: banded conv weights, columns ordered (ow%2, ow//2, co) so the fused
             2x2 max-pool is a pair of lane-slices at 128-aligned boundaries.
    o_ref  : (tb, 128) f32; embedding lives in the first 2 lanes.
    """
    tb = x_ref.shape[0]
    x = x_ref[...]                                                  # (tb, 28, 28)

    # ---- conv1 + PReLU + 2x2 max-pool: ONE banded MXU dot --------------------
    a1 = jnp.concatenate(
        [x[:, kh:kh + OH1, :] for kh in range(K)]
        + [jnp.zeros((tb, OH1, C1_KPAD - C1_KDIM), jnp.bfloat16)], axis=-1)
    a1 = a1.reshape(tb * OH1, C1_KPAD)                              # (tb*24, 256)
    y1 = jnp.dot(a1, c1w_ref[...], preferred_element_type=jnp.float32)
    y1 = _prelu(y1 + c1b_ref[...])                                  # (tb*24, 768)
    y1 = jnp.maximum(y1[:, :HALF1], y1[:, HALF1:])                  # pool along W
    y1 = y1.reshape(tb * PH1, 2 * HALF1)
    y1 = jnp.maximum(y1[:, :HALF1], y1[:, HALF1:])                  # pool along H
    p1 = y1.astype(jnp.bfloat16).reshape(tb, PH1, HALF1)            # NHWC, (W,C) on lanes

    # ---- conv2 + PReLU + 2x2 max-pool: ONE banded MXU dot --------------------
    a2 = jnp.concatenate([p1[:, kh:kh + OH2, :] for kh in range(K)], axis=-1)
    a2 = a2.reshape(tb * OH2, C2_KDIM)                              # (tb*8, 1920)
    y2 = jnp.dot(a2, c2w_ref[...], preferred_element_type=jnp.float32)
    y2 = _prelu(y2 + c2b_ref[...])                                  # (tb*8, 512)
    y2 = jnp.maximum(y2[:, :HALF2], y2[:, HALF2:])                  # pool along W
    y2 = y2.reshape(tb * PH2, 2 * HALF2)
    y2 = jnp.maximum(y2[:, :HALF2], y2[:, HALF2:])                  # (tb*4, 256)

    # ---- FC head (fc1 weight pre-permuted to absorb PyTorch's NCHW flatten) --
    h = y2.reshape(tb, FLAT).astype(jnp.bfloat16)
    h = _prelu(jnp.dot(h, w1_ref[...], preferred_element_type=jnp.float32)
               + b1_ref[...])
    h = _prelu(jnp.dot(h.astype(jnp.bfloat16), w2_ref[...],
                       preferred_element_type=jnp.float32) + b2_ref[...])
    emb = jnp.dot(h.astype(jnp.bfloat16), w3_ref[...],
                  preferred_element_type=jnp.float32) + b3_ref[...]
    o_ref[...] = emb                                                # (tb, 128) f32


# ------------------------------ forward -------------------------------------

def _round_up(x, m):
    return ((x + m - 1) // m) * m


@jax.jit
def triplet_net_forward(x1, x2, x3, params):
    """TripletNet.forward: (embedding_net_1(x1), embedding_net_2(x2), embedding_net_2(x3)).

    params: per-net-stacked prepared parameters from prepare_triplet_params().
    """
    n1, n2, n3 = x1.shape[0], x2.shape[0], x3.shape[0]
    n_max = max(n1, n2, n3)
    # Batch tile: up to 128 rows (good MXU M-fill, fits v7x's 64 MiB VMEM with
    # headroom); small batches pad to one multiple-of-8 block.
    tb = min(128, _round_up(n_max, 8))
    n_pad = _round_up(n_max, tb)

    def prep(x, n):
        x = x.reshape(n, IMG, IMG).astype(jnp.bfloat16)
        return jnp.pad(x, ((0, n_pad - n), (0, 0), (0, 0)))

    # streams: 0 -> net1(x1), 1 -> net2(x2), 2 -> net2(x3)
    xs = jnp.stack([prep(x1, n1), prep(x2, n2), prep(x3, n3)], axis=0)

    grid = (3, n_pad // tb)
    wmap = lambda s, i: (jnp.minimum(s, 1), 0, 0)    # stream -> net weight block

    emb = pl.pallas_call(
        triplet_kernel,
        out_shape=jax.ShapeDtypeStruct((3, n_pad, EMB_PAD), jnp.float32),
        grid=grid,
        in_specs=[
            pl.BlockSpec((None, tb, H1, W1), lambda s, i: (s, i, 0, 0)),
            pl.BlockSpec((None, C1_KPAD, COLS1), wmap),
            pl.BlockSpec((None, 1, COLS1), wmap),
            pl.BlockSpec((None, C2_KDIM, COLS2), wmap),
            pl.BlockSpec((None, 1, COLS2), wmap),
            pl.BlockSpec((None, FLAT, FC_DIM), wmap),
            pl.BlockSpec((None, 1, FC_DIM), wmap),
            pl.BlockSpec((None, FC_DIM, FC_DIM), wmap),
            pl.BlockSpec((None, 1, FC_DIM), wmap),
            pl.BlockSpec((None, FC_DIM, EMB_PAD), wmap),
            pl.BlockSpec((None, 1, EMB_PAD), wmap),
        ],
        out_specs=pl.BlockSpec((None, tb, EMB_PAD), lambda s, i: (s, i, 0)),
        compiler_params=pltpu.CompilerParams(
            dimension_semantics=("parallel", "parallel"),   # streams x batch blocks
            vmem_limit_bytes=48 * 1024 * 1024),
    )(xs, params["c1_bands"], params["c1_bias"], params["c2_bands"], params["c2_bias"],
      params["w1"], params["b1"], params["w2"], params["b2"],
      params["w3"], params["b3"])

    return emb[0, :n1, :EMB_DIM], emb[1, :n2, :EMB_DIM], emb[2, :n3, :EMB_DIM]


# ---------------------------- parameters ------------------------------------

def init_embedding_params(key):
    """Raw EmbeddingNet parameters in PyTorch layout."""
    ks = jax.random.split(key, 10)
    r = lambda k, s, sc: jax.random.normal(k, s, jnp.float32) * sc
    return {
        "conv1_w": r(ks[0], (C1_OUT, 1, K, K), 0.10), "conv1_b": r(ks[1], (C1_OUT,), 0.10),
        "conv2_w": r(ks[2], (C2_OUT, C2_IN, K, K), 0.05), "conv2_b": r(ks[3], (C2_OUT,), 0.05),
        "fc1_w": r(ks[4], (FC_DIM, FLAT), 0.03), "fc1_b": r(ks[5], (FC_DIM,), 0.03),
        "fc2_w": r(ks[6], (FC_DIM, FC_DIM), 0.05), "fc2_b": r(ks[7], (FC_DIM,), 0.05),
        "fc3_w": r(ks[8], (EMB_DIM, FC_DIM), 0.05), "fc3_b": r(ks[9], (EMB_DIM,), 0.05),
    }


def _conv_bands_2d(w_oihw, W, rows):
    """PyTorch (Cout,Cin,KH,KW) conv weight -> (rows, OW*Cout) banded matrix whose
    row index matches the in-kernel lane-concat order (kh, iw, ci) and whose
    output columns are ordered (ow%2, ow//2, co) so the fused 2x2 pool is a pair
    of lane-slices. Rows >= KH*W*Cin are zero padding (conv1: 140 -> 256)."""
    w = np.asarray(w_oihw, np.float32)
    Cout, Cin, KH, KW = w.shape
    OW = W - KW + 1
    OW2 = OW // 2
    band = np.zeros((rows, OW * Cout), np.float32)
    for kh in range(KH):
        wk = np.transpose(w[:, :, kh, :], (1, 2, 0))     # (Cin, KW, Cout)
        for ow in range(OW):
            col = (ow % 2) * OW2 * Cout + (ow // 2) * Cout
            for kw in range(KW):
                iw = ow + kw
                r0 = (kh * W + iw) * Cin
                band[r0:r0 + Cin, col:col + Cout] = wk[:, kw, :]
    return band


def _prepare_net(raw):
    """One-time layout work: conv bands, tiled biases (bias depends only on co,
    which stays the fastest-varying index under the parity ordering), transposed
    FC weights, NCHW-flatten permutation folded into fc1, fc3 padded to 128."""
    perm = np.zeros(FLAT, np.int64)
    for h in range(PH2):
        for w in range(PW2):
            for c in range(C2_OUT):
                perm[h * PW2 * C2_OUT + w * C2_OUT + c] = c * PH2 * PW2 + h * PW2 + w
    fc1_w = np.asarray(raw["fc1_w"], np.float32)
    w1 = fc1_w[:, perm].T                                # (1024, 256)
    w3 = np.zeros((FC_DIM, EMB_PAD), np.float32)
    w3[:, :EMB_DIM] = np.asarray(raw["fc3_w"], np.float32).T
    b3 = np.zeros((1, EMB_PAD), np.float32)
    b3[0, :EMB_DIM] = np.asarray(raw["fc3_b"], np.float32)
    return {
        "c1_bands": jnp.asarray(_conv_bands_2d(raw["conv1_w"], W1, C1_KPAD), jnp.bfloat16),
        "c1_bias": jnp.asarray(np.tile(np.asarray(raw["conv1_b"], np.float32), OW1)[None, :]),
        "c2_bands": jnp.asarray(_conv_bands_2d(raw["conv2_w"], W2, C2_KDIM), jnp.bfloat16),
        "c2_bias": jnp.asarray(np.tile(np.asarray(raw["conv2_b"], np.float32), OW2)[None, :]),
        "w1": jnp.asarray(w1, jnp.bfloat16),
        "b1": jnp.asarray(np.asarray(raw["fc1_b"], np.float32)[None, :]),
        "w2": jnp.asarray(np.asarray(raw["fc2_w"], np.float32).T, jnp.bfloat16),
        "b2": jnp.asarray(np.asarray(raw["fc2_b"], np.float32)[None, :]),
        "w3": jnp.asarray(w3, jnp.bfloat16),
        "b3": jnp.asarray(b3),
    }


def prepare_triplet_params(raw_net1, raw_net2):
    """Stack the two nets' prepared params with a leading net axis (size 2)."""
    p1, p2 = _prepare_net(raw_net1), _prepare_net(raw_net2)
    return {k: jnp.stack([p1[k], p2[k]], axis=0) for k in p1}


# ----------------------------- reference ------------------------------------

def _embed_reference(x_nchw, raw):
    """Pure-JAX f32 EmbeddingNet forward (PyTorch semantics) for validation."""
    y = jax.lax.conv_general_dilated(
        x_nchw.astype(jnp.float32), raw["conv1_w"], (1, 1), "VALID",
        dimension_numbers=("NCHW", "OIHW", "NCHW"))
    y = _prelu(y + raw["conv1_b"][None, :, None, None])
    y = jax.lax.reduce_window(y, -jnp.inf, jax.lax.max, (1, 1, 2, 2), (1, 1, 2, 2), "VALID")
    y = jax.lax.conv_general_dilated(
        y, raw["conv2_w"], (1, 1), "VALID",
        dimension_numbers=("NCHW", "OIHW", "NCHW"))
    y = _prelu(y + raw["conv2_b"][None, :, None, None])
    y = jax.lax.reduce_window(y, -jnp.inf, jax.lax.max, (1, 1, 2, 2), (1, 1, 2, 2), "VALID")
    h = y.reshape(y.shape[0], -1)                        # NCHW flatten, like PyTorch
    h = _prelu(h @ raw["fc1_w"].T + raw["fc1_b"])
    h = _prelu(h @ raw["fc2_w"].T + raw["fc2_b"])
    return h @ raw["fc3_w"].T + raw["fc3_b"]


if __name__ == "__main__":
    key = jax.random.PRNGKey(0)
    kp1, kp2, k1, k2, k3 = jax.random.split(key, 5)
    raw1 = init_embedding_params(kp1)
    raw2 = init_embedding_params(kp2)
    params = prepare_triplet_params(raw1, raw2)

    n = 2
    x1 = jax.random.normal(k1, (n, 1, IMG, IMG), jnp.float32)
    x2 = jax.random.normal(k2, (n, 1, IMG, IMG), jnp.float32)
    x3 = jax.random.normal(k3, (n, 1, IMG, IMG), jnp.float32)

    e1, e2, e3 = jax.block_until_ready(triplet_net_forward(x1, x2, x3, params))

    assert e1.shape == (n, EMB_DIM) and e2.shape == (n, EMB_DIM) and e3.shape == (n, EMB_DIM)
    assert all(bool(jnp.all(jnp.isfinite(e))) for e in (e1, e2, e3))

    # validate against a pure-JAX f32 reference (bf16 MXU operands/activations ->
    # loose tolerance; documented quantization relative to the f32 PyTorch ref)
    for got, ref in ((e1, _embed_reference(x1, raw1)),
                     (e2, _embed_reference(x2, raw2)),
                     (e3, _embed_reference(x3, raw2))):
        err = float(jnp.max(jnp.abs(got - ref)))
        assert err < 5e-2, f"max abs err {err}"

    print("KERNEL_OK")
</pallas_src>

<mosaic_0001>
module attributes {stable_mosaic.version = 11 : i64} {
  func.func @triplet_kernel(%arg0: i32, %arg1: i32, %arg2: memref<1x8x28x28xbf16, #tpu.memory_space<vmem>>, %arg3: memref<1x256x768xbf16, #tpu.memory_space<vmem>>, %arg4: memref<1x1x768xf32, #tpu.memory_space<vmem>>, %arg5: memref<1x1920x512xbf16, #tpu.memory_space<vmem>>, %arg6: memref<1x1x512xf32, #tpu.memory_space<vmem>>, %arg7: memref<1x1024x256xbf16, #tpu.memory_space<vmem>>, %arg8: memref<1x1x256xf32, #tpu.memory_space<vmem>>, %arg9: memref<1x256x256xbf16, #tpu.memory_space<vmem>>, %arg10: memref<1x1x256xf32, #tpu.memory_space<vmem>>, %arg11: memref<1x256x128xbf16, #tpu.memory_space<vmem>>, %arg12: memref<1x1x128xf32, #tpu.memory_space<vmem>>, %arg13: memref<1x8x128xf32, #tpu.memory_space<vmem>>) attributes {dimension_semantics = [#tpu.dimension_semantics<parallel>, #tpu.dimension_semantics<parallel>], iteration_bounds = array<i64: 3, 1>, scalar_prefetch = 0 : i64, scratch_operands = 0 : i64, tpu.core_type = #tpu.core_type<tc>, window_params = [{transform_indices = @transform_0, window_bounds = array<i64: 1, 8, 28, 28>}, {transform_indices = @transform_1, window_bounds = array<i64: 1, 256, 768>}, {transform_indices = @transform_2, window_bounds = array<i64: 1, 1, 768>}, {transform_indices = @transform_3, window_bounds = array<i64: 1, 1920, 512>}, {transform_indices = @transform_4, window_bounds = array<i64: 1, 1, 512>}, {transform_indices = @transform_5, window_bounds = array<i64: 1, 1024, 256>}, {transform_indices = @transform_6, window_bounds = array<i64: 1, 1, 256>}, {transform_indices = @transform_7, window_bounds = array<i64: 1, 256, 256>}, {transform_indices = @transform_8, window_bounds = array<i64: 1, 1, 256>}, {transform_indices = @transform_9, window_bounds = array<i64: 1, 256, 128>}, {transform_indices = @transform_10, window_bounds = array<i64: 1, 1, 128>}, {transform_indices = @transform_11, window_bounds = array<i64: 1, 8, 128>}]} {
    %c0 = arith.constant 0 : index
    %c0_0 = arith.constant 0 : index
    %c0_1 = arith.constant 0 : index
    %c0_2 = arith.constant 0 : index
    %0 = vector.load %arg2[%c0, %c0_0, %c0_1, %c0_2] : memref<1x8x28x28xbf16, #tpu.memory_space<vmem>>, vector<1x8x28x28xbf16>
    %1 = vector.shape_cast %0 : vector<1x8x28x28xbf16> to vector<8x28x28xbf16>
    %2 = vector.extract_strided_slice %1 {offsets = [0, 0, 0], sizes = [8, 24, 28], strides = [1, 1, 1]} : vector<8x28x28xbf16> to vector<8x24x28xbf16>
    %3 = vector.extract_strided_slice %1 {offsets = [0, 1, 0], sizes = [8, 24, 28], strides = [1, 1, 1]} : vector<8x28x28xbf16> to vector<8x24x28xbf16>
    %4 = vector.extract_strided_slice %1 {offsets = [0, 2, 0], sizes = [8, 24, 28], strides = [1, 1, 1]} : vector<8x28x28xbf16> to vector<8x24x28xbf16>
    %5 = vector.extract_strided_slice %1 {offsets = [0, 3, 0], sizes = [8, 24, 28], strides = [1, 1, 1]} : vector<8x28x28xbf16> to vector<8x24x28xbf16>
    %6 = vector.extract_strided_slice %1 {offsets = [0, 4, 0], sizes = [8, 24, 28], strides = [1, 1, 1]} : vector<8x28x28xbf16> to vector<8x24x28xbf16>
    %cst = arith.constant 0.000000e+00 : bf16
    %7 = vector.broadcast %cst : bf16 to vector<8x24x116xbf16>
    %8 = tpu.concatenate %2, %3, %4, %5, %6, %7 in 2 : vector<8x24x28xbf16>, vector<8x24x28xbf16>, vector<8x24x28xbf16>, vector<8x24x28xbf16>, vector<8x24x28xbf16>, vector<8x24x116xbf16> -> vector<8x24x256xbf16>
    %9 = vector.shape_cast %8 : vector<8x24x256xbf16> to vector<192x256xbf16>
    %c0_3 = arith.constant 0 : index
    %c0_4 = arith.constant 0 : index
    %c0_5 = arith.constant 0 : index
    %10 = vector.load %arg3[%c0_3, %c0_4, %c0_5] : memref<1x256x768xbf16, #tpu.memory_space<vmem>>, vector<1x256x768xbf16>
    %11 = vector.shape_cast %10 : vector<1x256x768xbf16> to vector<256x768xbf16>
    %cst_6 = arith.constant dense<0.000000e+00> : vector<192x768xf32>
    %12 = tpu.matmul %9, %11, %cst_6 {dimension_numbers = #tpu.dot_dimension_numbers<[1], [0], [0], [1], [0, 0, 1, 1], [], []>} : vector<192x256xbf16>, vector<256x768xbf16>, vector<192x768xf32> -> vector<192x768xf32>
    %c0_7 = arith.constant 0 : index
    %c0_8 = arith.constant 0 : index
    %c0_9 = arith.constant 0 : index
    %13 = vector.load %arg4[%c0_7, %c0_8, %c0_9] : memref<1x1x768xf32, #tpu.memory_space<vmem>>, vector<1x1x768xf32>
    %14 = vector.shape_cast %13 : vector<1x1x768xf32> to vector<1x768xf32>
    %15 = vector.broadcast %14 : vector<1x768xf32> to vector<192x768xf32>
    %16 = arith.addf %12, %15 : vector<192x768xf32>
    %cst_10 = arith.constant 0.000000e+00 : f32
    %17 = vector.broadcast %cst_10 : f32 to vector<192x768xf32>
    %18 = arith.cmpf ogt, %16, %17 : vector<192x768xf32>
    %cst_11 = arith.constant 2.500000e-01 : f32
    %19 = vector.broadcast %cst_11 : f32 to vector<192x768xf32>
    %20 = arith.mulf %19, %16 : vector<192x768xf32>
    %21 = arith.select %18, %16, %20 : vector<192x768xi1>, vector<192x768xf32>
    %22 = vector.extract_strided_slice %21 {offsets = [0, 0], sizes = [192, 384], strides = [1, 1]} : vector<192x768xf32> to vector<192x384xf32>
    %23 = vector.extract_strided_slice %21 {offsets = [0, 384], sizes = [192, 384], strides = [1, 1]} : vector<192x768xf32> to vector<192x384xf32>
    %24 = arith.maximumf %22, %23 : vector<192x384xf32>
    %25 = vector.shape_cast %24 : vector<192x384xf32> to vector<96x768xf32>
    %26 = vector.extract_strided_slice %25 {offsets = [0, 0], sizes = [96, 384], strides = [1, 1]} : vector<96x768xf32> to vector<96x384xf32>
    %27 = vector.extract_strided_slice %25 {offsets = [0, 384], sizes = [96, 384], strides = [1, 1]} : vector<96x768xf32> to vector<96x384xf32>
    %28 = arith.maximumf %26, %27 : vector<96x384xf32>
    %29 = arith.truncf %28 : vector<96x384xf32> to vector<96x384xbf16>
    %30 = vector.shape_cast %29 : vector<96x384xbf16> to vector<8x12x384xbf16>
    %31 = vector.extract_strided_slice %30 {offsets = [0, 0, 0], sizes = [8, 8, 384], strides = [1, 1, 1]} : vector<8x12x384xbf16> to vector<8x8x384xbf16>
    %32 = vector.extract_strided_slice %30 {offsets = [0, 1, 0], sizes = [8, 8, 384], strides = [1, 1, 1]} : vector<8x12x384xbf16> to vector<8x8x384xbf16>
    %33 = vector.extract_strided_slice %30 {offsets = [0, 2, 0], sizes = [8, 8, 384], strides = [1, 1, 1]} : vector<8x12x384xbf16> to vector<8x8x384xbf16>
    %34 = vector.extract_strided_slice %30 {offsets = [0, 3, 0], sizes = [8, 8, 384], strides = [1, 1, 1]} : vector<8x12x384xbf16> to vector<8x8x384xbf16>
    %35 = vector.extract_strided_slice %30 {offsets = [0, 4, 0], sizes = [8, 8, 384], strides = [1, 1, 1]} : vector<8x12x384xbf16> to vector<8x8x384xbf16>
    %36 = tpu.concatenate %31, %32, %33, %34, %35 in 2 : vector<8x8x384xbf16>, vector<8x8x384xbf16>, vector<8x8x384xbf16>, vector<8x8x384xbf16>, vector<8x8x384xbf16> -> vector<8x8x1920xbf16>
    %37 = vector.shape_cast %36 : vector<8x8x1920xbf16> to vector<64x1920xbf16>
    %c0_12 = arith.constant 0 : index
    %c0_13 = arith.constant 0 : index
    %c0_14 = arith.constant 0 : index
    %38 = vector.load %arg5[%c0_12, %c0_13, %c0_14] : memref<1x1920x512xbf16, #tpu.memory_space<vmem>>, vector<1x1920x512xbf16>
    %39 = vector.shape_cast %38 : vector<1x1920x512xbf16> to vector<1920x512xbf16>
    %cst_15 = arith.constant dense<0.000000e+00> : vector<64x512xf32>
    %40 = tpu.matmul %37, %39, %cst_15 {dimension_numbers = #tpu.dot_dimension_numbers<[1], [0], [0], [1], [0, 0, 1, 1], [], []>} : vector<64x1920xbf16>, vector<1920x512xbf16>, vector<64x512xf32> -> vector<64x512xf32>
    %c0_16 = arith.constant 0 : index
    %c0_17 = arith.constant 0 : index
    %c0_18 = arith.constant 0 : index
    %41 = vector.load %arg6[%c0_16, %c0_17, %c0_18] : memref<1x1x512xf32, #tpu.memory_space<vmem>>, vector<1x1x512xf32>
    %42 = vector.shape_cast %41 : vector<1x1x512xf32> to vector<1x512xf32>
    %43 = vector.broadcast %42 : vector<1x512xf32> to vector<64x512xf32>
    %44 = arith.addf %40, %43 : vector<64x512xf32>
    %cst_19 = arith.constant 0.000000e+00 : f32
    %45 = vector.broadcast %cst_19 : f32 to vector<64x512xf32>
    %46 = arith.cmpf ogt, %44, %45 : vector<64x512xf32>
    %cst_20 = arith.constant 2.500000e-01 : f32
    %47 = vector.broadcast %cst_20 : f32 to vector<64x512xf32>
    %48 = arith.mulf %47, %44 : vector<64x512xf32>
    %49 = arith.select %46, %44, %48 : vector<64x512xi1>, vector<64x512xf32>
    %50 = vector.extract_strided_slice %49 {offsets = [0, 0], sizes = [64, 256], strides = [1, 1]} : vector<64x512xf32> to vector<64x256xf32>
    %51 = vector.extract_strided_slice %49 {offsets = [0, 256], sizes = [64, 256], strides = [1, 1]} : vector<64x512xf32> to vector<64x256xf32>
    %52 = arith.maximumf %50, %51 : vector<64x256xf32>
    %53 = vector.shape_cast %52 : vector<64x256xf32> to vector<32x512xf32>
    %54 = vector.extract_strided_slice %53 {offsets = [0, 0], sizes = [32, 256], strides = [1, 1]} : vector<32x512xf32> to vector<32x256xf32>
    %55 = vector.extract_strided_slice %53 {offsets = [0, 256], sizes = [32, 256], strides = [1, 1]} : vector<32x512xf32> to vector<32x256xf32>
    %56 = arith.maximumf %54, %55 : vector<32x256xf32>
    %57 = vector.shape_cast %56 : vector<32x256xf32> to vector<8x1024xf32>
    %58 = arith.truncf %57 : vector<8x1024xf32> to vector<8x1024xbf16>
    %c0_21 = arith.constant 0 : index
    %c0_22 = arith.constant 0 : index
    %c0_23 = arith.constant 0 : index
    %59 = vector.load %arg7[%c0_21, %c0_22, %c0_23] : memref<1x1024x256xbf16, #tpu.memory_space<vmem>>, vector<1x1024x256xbf16>
    %60 = vector.shape_cast %59 : vector<1x1024x256xbf16> to vector<1024x256xbf16>
    %cst_24 = arith.constant dense<0.000000e+00> : vector<8x256xf32>
    %61 = tpu.matmul %58, %60, %cst_24 {dimension_numbers = #tpu.dot_dimension_numbers<[1], [0], [0], [1], [0, 0, 1, 1], [], []>} : vector<8x1024xbf16>, vector<1024x256xbf16>, vector<8x256xf32> -> vector<8x256xf32>
    %c0_25 = arith.constant 0 : index
    %c0_26 = arith.constant 0 : index
    %c0_27 = arith.constant 0 : index
    %62 = vector.load %arg8[%c0_25, %c0_26, %c0_27] : memref<1x1x256xf32, #tpu.memory_space<vmem>>, vector<1x1x256xf32>
    %63 = vector.shape_cast %62 : vector<1x1x256xf32> to vector<1x256xf32>
    %64 = vector.broadcast %63 : vector<1x256xf32> to vector<8x256xf32>
    %65 = arith.addf %61, %64 : vector<8x256xf32>
    %cst_28 = arith.constant 0.000000e+00 : f32
    %66 = vector.broadcast %cst_28 : f32 to vector<8x256xf32>
    %67 = arith.cmpf ogt, %65, %66 : vector<8x256xf32>
    %cst_29 = arith.constant 2.500000e-01 : f32
    %68 = vector.broadcast %cst_29 : f32 to vector<8x256xf32>
    %69 = arith.mulf %68, %65 : vector<8x256xf32>
    %70 = arith.select %67, %65, %69 : vector<8x256xi1>, vector<8x256xf32>
    %71 = arith.truncf %70 : vector<8x256xf32> to vector<8x256xbf16>
    %c0_30 = arith.constant 0 : index
    %c0_31 = arith.constant 0 : index
    %c0_32 = arith.constant 0 : index
    %72 = vector.load %arg9[%c0_30, %c0_31, %c0_32] : memref<1x256x256xbf16, #tpu.memory_space<vmem>>, vector<1x256x256xbf16>
    %73 = vector.shape_cast %72 : vector<1x256x256xbf16> to vector<256x256xbf16>
    %cst_33 = arith.constant dense<0.000000e+00> : vector<8x256xf32>
    %74 = tpu.matmul %71, %73, %cst_33 {dimension_numbers = #tpu.dot_dimension_numbers<[1], [0], [0], [1], [0, 0, 1, 1], [], []>} : vector<8x256xbf16>, vector<256x256xbf16>, vector<8x256xf32> -> vector<8x256xf32>
    %c0_34 = arith.constant 0 : index
    %c0_35 = arith.constant 0 : index
    %c0_36 = arith.constant 0 : index
    %75 = vector.load %arg10[%c0_34, %c0_35, %c0_36] : memref<1x1x256xf32, #tpu.memory_space<vmem>>, vector<1x1x256xf32>
    %76 = vector.shape_cast %75 : vector<1x1x256xf32> to vector<1x256xf32>
    %77 = vector.broadcast %76 : vector<1x256xf32> to vector<8x256xf32>
    %78 = arith.addf %74, %77 : vector<8x256xf32>
    %cst_37 = arith.constant 0.000000e+00 : f32
    %79 = vector.broadcast %cst_37 : f32 to vector<8x256xf32>
    %80 = arith.cmpf ogt, %78, %79 : vector<8x256xf32>
    %cst_38 = arith.constant 2.500000e-01 : f32
    %81 = vector.broadcast %cst_38 : f32 to vector<8x256xf32>
    %82 = arith.mulf %81, %78 : vector<8x256xf32>
    %83 = arith.select %80, %78, %82 : vector<8x256xi1>, vector<8x256xf32>
    %84 = arith.truncf %83 : vector<8x256xf32> to vector<8x256xbf16>
    %c0_39 = arith.constant 0 : index
    %c0_40 = arith.constant 0 : index
    %c0_41 = arith.constant 0 : index
    %85 = vector.load %arg11[%c0_39, %c0_40, %c0_41] : memref<1x256x128xbf16, #tpu.memory_space<vmem>>, vector<1x256x128xbf16>
    %86 = vector.shape_cast %85 : vector<1x256x128xbf16> to vector<256x128xbf16>
    %cst_42 = arith.constant dense<0.000000e+00> : vector<8x128xf32>
    %87 = tpu.matmul %84, %86, %cst_42 {dimension_numbers = #tpu.dot_dimension_numbers<[1], [0], [0], [1], [0, 0, 1, 1], [], []>} : vector<8x256xbf16>, vector<256x128xbf16>, vector<8x128xf32> -> vector<8x128xf32>
    %c0_43 = arith.constant 0 : index
    %c0_44 = arith.constant 0 : index
    %c0_45 = arith.constant 0 : index
    %88 = vector.load %arg12[%c0_43, %c0_44, %c0_45] : memref<1x1x128xf32, #tpu.memory_space<vmem>>, vector<1x1x128xf32>
    %89 = vector.shape_cast %88 : vector<1x1x128xf32> to vector<1x128xf32>
    %90 = vector.broadcast %89 : vector<1x128xf32> to vector<8x128xf32>
    %91 = arith.addf %87, %90 : vector<8x128xf32>
    %c0_46 = arith.constant 0 : index
    %c0_47 = arith.constant 0 : index
    %c0_48 = arith.constant 0 : index
    %92 = vector.load %arg13[%c0_46, %c0_47, %c0_48] : memref<1x8x128xf32, #tpu.memory_space<vmem>>, vector<1x8x128xf32>
    %93 = vector.shape_cast %92 : vector<1x8x128xf32> to vector<8x128xf32>
    %94 = vector.shape_cast %91 : vector<8x128xf32> to vector<1x8x128xf32>
    tpu.vector_store %arg13[%c0_46, %c0_47, %c0_48], %94 {strides = array<i32>} : memref<1x8x128xf32, #tpu.memory_space<vmem>>, vector<1x8x128xf32>,
    return
  }
  func.func @transform_0(%arg0: i32, %arg1: i32) -> (i32, i32, i32, i32) {
    %c0_i32 = arith.constant 0 : i32
    %c0_i32_0 = arith.constant 0 : i32
    %c0_i32_1 = arith.constant 0 : i32
    return %arg0, %arg1, %c0_i32, %c0_i32_0 : i32, i32, i32, i32
  }
  func.func @transform_1(%arg0: i32, %arg1: i32) -> (i32, i32, i32) {
    %c1_i32 = arith.constant 1 : i32
    %0 = arith.minsi %arg0, %c1_i32 : i32
    %c0_i32 = arith.constant 0 : i32
    %c0_i32_0 = arith.constant 0 : i32
    %c0_i32_1 = arith.constant 0 : i32
    return %0, %c0_i32, %c0_i32_0 : i32, i32, i32
  }
  func.func @transform_2(%arg0: i32, %arg1: i32) -> (i32, i32, i32) {
    %c1_i32 = arith.constant 1 : i32
    %0 = arith.minsi %arg0, %c1_i32 : i32
    %c0_i32 = arith.constant 0 : i32
    %c0_i32_0 = arith.constant 0 : i32
    %c0_i32_1 = arith.constant 0 : i32
    return %0, %c0_i32, %c0_i32_0 : i32, i32, i32
  }
  func.func @transform_3(%arg0: i32, %arg1: i32) -> (i32, i32, i32) {
    %c1_i32 = arith.constant 1 : i32
    %0 = arith.minsi %arg0, %c1_i32 : i32
    %c0_i32 = arith.constant 0 : i32
    %c0_i32_0 = arith.constant 0 : i32
    %c0_i32_1 = arith.constant 0 : i32
    return %0, %c0_i32, %c0_i32_0 : i32, i32, i32
  }
  func.func @transform_4(%arg0: i32, %arg1: i32) -> (i32, i32, i32) {
    %c1_i32 = arith.constant 1 : i32
    %0 = arith.minsi %arg0, %c1_i32 : i32
    %c0_i32 = arith.constant 0 : i32
    %c0_i32_0 = arith.constant 0 : i32
    %c0_i32_1 = arith.constant 0 : i32
    return %0, %c0_i32, %c0_i32_0 : i32, i32, i32
  }
  func.func @transform_5(%arg0: i32, %arg1: i32) -> (i32, i32, i32) {
    %c1_i32 = arith.constant 1 : i32
    %0 = arith.minsi %arg0, %c1_i32 : i32
    %c0_i32 = arith.constant 0 : i32
    %c0_i32_0 = arith.constant 0 : i32
    %c0_i32_1 = arith.constant 0 : i32
    return %0, %c0_i32, %c0_i32_0 : i32, i32, i32
  }
  func.func @transform_6(%arg0: i32, %arg1: i32) -> (i32, i32, i32) {
    %c1_i32 = arith.constant 1 : i32
    %0 = arith.minsi %arg0, %c1_i32 : i32
    %c0_i32 = arith.constant 0 : i32
    %c0_i32_0 = arith.constant 0 : i32
    %c0_i32_1 = arith.constant 0 : i32
    return %0, %c0_i32, %c0_i32_0 : i32, i32, i32
  }
  func.func @transform_7(%arg0: i32, %arg1: i32) -> (i32, i32, i32) {
    %c1_i32 = arith.constant 1 : i32
    %0 = arith.minsi %arg0, %c1_i32 : i32
    %c0_i32 = arith.constant 0 : i32
    %c0_i32_0 = arith.constant 0 : i32
    %c0_i32_1 = arith.constant 0 : i32
    return %0, %c0_i32, %c0_i32_0 : i32, i32, i32
  }
  func.func @transform_8(%arg0: i32, %arg1: i32) -> (i32, i32, i32) {
    %c1_i32 = arith.constant 1 : i32
    %0 = arith.minsi %arg0, %c1_i32 : i32
    %c0_i32 = arith.constant 0 : i32
    %c0_i32_0 = arith.constant 0 : i32
    %c0_i32_1 = arith.constant 0 : i32
    return %0, %c0_i32, %c0_i32_0 : i32, i32, i32
  }
  func.func @transform_9(%arg0: i32, %arg1: i32) -> (i32, i32, i32) {
    %c1_i32 = arith.constant 1 : i32
    %0 = arith.minsi %arg0, %c1_i32 : i32
    %c0_i32 = arith.constant 0 : i32
    %c0_i32_0 = arith.constant 0 : i32
    %c0_i32_1 = arith.constant 0 : i32
    return %0, %c0_i32, %c0_i32_0 : i32, i32, i32
  }
  func.func @transform_10(%arg0: i32, %arg1: i32) -> (i32, i32, i32) {
    %c1_i32 = arith.constant 1 : i32
    %0 = arith.minsi %arg0, %c1_i32 : i32
    %c0_i32 = arith.constant 0 : i32
    %c0_i32_0 = arith.constant 0 : i32
    %c0_i32_1 = arith.constant 0 : i32
    return %0, %c0_i32, %c0_i32_0 : i32, i32, i32
  }
  func.func @transform_11(%arg0: i32, %arg1: i32) -> (i32, i32, i32) {
    %c0_i32 = arith.constant 0 : i32
    %c0_i32_0 = arith.constant 0 : i32
    return %arg0, %arg1, %c0_i32 : i32, i32, i32
  }
}

</mosaic_0001>

<bundles_post_ra>
// kernel: triplet_net_forward.1
= control target key start
LH: loop header
LB: loop body
LE: loop exit
PB: predicated region body
PF: predicated region fallthrough
CT: control target
= control target key end

     0   :  { %s19421_s0 = inlined_call_operand.vmem [shape: bf16[3,8,28,28], index: 0, kind: input, shape index: {}]   ;;  %s19422_s1 = inlined_call_operand.hbm [shape: bf16[2,256,768], index: 1, kind: input, shape index: {}]   ;;  %s19423_s2 = inlined_call_operand.hbm [shape: f32[2,1,768], index: 2, kind: input, shape index: {}]   ;;  %s19424_s3 = inlined_call_operand.hbm [shape: bf16[2,1920,512], index: 3, kind: input, shape index: {}]   ;;  %s19425_s4 = inlined_call_operand.hbm [shape: f32[2,1,512], index: 4, kind: input, shape index: {}]   ;;  %s19426_s5 = inlined_call_operand.hbm [shape: bf16[2,1024,256], index: 5, kind: input, shape index: {}]   ;;  %s19427_s6 = inlined_call_operand.hbm [shape: f32[2,1,256], index: 6, kind: input, shape index: {}]   ;;  %s19428_s7 = inlined_call_operand.hbm [shape: bf16[2,256,256], index: 7, kind: input, shape index: {}]   ;;  %s19429_s8 = inlined_call_operand.hbm [shape: f32[2,1,256], index: 8, kind: input, shape index: {}]   ;;  %s19430_s9 = inlined_call_operand.hbm [shape: bf16[2,256,128], index: 9, kind: input, shape index: {}]   ;;  %s19431_s10 = inlined_call_operand.hbm [shape: f32[2,1,128], index: 10, kind: input, shape index: {}]   ;;  %s19432_s11 = inlined_call_operand.vmem [shape: f32[3,8,128], index: 11, kind: output, shape index: {}]  }
   0x1   :  { %19561 = sst [smem:[#allocation98_spill]] %s19421_s0 }
   0x2   :  { %19562 = sst [smem:[#allocation99_spill]] %s19422_s1 }
   0x3   :  { %19563 = sst [smem:[#allocation100_spill]] %s19423_s2 }
   0x4   :  { %19564 = sst [smem:[#allocation101_spill]] %s19425_s4 }
   0x5   :  { %19565 = sst [smem:[#allocation102_spill]] %s19432_s11 }
   0x6   :  { %16 = vsyncpa [#allocation3], 0 }
   0x7   :  { %18 = vsyncpa [#allocation3 + $0x1], 0 }
   0x8   :  { %19 = vsyncpa [#allocation5], 0 }
   0x9   :  { %21 = vsyncpa [#allocation5 + $0x1], 0 }
   0xa   :  { %22 = vsyncpa [#allocation8], 0 }
   0xb   :  { %24 = vsyncpa [#allocation8 + $0x1], 0 }
   0xc   :  { %25 = vsyncpa [#allocation11], 0 }
   0xd   :  { %27 = vsyncpa [#allocation11 + $0x1], 0 }
   0xe   :  { %28 = vsyncpa [#allocation14], 0 }
   0xf   :  { %30 = vsyncpa [#allocation14 + $0x1], 0 }
  0x10   :  { %31 = vsyncpa [#allocation17], 0 }
  0x11   :  { %33 = vsyncpa [#allocation17 + $0x1], 0  ;;  %s14661_s17 = smov 0   ;;  %s14663_s18 = smov 0  }
  0x12   :  { %s14665_s19 = smov 0   ;;  %s14667_s20 = smov 0  }
  0x13   :  { %s14669_s21 = smov 0   ;;  %s14671_s22 = smov 0  }
  0x14 LB: > { %19566 = sst [smem:[#allocation24_spill]] %s14561_s19  ;;  %s19433_s23 = sadd.s32 4294967295, %s14573_s22   ;;  %s14573_s22 = sphi %s14671_s22, %s39_s22   ;;  %s14569_s21 = sphi %s14669_s21, %s19904_s21   ;;  %s14565_s20 = sphi %s14667_s20, %s19903_s20   ;;  %s14561_s19 = sphi %s14665_s19, %s19902_s19   ;;  %s14557_s18 = sphi %s14663_s18, %s19906_s18   ;;  %s14553_s17 = sphi %s14661_s17, %s19905_s17  }
  0x15   : > { %19567 = sst [smem:[#allocation25_spill]] %s14569_s21  ;;  %s51_s24 = sadd.s32 1, %s14569_s21 }
  0x16   : > { %p53_p0 = scmp.ge.s32.totalorder %s51_s24, 3  ;;  %p83_p1 = scmp.lt.s32.totalorder %s14569_s21, 1 }
  0x17   : > { %s90_s25 = sadd.s32 1, %s14561_s19  ;;  %p97_p2 = scmp.ne.s32.totalorder %s14561_s19, %s14557_s18 }
  0x18   : > { %s19908_s24 = smov (%p53_p0, %s51_s24), 0  ;;  %p98_p4 = scmp.eq.s32.totalorder %s14573_s22, 0 }
  0x19   : > { %19568 = sst [smem:[#allocation26_spill]] %s19908_s24  ;;  %p85_p3 = scmp.lt.s32.totalorder %s19908_s24, 1 }
  0x1a   : > { %s14698_s26 = scalar_select %p83_p1, %s14569_s21, 1 }
  0x1b   : > { %p103_p5 = scmp.ne.s32.totalorder %s14557_s18, %s14553_s17  ;;  %p104_p6 = scmp.eq.s32.totalorder %s19433_s23, 0 }
  0x1c   : > { %s86_s27 = scalar_select %p85_p3, %s19908_s24, 1 }
  0x1d   : > { %p99_p7 = por %p98_p4, %p97_p2  ;;  %p14706_p8 = por %p104_p6, %p103_p5 }
  0x1e   : > { %s87_s29 = ssub.s32 %s14698_s26, %s86_s27  ;;  %p12977_p10 = scmp.lt.s32.totalorder %s14573_s22, 3 }
  0x1f   : > { %s19569_s28 = scalar_select %p14706_p8, 1, 0 }
  0x20   : > { %p88_p9 = scmp.eq.s32.totalorder %s87_s29, 0  ;;  %s14713_s30 = sand.u32 1, %s14561_s19  }
  0x21   : > { %s14716_s12 = sand.u32 1, %s14573_s22   ;;  %p14721_p11 = pnand %p12977_p10, %p99_p7 }
  0x22   : > { %s14719_s13 = scalar_select %p88_p9, %s14561_s19, %s90_s25  }
  0x23   : > { %s19571_s14 = scalar_select %p14721_p11, 1, 0 }
  0x24   : > { %19570 = sst [smem:[#allocation27_spill]] %s14719_s13  ;;  %s12919_s15 = smul.u32 6, %s14713_s30 }
  0x25   : > { %p11699_p12 = scmp.ge.s32.totalorder %s14573_s22, 1  ;;  %s12920_s16 = smul.u32 96, %s14698_s26 }
  0x26   : > { %p655_p13 = scmp.lt.s32.totalorder %s14573_s22, 4  ;;  %s19572_s2 = sld [smem:[#allocation100_spill]] }
  0x27   : > { %s466_s25 = scalar_lea.vmem [#allocation4], %s12919_s15  ;;  %p14745_p2 = pneg %p14721_p11 }
  0x28   : > { %s476_s23 = sshll.u32 %s466_s25, 4  ;;  %p14736_p0 = pnand %p11699_p12, %p655_p13  ;;  %s14734_s23 = int_to_ptr.vmem [resolvable:$true] %s476_s23 }
  0x2a   : > { %s19573_s24 = scalar_select %p14736_p0, 1, 0 }
  0x2c   : > { %s14732_s29 = scalar_lea.hbm %s19572_s2, %s12920_s16  ;;  %s14208_s27 = scalar_lea.hbm %s19572_s2, 192 }
  0x2d   : > { %s14203_s13 = scalar_lea.hbm %s14732_s29, 96  ;;  %p14209_p5 = scmp.lt.u32.totalorder %s14732_s29, %s19572_s2 }
  0x2e   : > { %p14204_p1 = scmp.ne.s32.totalorder %s14732_s29, %s14203_s13  ;;  %p14210_p6 = scmp.lt.u32.totalorder %s14208_s27, %s14203_s13 }
  0x2f   : > { %p14212_p9 = scmp.lt.u32.totalorder %s14203_s13, %s14732_s29 }
  0x30   : > { %p14206_p3 = pnand %p14745_p2, %p14204_p1  ;;  %p14211_p7 = por %p14210_p6, %p14209_p5 }
  0x32   : > { %p14207_p4 = pneg %p14206_p3  ;;  %p14213_p10 = por %p14212_p9, %p14211_p7 }
  0x34   : > { %p14214_p12 = pnand %p14213_p10, %p14207_p4 }
  0x36   : > { %14217 = shalt.err (!%p14214_p12)
}
  0x37   : > { %s14218_s21 = scalar_lea.vmem %s14734_s23, 96  ;;  %s14575_s15 = smov [#allocation4]  }
  0x38   : > { %p14219_p13 = scmp.ne.s32.totalorder %s14734_s23, %s14218_s21  ;;  %s14223_s16 = sshll.u32 %s14575_s15, 4  ;;  %s14224_s16 = int_to_ptr.vmem [resolvable:$false] %s14223_s16 }
  0x39   : > { %s14225_s19 = scalar_lea.vmem %s14224_s16, 192  ;;  %p14226_p8 = scmp.lt.s32.totalorder %s14734_s23, %s14224_s16 }
  0x3a   : > { %p14221_p1 = pnand %p14219_p13, %p14745_p2  ;;  %p14227_p0 = scmp.lt.s32.totalorder %s14225_s19, %s14218_s21 }
  0x3c   : > { %p14222_p3 = pneg %p14221_p1  ;;  %p14228_p5 = por %p14227_p0, %p14226_p8 }
  0x3e   : > { %p14229_p6 = pnand %p14228_p5, %p14222_p3 }
  0x40   : > { %14232 = shalt.err (!%p14229_p6)
}
  0x41   : > { %s19575_s13 = scalar_lea.sflag [#allocation5], %s14716_s12  ;;  %s11680_s27 = sshll.u32 %s14713_s30, 2 }
  0x42   : > { %12952 = dma.hbm_to_vmem [thread:$0]  (!%p14721_p11), %s14732_s29, 96, %s14734_s23, %s19575_s13  }
  0x43   : > { %s12610_s25 = sshll.u32 %s14698_s26, 6  ;;  %s19576_s4 = sld [smem:[#allocation101_spill]] }
  0x44   : > { %s510_s16 = scalar_lea.vmem [#allocation7], %s11680_s27  ;;  %s19440_s11 = scalar_lea.sflag [#allocation8], %s14716_s12 }
  0x45   : > { %s520_s19 = sshll.u32 %s510_s16, 4  ;;  %s521_s19 = int_to_ptr.vmem [resolvable:$true] %s520_s19 }
  0x49   : > { %s14775_s21 = scalar_lea.hbm %s19576_s4, %s12610_s25  ;;  %s14238_s13 = scalar_lea.hbm %s19576_s4, 128 }
  0x4a   : > { %s14233_s0 = scalar_lea.hbm %s14775_s21, 64  ;;  %p14239_p7 = scmp.lt.u32.totalorder %s14775_s21, %s19576_s4 }
  0x4b   : > { %p14234_p8 = scmp.ne.s32.totalorder %s14775_s21, %s14233_s0  ;;  %p14240_p9 = scmp.lt.u32.totalorder %s14238_s13, %s14233_s0 }
  0x4c   : > { %p14242_p12 = scmp.lt.u32.totalorder %s14233_s0, %s14775_s21 }
  0x4d   : > { %p14236_p0 = pnand %p14234_p8, %p14745_p2  ;;  %p14241_p10 = por %p14240_p9, %p14239_p7 }
  0x4f   : > { %p14237_p4 = pneg %p14236_p0  ;;  %p14243_p13 = por %p14242_p12, %p14241_p10 }
  0x51   : > { %p14244_p1 = pnand %p14243_p13, %p14237_p4 }
  0x53   : > { %14247 = shalt.err (!%p14244_p1)
}
  0x54   : > { %s14248_s27 = scalar_lea.vmem %s521_s19, 64  ;;  %s14576_s15 = smov [#allocation7]  }
  0x55   : > { %p14249_p3 = scmp.ne.s32.totalorder %s521_s19, %s14248_s27  ;;  %s14253_s16 = sshll.u32 %s14576_s15, 4  ;;  %s14254_s16 = int_to_ptr.vmem [resolvable:$false] %s14253_s16 }
  0x56   : > { %s14255_s23 = scalar_lea.vmem %s14254_s16, 128  ;;  %p14256_p8 = scmp.lt.s32.totalorder %s521_s19, %s14254_s16 }
  0x57   : > { %p14251_p5 = pnand %p14249_p3, %p14745_p2  ;;  %p14257_p0 = scmp.lt.s32.totalorder %s14255_s23, %s14248_s27 }
  0x59   : > { %p14252_p6 = pneg %p14251_p5  ;;  %p14258_p11 = por %p14257_p0, %p14256_p8 }
  0x5b   : > { %p14259_p7 = pnand %p14258_p11, %p14252_p6 }
  0x5d   : > { %14262 = shalt.err (!%p14259_p7)
}
  0x5e   : > { %p19577_p9 = scmp.ne.s32.totalorder %s19571_s14, 0  ;;  %s19441_s0 = sshll.u32 %s14713_s30, 1 }
  0x5f   : > { %s19442_s29 = sshll.u32 %s14698_s26, 5  ;;  %s554_s27 = scalar_lea.vmem [#allocation10], %s19441_s0 }
  0x60   : > { %12958 = dma.hbm_to_vmem [thread:$0]  (!%p19577_p9), %s14775_s21, 64, %s521_s19, %s19440_s11  }
  0x61   : > { %s14804_s25 = scalar_lea.hbm %s19427_s6, %s19442_s29  ;;  %s564_s15 = sshll.u32 %s554_s27, 4  ;;  %s565_s15 = int_to_ptr.vmem [resolvable:$true] %s564_s15 }
  0x62   : > { %s19443_s16 = scalar_lea.sflag [#allocation11], %s14716_s12  ;;  %s14263_s23 = scalar_lea.hbm %s14804_s25, 32 }
  0x63   : > { %p14264_p11 = scmp.ne.s32.totalorder %s14804_s25, %s14263_s23  ;;  %s14268_s13 = scalar_lea.hbm %s19427_s6, 64 }
  0x64   : > { %p14269_p12 = scmp.lt.u32.totalorder %s14804_s25, %s19427_s6  ;;  %p14270_p13 = scmp.lt.u32.totalorder %s14268_s13, %s14263_s23 }
  0x65   : > { %p14266_p4 = pnand %p14264_p11, %p14745_p2  ;;  %p14272_p3 = scmp.lt.u32.totalorder %s14263_s23, %s14804_s25 }
  0x66   : > { %p14271_p1 = por %p14270_p13, %p14269_p12 }
  0x67   : > { %p14267_p10 = pneg %p14266_p4 }
  0x68   : > { %p14273_p5 = por %p14272_p3, %p14271_p1 }
  0x6a   : > { %p14274_p6 = pnand %p14273_p5, %p14267_p10 }
  0x6c   : > { %14277 = shalt.err (!%p14274_p6)
}
  0x6d   : > { %s14278_s27 = scalar_lea.vmem %s565_s15, 32  ;;  %s14577_s0 = smov [#allocation10]  }
  0x6e   : > { %p14279_p8 = scmp.ne.s32.totalorder %s565_s15, %s14278_s27  ;;  %s14283_s29 = sshll.u32 %s14577_s0, 4  ;;  %s14284_s29 = int_to_ptr.vmem [resolvable:$false] %s14283_s29 }
  0x6f   : > { %s14285_s21 = scalar_lea.vmem %s14284_s29, 64  ;;  %p14286_p11 = scmp.lt.s32.totalorder %s565_s15, %s14284_s29 }
  0x70   : > { %p14281_p0 = pnand %p14279_p8, %p14745_p2  ;;  %p14287_p4 = scmp.lt.s32.totalorder %s14285_s21, %s14278_s27 }
  0x72   : > { %p14282_p7 = pneg %p14281_p0  ;;  %p14288_p9 = por %p14287_p4, %p14286_p11 }
  0x74   : > { %p14289_p12 = pnand %p14288_p9, %p14282_p7 }
  0x76   : > { %14292 = shalt.err (!%p14289_p12)
}
  0x77   : > { %p19578_p13 = scmp.ne.s32.totalorder %s19571_s14, 0  ;;  %s19579_s11 = sshll.u32 %s14698_s26, 5 }
  0x78   : > { %s14833_s19 = scalar_lea.hbm %s19429_s8, %s19579_s11  ;;  %s19580_s29 = sshll.u32 %s14713_s30, 1 }
  0x79   : > { %12964 = dma.hbm_to_vmem [thread:$0]  (!%p19578_p13), %s14804_s25, 32, %s565_s15, %s19443_s16  }
  0x7a   : > { %s598_s13 = scalar_lea.vmem [#allocation13], %s19580_s29  ;;  %s19444_s27 = scalar_lea.sflag [#allocation14], %s14716_s12 }
  0x7b   : > { %s608_s2 = sshll.u32 %s598_s13, 4  ;;  %s14293_s21 = scalar_lea.hbm %s14833_s19, 32  ;;  %s609_s2 = int_to_ptr.vmem [resolvable:$true] %s608_s2 }
  0x7c   : > { %p14294_p9 = scmp.ne.s32.totalorder %s14833_s19, %s14293_s21  ;;  %s14298_s23 = scalar_lea.hbm %s19429_s8, 64 }
  0x7d   : > { %p14299_p3 = scmp.lt.u32.totalorder %s14833_s19, %s19429_s8  ;;  %p14300_p5 = scmp.lt.u32.totalorder %s14298_s23, %s14293_s21 }
  0x7e   : > { %p14296_p10 = pnand %p14294_p9, %p14745_p2  ;;  %p14302_p8 = scmp.lt.u32.totalorder %s14293_s21, %s14833_s19 }
  0x7f   : > { %p14301_p6 = por %p14300_p5, %p14299_p3 }
  0x80   : > { %p14297_p1 = pneg %p14296_p10 }
  0x81   : > { %p14303_p0 = por %p14302_p8, %p14301_p6 }
  0x83   : > { %p14304_p7 = pnand %p14303_p0, %p14297_p1 }
  0x85   : > { %14307 = shalt.err (!%p14304_p7)
}
  0x86   : > { %s14308_s29 = scalar_lea.vmem %s609_s2, 32  ;;  %s14578_s13 = smov [#allocation13]  }
  0x87   : > { %p14309_p11 = scmp.ne.s32.totalorder %s609_s2, %s14308_s29  ;;  %s14313_s16 = sshll.u32 %s14578_s13, 4  ;;  %s14314_s16 = int_to_ptr.vmem [resolvable:$false] %s14313_s16 }
  0x88   : > { %s14315_s25 = scalar_lea.vmem %s14314_s16, 64  ;;  %p14316_p9 = scmp.lt.s32.totalorder %s609_s2, %s14314_s16 }
  0x89   : > { %p14311_p4 = pnand %p14309_p11, %p14745_p2  ;;  %p14317_p10 = scmp.lt.s32.totalorder %s14315_s25, %s14308_s29 }
  0x8b   : > { %p14312_p12 = pneg %p14311_p4  ;;  %p14318_p13 = por %p14317_p10, %p14316_p9 }
  0x8d   : > { %p14319_p3 = pnand %p14318_p13, %p14312_p12 }
  0x8f   : > { %14322 = shalt.err (!%p14319_p3)
}
  0x90   : > { %p19581_p5 = scmp.ne.s32.totalorder %s19571_s14, 0  ;;  %s12917_s21 = smul.u32 768, %s14713_s30 }
  0x91   : > { %s12918_s15 = smul.u32 12288, %s14698_s26  ;;  %s19582_s1 = sld [smem:[#allocation99_spill]] }
  0x92   : > { %12970 = dma.hbm_to_vmem [thread:$0]  (!%p19581_p5), %s14833_s19, 32, %s609_s2, %s19444_s27  }
  0x93   : > { %s12921_s23 = smul.u32 3840, %s14713_s30  ;;  %s443_s29 = scalar_lea.vmem [#allocation2], %s12917_s21 }
  0x94   : > { %s452_s13 = sshll.u32 %s443_s29, 4  ;;  %s440_s25 = scalar_lea.sflag [#allocation3], %s14713_s30  ;;  %s14865_s13 = int_to_ptr.vmem [resolvable:$true] %s452_s13 }
  0x97   : > { %s14863_s0 = scalar_lea.hbm %s19582_s1, %s12918_s15  ;;  %s14328_s11 = scalar_lea.hbm %s19582_s1, 24576 }
  0x98   : > { %s14323_s4 = scalar_lea.hbm %s14863_s0, 12288  ;;  %p14329_p8 = scmp.lt.u32.totalorder %s14863_s0, %s19582_s1 }
  0x99   : > { %p14324_p13 = scmp.ne.s32.totalorder %s14863_s0, %s14323_s4  ;;  %p14330_p0 = scmp.lt.u32.totalorder %s14328_s11, %s14323_s4 }
  0x9a   : > { %p14332_p11 = scmp.lt.u32.totalorder %s14323_s4, %s14863_s0 }
  0x9b   : > { %p14326_p1 = pnand %p14324_p13, %p14745_p2  ;;  %p14331_p7 = por %p14330_p0, %p14329_p8 }
  0x9d   : > { %p14327_p6 = pneg %p14326_p1  ;;  %p14333_p4 = por %p14332_p11, %p14331_p7 }
  0x9f   : > { %p14334_p12 = pnand %p14333_p4, %p14327_p6 }
  0xa1   : > { %14337 = shalt.err (!%p14334_p12)
}
  0xa2   : > { %s14338_s21 = scalar_lea.vmem %s14865_s13, 12288  ;;  %s14579_s29 = smov [#allocation2]  }
  0xa3   : > { %p14339_p9 = scmp.ne.s32.totalorder %s14865_s13, %s14338_s21  ;;  %s14343_s19 = sshll.u32 %s14579_s29, 4  ;;  %s14344_s19 = int_to_ptr.vmem [resolvable:$false] %s14343_s19 }
  0xa4   : > { %s14345_s2 = scalar_lea.vmem %s14344_s19, 24576  ;;  %p14346_p13 = scmp.lt.s32.totalorder %s14865_s13, %s14344_s19 }
  0xa5   : > { %p14341_p10 = pnand %p14339_p9, %p14745_p2  ;;  %p14347_p1 = scmp.lt.s32.totalorder %s14345_s2, %s14338_s21 }
  0xa7   : > { %p14342_p3 = pneg %p14341_p10  ;;  %p14348_p8 = por %p14347_p1, %p14346_p13 }
  0xa9   : > { %p14349_p0 = pnand %p14348_p8, %p14342_p3 }
  0xab   : > { %14352 = shalt.err (!%p14349_p0)
}
  0xac   : > { %s14580_s4 = smov 384   ;;  %s14581_s11 = smov 24  }
  0xad   : > { %12949 = dma.hbm_to_vmem [thread:$0]  (!%p19581_p5), %s14863_s0, 12288, %s14865_s13, %s440_s25, %s14580_s4, %s14580_s4, %s14581_s11  }
  0xae   : > { %s12922_s15 = smul.u32 61440, %s14698_s26  ;;  %s487_s16 = scalar_lea.vmem [#allocation6], %s12921_s23 }
  0xaf   : > { %s496_s29 = sshll.u32 %s487_s16, 4  ;;  %s14358_s23 = scalar_lea.hbm %s19424_s3, 122880  ;;  %s14894_s29 = int_to_ptr.vmem [resolvable:$true] %s496_s29 }
  0xb0   : > { %s14899_s2 = scalar_lea.hbm %s19424_s3, %s12922_s15 }
  0xb1   : > { %s14353_s27 = scalar_lea.hbm %s14899_s2, 61440  ;;  %p14359_p4 = scmp.lt.u32.totalorder %s14899_s2, %s19424_s3 }
  0xb2   : > { %p14354_p6 = scmp.ne.s32.totalorder %s14899_s2, %s14353_s27  ;;  %p14360_p12 = scmp.lt.u32.totalorder %s14358_s23, %s14353_s27 }
  0xb3   : > { %p14362_p10 = scmp.lt.u32.totalorder %s14353_s27, %s14899_s2 }
  0xb4   : > { %p14356_p7 = pnand %p14354_p6, %p14745_p2  ;;  %p14361_p9 = por %p14360_p12, %p14359_p4 }
  0xb6   : > { %p14357_p11 = pneg %p14356_p7  ;;  %p14363_p3 = por %p14362_p10, %p14361_p9 }
  0xb8   : > { %p14364_p13 = pnand %p14363_p3, %p14357_p11 }
  0xba   : > { %14367 = shalt.err (!%p14364_p13)
}
  0xbb   : > { %s14368_s11 = scalar_lea.vmem %s14894_s29, 61440  ;;  %s14582_s15 = smov [#allocation6]  }
  0xbc   : > { %p14369_p1 = scmp.ne.s32.totalorder %s14894_s29, %s14368_s11  ;;  %s14373_s16 = sshll.u32 %s14582_s15, 4  ;;  %s14374_s16 = int_to_ptr.vmem [resolvable:$false] %s14373_s16 }
  0xbd   : > { %s14375_s21 = scalar_lea.vmem %s14374_s16, 122880  ;;  %p14376_p6 = scmp.lt.s32.totalorder %s14894_s29, %s14374_s16 }
  0xbe   : > { %p14371_p8 = pnand %p14369_p1, %p14745_p2  ;;  %p14377_p7 = scmp.lt.s32.totalorder %s14375_s21, %s14368_s11 }
  0xc0   : > { %p14372_p0 = pneg %p14371_p8  ;;  %p14378_p4 = por %p14377_p7, %p14376_p6 }
  0xc2   : > { %p14379_p12 = pnand %p14378_p4, %p14372_p0 }
  0xc4   : > { %14382 = shalt.err (!%p14379_p12)
}
  0xc5   : > { %s14583_s27 = smov 256   ;;  %s14584_s19 = smov 16  }
  0xc6   : > { %s19583_s0 = scalar_lea.sflag [#allocation5], %s14716_s12  ;;  %s11683_s13 = sshll.u32 %s14713_s30, 10 }
  0xc7   : > { %12955 = dma.hbm_to_vmem [thread:$0]  (!%p19581_p5), %s14899_s2, 61440, %s14894_s29, %s19583_s0, %s14583_s27, %s14583_s27, %s14584_s19  }
  0xc8   : > { %s12611_s23 = sshll.u32 %s14698_s26, 14  ;;  %s531_s15 = scalar_lea.vmem [#allocation9], %s11683_s13 }
  0xc9   : > { %s14929_s11 = scalar_lea.hbm %s19426_s5, %s12611_s23  ;;  %s540_s16 = sshll.u32 %s531_s15, 4  ;;  %s14931_s16 = int_to_ptr.vmem [resolvable:$true] %s540_s16 }
  0xca   : > { %s14383_s21 = scalar_lea.hbm %s14929_s11, 16384  ;;  %s14388_s27 = scalar_lea.hbm %s19426_s5, 32768 }
  0xcb   : > { %p14384_p11 = scmp.ne.s32.totalorder %s14929_s11, %s14383_s21  ;;  %p14389_p3 = scmp.lt.u32.totalorder %s14929_s11, %s19426_s5 }
  0xcc   : > { %p14390_p13 = scmp.lt.u32.totalorder %s14388_s27, %s14383_s21  ;;  %p14392_p8 = scmp.lt.u32.totalorder %s14383_s21, %s14929_s11 }
  0xcd   : > { %p14386_p9 = pnand %p14384_p11, %p14745_p2 }
  0xce   : > { %p14391_p1 = por %p14390_p13, %p14389_p3 }
  0xcf   : > { %p14387_p10 = pneg %p14386_p9 }
  0xd0   : > { %p14393_p0 = por %p14392_p8, %p14391_p1 }
  0xd2   : > { %p14394_p6 = pnand %p14393_p0, %p14387_p10 }
  0xd4   : > { %14397 = shalt.err (!%p14394_p6)
}
  0xd5   : > { %s14398_s13 = scalar_lea.vmem %s14931_s16, 16384  ;;  %s14585_s23 = smov [#allocation9]  }
  0xd6   : > { %p14399_p7 = scmp.ne.s32.totalorder %s14931_s16, %s14398_s13  ;;  %s14403_s25 = sshll.u32 %s14585_s23, 4  ;;  %s14404_s25 = int_to_ptr.vmem [resolvable:$false] %s14403_s25 }
  0xd7   : > { %s14405_s4 = scalar_lea.vmem %s14404_s25, 32768  ;;  %p14406_p11 = scmp.lt.s32.totalorder %s14931_s16, %s14404_s25 }
  0xd8   : > { %p14401_p4 = pnand %p14399_p7, %p14745_p2  ;;  %p14407_p9 = scmp.lt.s32.totalorder %s14405_s4, %s14398_s13 }
  0xda   : > { %p14402_p12 = pneg %p14401_p4  ;;  %p14408_p3 = por %p14407_p9, %p14406_p11 }
  0xdc   : > { %p14409_p13 = pnand %p14408_p3, %p14402_p12 }
  0xde   : > { %14412 = shalt.err (!%p14409_p13)
}
  0xdf   : > { %s14586_s15 = smov 128   ;;  %s14587_s21 = smov 8  }
  0xe0   : > { %s19584_s29 = scalar_lea.sflag [#allocation8], %s14716_s12  ;;  %s11689_s2 = sshll.u32 %s14713_s30, 8 }
  0xe1   : > { %12961 = dma.hbm_to_vmem [thread:$0]  (!%p19581_p5), %s14929_s11, 16384, %s14931_s16, %s19584_s29, %s14586_s15, %s14586_s15, %s14587_s21  }
  0xe2   : > { %s12613_s27 = sshll.u32 %s14698_s26, 12  ;;  %s575_s23 = scalar_lea.vmem [#allocation12], %s11689_s2 }
  0xe3   : > { %s14964_s13 = scalar_lea.hbm %s19428_s7, %s12613_s27  ;;  %s584_s25 = sshll.u32 %s575_s23, 4  ;;  %s14967_s25 = int_to_ptr.vmem [resolvable:$true] %s584_s25 }
  0xe4   : > { %s11695_s4 = sshll.u32 %s14713_s30, 7  ;;  %s14413_s1 = scalar_lea.hbm %s14964_s13, 4096 }
  0xe5   : > { %p14414_p10 = scmp.ne.s32.totalorder %s14964_s13, %s14413_s1  ;;  %s14418_s29 = scalar_lea.hbm %s19428_s7, 8192 }
  0xe6   : > { %p14419_p0 = scmp.lt.u32.totalorder %s14964_s13, %s19428_s7  ;;  %p14420_p6 = scmp.lt.u32.totalorder %s14418_s29, %s14413_s1 }
  0xe7   : > { %p14416_p1 = pnand %p14414_p10, %p14745_p2  ;;  %p14422_p4 = scmp.lt.u32.totalorder %s14413_s1, %s14964_s13 }
  0xe8   : > { %p14421_p7 = por %p14420_p6, %p14419_p0 }
  0xe9   : > { %p14417_p8 = pneg %p14416_p1 }
  0xea   : > { %p14423_p12 = por %p14422_p4, %p14421_p7 }
  0xec   : > { %p14424_p11 = pnand %p14423_p12, %p14417_p8 }
  0xee   : > { %14427 = shalt.err (!%p14424_p11)
}
  0xef   : > { %s14428_s2 = scalar_lea.vmem %s14967_s25, 4096  ;;  %s14588_s0 = smov [#allocation12]  }
  0xf0   : > { %p14429_p9 = scmp.ne.s32.totalorder %s14967_s25, %s14428_s2  ;;  %s14433_s23 = sshll.u32 %s14588_s0, 4  ;;  %s14434_s23 = int_to_ptr.vmem [resolvable:$false] %s14433_s23 }
  0xf1   : > { %s14435_s11 = scalar_lea.vmem %s14434_s23, 8192  ;;  %p14436_p10 = scmp.lt.s32.totalorder %s14967_s25, %s14434_s23 }
  0xf2   : > { %p14431_p3 = pnand %p14429_p9, %p14745_p2  ;;  %p14437_p1 = scmp.lt.s32.totalorder %s14435_s11, %s14428_s2 }
  0xf4   : > { %p14432_p13 = pneg %p14431_p3  ;;  %p14438_p0 = por %p14437_p1, %p14436_p10 }
  0xf6   : > { %p14439_p6 = pnand %p14438_p0, %p14432_p13 }
  0xf8   : > { %14442 = shalt.err (!%p14439_p6)
}
  0xf9   : > { %s19585_s1 = scalar_lea.sflag [#allocation11], %s14716_s12  ;;  %s12615_s16 = sshll.u32 %s14698_s26, 11 }
  0xfa   : > { %12967 = dma.hbm_to_vmem [thread:$0]  (!%p19581_p5), %s14964_s13, 4096, %s14967_s25, %s19585_s1, %s14586_s15, %s14586_s15, %s14587_s21  }
  0xfb   : > { %s619_s29 = scalar_lea.vmem [#allocation15], %s11695_s4  ;;  %s15001_s0 = scalar_lea.hbm %s19430_s9, %s12615_s16 }
  0xfc   : > { %s628_s27 = sshll.u32 %s619_s29, 4  ;;  %s14443_s23 = scalar_lea.hbm %s15001_s0, 2048  ;;  %s15003_s27 = int_to_ptr.vmem [resolvable:$true] %s628_s27 }
  0xfd   : > { %p14444_p8 = scmp.ne.s32.totalorder %s15001_s0, %s14443_s23  ;;  %s14448_s13 = scalar_lea.hbm %s19430_s9, 4096 }
  0xfe   : > { %p14449_p12 = scmp.lt.u32.totalorder %s15001_s0, %s19430_s9  ;;  %p14450_p11 = scmp.lt.u32.totalorder %s14448_s13, %s14443_s23 }
  0xff   : > { %p14446_p7 = pnand %p14444_p8, %p14745_p2  ;;  %p14452_p3 = scmp.lt.u32.totalorder %s14443_s23, %s15001_s0 }
 0x100   : > { %p14451_p9 = por %p14450_p11, %p14449_p12 }
 0x101   : > { %p14447_p4 = pneg %p14446_p7 }
 0x102   : > { %p14453_p13 = por %p14452_p3, %p14451_p9 }
 0x104   : > { %p14454_p10 = pnand %p14453_p13, %p14447_p4 }
 0x106   : > { %14457 = shalt.err (!%p14454_p10)
}
 0x107   : > { %s14458_s11 = scalar_lea.vmem %s15003_s27, 2048  ;;  %s14589_s1 = smov [#allocation15]  }
 0x108   : > { %p14459_p1 = scmp.ne.s32.totalorder %s15003_s27, %s14458_s11  ;;  %s14463_s16 = sshll.u32 %s14589_s1, 4  ;;  %s14464_s16 = int_to_ptr.vmem [resolvable:$false] %s14463_s16 }
 0x109   : > { %s14465_s29 = scalar_lea.vmem %s14464_s16, 4096  ;;  %p14466_p8 = scmp.lt.s32.totalorder %s15003_s27, %s14464_s16 }
 0x10a   : > { %p14461_p0 = pnand %p14459_p1, %p14745_p2  ;;  %p14467_p7 = scmp.lt.s32.totalorder %s14465_s29, %s14458_s11 }
 0x10c   : > { %p14462_p6 = pneg %p14461_p0  ;;  %p14468_p12 = por %p14467_p7, %p14466_p8 }
 0x10e   : > { %p14469_p11 = pnand %p14468_p12, %p14462_p6 }
 0x110   : > { %14472 = shalt.err (!%p14469_p11)
}
 0x111   : > { %s14590_s19 = smov 64   ;;  %s14591_s2 = smov 4  }
 0x112   : > { %s19586_s23 = scalar_lea.sflag [#allocation14], %s14716_s12  ;;  %s11698_s15 = sshll.u32 %s14698_s26, 4 }
 0x113   : > { %12973 = dma.hbm_to_vmem [thread:$0]  (!%p19581_p5), %s15001_s0, 2048, %s15003_s27, %s19586_s23, %s14590_s19, %s14590_s19, %s14591_s2  }
 0x114   : > { %s641_s21 = scalar_lea.vmem [#allocation16], %s14713_s30  ;;  %s15033_s11 = scalar_lea.hbm %s19431_s10, %s11698_s15 }
 0x115   : > { %s650_s13 = sshll.u32 %s641_s21, 4  ;;  %s639_s1 = scalar_lea.sflag [#allocation17], %s14713_s30  ;;  %s651_s13 = int_to_ptr.vmem [resolvable:$true] %s650_s13 }
 0x116   : > { %s14473_s16 = scalar_lea.hbm %s15033_s11, 16  ;;  %s14478_s27 = scalar_lea.hbm %s19431_s10, 32 }
 0x117   : > { %p14474_p4 = scmp.ne.s32.totalorder %s15033_s11, %s14473_s16  ;;  %p14479_p13 = scmp.lt.u32.totalorder %s15033_s11, %s19431_s10 }
 0x118   : > { %p14480_p10 = scmp.lt.u32.totalorder %s14478_s27, %s14473_s16  ;;  %p14482_p0 = scmp.lt.u32.totalorder %s14473_s16, %s15033_s11 }
 0x119   : > { %p14476_p9 = pnand %p14474_p4, %p14745_p2 }
 0x11a   : > { %p14481_p1 = por %p14480_p10, %p14479_p13 }
 0x11b   : > { %p14477_p3 = pneg %p14476_p9 }
 0x11c   : > { %p14483_p6 = por %p14482_p0, %p14481_p1 }
 0x11e   : > { %p14484_p8 = pnand %p14483_p6, %p14477_p3 }
 0x120   : > { %14487 = shalt.err (!%p14484_p8)
}
 0x121   : > { %s14488_s30 = scalar_lea.vmem %s651_s13, 16  ;;  %s14592_s19 = smov [#allocation16]  }
 0x122   : > { %p14489_p7 = scmp.ne.s32.totalorder %s651_s13, %s14488_s30  ;;  %s14493_s2 = sshll.u32 %s14592_s19, 4  ;;  %s14494_s2 = int_to_ptr.vmem [resolvable:$false] %s14493_s2 }
 0x123   : > { %s14495_s23 = scalar_lea.vmem %s14494_s2, 32  ;;  %p14496_p4 = scmp.lt.s32.totalorder %s651_s13, %s14494_s2 }
 0x124   : > { %p14491_p12 = pnand %p14489_p7, %p14745_p2  ;;  %p14497_p9 = scmp.lt.s32.totalorder %s14495_s23, %s14488_s30 }
 0x126   : > { %p14492_p11 = pneg %p14491_p12  ;;  %p14498_p5 = por %p14497_p9, %p14496_p4 }
 0x128   : > { %p14499_p10 = pnand %p14498_p5, %p14492_p11 }
 0x12a   : > { %14502 = shalt.err (!%p14499_p10)
}
 0x12b   : > { %p19587_p13 = scmp.ne.s32.totalorder %s19571_s14, 0  ;;  %p19588_p3 = scmp.ne.s32.totalorder %s19573_s24, 0 }
 0x12d   : > { %12976 = dma.hbm_to_vmem [thread:$0]  (!%p19587_p13), %s15033_s11, 16, %s651_s13, %s639_s1  }
 0x12e   : > { %659 = sbr.rel (%p19588_p3) target bundleno = 2624 (0xa40), region = 64 }
 0x135   : > { %s15056_s17 = sand.u32 1, %s14557_s18   ;;  %p19589_p2 = scmp.ne.s32.totalorder %s19569_s28, 0 }
 0x136   : > { %s12923_s15 = smul.u32 768, %s15056_s17  ;;  %s662_s21 = scalar_lea.sflag [#allocation3], %s15056_s17 }
 0x138   : > { %s15060_s25 = scalar_lea.vmem [#allocation2], %s12923_s15 }
 0x139   : > { %14528 = dma.done.wait (%p19589_p2), %s662_s21, 12288  }
 0x13a   : > { %14530 = vsyncadd (%p19589_p2), %s662_s21, 4294955008  ;;  %s19590_s14 = sadd.s32 4294967295, %s14573_s22   ;;  %s12924_s13 = smul.u32 6, %s15056_s17 }
 0x13b   : > { %s670_s24 = sand.u32 1, %s19590_s14  }
 0x13c   : > { %s671_s4 = scalar_lea.sflag [#allocation5], %s670_s24  ;;  %s15069_s11 = scalar_lea.vmem [#allocation4], %s12924_s13 }
 0x13d   : > { %14532 = dma.done.wait (%p19589_p2), %s671_s4, 61536  }
 0x13e   : > { %14534 = vsyncadd (%p19589_p2), %s671_s4, 4294905760  ;;  %s12925_s1 = smul.u32 3840, %s15056_s17  ;;  %s11700_s16 = sshll.u32 %s15056_s17, 2 }
 0x13f   : > { %s689_s26 = scalar_lea.sflag [#allocation8], %s670_s24  ;;  %s15079_s27 = scalar_lea.vmem [#allocation7], %s11700_s16 }
 0x140   : > { %s15077_s12 = scalar_lea.vmem [#allocation6], %s12925_s1 }
 0x141   : > { %14536 = dma.done.wait (%p19589_p2), %s689_s26, 16448  }
 0x142   : > { %14538 = vsyncadd (%p19589_p2), %s689_s26, 4294950848  ;;  %s11701_s0 = sshll.u32 %s15056_s17, 10  ;;  %s11702_s29 = sshll.u32 %s15056_s17, 1 }
 0x143   : > { %s15087_s30 = scalar_lea.vmem [#allocation9], %s11701_s0  ;;  %s707_s19 = scalar_lea.sflag [#allocation11], %s670_s24 }
 0x144   : > { %s15089_s2 = scalar_lea.vmem [#allocation10], %s11702_s29 }
 0x145   : > { %14540 = dma.done.wait (%p19589_p2), %s707_s19, 4128  }
 0x146   : > { %14542 = vsyncadd (%p19589_p2), %s707_s19, 4294963168  ;;  %s11703_s23 = sshll.u32 %s15056_s17, 8  ;;  %s725_s21 = scalar_lea.sflag [#allocation14], %s670_s24 }
 0x147   : > { %s15096_s15 = scalar_lea.vmem [#allocation12], %s11703_s23  ;;  %s15098_s14 = scalar_lea.vmem [#allocation13], %s11702_s29 }
 0x148   : > { %14544 = dma.done.wait (%p19589_p2), %s725_s21, 2080  }
 0x149   : > { %14546 = vsyncadd (%p19589_p2), %s725_s21, 4294965216  ;;  %s11705_s13 = sshll.u32 %s15056_s17, 7  ;;  %s743_s1 = scalar_lea.sflag [#allocation17], %s15056_s17 }
 0x14a   : > { %s15105_s4 = scalar_lea.vmem [#allocation15], %s11705_s13  ;;  %s745_s16 = scalar_lea.vmem [#allocation16], %s15056_s17 }
 0x14b   : > { %14548 = dma.done.wait (%p19589_p2), %s743_s1, 16  }
 0x14c   : > { %14550 = vsyncadd (%p19589_p2), %s743_s1, 4294967280  ;;  %p841_p5 = scmp.lt.s32.totalorder %s14565_s20, 2  ;;  %s19591_s29 = sld [smem:[#allocation98_spill]]  ;;  %vm1298_vm0 = vcmask 1045504   ;;  %vm1152_vm1 = vcmask 1046528   ;;  %vm1495_vm4 = vcmask 97280  }
 0x14d   : > { %s14593_s28 = smov 56   ;;  %s14594_s23 = smov 112   ;;  %vm1209_vm2 = vsmask.f32 6400  ;;  %vm999_vm3 = vsmask.f32 7424 }
 0x14e   : > { %s19910_s20 = smov (!%p841_p5, %s14565_s20), 2  ;;  %v13052_v42 = vld [vmem:[%s15060_s25 + $0x4] ss:$24 sps:$4 sm:$0xff]   ;;  %s14595_s21 = smov 28   ;;  %v13056_v47 = vld [vmem:[%s15060_s25] ss:$24 sps:$4 sm:$0xff]  }
 0x14f   : > { %s12616_s24 = sshll.u32 %s19910_s20, 7  ;;  %v13054_v43 = vld [vmem:[%s15060_s25 + $0xc] ss:$24 sps:$4 sm:$0xff]   ;;  %s14596_s13 = smov 84   ;;  %2249 = vmatprep.subr.bf16.mxu0 %v13052_v42  ;;  %v13057_v52 = vld [vmem:[%s15060_s25 + $0x8] ss:$24 sps:$4 sm:$0xff]  }
 0x150   : > { %2402 = vmatprep.subr.bf16.mxu1 %v13054_v43  ;;  %2250 = vmatpush1.bf16.msra.mxu0 %v13056_v47  ;;  %v13060_v60 = vld [vmem:[%s15060_s25 + $0x34] ss:$24 sps:$4 sm:$0xff]   ;;  %v13064_v63 = vld [vmem:[%s15060_s25 + $0x30] ss:$24 sps:$4 sm:$0xff]   ;;  %vm1355_vm5 = vcmask 228352   ;;  %vm1396_vm6 = vcmask 457728  }
 0x151   : > { %2403 = vmatpush1.bf16.msra.mxu1 %v13057_v52  ;;  %v13062_v62 = vld [vmem:[%s15060_s25 + $0x3c] ss:$24 sps:$4 sm:$0xff]   ;;  %2251 = vmatprep.subr.bf16.mxu0 %v13060_v60  ;;  %v13083_v47 = vld [vmem:[%s15060_s25 + $0xc8] ss:$24 sps:$4 sm:$0xff]   ;;  %vm1462_vm7 = vcmask 916480   ;;  %vm1429_vm8 = vcmask 687104  }
 0x152   : > { %s15121_s19 = scalar_lea.vmem %s19591_s29, %s12616_s24  ;;  %2404 = vmatprep.subr.bf16.mxu1 %v13062_v62  ;;  %v13084_v52 = vld [vmem:[%s15060_s25 + $0xf4] ss:$24 sps:$4 sm:$0xff]   ;;  %vm3212_vm11 = vcmask 1040384   ;;  %vm3215_vm12 = vcmask 1041409   ;;  %vm3218_vm13 = vcmask 1042434   ;;  %vm3221_vm14 = vcmask 1043459  }
 0x153   : > { %v881_v0 = vld [vmem:[%s15121_s19 + $0x8] sm:$0xf]  ;;  %v882_v1 = vld [vmem:[%s15121_s19 + $0xc] sm:$0x3]  ;;  %v13043_v3 = vld [vmem:[%s15121_s19] sm:$0xff]  }
 0x154   : > { %v15125_v2 = vcombine.low %v881_v0, %v882_v1  ;;  %v885_v4 = vld [vmem:[%s15121_s19 + $0x18] sm:$0xf]  ;;  %v886_v5 = vld [vmem:[%s15121_s19 + $0x1c] sm:$0x3]  ;;  %v1299_v7 = vrot.slane %v13043_v3, 2  ;;  %v1153_v9 = vrot.slane %v13043_v3, 1  ;;  %2252 = vmatpush1.bf16.msra.mxu0 %v13064_v63 }
 0x155   : > { %v15133_v10 = vld [vmem:[%s15121_s19 + $0x10] sm:$0xff]   ;;  %v15135_v11 = vcombine.low %v885_v4, %v886_v5  ;;  %v1001_v14 = vshrl.u32 %v13043_v3, 16  ;;  %v1003_v18 = vshll.u32 %v13043_v3, 16  ;;  %v889_v45 = vld [vmem:[%s15121_s19 + $0x28] sm:$0xf]  ;;  %v15167_v46 = vld [vmem:[%s15121_s19 + $0x20] sm:$0xff]  }
 0x156   : > { %v1154_v6 = vrot.slane %v15125_v2, 1  ;;  %v1300_v8 = vrot.slane %v15125_v2, 2  ;;  %v1008_v12 = vshll.u32 %v15125_v2, 16  ;;  %v1012_v13 = vshrl.u32 %v15125_v2, 16  ;;  %v890_v51 = vld [vmem:[%s15121_s19 + $0x2c] sm:$0x3] }
 0x157   : > { %v1156_v17 = vrot.slane %v15133_v10, 1  ;;  %v1157_v19 = vrot.slane %v15135_v11, 1  ;;  %v1210_v22 = vrot.slane %v1001_v14, 1  ;;  %v1211_v23 = vrot.slane %v1003_v18, 2  ;;  %v15187_v59 = vld [vmem:[%s15121_s19 + $0x30] sm:$0xff]  }
 0x158   : > { %1179 = vrot.lane.b32.xlu0 %v1154_v6, %s14593_s28  ;;  %v1301_v15 = vsel %vm1298_vm0, %v1299_v7, %v1300_v8  ;;  %v1155_v16 = vsel %vm1152_vm1, %v1153_v9, %v1154_v6  ;;  %v1010_v20 = vrot.slane %v1008_v12, 1  ;;  %v1213_v21 = vrot.slane %v1012_v13, 1  ;;  %v893_v61 = vld [vmem:[%s15121_s19 + $0x38] sm:$0xf]  ;;  %v894_v1 = vld [vmem:[%s15121_s19 + $0x3c] sm:$0x3] }
 0x159   : > { %1323 = vrot.lane.b32.xlu1 %v1301_v15, %s14594_s23  ;;  %v1214_v24 = vrot.slane %v1008_v12, 2  ;;  %v1016_v25 = vshrl.u32 %v15133_v10, 16  ;;  %v1018_v26 = vshll.u32 %v15133_v10, 16  ;;  %v1158_v27 = vsel %vm1152_vm1, %v1156_v17, %v1157_v19  ;;  %v13065_v3 = vld [vmem:[%s15060_s25 + $0x38] ss:$24 sps:$4 sm:$0xff]  }
 0x15a   : > { %v1014_v28 = vor.u32 %v1012_v13, %v1010_v20  ;;  %v1023_v29 = vshll.u32 %v15135_v11, 16  ;;  %v1212_v30 = vor.u32 %v1211_v23, %v1210_v22  ;;  %v1027_v33 = vshrl.u32 %v15135_v11, 16  ;;  %v13066_v9 = vld [vmem:[%s15060_s25 + $0x64] ss:$24 sps:$4 sm:$0xff]   ;;  %2405 = vmatpush1.bf16.msra.mxu1 %v13065_v3  ;;  %v13071_v17 = vld [vmem:[%s15060_s25 + $0x68] ss:$24 sps:$4 sm:$0xff]  }
 0x15b   : > { %v1215_v31 = vor.u32 %v1214_v24, %v1213_v21  ;;  %v1020_v32 = vrot.slane %v1018_v26, 1  ;;  %v1005_v35 = vrot.slane %v1003_v18, 1  ;;  %v1217_v36 = vrot.slane %v1016_v25, 1  ;;  %2253 = vmatprep.subr.bf16.mxu0 %v13066_v9  ;;  %v15224_v23 = vld [vmem:[%s15121_s19 + $0x50] sm:$0xff]  }
 0x15c   : > { %1177 = vrot.lane.b32.xlu0 %v1155_v16, %s14593_s28  ;;  %v15156_v34 = vrot.slane %v1023_v29, 1  ;;  %v1218_v37 = vrot.slane %v1018_v26, 2  ;;  %v1220_v40 = vrot.slane %v1027_v33, 1  ;;  %v1221_v41 = vrot.slane %v1023_v29, 2  ;;  %v13070_v16 = vld [vmem:[%s15060_s25 + $0x60] ss:$24 sps:$4 sm:$0xff]  }
 0x15d   : > { %1181 = vrot.lane.b32.xlu1 %v1158_v27, %s14593_s28  ;;  %v1216_v38 = vsel %vm1209_vm2, %v1212_v30, %v1215_v31  ;;  %v1021_v39 = vor.u32 %v1020_v32, %v1016_v25  ;;  %v1006_v44 = vor.u32 %v1005_v35, %v1001_v14  ;;  %v1302_v54 = vrot.slane %v15133_v10, 2  ;;  %v13068_v14 = vld [vmem:[%s15060_s25 + $0x6c] ss:$24 sps:$4 sm:$0xff]   ;;  %v13074_v25 = vld [vmem:[%s15060_s25 + $0x9c] ss:$24 sps:$4 sm:$0xff]   ;;  %2254 = vmatpush1.bf16.msra.mxu0 %v13070_v16 }
 0x15e   : > { %v1219_v49 = vor.u32 %v1218_v37, %v1217_v36  ;;  %v15172_v50 = vor.u32 %v1221_v41, %v1220_v40  ;;  %v15180_v55 = vcombine.low %v889_v45, %v890_v51  ;;  %v1303_v57 = vrot.slane %v15135_v11, 2  ;;  %2406 = vmatprep.subr.bf16.mxu1 %v13068_v14  ;;  %v13072_v24 = vld [vmem:[%s15060_s25 + $0x94] ss:$24 sps:$4 sm:$0xff]   ;;  %v902_v27 = vld [vmem:[%s15121_s19 + $0x5c] sm:$0x3] }
 0x15f   : > { %v1026_v48 = vsel %vm999_vm3, %v1021_v39, %v15156_v34  ;;  %v1011_v53 = vsel %vm999_vm3, %v1006_v44, %v1010_v20  ;;  %v1033_v58 = vshll.u32 %v15167_v46, 16  ;;  %v1031_v0 = vshrl.u32 %v15167_v46, 16  ;;  %2407 = vmatpush1.bf16.msra.mxu1 %v13071_v17  ;;  %2255 = vmatprep.subr.bf16.mxu0 %v13072_v24  ;;  %v13077_v32 = vld [vmem:[%s15060_s25 + $0x98] ss:$24 sps:$4 sm:$0xff]   ;;  %v13078_v37 = vld [vmem:[%s15060_s25 + $0xc4] ss:$24 sps:$4 sm:$0xff]  }
 0x160   : > { %1122 = vrot.lane.b32.xlu0 %v1014_v28, %s14595_s21  ;;  %v1223_v56 = vsel %vm1209_vm2, %v1219_v49, %v15172_v50  ;;  %v1038_v4 = vshll.u32 %v15180_v55, 16  ;;  %v1159_v5 = vrot.slane %v15167_v46, 1  ;;  %v1160_v6 = vrot.slane %v15180_v55, 1  ;;  %v13076_v28 = vld [vmem:[%s15060_s25 + $0x90] ss:$24 sps:$4 sm:$0xff]   ;;  %2408 = vmatprep.subr.bf16.mxu1 %v13074_v25 }
 0x161   : > { %1266 = vrot.lane.b32.xlu1 %v1216_v38, %s14596_s13  ;;  %v1042_v7 = vshrl.u32 %v15180_v55, 16  ;;  %v1304_v10 = vsel %vm1298_vm0, %v1302_v54, %v1303_v57  ;;  %v1035_v12 = vrot.slane %v1033_v58, 1  ;;  %v15206_v13 = vrot.slane %v1031_v0, 1  ;;  %v13080_v40 = vld [vmem:[%s15060_s25 + $0xcc] ss:$24 sps:$4 sm:$0xff]   ;;  %2256 = vmatpush1.bf16.msra.mxu0 %v13076_v28 }
 0x162   : > { %v15209_v15 = vrot.slane %v1033_v58, 2  ;;  %v1029_v18 = vor.u32 %v1027_v33, %v15156_v34  ;;  %v1305_v20 = vrot.slane %v15167_v46, 2  ;;  %v15220_v21 = vcombine.low %v893_v61, %v894_v1  ;;  %v13082_v41 = vld [vmem:[%s15060_s25 + $0xc0] ss:$24 sps:$4 sm:$0xff]   ;;  %2257 = vmatprep.subr.bf16.mxu0 %v13078_v37  ;;  %v13086_v63 = vld [vmem:[%s15060_s25 + $0xfc] ss:$24 sps:$4 sm:$0xff]  }
 0x163   : > { %v1048_v22 = vshll.u32 %v15187_v59, 16  ;;  %v1227_v2 = vrot.slane %v1042_v7, 1  ;;  %v1228_v26 = vrot.slane %v1038_v4, 2  ;;  %v15234_v29 = vrot.slane %v1038_v4, 1  ;;  %2409 = vmatpush1.bf16.msra.mxu1 %v13077_v32  ;;  %v13088_v3 = vld [vmem:[%s15060_s25 + $0xf0] ss:$24 sps:$4 sm:$0xff]  }
 0x164   : > { %1268 = vrot.lane.b32.xlu0 %v1215_v31, %s14596_s13  ;;  %v1306_v30 = vrot.slane %v15180_v55, 2  ;;  %v1046_v31 = vshrl.u32 %v15187_v59, 16  ;;  %v1036_v33 = vor.u32 %v1035_v12, %v1031_v0  ;;  %v1053_v35 = vshll.u32 %v15220_v21, 16  ;;  %2410 = vmatprep.subr.bf16.mxu1 %v13080_v40  ;;  %v13089_v4 = vld [vmem:[%s15060_s25 + $0xf8] ss:$24 sps:$4 sm:$0xff]  }
 0x165   : > { %1124 = vrot.lane.b32.xlu1 %v1026_v48, %s14595_s21  ;;  %v1050_v34 = vrot.slane %v1048_v22, 1  ;;  %v1162_v36 = vrot.slane %v15187_v59, 1  ;;  %v1163_v38 = vrot.slane %v15220_v21, 1  ;;  %v1226_v42 = vor.u32 %v15209_v15, %v15206_v13  ;;  %2258 = vmatpush1.bf16.msra.mxu0 %v13082_v41  ;;  %v13090_v12 = vld [vmem:[%s15060_s25 + $0x124] ss:$24 sps:$4 sm:$0xff]  }
 0x166   : > { %v15255_v43 = vor.u32 %v1228_v26, %v1227_v2  ;;  %v1076_v44 = vshrl.u32 %v15224_v23, 16  ;;  %v1078_v45 = vshll.u32 %v15224_v23, 16  ;;  %v1168_v48 = vrot.slane %v15224_v23, 1  ;;  %2259 = vmatprep.subr.bf16.mxu0 %v13084_v52  ;;  %v13092_v14 = vld [vmem:[%s15060_s25 + $0x12c] ss:$24 sps:$4 sm:$0xff]  }
 0x167   : > { %v1057_v54 = vshrl.u32 %v15220_v21, 16  ;;  %v15277_v60 = vrot.slane %v1053_v35, 1  ;;  %v1161_v11 = vsel %vm1152_vm1, %v1159_v5, %v1160_v6  ;;  %v1314_v0 = vrot.slane %v15224_v23, 2  ;;  %2411 = vmatpush1.bf16.msra.mxu1 %v13083_v47  ;;  %v13094_v15 = vld [vmem:[%s15060_s25 + $0x120] ss:$24 sps:$4 sm:$0xff]  }
 0x168   : > { %1120 = vrot.lane.b32.xlu0 %v1011_v53, %s14595_s21  ;;  %v1041_v53 = vsel %vm999_vm3, %v1036_v33, %v15234_v29  ;;  %v1246_v58 = vrot.slane %v1078_v45, 2  ;;  %v15298_v9 = vrot.slane %v1046_v31, 1  ;;  %2412 = vmatprep.subr.bf16.mxu1 %v13086_v63  ;;  %v13095_v16 = vld [vmem:[%s15060_s25 + $0x128] ss:$24 sps:$4 sm:$0xff]   ;;  %v1230_v17 = vsel %vm1209_vm2, %v1226_v42, %v15255_v43  ;;  %v906_v26 = vld [vmem:[%s15121_s19 + $0x6c] sm:$0x3] }
 0x169   : > { %1270 = vrot.lane.b32.xlu1 %v1223_v56, %s14596_s13  ;;  %v1245_v56 = vrot.slane %v1076_v44, 1  ;;  %v905_v24 = vld [vmem:[%s15121_s19 + $0x68] sm:$0xf]  ;;  %v1307_v2 = vsel %vm1298_vm0, %v1305_v20, %v1306_v30  ;;  %v1235_v25 = vrot.slane %v1053_v35, 2  ;;  %2260 = vmatpush1.bf16.msra.mxu0 %v13088_v3  ;;  %v1308_v28 = vrot.slane %v15187_v59, 2 }
 0x16a   : > { %2261 = vmatprep.subr.bf16.mxu0 %v13090_v12  ;;  %v15335_v46 = vcombine.low %v905_v24, %v906_v26  ;;  %v13098_v20 = vld [vmem:[%s15060_s25 + $0x154] ss:$24 sps:$4 sm:$0xff]   ;;  %v1044_v32 = vor.u32 %v1042_v7, %v15234_v29  ;;  %v13102_v47 = vld [vmem:[%s15060_s25 + $0x150] ss:$24 sps:$4 sm:$0xff]   ;;  %v13104_v63 = vld [vmem:[%s15060_s25 + $0x184] ss:$24 sps:$4 sm:$0xff]   ;;  %v1059_v59 = vor.u32 %v1057_v54, %v15277_v60 }
 0x16b   : > { %2413 = vmatpush1.bf16.msra.mxu1 %v13089_v4  ;;  %v13100_v37 = vld [vmem:[%s15060_s25 + $0x15c] ss:$24 sps:$4 sm:$0xff]   ;;  %v13106_v4 = vld [vmem:[%s15060_s25 + $0x18c] ss:$24 sps:$4 sm:$0xff]   ;;  %v897_v24 = vld [vmem:[%s15121_s19 + $0x48] sm:$0xf] }
 0x16c   : > { %1325 = vrot.lane.b32.xlu0 %v1300_v8, %s14594_s23  ;;  %v901_v8 = vld [vmem:[%s15121_s19 + $0x58] sm:$0xf]  ;;  %2414 = vmatprep.subr.bf16.mxu1 %v13092_v14  ;;  %v1098_v41 = vshll.u32 %v15335_v46, 16  ;;  %v1172_v42 = vrot.slane %v15335_v46, 1  ;;  %v1102_v7 = vshrl.u32 %v15335_v46, 16  ;;  %v1318_v3 = vrot.slane %v15335_v46, 2 }
 0x16d   : > { %1327 = vrot.lane.b32.xlu1 %v1304_v10, %s14594_s23  ;;  %v15249_v39 = vcombine.low %v901_v8, %v902_v27  ;;  %v15302_v10 = vrot.slane %v1048_v22, 2  ;;  %v1234_v8 = vrot.slane %v1057_v54, 1  ;;  %v13096_v27 = vld [vmem:[%s15121_s19 + $0x60] sm:$0xff]   ;;  %2262 = vmatpush1.bf16.msra.mxu0 %v13094_v15  ;;  %v15365_v12 = vld [vmem:[%s15121_s19 + $0x70] sm:$0xff]   ;;  %v1164_v14 = vsel %vm1152_vm1, %v1162_v36, %v1163_v38 }
 0x16e   : > { %v1091_v33 = vshrl.u32 %v13096_v27, 16  ;;  %v1171_v35 = vrot.slane %v13096_v27, 1  ;;  %2263 = vmatprep.subr.bf16.mxu0 %v13098_v20  ;;  %v15382_v26 = vld [vmem:[%s15121_s19 + $0x40] sm:$0xff]   ;;  %v1106_v20 = vshrl.u32 %v15365_v12, 16  ;;  %v13128_v55 = vld [vmem:[%s15060_s25 + $0x210] ss:$24 sps:$4 sm:$0xff]  }
 0x16f   : > { %v1169_v49 = vrot.slane %v15249_v39, 1  ;;  %v1087_v51 = vshrl.u32 %v15249_v39, 16  ;;  %v1315_v1 = vrot.slane %v15249_v39, 2  ;;  %2415 = vmatpush1.bf16.msra.mxu1 %v13095_v16  ;;  %v1233_v15 = vor.u32 %v15302_v10, %v15298_v9  ;;  %v909_v10 = vld [vmem:[%s15121_s19 + $0x78] sm:$0xf] }
 0x170   : > { %1126 = vrot.lane.b32.xlu0 %v1029_v18, %s14595_s21  ;;  %v1051_v18 = vor.u32 %v1050_v34, %v1046_v31  ;;  %v1309_v31 = vrot.slane %v15220_v21, 2  ;;  %v1093_v34 = vshll.u32 %v13096_v27, 16  ;;  %v1252_v29 = vrot.slane %v1091_v33, 1  ;;  %2416 = vmatprep.subr.bf16.mxu1 %v13100_v37  ;;  %v13132_v54 = vld [vmem:[%s15060_s25 + $0x24c] ss:$24 sps:$4 sm:$0xff]  }
 0x171   : > { %1183 = vrot.lane.b32.xlu1 %v1157_v19, %s14593_s28  ;;  %v1083_v19 = vshll.u32 %v15249_v39, 16  ;;  %v1248_v61 = vrot.slane %v1087_v51, 1  ;;  %v15311_v13 = vsel %vm1298_vm0, %v1314_v0, %v1315_v1  ;;  %v1255_v0 = vrot.slane %v1102_v7, 1  ;;  %2264 = vmatpush1.bf16.msra.mxu0 %v13102_v47  ;;  %v13142_v21 = vld [vmem:[%s15060_s25 + $0x278] ss:$24 sps:$4 sm:$0xff]  }
 0x172   : > { %v1056_v40 = vsel %vm999_vm3, %v1051_v18, %v15277_v60  ;;  %v1095_v52 = vrot.slane %v1093_v34, 1  ;;  %v15375_v16 = vor.u32 %v1235_v25, %v1234_v8  ;;  %v13109_v18 = vld [vmem:[%s15060_s25 + $0x188] ss:$24 sps:$4 sm:$0xff]   ;;  %v910_v8 = vld [vmem:[%s15121_s19 + $0x7c] sm:$0x3]  ;;  %2265 = vmatprep.subr.bf16.mxu0 %v13104_v63  ;;  %v1174_v37 = vrot.slane %v15365_v12, 1 }
 0x173   : > { %v1249_v62 = vrot.slane %v1083_v19, 2  ;;  %v15397_v25 = vcombine.low %v909_v10, %v910_v8  ;;  %v13123_v10 = vld [vmem:[%s15060_s25 + $0x1e8] ss:$24 sps:$4 sm:$0xff]  }
 0x174   : > { %1272 = vrot.lane.b32.xlu0 %v15172_v50, %s14596_s13  ;;  %v15282_v50 = vsel %vm1152_vm1, %v1168_v48, %v1169_v49  ;;  %v13103_v48 = vld [vmem:[%s15060_s25 + $0x158] ss:$24 sps:$4 sm:$0xff]  }
 0x175   : > { %1329 = vrot.lane.b32.xlu1 %v1303_v57, %s14594_s23  ;;  %v1247_v57 = vor.u32 %v1246_v58, %v1245_v56  ;;  %v15304_v5 = vor.u32 %v1249_v62, %v1248_v61  ;;  %v15351_v56 = vrot.slane %v1098_v41, 1  ;;  %v15356_v58 = vsel %vm1152_vm1, %v1171_v35, %v1172_v42  ;;  %2417 = vmatpush1.bf16.msra.mxu1 %v13103_v48  ;;  %v13114_v35 = vld [vmem:[%s15060_s25 + $0x1bc] ss:$24 sps:$4 sm:$0xff]   ;;  %v13116_v48 = vld [vmem:[%s15060_s25 + $0x1b0] ss:$24 sps:$4 sm:$0xff]  }
 0x176   : > { %v1256_v61 = vrot.slane %v1098_v41, 2  ;;  %v1317_v62 = vrot.slane %v13096_v27, 2  ;;  %2418 = vmatprep.subr.bf16.mxu1 %v13106_v4  ;;  %v1113_v47 = vshll.u32 %v15397_v25, 16  ;;  %v1063_v4 = vshll.u32 %v15382_v26, 16 }
 0x177   : > { %v15321_v22 = vsel %vm1209_vm2, %v1247_v57, %v15304_v5 }
 0x178   : > { %1128 = vrot.lane.b32.xlu0 %v1041_v53, %s14595_s21  ;;  %v1253_v53 = vrot.slane %v1093_v34, 2  ;;  %v15388_v36 = vor.u32 %v1256_v61, %v1255_v0  ;;  %v15393_v9 = vsel %vm1298_vm0, %v1317_v62, %v1318_v3  ;;  %v1117_v61 = vshrl.u32 %v15397_v25, 16 }
 0x179   : > { %1185 = vrot.lane.b32.xlu1 %v1161_v11, %s14593_s28  ;;  %v1096_v11 = vor.u32 %v1095_v52, %v1091_v33  ;;  %v13112_v33 = vld [vmem:[%s15060_s25 + $0x1b4] ss:$24 sps:$4 sm:$0xff]   ;;  %v13117_v52 = vld [vmem:[%s15060_s25 + $0x1b8] ss:$24 sps:$4 sm:$0xff]   ;;  %2419 = vmatpush1.bf16.msra.mxu1 %v13109_v18  ;;  %v1259_v0 = vrot.slane %v1106_v20, 1  ;;  %v1263_v18 = vrot.slane %v1113_v47, 2 }
 0x17a   : > { %v1254_v57 = vor.u32 %v1253_v53, %v1252_v29  ;;  %v1175_v29 = vrot.slane %v15397_v25, 1  ;;  %v13118_v53 = vld [vmem:[%s15060_s25 + $0x1e4] ss:$24 sps:$4 sm:$0xff]   ;;  %2420 = vmatprep.subr.bf16.mxu1 %v13114_v35 }
 0x17b   : > { %v15386_v27 = vsel %vm999_vm3, %v1096_v11, %v15351_v56  ;;  %v15423_v11 = vrot.slane %v1113_v47, 1 }
 0x17c   : > { %1274 = vrot.lane.b32.xlu0 %v1230_v17, %s14596_s13  ;;  %v13108_v17 = vld [vmem:[%s15060_s25 + $0x180] ss:$24 sps:$4 sm:$0xff]   ;;  %v15407_v34 = vsel %vm1209_vm2, %v1254_v57, %v15388_v36  ;;  %v13120_v57 = vld [vmem:[%s15060_s25 + $0x1ec] ss:$24 sps:$4 sm:$0xff]  }
 0x17d   : > { %1331 = vrot.lane.b32.xlu1 %v1307_v2, %s14594_s23  ;;  %v898_v2 = vld [vmem:[%s15121_s19 + $0x4c] sm:$0x3]  ;;  %2266 = vmatpush1.bf16.msra.mxu0 %v13108_v17 }
 0x17e   : > { %v15421_v62 = vcombine.low %v897_v24, %v898_v2  ;;  %2267 = vmatprep.subr.bf16.mxu0 %v13112_v33  ;;  %v1321_v24 = vrot.slane %v15397_v25, 2  ;;  %v1310_v2 = vsel %vm1298_vm0, %v1308_v28, %v1309_v31  ;;  %2421 = vmatpush1.bf16.msra.mxu1 %v13117_v52  ;;  %v13126_v33 = vld [vmem:[%s15060_s25 + $0x21c] ss:$24 sps:$4 sm:$0xff]   ;;  %v1061_v28 = vshrl.u32 %v15382_v26, 16 }
 0x17f   : > { %2422 = vmatprep.subr.bf16.mxu1 %v13120_v57 }
 0x180   : > { %1130 = vrot.lane.b32.xlu0 %v1044_v32, %s14595_s21  ;;  %v1108_v32 = vshll.u32 %v15365_v12, 16  ;;  %v1072_v47 = vshrl.u32 %v15421_v62, 16  ;;  %v1238_v52 = vrot.slane %v1061_v28, 1 }
 0x181   : > { %1132 = vrot.lane.b32.xlu1 %v1056_v40, %s14595_s21  ;;  %v1320_v40 = vrot.slane %v15365_v12, 2  ;;  %v15432_v12 = vsel %vm1152_vm1, %v1174_v37, %v1175_v29  ;;  %2268 = vmatpush1.bf16.msra.mxu0 %v13116_v48  ;;  %v1065_v37 = vrot.slane %v1063_v4, 1  ;;  %v13130_v48 = vld [vmem:[%s15060_s25 + $0x244] ss:$24 sps:$4 sm:$0xff]  }
 0x182   : > { %v1110_v41 = vrot.slane %v1108_v32, 1  ;;  %2269 = vmatprep.subr.bf16.mxu0 %v13118_v53  ;;  %2423 = vmatpush1.bf16.msra.mxu1 %v13123_v10 }
 0x183   : > { %v15456_v35 = vsel %vm1298_vm0, %v1320_v40, %v1321_v24  ;;  %2424 = vmatprep.subr.bf16.mxu1 %v13126_v33  ;;  %v1066_v53 = vor.u32 %v1065_v37, %v1061_v28  ;;  %v13145_v28 = vld [vmem:[%s15060_s25 + $0x2ac] ss:$24 sps:$4 sm:$0xff]  }
 0x184   : > { %1187 = vrot.lane.b32.xlu0 %v1160_v6, %s14593_s28  ;;  %v1237_v6 = vsel %vm1209_vm2, %v1233_v15, %v15375_v16  ;;  %v1111_v63 = vor.u32 %v1110_v41, %v1106_v20  ;;  %v1262_v15 = vrot.slane %v1117_v61, 1  ;;  %v1068_v41 = vshll.u32 %v15421_v62, 16 }
 0x185   : > { %1189 = vrot.lane.b32.xlu1 %v1164_v14, %s14593_s28  ;;  %v1260_v14 = vrot.slane %v1108_v32, 2  ;;  %v13124_v32 = vld [vmem:[%s15060_s25 + $0x214] ss:$24 sps:$4 sm:$0xff]  }
 0x186   : > { %v15439_v17 = vsel %vm999_vm3, %v1111_v63, %v15423_v11  ;;  %v15449_v20 = vor.u32 %v1263_v18, %v1262_v15  ;;  %v1070_v60 = vrot.slane %v1068_v41, 1  ;;  %v1241_v63 = vrot.slane %v1072_v47, 1  ;;  %v13139_v18 = vld [vmem:[%s15060_s25 + $0x27c] ss:$24 sps:$4 sm:$0xff]  }
 0x187   : > { %v1261_v8 = vor.u32 %v1260_v14, %v1259_v0  ;;  %v1242_v57 = vrot.slane %v1068_v41, 2  ;;  %v13134_v0 = vld [vmem:[%s15060_s25 + $0x240] ss:$24 sps:$4 sm:$0xff]   ;;  %v1165_v14 = vrot.slane %v15382_v26, 1  ;;  %v1166_v15 = vrot.slane %v15421_v62, 1 }
 0x188   : > { %1276 = vrot.lane.b32.xlu0 %v15255_v43, %s14596_s13  ;;  %v13122_v43 = vld [vmem:[%s15060_s25 + $0x1e0] ss:$24 sps:$4 sm:$0xff]   ;;  %v1085_v41 = vrot.slane %v1083_v19, 1  ;;  %v13159_v19 = vld [vmem:[%s15060_s25 + $0x14] ss:$24 sps:$4 sm:$0xff]  }
 0x189   : > { %1278 = vrot.lane.b32.xlu1 %v1237_v6, %s14596_s13  ;;  %v15470_v40 = vsel %vm1209_vm2, %v1261_v8, %v15449_v20  ;;  %2270 = vmatpush1.bf16.msra.mxu0 %v13122_v43  ;;  %v1239_v6 = vrot.slane %v1063_v4, 2  ;;  %v13135_v43 = vld [vmem:[%s15060_s25 + $0x248] ss:$24 sps:$4 sm:$0xff]   ;;  %v13137_v4 = vld [vmem:[%s15060_s25 + $0x274] ss:$24 sps:$4 sm:$0xff]   ;;  %v1243_v10 = vor.u32 %v1242_v57, %v1241_v63  ;;  %v1311_v8 = vrot.slane %v15382_v26, 2 }
 0x18a   : > { %2271 = vmatprep.subr.bf16.mxu0 %v13124_v32  ;;  %v13141_v32 = vld [vmem:[%s15060_s25 + $0x270] ss:$24 sps:$4 sm:$0xff]   ;;  %v1167_v33 = vsel %vm1152_vm1, %v1165_v14, %v1166_v15 }
 0x18c   : > { %1333 = vrot.lane.b32.xlu0 %v1306_v30, %s14594_s23  ;;  %v13129_v30 = vld [vmem:[%s15060_s25 + $0x218] ss:$24 sps:$4 sm:$0xff]  }
 0x18d   : > { %1335 = vrot.lane.b32.xlu1 %v1310_v2, %s14594_s23  ;;  %2272 = vmatpush1.bf16.msra.mxu0 %v13128_v55  ;;  %v1240_v2 = vor.u32 %v1239_v6, %v1238_v52  ;;  %v13148_v55 = vld [vmem:[%s15060_s25 + $0x2a8] ss:$24 sps:$4 sm:$0xff]  }
 0x18e   : > { %2425 = vmatpush1.bf16.msra.mxu1 %v13129_v30  ;;  %2273 = vmatprep.subr.bf16.mxu0 %v13130_v48  ;;  %v13149_v30 = vld [vmem:[%s15060_s25 + $0x2d4] ss:$24 sps:$4 sm:$0xff]   ;;  %v13153_v52 = vld [vmem:[%s15060_s25 + $0x2d0] ss:$24 sps:$4 sm:$0xff]  }
 0x18f   : > { %2426 = vmatprep.subr.bf16.mxu1 %v13132_v54  ;;  %v1244_v26 = vsel %vm1209_vm2, %v1240_v2, %v1243_v10  ;;  %v13151_v48 = vld [vmem:[%s15060_s25 + $0x2dc] ss:$24 sps:$4 sm:$0xff]   ;;  %v1074_v54 = vor.u32 %v1072_v47, %v1070_v60  ;;  %v1089_v47 = vor.u32 %v1087_v51, %v1085_v41  ;;  %v13163_v2 = vld [vmem:[%s15060_s25 + $0x70] ss:$24 sps:$4 sm:$0xff]   ;;  %vm3227_vm2 = vcmask 1045509  }
 0x190   : > { %1134 = vrot.lane.b32.xlu0 %v1059_v59, %s14595_s21  ;;  %v1312_v59 = vrot.slane %v15421_v62, 2  ;;  %v13147_v62 = vld [vmem:[%s15060_s25 + $0x2a0] ss:$24 sps:$4 sm:$0xff]  }
 0x191   : > { %1191 = vrot.lane.b32.xlu1 %v1163_v38, %s14593_s28  ;;  %v1071_v38 = vsel %vm999_vm3, %v1066_v53, %v1070_v60  ;;  %2274 = vmatpush1.bf16.msra.mxu0 %v13134_v0  ;;  %v14189_v60 = vld [vmem:[%s15121_s19 + $0x18] sm:$0xf]  ;;  %v13165_v53 = vld [vmem:[%s15060_s25 + $0x74] ss:$24 sps:$4 sm:$0xff]  }
 0x192   : > { %2427 = vmatpush1.bf16.msra.mxu1 %v13135_v43  ;;  %2275 = vmatprep.subr.bf16.mxu0 %v13137_v4  ;;  %v11712_v6 = vcombine.low %v14189_v60, %v14189_v60 }
 0x193   : > { %2428 = vmatprep.subr.bf16.mxu1 %v13139_v18 }
 0x194   : > { %1280 = vrot.lane.b32.xlu0 %v15375_v16, %s14596_s13  ;;  %v1080_v16 = vrot.slane %v1078_v45, 1  ;;  %v1313_v45 = vsel %vm1298_vm0, %v1311_v8, %v1312_v59  ;;  %vm3224_vm0 = vcmask 1044484  }
 0x195   : > { %1337 = vrot.lane.b32.xlu1 %v1309_v31, %s14594_s23  ;;  %v13143_v31 = vld [vmem:[%s15060_s25 + $0x2a4] ss:$24 sps:$4 sm:$0xff]   ;;  %2276 = vmatpush1.bf16.msra.mxu0 %v13141_v32 }
 0x196   : > { %v1081_v37 = vor.u32 %v1080_v16, %v1076_v44  ;;  %2429 = vmatpush1.bf16.msra.mxu1 %v13142_v21  ;;  %2277 = vmatprep.subr.bf16.mxu0 %v13143_v31  ;;  %v13154_v44 = vld [vmem:[%s15060_s25 + $0x2d8] ss:$24 sps:$4 sm:$0xff]   ;;  %v13169_v32 = vld [vmem:[%s15060_s25 + $0xa4] ss:$24 sps:$4 sm:$0xff]  }
 0x197   : > { %2430 = vmatprep.subr.bf16.mxu1 %v13145_v28  ;;  %v13167_v21 = vld [vmem:[%s15060_s25 + $0xa0] ss:$24 sps:$4 sm:$0xff]  }
 0x198   : > { %1136 = vrot.lane.b32.xlu0 %v1071_v38, %s14595_s21  ;;  %v1086_v23 = vsel %vm999_vm3, %v1081_v37, %v1085_v41 }
 0x199   : > { %1193 = vrot.lane.b32.xlu1 %v1167_v33, %s14593_s28  ;;  %2278 = vmatpush1.bf16.msra.mxu0 %v13147_v62 }
 0x19a   : > { %2431 = vmatpush1.bf16.msra.mxu1 %v13148_v55  ;;  %2279 = vmatprep.subr.bf16.mxu0 %v13149_v30 }
 0x19b   : > { %2432 = vmatprep.subr.bf16.mxu1 %v13151_v48 }
 0x19c   : > { %1282 = vrot.lane.b32.xlu0 %v1244_v26, %s14596_s13 }
 0x19d   : > { %1339 = vrot.lane.b32.xlu1 %v1313_v45, %s14594_s23  ;;  %2280 = vmatpush1.bf16.msra.mxu0 %v13153_v52  ;;  %v13172_v45 = vld [vmem:[%s15060_s25 + $0xd4] ss:$24 sps:$4 sm:$0xff]  }
 0x19e   : > { %2433 = vmatpush1.bf16.msra.mxu1 %v13154_v44  ;;  %2555 = vmatprep.subr.bf16.mxu0 %v13159_v19  ;;  %v13176_v44 = vld [vmem:[%s15060_s25 + $0x104] ss:$24 sps:$4 sm:$0xff]  }
 0x1a0   : > { %1138 = vrot.lane.b32.xlu0 %v1074_v54, %s14595_s21 }
 0x1a1   : > { %1140 = vrot.lane.b32.xlu1 %v1086_v23, %s14595_s21  ;;  %v13170_v23 = vld [vmem:[%s15060_s25 + $0xd0] ss:$24 sps:$4 sm:$0xff]  }
 0x1a4   : > { %1195 = vrot.lane.b32.xlu0 %v1166_v15, %s14593_s28 }
 0x1a5   : > { %1197 = vrot.lane.b32.xlu1 %v15282_v50, %s14593_s28  ;;  %v1119_v50 = vor.u32 %v1117_v61, %v15423_v11  ;;  %v14188_v61 = vld [vmem:[%s15121_s19 + $0x10] sm:$0xff]  }
 0x1a8   : > { %1284 = vrot.lane.b32.xlu0 %v1243_v10, %s14596_s13 }
 0x1a9   : > { %1286 = vrot.lane.b32.xlu1 %v15321_v22, %s14596_s13 }
 0x1ac   : > { %1341 = vrot.lane.b32.xlu0 %v1312_v59, %s14594_s23 }
 0x1ad   : > { %1343 = vrot.lane.b32.xlu1 %v15311_v13, %s14594_s23 }
 0x1b0   : > { %1142 = vrot.lane.b32.xlu0 %v1089_v47, %s14595_s21 }
 0x1b1   : > { %1199 = vrot.lane.b32.xlu1 %v1169_v49, %s14593_s28  ;;  %v1104_v49 = vor.u32 %v1102_v7, %v15351_v56  ;;  %v14186_v7 = vld [vmem:[%s15121_s19 + $0x8] sm:$0xf] }
 0x1b2   : > { %v11710_v56 = vcombine.low %v14186_v7, %v14186_v7  ;;  %v13177_v7 = vld [vmem:[%s15060_s25 + $0x130] ss:$24 sps:$4 sm:$0xff]  }
 0x1b4   : > { %1288 = vrot.lane.b32.xlu0 %v15304_v5, %s14596_s13 }
 0x1b5   : > { %1345 = vrot.lane.b32.xlu1 %v1315_v1, %s14594_s23 }
 0x1b8   : > { %1144 = vrot.lane.b32.xlu0 %v15386_v27, %s14595_s21  ;;  %v14187_v27 = vld [vmem:[%s15121_s19] sm:$0xff]  }
 0x1b9   : > { %1201 = vrot.lane.b32.xlu1 %v15356_v58, %s14593_s28 }
 0x1bc   : > { %1290 = vrot.lane.b32.xlu0 %v15407_v34, %s14596_s13  ;;  %v13162_v34 = vld [vmem:[%s15060_s25 + $0x44] ss:$24 sps:$4 sm:$0xff]  }
 0x1bd   : > { %1347 = vrot.lane.b32.xlu1 %v15393_v9, %s14594_s23 }
 0x1c0   : > { %1146 = vrot.lane.b32.xlu0 %v1104_v49, %s14595_s21  ;;  %v14190_v49 = vld [vmem:[%s15121_s19 + $0x20] sm:$0xff]  }
 0x1c1   : > { %1148 = vrot.lane.b32.xlu1 %v15439_v17, %s14595_s21 }
 0x1c4   : > { %1203 = vrot.lane.b32.xlu0 %v1172_v42, %s14593_s28 }
 0x1c5   : > { %1205 = vrot.lane.b32.xlu1 %v15432_v12, %s14593_s28 }
 0x1c8   : > { %1292 = vrot.lane.b32.xlu0 %v15388_v36, %s14596_s13 }
 0x1c9   : > { %1294 = vrot.lane.b32.xlu1 %v15470_v40, %s14596_s13 }
 0x1ca   : > { %v1180_v39 = vpop.permute.xlu0 %1179 }
 0x1cb   : > { %v15564_v51 = vpop.permute.xlu1 %1323 }
 0x1cc   : > { %11837 = vmatprep.mubr.msk.bf16.mxu0 %vm1495_vm4, %v15564_v51  ;;  %11841 = vmatprep.mubr.msk.bf16.mxu1 %vm1495_vm4, %v15564_v51 }
 0x1cd   : > { %1349 = vrot.lane.b32.xlu0 %v1318_v3, %s14594_s23  ;;  %1351 = vrot.lane.b32.xlu1 %v15456_v35, %s14594_s23  ;;  %v13157_v3 = vld [vmem:[%s15060_s25 + $0x10] ss:$24 sps:$4 sm:$0xff]  }
 0x1ce   : > { %v1178_v1 = vpop.permute.xlu0 %1177 }
 0x1cf   : > { %v1182_v5 = vpop.permute.xlu1 %1181 }
 0x1d1   : > { %1150 = vrot.lane.b32.xlu0 %v1119_v50, %s14595_s21  ;;  %1207 = vrot.lane.b32.xlu1 %v1175_v29, %s14593_s28 }
 0x1d2   : > { %v1123_v13 = vpop.permute.xlu0 %1122 }
 0x1d3   : > { %v1267_v22 = vpop.permute.xlu1 %1266  ;;  %v1360_v29 = vsel %vm1355_vm5, %v11710_v56, %v1123_v13  ;;  %v13182_v56 = vld [vmem:[%s15060_s25 + $0x164] ss:$24 sps:$4 sm:$0xff]  }
 0x1d4   : > { %v1400_v63 = vsel %vm1396_vm6, %v1360_v29, %v1180_v39 }
 0x1d5   : > { %1296 = vrot.lane.b32.xlu0 %v15449_v20, %s14596_s13  ;;  %1353 = vrot.lane.b32.xlu1 %v1321_v24, %s14594_s23  ;;  %v13160_v20 = vld [vmem:[%s15060_s25 + $0x40] ss:$24 sps:$4 sm:$0xff]  }
 0x1d6   : > { %v1269_v46 = vpop.permute.xlu0 %1268 }
 0x1d7   : > { %v1125_v42 = vpop.permute.xlu1 %1124  ;;  %v1433_v14 = vsel %vm1429_vm8, %v1400_v63, %v1269_v46 }
 0x1d8   : > { %v1362_v11 = vsel %vm1355_vm5, %v14188_v61, %v1125_v42 }
 0x1d9   : > { %v1402_v57 = vsel %vm1396_vm6, %v1362_v11, %v1182_v5  ;;  %v13179_v5 = vld [vmem:[%s15060_s25 + $0x134] ss:$24 sps:$4 sm:$0xff]   ;;  %v13184_v11 = vld [vmem:[%s15060_s25 + $0x190] ss:$24 sps:$4 sm:$0xff]  }
 0x1da   : > { %v1121_v58 = vpop.permute.xlu0 %1120 }
 0x1db   : > { %v1357_v36 = vsel %vm1355_vm5, %v14187_v27, %v1121_v58  ;;  %v1271_v9 = vpop.permute.xlu1 %1270 }
 0x1dc   : > { %v1398_v25 = vsel %vm1396_vm6, %v1357_v36, %v1178_v1  ;;  %v1435_v15 = vsel %vm1429_vm8, %v1402_v57, %v1271_v9  ;;  %v13174_v1 = vld [vmem:[%s15060_s25 + $0x100] ss:$24 sps:$4 sm:$0xff]   ;;  %v14191_v9 = vld [vmem:[%s15121_s19 + $0x28] sm:$0xf] }
 0x1dd   : > { %v1431_v12 = vsel %vm1429_vm8, %v1398_v25, %v1267_v22  ;;  %v13180_v36 = vld [vmem:[%s15060_s25 + $0x160] ss:$24 sps:$4 sm:$0xff]   ;;  %v13186_v25 = vld [vmem:[%s15060_s25 + $0x194] ss:$24 sps:$4 sm:$0xff]  }
 0x1de   : > { %v1326_v17 = vpop.permute.xlu0 %1325  ;;  %v15599_v24 = vsel %vm1462_vm7, %v1431_v12, %v15564_v51 }
 0x1df   : > { %v1498_v35 = vsel %vm1495_vm4, %v1326_v17, 0  ;;  %v1328_v40 = vpop.permute.xlu1 %1327  ;;  %2282 = vmatmul.mubr.bf16.vlgmr.msra.gmra.mrb[0].mxu0 %v15599_v24  ;;  %2435 = vmatmul.mubr.bf16.vlgmr.msra.gmra.mrb[0].mxu1 %v15599_v24  ;;  %v1466_v4 = vsel %vm1462_vm7, %v1433_v14, %v1326_v17  ;;  %v13189_v17 = vld [vmem:[%s15060_s25 + $0x1c4] ss:$24 sps:$4 sm:$0xff]  }
 0x1e0   : > { %v1499_v0 = vsel %vm1495_vm4, %v1328_v40, 0  ;;  %2556 = vmatpush1.bf16.msra.mxu0 %v13157_v3  ;;  %v1468_v18 = vsel %vm1462_vm7, %v1435_v15, %v1328_v40  ;;  %v14193_v15 = vld [vmem:[%s15121_s19 + $0x38] sm:$0xf] }
 0x1e1   : > { %v15612_v43 = vcombine.low %v1498_v35, %v1499_v0  ;;  %2557 = vmatprep.subr.bf16.mxu0 %v13162_v34  ;;  %v15621_v33 = vcombine.low %v1466_v4, %v1468_v18  ;;  %v1554_v37 = vunpack.c.h.b16 %v1499_v0  ;;  %v1553_v48 = vunpack.c.h.b16 %v1468_v18  ;;  %v13187_v18 = vld [vmem:[%s15060_s25 + $0x1c0] ss:$24 sps:$4 sm:$0xff]  }
 0x1e2   : > { %v1127_v38 = vpop.permute.xlu0 %1126  ;;  %v11714_v34 = vcombine.low %v14191_v9, %v14191_v9  ;;  %v11716_v4 = vcombine.low %v14193_v15, %v14193_v15 }
 0x1e3   : > { %v1365_v10 = vsel %vm1355_vm5, %v11712_v6, %v1127_v38  ;;  %v1184_v8 = vpop.permute.xlu1 %1183  ;;  %2291 = vmatprep.mubr.bf16.mxu0 %v15612_v43  ;;  %2444 = vmatprep.mubr.bf16.mxu1 %v15612_v43 }
 0x1e4   : > { %2558 = vmatpush1.bf16.msra.mxu0 %v13160_v20  ;;  %v1404_v59 = vsel %vm1396_vm6, %v1365_v10, %v1184_v8  ;;  %v14192_v20 = vld [vmem:[%s15121_s19 + $0x30] sm:$0xff]  }
 0x1e5   : > { %2559 = vmatprep.subr.bf16.mxu0 %v13165_v53  ;;  %v13192_v10 = vld [vmem:[%s15060_s25 + $0x1f4] ss:$24 sps:$4 sm:$0xff]  }
 0x1e6   : > { %v1273_v16 = vpop.permute.xlu0 %1272 }
 0x1e7   : > { %v1437_v31 = vsel %vm1429_vm8, %v1404_v59, %v1273_v16  ;;  %v1330_v28 = vpop.permute.xlu1 %1329  ;;  %2292 = vmatmul.mubr.bf16.gmra.mrb[4].mxu0 %v15621_v33  ;;  %2445 = vmatmul.mubr.bf16.gmra.mrb[4].mxu1 %v15621_v33 }
 0x1e8   : > { %v1470_v26 = vsel %vm1462_vm7, %v1437_v31, %v1330_v28  ;;  %v1500_v62 = vsel %vm1495_vm4, %v1330_v28, 0  ;;  %2560 = vmatpush1.bf16.msra.mxu0 %v13163_v2  ;;  %v13190_v31 = vld [vmem:[%s15060_s25 + $0x1f0] ss:$24 sps:$4 sm:$0xff]   ;;  %v13196_v28 = vld [vmem:[%s15060_s25 + $0x224] ss:$24 sps:$4 sm:$0xff]  }
 0x1e9   : > { %v1555_v41 = vunpack.c.l.b16 %v1470_v26  ;;  %v1556_v55 = vunpack.c.l.b16 %v1500_v62  ;;  %2561 = vmatprep.subr.bf16.mxu0 %v13169_v32 }
 0x1ea   : > { %v1129_v30 = vpop.permute.xlu0 %1128 }
 0x1eb   : > { %v1186_v54 = vpop.permute.xlu1 %1185  ;;  %v15631_v52 = vpack.c.b16 %v1556_v55, %v1554_v37  ;;  %v15637_v19 = vpack.c.b16 %v1555_v41, %v1553_v48  ;;  %v1367_v39 = vsel %vm1355_vm5, %v14190_v49, %v1129_v30 }
 0x1ec   : > { %2562 = vmatpush1.bf16.msra.mxu0 %v13167_v21  ;;  %v1406_v13 = vsel %vm1396_vm6, %v1367_v39, %v1186_v54 }
 0x1ed   : > { %2301 = vmatprep.mubr.bf16.mxu0 %v15631_v52  ;;  %2454 = vmatprep.mubr.bf16.mxu1 %v15631_v52 }
 0x1ee   : > { %v1275_v47 = vpop.permute.xlu0 %1274  ;;  %2563 = vmatprep.subr.bf16.mxu0 %v13172_v45 }
 0x1ef   : > { %v15641_v50 = vpop.permute.xlu1 %1331  ;;  %2302 = vmatmul.mubr.bf16.gmra.mrb[8].mxu0 %v15637_v19  ;;  %2455 = vmatmul.mubr.bf16.gmra.mrb[8].mxu1 %v15637_v19  ;;  %v1439_v46 = vsel %vm1429_vm8, %v1406_v13, %v1275_v47  ;;  %v13197_v13 = vld [vmem:[%s15060_s25 + $0x250] ss:$24 sps:$4 sm:$0xff]  }
 0x1f0   : > { %11838 = vmatprep.mubr.msk.bf16.mxu0 %vm1495_vm4, %v15641_v50  ;;  %11842 = vmatprep.mubr.msk.bf16.mxu1 %vm1495_vm4, %v15641_v50  ;;  %v15657_v3 = vsel %vm1462_vm7, %v1439_v46, %v15641_v50 }
 0x1f1   : > { %2564 = vmatpush1.bf16.msra.mxu0 %v13170_v23 }
 0x1f2   : > { %v1131_v22 = vpop.permute.xlu0 %1130  ;;  %2565 = vmatprep.subr.bf16.mxu0 %v13176_v44  ;;  %v13194_v44 = vld [vmem:[%s15060_s25 + $0x220] ss:$24 sps:$4 sm:$0xff]  }
 0x1f3   : > { %v1133_v42 = vpop.permute.xlu1 %1132  ;;  %v1370_v12 = vsel %vm1355_vm5, %v11714_v34, %v1131_v22  ;;  %v14194_v22 = vld [vmem:[%s15121_s19 + $0x40] sm:$0xff]   ;;  %v13206_v34 = vld [vmem:[%s15060_s25 + $0x2b4] ss:$24 sps:$4 sm:$0xff]  }
 0x1f4   : > { %v1372_v35 = vsel %vm1355_vm5, %v14192_v20, %v1133_v42  ;;  %v14195_v20 = vld [vmem:[%s15121_s19 + $0x48] sm:$0xf] }
 0x1f5   : > { %2566 = vmatpush1.bf16.msra.mxu0 %v13174_v1 }
 0x1f6   : > { %v1188_v58 = vpop.permute.xlu0 %1187  ;;  %2567 = vmatprep.subr.bf16.mxu0 %v13179_v5  ;;  %v13199_v5 = vld [vmem:[%s15060_s25 + $0x254] ss:$24 sps:$4 sm:$0xff]  }
 0x1f7   : > { %v1190_v27 = vpop.permute.xlu1 %1189  ;;  %2312 = vmatmul.mubr.bf16.gmra.mrb[12].mxu0 %v15657_v3  ;;  %2465 = vmatmul.mubr.bf16.gmra.mrb[12].mxu1 %v15657_v3  ;;  %v1408_v40 = vsel %vm1396_vm6, %v1370_v12, %v1188_v58  ;;  %v13209_v12 = vld [vmem:[%s15060_s25 + $0x2e4] ss:$24 sps:$4 sm:$0xff]  }
 0x1f8   : > { %v1410_v60 = vsel %vm1396_vm6, %v1372_v35, %v1190_v27  ;;  %v13201_v27 = vld [vmem:[%s15060_s25 + $0x280] ss:$24 sps:$4 sm:$0xff]   ;;  %v11718_v35 = vcombine.low %v14195_v20, %v14195_v20  ;;  %v14199_v20 = vld [vmem:[%s15121_s19 + $0x68] sm:$0xf] }
 0x1f9   : > { %2568 = vmatpush1.bf16.msra.mxu0 %v13177_v7  ;;  %v13203_v7 = vld [vmem:[%s15060_s25 + $0x284] ss:$24 sps:$4 sm:$0xff]  }
 0x1fa   : > { %v1277_v29 = vpop.permute.xlu0 %1276  ;;  %2569 = vmatprep.subr.bf16.mxu0 %v13182_v56 }
 0x1fb   : > { %v1279_v61 = vpop.permute.xlu1 %1278  ;;  %v1441_v6 = vsel %vm1429_vm8, %v1408_v40, %v1277_v29  ;;  %v13207_v40 = vld [vmem:[%s15060_s25 + $0x2e0] ss:$24 sps:$4 sm:$0xff]  }
 0x1fc   : > { %v1443_v63 = vsel %vm1429_vm8, %v1410_v60, %v1279_v61  ;;  %v13204_v61 = vld [vmem:[%s15060_s25 + $0x2b0] ss:$24 sps:$4 sm:$0xff]   ;;  %s11708_s25 = sshll.u32 %s19910_s20, 3 }
 0x1fd   : > { %2570 = vmatpush1.bf16.msra.mxu0 %v13180_v36 }
 0x1fe   : > { %v1334_v53 = vpop.permute.xlu0 %1333  ;;  %2571 = vmatprep.subr.bf16.mxu0 %v13186_v25 }
 0x1ff   : > { %v1474_v57 = vsel %vm1462_vm7, %v1441_v6, %v1334_v53  ;;  %v1502_v0 = vsel %vm1495_vm4, %v1334_v53, 0  ;;  %v1336_v14 = vpop.permute.xlu1 %1335 }
 0x200   : > { %v1476_v38 = vsel %vm1462_vm7, %v1443_v63, %v1336_v14  ;;  %v1503_v2 = vsel %vm1495_vm4, %v1336_v14, 0  ;;  %v14196_v63 = vld [vmem:[%s15121_s19 + $0x50] sm:$0xff]  }
 0x201   : > { %v15680_v8 = vcombine.low %v1474_v57, %v1476_v38  ;;  %v15682_v32 = vcombine.low %v1502_v0, %v1503_v2  ;;  %2572 = vmatpush1.bf16.msra.mxu0 %v13184_v11  ;;  %v1565_v30 = vunpack.c.h.b16 %v1476_v38  ;;  %v1566_v48 = vunpack.c.h.b16 %v1503_v2 }
 0x202   : > { %v1135_v59 = vpop.permute.xlu0 %1134  ;;  %2573 = vmatprep.subr.bf16.mxu0 %v13189_v17 }
 0x203   : > { %v1375_v16 = vsel %vm1355_vm5, %v11716_v4, %v1135_v59  ;;  %v1192_v21 = vpop.permute.xlu1 %1191  ;;  %2321 = vmatprep.mubr.bf16.mxu0 %v15682_v32  ;;  %2474 = vmatprep.mubr.bf16.mxu1 %v15682_v32  ;;  %v14197_v59 = vld [vmem:[%s15121_s19 + $0x58] sm:$0xf] }
 0x204   : > { %2322 = vmatmul.mubr.bf16.gmra.mrb[16].mxu0 %v15680_v8  ;;  %2475 = vmatmul.mubr.bf16.gmra.mrb[16].mxu1 %v15680_v8  ;;  %v1412_v26 = vsel %vm1396_vm6, %v1375_v16, %v1192_v21  ;;  %v11720_v16 = vcombine.low %v14197_v59, %v14197_v59 }
 0x205   : > { %2574 = vmatpush1.bf16.msra.mxu0 %v13187_v18 }
 0x206   : > { %v1281_v62 = vpop.permute.xlu0 %1280  ;;  %2575 = vmatprep.subr.bf16.mxu0 %v13192_v10 }
 0x207   : > { %v1445_v45 = vsel %vm1429_vm8, %v1412_v26, %v1281_v62  ;;  %v1338_v37 = vpop.permute.xlu1 %1337 }
 0x208   : > { %v1478_v41 = vsel %vm1462_vm7, %v1445_v45, %v1338_v37  ;;  %v1504_v55 = vsel %vm1495_vm4, %v1338_v37, 0 }
 0x209   : > { %v1567_v54 = vunpack.c.l.b16 %v1478_v41  ;;  %v1568_v23 = vunpack.c.l.b16 %v1504_v55  ;;  %2576 = vmatpush1.bf16.msra.mxu0 %v13190_v31 }
 0x20a   : > { %v1137_v47 = vpop.permute.xlu0 %1136  ;;  %2577 = vmatprep.subr.bf16.mxu0 %v13196_v28 }
 0x20b   : > { %v1194_v49 = vpop.permute.xlu1 %1193  ;;  %v15696_v39 = vpack.c.b16 %v1568_v23, %v1566_v48  ;;  %v15698_v1 = vpack.c.b16 %v1567_v54, %v1565_v30  ;;  %v1377_v46 = vsel %vm1355_vm5, %v14194_v22, %v1137_v47 }
 0x20c   : > { %v1414_v58 = vsel %vm1396_vm6, %v1377_v46, %v1194_v49 }
 0x20d   : > { %2331 = vmatprep.mubr.bf16.mxu0 %v15696_v39  ;;  %2484 = vmatprep.mubr.bf16.mxu1 %v15696_v39 }
 0x20e   : > { %2332 = vmatmul.mubr.bf16.gmra.mrb[20].mxu0 %v15698_v1  ;;  %2485 = vmatmul.mubr.bf16.gmra.mrb[20].mxu1 %v15698_v1  ;;  %v1283_v42 = vpop.permute.xlu0 %1282 }
 0x20f   : > { %v15709_v56 = vpop.permute.xlu1 %1339  ;;  %2578 = vmatpush1.bf16.msra.mxu0 %v13194_v44  ;;  %v1447_v36 = vsel %vm1429_vm8, %v1414_v58, %v1283_v42 }
 0x210   : > { %11839 = vmatprep.mubr.msk.bf16.mxu0 %vm1495_vm4, %v15709_v56  ;;  %11843 = vmatprep.mubr.msk.bf16.mxu1 %vm1495_vm4, %v15709_v56  ;;  %v15721_v29 = vsel %vm1462_vm7, %v1447_v36, %v15709_v56 }
 0x211   : > { %2579 = vmatprep.subr.bf16.mxu0 %v13199_v5 }
 0x212   : > { %v1139_v9 = vpop.permute.xlu0 %1138 }
 0x213   : > { %v1141_v25 = vpop.permute.xlu1 %1140  ;;  %2580 = vmatpush1.bf16.msra.mxu0 %v13197_v13  ;;  %v1380_v53 = vsel %vm1355_vm5, %v11718_v35, %v1139_v9  ;;  %v11722_v35 = vcombine.low %v14199_v20, %v14199_v20 }
 0x214   : > { %2581 = vmatprep.subr.bf16.mxu0 %v13203_v7  ;;  %v1382_v57 = vsel %vm1355_vm5, %v14196_v63, %v1141_v25  ;;  %v14198_v7 = vld [vmem:[%s15121_s19 + $0x60] sm:$0xff]  }
 0x216   : > { %2342 = vmatmul.mubr.bf16.gmra.mrb[24].mxu0 %v15721_v29  ;;  %2495 = vmatmul.mubr.bf16.gmra.mrb[24].mxu1 %v15721_v29  ;;  %v1196_v11 = vpop.permute.xlu0 %1195 }
 0x217   : > { %v1198_v17 = vpop.permute.xlu1 %1197  ;;  %2582 = vmatpush1.bf16.msra.mxu0 %v13201_v27  ;;  %v1416_v0 = vsel %vm1396_vm6, %v1380_v53, %v1196_v11  ;;  %v14200_v53 = vld [vmem:[%s15121_s19 + $0x70] sm:$0xff]  }
 0x218   : > { %2583 = vmatprep.subr.bf16.mxu0 %v13206_v34  ;;  %v1418_v14 = vsel %vm1396_vm6, %v1382_v57, %v1198_v17 }
 0x21a   : > { %v1285_v60 = vpop.permute.xlu0 %1284 }
 0x21b   : > { %v1287_v6 = vpop.permute.xlu1 %1286  ;;  %2584 = vmatpush1.bf16.msra.mxu0 %v13204_v61  ;;  %v1449_v15 = vsel %vm1429_vm8, %v1416_v0, %v1285_v60 }
 0x21c   : > { %2585 = vmatprep.subr.bf16.mxu0 %v13209_v12  ;;  %v1451_v18 = vsel %vm1429_vm8, %v1418_v14, %v1287_v6 }
 0x21e   : > { %v1342_v4 = vpop.permute.xlu0 %1341 }
 0x21f   : > { %v1482_v38 = vsel %vm1462_vm7, %v1449_v15, %v1342_v4  ;;  %v1506_v2 = vsel %vm1495_vm4, %v1342_v4, 0  ;;  %v1344_v10 = vpop.permute.xlu1 %1343  ;;  %2586 = vmatpush1.bf16.msra.mxu0 %v13207_v40 }
 0x220   : > { %v1484_v21 = vsel %vm1462_vm7, %v1451_v18, %v1344_v10  ;;  %v1507_v31 = vsel %vm1495_vm4, %v1344_v10, 0 }
 0x221   : > { %v15741_v28 = vcombine.low %v1482_v38, %v1484_v21  ;;  %v15743_v26 = vcombine.low %v1506_v2, %v1507_v31  ;;  %v1577_v44 = vunpack.c.h.b16 %v1484_v21  ;;  %v1578_v47 = vunpack.c.h.b16 %v1507_v31  ;;  %v14201_v38 = vld [vmem:[%s15121_s19 + $0x78] sm:$0xf] }
 0x222   : > { %v1143_v62 = vpop.permute.xlu0 %1142  ;;  %v11724_v2 = vcombine.low %v14201_v38, %v14201_v38 }
 0x223   : > { %v1385_v45 = vsel %vm1355_vm5, %v11720_v16, %v1143_v62  ;;  %v1200_v37 = vpop.permute.xlu1 %1199  ;;  %2351 = vmatprep.mubr.bf16.mxu0 %v15743_v26  ;;  %2504 = vmatprep.mubr.bf16.mxu1 %v15743_v26 }
 0x224   : > { %2352 = vmatmul.mubr.bf16.gmra.mrb[28].mxu0 %v15741_v28  ;;  %2505 = vmatmul.mubr.bf16.gmra.mrb[28].mxu1 %v15741_v28  ;;  %v1420_v41 = vsel %vm1396_vm6, %v1385_v45, %v1200_v37 }
 0x226   : > { %v1289_v55 = vpop.permute.xlu0 %1288 }
 0x227   : > { %v1453_v30 = vsel %vm1429_vm8, %v1420_v41, %v1289_v55  ;;  %v1346_v48 = vpop.permute.xlu1 %1345 }
 0x228   : > { %v1486_v54 = vsel %vm1462_vm7, %v1453_v30, %v1346_v48  ;;  %v1508_v23 = vsel %vm1495_vm4, %v1346_v48, 0 }
 0x229   : > { %v1579_v49 = vunpack.c.l.b16 %v1486_v54  ;;  %v1580_v5 = vunpack.c.l.b16 %v1508_v23 }
 0x22a   : > { %v1145_v13 = vpop.permute.xlu0 %1144 }
 0x22b   : > { %v1202_v22 = vpop.permute.xlu1 %1201  ;;  %v15754_v46 = vpack.c.b16 %v1580_v5, %v1578_v47  ;;  %v15756_v42 = vpack.c.b16 %v1579_v49, %v1577_v44  ;;  %v1387_v58 = vsel %vm1355_vm5, %v14198_v7, %v1145_v13 }
 0x22c   : > { %v1422_v9 = vsel %vm1396_vm6, %v1387_v58, %v1202_v22 }
 0x22d   : > { %2361 = vmatprep.mubr.bf16.mxu0 %v15754_v46  ;;  %2514 = vmatprep.mubr.bf16.mxu1 %v15754_v46 }
 0x22e   : > { %2362 = vmatmul.mubr.bf16.gmra.mrb[32].mxu0 %v15756_v42  ;;  %2515 = vmatmul.mubr.bf16.gmra.mrb[32].mxu1 %v15756_v42  ;;  %v1291_v27 = vpop.permute.xlu0 %1290 }
 0x22f   : > { %v15764_v36 = vpop.permute.xlu1 %1347  ;;  %v1455_v34 = vsel %vm1429_vm8, %v1422_v9, %v1291_v27 }
 0x230   : > { %11840 = vmatprep.mubr.msk.bf16.mxu0 %vm1495_vm4, %v15764_v36  ;;  %11844 = vmatprep.mubr.msk.bf16.mxu1 %vm1495_vm4, %v15764_v36  ;;  %v15774_v11 = vsel %vm1462_vm7, %v1455_v34, %v15764_v36 }
 0x232   : > { %v1147_v25 = vpop.permute.xlu0 %1146 }
 0x233   : > { %v1149_v61 = vpop.permute.xlu1 %1148  ;;  %v1390_v6 = vsel %vm1355_vm5, %v11722_v35, %v1147_v25 }
 0x234   : > { %v1392_v63 = vsel %vm1355_vm5, %v14200_v53, %v1149_v61 }
 0x236   : > { %2372 = vmatmul.mubr.bf16.gmra.mrb[36].mxu0 %v15774_v11  ;;  %2525 = vmatmul.mubr.bf16.gmra.mrb[36].mxu1 %v15774_v11  ;;  %v1204_v12 = vpop.permute.xlu0 %1203 }
 0x237   : > { %v1206_v17 = vpop.permute.xlu1 %1205  ;;  %v1424_v57 = vsel %vm1396_vm6, %v1390_v6, %v1204_v12 }
 0x238   : > { %v1426_v0 = vsel %vm1396_vm6, %v1392_v63, %v1206_v17 }
 0x23a   : > { %v1293_v40 = vpop.permute.xlu0 %1292 }
 0x23b   : > { %v1295_v60 = vpop.permute.xlu1 %1294  ;;  %v1457_v14 = vsel %vm1429_vm8, %v1424_v57, %v1293_v40 }
 0x23c   : > { %v1459_v15 = vsel %vm1429_vm8, %v1426_v0, %v1295_v60 }
 0x23f   : > { %v1350_v4 = vpop.permute.xlu0 %1349  ;;  %v1352_v18 = vpop.permute.xlu1 %1351 }
 0x240   : > { %v1490_v10 = vsel %vm1462_vm7, %v1457_v14, %v1350_v4  ;;  %v1510_v59 = vsel %vm1495_vm4, %v1350_v4, 0  ;;  %v1492_v16 = vsel %vm1462_vm7, %v1459_v15, %v1352_v18  ;;  %v1511_v21 = vsel %vm1495_vm4, %v1352_v18, 0 }
 0x241   : > { %v11739_v31 = vcombine.low %v1490_v10, %v1492_v16  ;;  %v11740_v62 = vcombine.low %v1510_v59, %v1511_v21  ;;  %v1590_v44 = vunpack.c.h.b16 %v1511_v21  ;;  %v1589_v5 = vunpack.c.h.b16 %v1492_v16 }
 0x243   : > { %v1151_v45 = vpop.permute.xlu0 %1150  ;;  %v1208_v37 = vpop.permute.xlu1 %1207  ;;  %2381 = vmatprep.mubr.bf16.mxu0 %v11740_v62  ;;  %2534 = vmatprep.mubr.bf16.mxu1 %v11740_v62 }
 0x244   : > { %v1395_v41 = vsel %vm1355_vm5, %v11724_v2, %v1151_v45  ;;  %2382 = vmatmul.mubr.bf16.gmra.mrb[40].mxu0 %v11739_v31  ;;  %2535 = vmatmul.mubr.bf16.gmra.mrb[40].mxu1 %v11739_v31 }
 0x245   : > { %v1428_v55 = vsel %vm1396_vm6, %v1395_v41, %v1208_v37  ;;  %vm3233_vm6 = vcmask 1047559  }
 0x247   : > { %v1297_v30 = vpop.permute.xlu0 %1296  ;;  %v1354_v48 = vpop.permute.xlu1 %1353 }
 0x248   : > { %v1461_v54 = vsel %vm1429_vm8, %v1428_v55, %v1297_v30  ;;  %v1512_v23 = vsel %vm1495_vm4, %v1354_v48, 0 }
 0x249   : > { %v1494_v47 = vsel %vm1462_vm7, %v1461_v54, %v1354_v48  ;;  %v1592_v49 = vunpack.c.l.b16 %v1512_v23 }
 0x24a   : > { %v1591_v13 = vunpack.c.l.b16 %v1494_v47 }
 0x24b   : > { %v1744_v22 = vpack.c.b16 %v1592_v49, %v1590_v44 }
 0x24c   : > { %v1743_v7 = vpack.c.b16 %v1591_v13, %v1589_v5 }
 0x24d   : > { %2391 = vmatprep.mubr.bf16.mxu0 %v1744_v22  ;;  %2544 = vmatprep.mubr.bf16.mxu1 %v1744_v22 }
 0x24e   : > { %2392 = vmatmul.mubr.bf16.gmra.mrb[44].mxu0 %v1743_v7  ;;  %2545 = vmatmul.mubr.bf16.gmra.mrb[44].mxu1 %v1743_v7 }
 0x24f   : > { %11845 = vmatprep.mubr.msk.bf16.mxu0 %vm1495_vm4, %v15564_v51  ;;  %v1691_v51 = vlaneseq }
 0x256   : > { %2588 = vmatmul.mubr.bf16.vlgmr.msra.gmra.mrb[48].mxu0 %v15599_v24  ;;  %v15820_v24 = vshrl.u32 %v1691_v51, 7 }
 0x257   : > { %2597 = vmatprep.mubr.bf16.mxu0 %v15612_v43 }
 0x258   : > { %19592 = vst [vmem:[#allocation28_spill] sm:$0xff] %v15820_v24  ;;  %v15823_v43 = vsub.s32 0, %v15820_v24 }
 0x25a   : > { %19593 = vst [vmem:[#allocation29_spill] sm:$0xff] %v15823_v43 }
 0x25e   : > { %2598 = vmatmul.mubr.bf16.gmra.mrb[52].mxu0 %v15621_v33  ;;  %v1689_v33 = vld [vmem:[%s15069_s11] sm:$0x3f] }
 0x25f   : > { %2607 = vmatprep.mubr.bf16.mxu0 %v15631_v52  ;;  %v19446_v52 = vsub.s32 3, %v15820_v24 }
 0x266   : > { %2608 = vmatmul.mubr.bf16.gmra.mrb[56].mxu0 %v15637_v19  ;;  %v19447_v19 = vsub.s32 2, %v15820_v24 }
 0x267   : > { %11846 = vmatprep.mubr.msk.bf16.mxu0 %vm1495_vm4, %v15641_v50  ;;  %v15829_v50 = vrot.slane %v1689_v33, %v15823_v43 }
 0x26e   : > { %2618 = vmatmul.mubr.bf16.gmra.mrb[60].mxu0 %v15657_v3  ;;  %v15832_v3 = vsub.s32 1, %v15820_v24 }
 0x26f   : > { %2627 = vmatprep.mubr.bf16.mxu0 %v15682_v32 }
 0x270   : > { %19594 = vst [vmem:[#allocation30_spill] sm:$0xff] %v15832_v3 }
 0x276   : > { %2628 = vmatmul.mubr.bf16.gmra.mrb[64].mxu0 %v15680_v8  ;;  %v15836_v8 = vrot.slane %v1689_v33, %v19446_v52 }
 0x277   : > { %2637 = vmatprep.mubr.bf16.mxu0 %v15696_v39  ;;  %v15840_v39 = vrot.slane %v1689_v33, %v19447_v19 }
 0x27e   : > { %2638 = vmatmul.mubr.bf16.gmra.mrb[68].mxu0 %v15698_v1 }
 0x27f   : > { %11847 = vmatprep.mubr.msk.bf16.mxu0 %vm1495_vm4, %v15709_v56 }
 0x286   : > { %2648 = vmatmul.mubr.bf16.gmra.mrb[72].mxu0 %v15721_v29  ;;  %v15844_v29 = vrot.slane %v1689_v33, %v15832_v3 }
 0x287   : > { %2657 = vmatprep.mubr.bf16.mxu0 %v15743_v26 }
 0x28e   : > { %2658 = vmatmul.mubr.bf16.gmra.mrb[76].mxu0 %v15741_v28 }
 0x28f   : > { %2667 = vmatprep.mubr.bf16.mxu0 %v15754_v46 }
 0x296   : > { %2668 = vmatmul.mubr.bf16.gmra.mrb[80].mxu0 %v15756_v42 }
 0x297   : > { %11848 = vmatprep.mubr.msk.bf16.mxu0 %vm1495_vm4, %v15764_v36  ;;  %vm3230_vm4 = vcmask 1046534  }
 0x29e   : > { %2678 = vmatmul.mubr.bf16.gmra.mrb[84].mxu0 %v15774_v11 }
 0x29f   : > { %2687 = vmatprep.mubr.bf16.mxu0 %v11740_v62 }
 0x2a6   : > { %2688 = vmatmul.mubr.bf16.gmra.mrb[88].mxu0 %v11739_v31 }
 0x2a7   : > { %2697 = vmatprep.mubr.bf16.mxu0 %v1744_v22 }
 0x2ae   : > { %2698 = vmatmul.mubr.bf16.gmra.mrb[92].mxu0 %v1743_v7 }
 0x2b2   : > { %v2283_v32 = vpop.f32.mrb[0].mxu0  ;;  %v2436_v1 = vpop.f32.mrb[0].mxu1 }
 0x2b3   : > { %v2284_v56 = vadd.f32 %v2283_v32, %v15829_v50  ;;  %v2285_v28 = vpop.f32.mrb[1].mxu0  ;;  %v2438_v26 = vpop.f32.mrb[1].mxu1  ;;  %v15848_v34 = vadd.f32 %v2436_v1, %v15840_v39 }
 0x2b4   : > { %v2439_v46 = vadd.f32 %v2438_v26, %v15836_v8  ;;  %v2287_v42 = vpop.f32.mrb[2].mxu0  ;;  %v2440_v58 = vpop.f32.mrb[2].mxu1  ;;  %v15851_v11 = vadd.f32 %v2285_v28, %v15844_v29 }
 0x2b5   : > { %vm2708_vm9 = vcmp.gt.f32.partialorder %v2284_v56, 0.0  ;;  %v2852_v27 = vmul.f32 0.25, %v2284_v56  ;;  %v2289_v36 = vpop.f32.mrb[3].mxu0  ;;  %v2442_v9 = vpop.f32.mrb[3].mxu1  ;;  %v2288_v12 = vadd.f32 %v2287_v42, %v15829_v50  ;;  %vm2710_vm1 = vcmp.gt.f32.partialorder %v15848_v34, 0.0 }
 0x2b6   : > { %vm2711_vm10 = vcmp.gt.f32.partialorder %v2439_v46, 0.0  ;;  %v2855_v25 = vmul.f32 0.25, %v2439_v46  ;;  %v2443_v20 = vadd.f32 %v2442_v9, %v15836_v8  ;;  %v2854_v60 = vmul.f32 0.25, %v15848_v34 }
 0x2b7   : > { %v2996_v61 = vsel %vm2708_vm9, %v2284_v56, %v2852_v27  ;;  %vm2714_vm15 = vcmp.gt.f32.partialorder %v2288_v12, 0.0  ;;  %v2858_v40 = vmul.f32 0.25, %v2288_v12  ;;  %v15858_v6 = vadd.f32 %v2440_v58, %v15840_v39 }
 0x2b8   : > { %v2999_v17 = vsel %vm2711_vm10, %v2439_v46, %v2855_v25  ;;  %vm2709_vm3 = vcmp.gt.f32.partialorder %v15851_v11, 0.0  ;;  %v2290_v2 = vadd.f32 %v2289_v36, %v15844_v29  ;;  %vm2717_vm5 = vcmp.gt.f32.partialorder %v2443_v20, 0.0  ;;  %v13210_v36 = vld [vmem:[%s15077_s12] ss:$16 sps:$4 sm:$0xff]  }
 0x2b9   : > { %v3140_v35 = vmax.f32 %v2996_v61, %v2999_v17  ;;  %v3002_v38 = vsel %vm2714_vm15, %v2288_v12, %v2858_v40  ;;  %v2861_v31 = vmul.f32 0.25, %v2443_v20  ;;  %v2853_v41 = vmul.f32 0.25, %v15851_v11 }
 0x2ba   : > { %v2293_v53 = vpop.f32.mrb[4].mxu0  ;;  %v2446_v63 = vpop.f32.mrb[4].mxu1  ;;  %vm2716_vm7 = vcmp.gt.f32.partialorder %v15858_v6, 0.0  ;;  %v2860_v23 = vmul.f32 0.25, %v15858_v6  ;;  %vm2715_vm8 = vcmp.gt.f32.partialorder %v2290_v2, 0.0  ;;  %v2859_v22 = vmul.f32 0.25, %v2290_v2 }
 0x2bb   : > { %v3213_v57 = vsel %vm3212_vm11, %v3140_v35, 0.0  ;;  %v3214_v0 = vrot.slane %v3140_v35, 1  ;;  %v3217_v14 = vrot.slane %v3140_v35, 2  ;;  %v2295_v15 = vpop.f32.mrb[5].mxu0  ;;  %v2448_v4 = vpop.f32.mrb[5].mxu1  ;;  %v3220_v18 = vrot.slane %v3140_v35, 3 }
 0x2bc   : > { %v2297_v10 = vpop.f32.mrb[6].mxu0  ;;  %v15864_v59 = vpop.f32.mrb[6].mxu1  ;;  %v2294_v62 = vadd.f32 %v2293_v53, %v15829_v50  ;;  %v3268_v54 = vrot.slane %v3140_v35, 4  ;;  %v3005_v44 = vsel %vm2717_vm5, %v2443_v20, %v2861_v31  ;;  %v2449_v7 = vadd.f32 %v2448_v4, %v15836_v8  ;;  %v13212_v35 = vld [vmem:[%s15077_s12 + $0x4] ss:$16 sps:$4 sm:$0xff]  }
 0x2bd   : > { %v3216_v16 = vsel %vm3215_vm12, %v3214_v0, %v3213_v57  ;;  %v3265_v21 = vsel %vm3212_vm11, %v3214_v0, 0.0  ;;  %v15869_v45 = vpop.f32.mrb[7].mxu0  ;;  %v2452_v37 = vpop.f32.mrb[7].mxu1  ;;  %v15878_v47 = vmax.f32 %v3002_v38, %v3005_v44  ;;  %v15887_v1 = vadd.f32 %v2446_v63, %v15840_v39  ;;  %v13215_v4 = vld [vmem:[%s15077_s12 + $0xc] ss:$16 sps:$4 sm:$0xff]   ;;  %8188 = vmatprep.subr.bf16.mxu1 %v13212_v35 }
 0x2be   : > { %v3219_v55 = vsel %vm3218_vm13, %v3217_v14, %v3216_v16  ;;  %v3266_v30 = vsel %vm3215_vm12, %v3217_v14, %v3265_v21  ;;  %vm2720_vm9 = vcmp.gt.f32.partialorder %v2294_v62, 0.0  ;;  %v2864_v49 = vmul.f32 0.25, %v2294_v62  ;;  %8772 = vmatprep.subr.bf16.mxu0 %v13215_v4  ;;  %8189 = vmatpush1.bf16.msra.mxu1 %v13210_v36 }
 0x2bf   : > { %v3267_v48 = vsel %vm3218_vm13, %v3220_v18, %v3266_v30  ;;  %v3222_v5 = vsel %vm3221_vm14, %v3220_v18, %v3219_v55  ;;  %v3223_v51 = vrot.slane %v15878_v47, 4  ;;  %v3226_v33 = vrot.slane %v15878_v47, 5  ;;  %v13216_v55 = vld [vmem:[%s15077_s12 + $0x20] ss:$16 sps:$4 sm:$0xff]  }
 0x2c0   : > { %v3269_v13 = vsel %vm3221_vm14, %v3268_v54, %v3267_v48  ;;  %v19449_v32 = vrot.slane %v15878_v47, 6  ;;  %v19448_v26 = vrot.slane %v15878_v47, 7  ;;  %v3008_v46 = vsel %vm2720_vm9, %v2294_v62, %v2864_v49 }
 0x2c1   : > { %v15893_v42 = vadd.f32 %v2295_v15, %v15844_v29  ;;  %vm2723_vm10 = vcmp.gt.f32.partialorder %v2449_v7, 0.0  ;;  %v3225_v9 = vsel %vm3224_vm0, %v3223_v51, %v3222_v5  ;;  %v3270_v25 = vsel %vm3224_vm0, %v3226_v33, %v3269_v13  ;;  %v13213_v15 = vld [vmem:[%s15077_s12 + $0x8] ss:$16 sps:$4 sm:$0xff]  }
 0x2c2   : > { %v2303_v56 = vpop.f32.mrb[8].mxu0  ;;  %v15889_v28 = vpop.f32.mrb[8].mxu1  ;;  %v2867_v61 = vmul.f32 0.25, %v2449_v7  ;;  %v2298_v12 = vadd.f32 %v2297_v10, %v15829_v50  ;;  %v15911_v40 = vsel %vm2710_vm1, %v15848_v34, %v2854_v60  ;;  %v15916_v53 = vsel %vm2709_vm3, %v15851_v11, %v2853_v41  ;;  %8773 = vmatpush1.bf16.msra.mxu0 %v13213_v15 }
 0x2c3   : > { %v15895_v58 = vpop.f32.mrb[9].mxu0  ;;  %v15897_v27 = vpop.f32.mrb[9].mxu1  ;;  %19595 = vst [vmem:[#allocation31_spill] sm:$0xff] %v15911_v40  ;;  %v15919_v63 = vsel %vm3227_vm2, %v3226_v33, %v3225_v9  ;;  %v3271_v57 = vsel %vm3227_vm2, %v19449_v32, %v3270_v25  ;;  %v15933_v34 = vsel %vm2716_vm7, %v15858_v6, %v2860_v23  ;;  %v15940_v38 = vsel %vm2715_vm8, %v2290_v2, %v2859_v22 }
 0x2c4   : > { %v15903_v17 = vpop.f32.mrb[10].mxu0  ;;  %v15905_v20 = vpop.f32.mrb[10].mxu1  ;;  %19596 = vst [vmem:[#allocation32_spill] sm:$0xff] %v15933_v34  ;;  %v3272_v11 = vsel %vm3230_vm4, %v19448_v26, %v3271_v57  ;;  %v3011_v60 = vsel %vm2723_vm10, %v2449_v7, %v2867_v61  ;;  %v2870_v18 = vmul.f32 0.25, %v2298_v12  ;;  %19597 = vst [vmem:[#allocation33_spill] sm:$0xff] %v15940_v38  ;;  %vm2726_vm15 = vcmp.gt.f32.partialorder %v2298_v12, 0.0 }
 0x2c5   : > { %v15924_v0 = vpop.f32.mrb[11].mxu0  ;;  %v15926_v14 = vpop.f32.mrb[11].mxu1  ;;  %v15944_v10 = vsel %vm3233_vm6, %v15878_v47, %v3272_v11  ;;  %v3146_v16 = vmax.f32 %v3008_v46, %v3011_v60  ;;  %vm2722_vm1 = vcmp.gt.f32.partialorder %v15887_v1, 0.0  ;;  %v2866_v6 = vmul.f32 0.25, %v15887_v1  ;;  %v13222_v11 = vld [vmem:[%s15077_s12 + $0x40] ss:$16 sps:$4 sm:$0xff]  }
 0x2c6   : > { %19598 = vst [vmem:[#allocation34_spill] sm:$0xff] %v15944_v10  ;;  %vm2721_vm3 = vcmp.gt.f32.partialorder %v15893_v42, 0.0  ;;  %v2453_v21 = vadd.f32 %v2452_v37, %v15836_v8  ;;  %v2865_v2 = vmul.f32 0.25, %v15893_v42  ;;  %v3014_v48 = vsel %vm2726_vm15, %v2298_v12, %v2870_v18  ;;  %v13218_v37 = vld [vmem:[%s15077_s12 + $0x24] ss:$16 sps:$4 sm:$0xff]  }
 0x2c7   : > { %v3292_v31 = vsel %vm3212_vm11, %v3146_v16, 0.0  ;;  %v3293_v62 = vrot.slane %v3146_v16, 1  ;;  %v3295_v41 = vrot.slane %v3146_v16, 2  ;;  %v3297_v30 = vrot.slane %v3146_v16, 3  ;;  %8190 = vmatprep.subr.bf16.mxu1 %v13218_v37  ;;  %v13224_v60 = vld [vmem:[%s15077_s12 + $0x44] ss:$16 sps:$4 sm:$0xff]  }
 0x2c8   : > { %v15955_v54 = vadd.f32 %v15864_v59, %v15840_v39  ;;  %vm2729_vm5 = vcmp.gt.f32.partialorder %v2453_v21, 0.0  ;;  %v2873_v13 = vmul.f32 0.25, %v2453_v21  ;;  %v2304_v22 = vadd.f32 %v2303_v56, %v15829_v50  ;;  %v13219_v59 = vld [vmem:[%s15077_s12 + $0x28] ss:$16 sps:$4 sm:$0xff]   ;;  %v13221_v56 = vld [vmem:[%s15077_s12 + $0x2c] ss:$16 sps:$4 sm:$0xff]   ;;  %8191 = vmatpush1.bf16.msra.mxu1 %v13216_v55 }
 0x2c9   : > { %v3294_v49 = vsel %vm3215_vm12, %v3293_v62, %v3292_v31  ;;  %v3337_v5 = vsel %vm3212_vm11, %v3293_v62, 0.0  ;;  %v3340_v36 = vrot.slane %v3146_v16, 4  ;;  %v15974_v9 = vadd.f32 %v15869_v45, %v15844_v29  ;;  %8774 = vmatprep.subr.bf16.mxu0 %v13221_v56  ;;  %8192 = vmatprep.subr.bf16.mxu1 %v13224_v60  ;;  %v13225_v31 = vld [vmem:[%s15077_s12 + $0x48] ss:$16 sps:$4 sm:$0xff]  }
 0x2ca   : > { %v15957_v23 = vpop.f32.mrb[12].mxu0  ;;  %v15959_v44 = vpop.f32.mrb[12].mxu1  ;;  %v3296_v33 = vsel %vm3218_vm13, %v3295_v41, %v3294_v49  ;;  %v3338_v46 = vsel %vm3215_vm12, %v3295_v41, %v3337_v5  ;;  %v15984_v12 = vsel %vm2722_vm1, %v15887_v1, %v2866_v6  ;;  %v15989_v35 = vsel %vm2721_vm3, %v15893_v42, %v2865_v2  ;;  %v13227_v42 = vld [vmem:[%s15077_s12 + $0x4c] ss:$16 sps:$4 sm:$0xff]   ;;  %8775 = vmatpush1.bf16.msra.mxu0 %v13219_v59 }
 0x2cb   : > { %v15965_v7 = vpop.f32.mrb[13].mxu0  ;;  %v15967_v51 = vpop.f32.mrb[13].mxu1  ;;  %19599 = vst [vmem:[#allocation35_spill] sm:$0xff] %v15984_v12  ;;  %19600 = vst [vmem:[#allocation36_spill] sm:$0xff] %v15989_v35  ;;  %v3339_v45 = vsel %vm3218_vm13, %v3297_v30, %v3338_v46  ;;  %v3017_v57 = vsel %vm2729_vm5, %v2453_v21, %v2873_v13  ;;  %vm2728_vm7 = vcmp.gt.f32.partialorder %v15955_v54, 0.0  ;;  %v2872_v1 = vmul.f32 0.25, %v15955_v54  ;;  %8776 = vmatprep.subr.bf16.mxu0 %v13227_v42 }
 0x2cc   : > { %v15976_v25 = vpop.f32.mrb[14].mxu0  ;;  %v15978_v61 = vpop.f32.mrb[14].mxu1  ;;  %v3149_v18 = vmax.f32 %v3014_v48, %v3017_v57  ;;  %v2876_v16 = vmul.f32 0.25, %v2304_v22  ;;  %v3298_v6 = vsel %vm3221_vm14, %v3297_v30, %v3296_v33  ;;  %v3341_v21 = vsel %vm3221_vm14, %v3340_v36, %v3339_v45  ;;  %8193 = vmatpush1.bf16.msra.mxu1 %v13222_v11  ;;  %v13233_v45 = vld [vmem:[%s15077_s12 + $0x6c] ss:$16 sps:$4 sm:$0xff]  }
 0x2cd   : > { %v15993_v15 = vpop.f32.mrb[15].mxu0  ;;  %v15995_v4 = vpop.f32.mrb[15].mxu1  ;;  %vm2732_vm8 = vcmp.gt.f32.partialorder %v2304_v22, 0.0  ;;  %v2459_v2 = vadd.f32 %v15897_v27, %v15836_v8  ;;  %vm2727_vm9 = vcmp.gt.f32.partialorder %v15974_v9, 0.0  ;;  %v2457_v55 = vadd.f32 %v15889_v28, %v15840_v39  ;;  %v13228_v42 = vld [vmem:[%s15077_s12 + $0x60] ss:$16 sps:$4 sm:$0xff]  }
 0x2ce   : > { %v3299_v62 = vrot.slane %v3149_v18, 4  ;;  %v3301_v41 = vrot.slane %v3149_v18, 5  ;;  %v3303_v48 = vrot.slane %v3149_v18, 6  ;;  %v3305_v37 = vrot.slane %v3149_v18, 7  ;;  %8777 = vmatpush1.bf16.msra.mxu0 %v13225_v31  ;;  %v13266_v12 = vld [vmem:[%s15077_s12 + $0x124] ss:$16 sps:$4 sm:$0xff]  }
 0x2cf   : > { %v2306_v30 = vadd.f32 %v15895_v58, %v15844_v29  ;;  %vm2735_vm10 = vcmp.gt.f32.partialorder %v2459_v2, 0.0  ;;  %v3020_v5 = vsel %vm2732_vm8, %v2304_v22, %v2876_v16  ;;  %v2879_v13 = vmul.f32 0.25, %v2459_v2  ;;  %v13230_v22 = vld [vmem:[%s15077_s12 + $0x64] ss:$16 sps:$4 sm:$0xff]   ;;  %8778 = vmatprep.subr.bf16.mxu0 %v13233_v45  ;;  %v13269_v35 = vld [vmem:[%s15077_s12 + $0x12c] ss:$16 sps:$4 sm:$0xff]  }
 0x2d0   : > { %v3300_v27 = vsel %vm3224_vm0, %v3299_v62, %v3298_v6  ;;  %v3342_v49 = vsel %vm3224_vm0, %v3301_v41, %v3341_v21  ;;  %v2871_v28 = vmul.f32 0.25, %v15974_v9  ;;  %v2308_v58 = vadd.f32 %v15903_v17, %v15829_v50  ;;  %v13231_v6 = vld [vmem:[%s15077_s12 + $0x68] ss:$16 sps:$4 sm:$0xff]   ;;  %8194 = vmatprep.subr.bf16.mxu1 %v13230_v22 }
 0x2d1   : > { %v3302_v59 = vsel %vm3227_vm2, %v3301_v41, %v3300_v27  ;;  %v3343_v33 = vsel %vm3227_vm2, %v3303_v48, %v3342_v49  ;;  %vm2734_vm15 = vcmp.gt.f32.partialorder %v2457_v55, 0.0  ;;  %v3023_v56 = vsel %vm2735_vm10, %v2459_v2, %v2879_v13  ;;  %8195 = vmatpush1.bf16.msra.mxu1 %v13228_v42  ;;  %v13243_v17 = vld [vmem:[%s15077_s12 + $0xa8] ss:$16 sps:$4 sm:$0xff]  }
 0x2d2   : > { %v3304_v46 = vsel %vm3230_vm4, %v3303_v48, %v3302_v59  ;;  %v3344_v36 = vsel %vm3230_vm4, %v3305_v37, %v3343_v33  ;;  %v2878_v60 = vmul.f32 0.25, %v2457_v55  ;;  %v3152_v16 = vmax.f32 %v3020_v5, %v3023_v56  ;;  %8779 = vmatpush1.bf16.msra.mxu0 %v13231_v6  ;;  %v13236_v59 = vld [vmem:[%s15077_s12 + $0x84] ss:$16 sps:$4 sm:$0xff]   ;;  %v13237_v6 = vld [vmem:[%s15077_s12 + $0x88] ss:$16 sps:$4 sm:$0xff]  }
 0x2d3   : > { %v16025_v57 = vsel %vm3233_vm6, %v3305_v37, %v3304_v46  ;;  %v16028_v11 = vsel %vm3233_vm6, %v3149_v18, %v3344_v36  ;;  %vm2733_vm1 = vcmp.gt.f32.partialorder %v2306_v30, 0.0  ;;  %v2877_v21 = vmul.f32 0.25, %v2306_v30  ;;  %v13234_v36 = vld [vmem:[%s15077_s12 + $0x80] ss:$16 sps:$4 sm:$0xff]   ;;  %8196 = vmatprep.subr.bf16.mxu1 %v13236_v59 }
 0x2d4   : > { %19601 = vst [vmem:[#allocation37_spill] sm:$0xff] %v16025_v57  ;;  %19602 = vst [vmem:[#allocation38_spill] sm:$0xff] %v16028_v11  ;;  %v2461_v2 = vadd.f32 %v15905_v20, %v15840_v39  ;;  %v3364_v31 = vsel %vm3212_vm11, %v3152_v16, 0.0  ;;  %v3365_v62 = vrot.slane %v3152_v16, 1  ;;  %v3367_v18 = vrot.slane %v3152_v16, 2 }
 0x2d5   : > { %v2882_v41 = vmul.f32 0.25, %v2308_v58  ;;  %v16044_v27 = vsel %vm2728_vm7, %v15955_v54, %v2872_v1  ;;  %v16049_v20 = vsel %vm2727_vm9, %v15974_v9, %v2871_v28  ;;  %v3369_v49 = vrot.slane %v3152_v16, 3  ;;  %8197 = vmatpush1.bf16.msra.mxu1 %v13234_v36 }
 0x2d6   : > { %19603 = vst [vmem:[#allocation39_spill] sm:$0xff] %v16044_v27  ;;  %19604 = vst [vmem:[#allocation40_spill] sm:$0xff] %v16049_v20  ;;  %vm2738_vm3 = vcmp.gt.f32.partialorder %v2308_v58, 0.0  ;;  %v3366_v33 = vsel %vm3215_vm12, %v3365_v62, %v3364_v31  ;;  %v3409_v46 = vsel %vm3212_vm11, %v3365_v62, 0.0  ;;  %v2463_v54 = vadd.f32 %v15926_v14, %v15836_v8  ;;  %v13239_v31 = vld [vmem:[%s15077_s12 + $0x8c] ss:$16 sps:$4 sm:$0xff]  }
 0x2d7   : > { %v16037_v48 = vpop.f32.mrb[16].mxu0  ;;  %v16039_v37 = vpop.f32.mrb[16].mxu1  ;;  %v2314_v9 = vadd.f32 %v15957_v23, %v15829_v50  ;;  %v16068_v56 = vsel %vm2734_vm15, %v2457_v55, %v2878_v60  ;;  %v16071_v22 = vsel %vm2733_vm1, %v2306_v30, %v2877_v21  ;;  %v3410_v45 = vsel %vm3215_vm12, %v3367_v18, %v3409_v46  ;;  %8780 = vmatprep.subr.bf16.mxu0 %v13239_v31 }
 0x2d8   : > { %v16051_v5 = vpop.f32.mrb[17].mxu0  ;;  %v16053_v13 = vpop.f32.mrb[17].mxu1  ;;  %19605 = vst [vmem:[#allocation41_spill] sm:$0xff] %v16068_v56  ;;  %19606 = vst [vmem:[#allocation42_spill] sm:$0xff] %v16071_v22  ;;  %v16076_v42 = vadd.f32 %v15924_v0, %v15844_v29  ;;  %v3026_v62 = vsel %vm2738_vm3, %v2308_v58, %v2882_v41  ;;  %v2884_v55 = vmul.f32 0.25, %v2461_v2  ;;  %vm2741_vm5 = vcmp.gt.f32.partialorder %v2463_v54, 0.0  ;;  %8781 = vmatpush1.bf16.msra.mxu0 %v13237_v6 }
 0x2d9   : > { %v16062_v1 = vpop.f32.mrb[18].mxu0  ;;  %v16064_v28 = vpop.f32.mrb[18].mxu1  ;;  %v2885_v60 = vmul.f32 0.25, %v2463_v54  ;;  %v3368_v30 = vsel %vm3218_vm13, %v3367_v18, %v3366_v33  ;;  %v3411_v21 = vsel %vm3218_vm13, %v3369_v49, %v3410_v45  ;;  %vm2740_vm7 = vcmp.gt.f32.partialorder %v2461_v2, 0.0 }
 0x2da   : > { %v16078_v14 = vpop.f32.mrb[19].mxu0  ;;  %v16080_v23 = vpop.f32.mrb[19].mxu1  ;;  %v16089_v0 = vadd.f32 %v15959_v44, %v15840_v39  ;;  %v3412_v46 = vrot.slane %v3152_v16, 4  ;;  %v2888_v52 = vmul.f32 0.25, %v2314_v9  ;;  %v2469_v58 = vadd.f32 %v15967_v51, %v15836_v8 }
 0x2db   : > { %v3029_v59 = vsel %vm2741_vm5, %v2463_v54, %v2885_v60  ;;  %vm2739_vm8 = vcmp.gt.f32.partialorder %v16076_v42, 0.0  ;;  %vm2744_vm9 = vcmp.gt.f32.partialorder %v2314_v9, 0.0  ;;  %v2318_v18 = vadd.f32 %v15976_v25, %v15829_v50 }
 0x2dc   : > { %v3155_v41 = vmax.f32 %v3026_v62, %v3029_v59  ;;  %v3370_v33 = vsel %vm3221_vm14, %v3369_v49, %v3368_v30  ;;  %v3413_v44 = vsel %vm3221_vm14, %v3412_v46, %v3411_v21  ;;  %v16098_v36 = vsel %vm2740_vm7, %v2461_v2, %v2884_v55 }
 0x2dd   : > { %19607 = vst [vmem:[#allocation43_spill] sm:$0xff] %v16098_v36  ;;  %v2883_v16 = vmul.f32 0.25, %v16076_v42  ;;  %vm2746_vm10 = vcmp.gt.f32.partialorder %v16089_v0, 0.0  ;;  %vm2747_vm15 = vcmp.gt.f32.partialorder %v2469_v58, 0.0  ;;  %v3032_v6 = vsel %vm2744_vm9, %v2314_v9, %v2888_v52  ;;  %v13242_v52 = vld [vmem:[%s15077_s12 + $0xa4] ss:$16 sps:$4 sm:$0xff]  }
 0x2de   : > { %v3371_v54 = vrot.slane %v3155_v41, 4  ;;  %v3373_v45 = vrot.slane %v3155_v41, 5  ;;  %v3375_v51 = vrot.slane %v3155_v41, 6  ;;  %v2890_v31 = vmul.f32 0.25, %v16089_v0  ;;  %8198 = vmatprep.subr.bf16.mxu1 %v13242_v52 }
 0x2df   : > { %v2891_v62 = vmul.f32 0.25, %v2469_v58  ;;  %v3377_v55 = vrot.slane %v3155_v41, 7  ;;  %v2894_v30 = vmul.f32 0.25, %v2318_v18  ;;  %v2316_v19 = vadd.f32 %v15965_v7, %v15844_v29  ;;  %v13245_v7 = vld [vmem:[%s15077_s12 + $0xac] ss:$16 sps:$4 sm:$0xff]  }
 0x2e0   : > { %v3372_v2 = vsel %vm3224_vm0, %v3371_v54, %v3370_v33  ;;  %v3414_v60 = vsel %vm3224_vm0, %v3373_v45, %v3413_v44  ;;  %v13240_v44 = vld [vmem:[%s15077_s12 + $0xa0] ss:$16 sps:$4 sm:$0xff]   ;;  %vm2750_vm1 = vcmp.gt.f32.partialorder %v2318_v18, 0.0  ;;  %8782 = vmatprep.subr.bf16.mxu0 %v13245_v7 }
 0x2e1   : > { %v16103_v25 = vpop.f32.mrb[20].mxu0  ;;  %v16105_v49 = vpop.f32.mrb[20].mxu1  ;;  %v3374_v9 = vsel %vm3227_vm2, %v3373_v45, %v3372_v2  ;;  %v3415_v59 = vsel %vm3227_vm2, %v3375_v51, %v3414_v60  ;;  %v3035_v26 = vsel %vm2747_vm15, %v2469_v58, %v2891_v62  ;;  %v16140_v60 = vadd.f32 %v15978_v61, %v15840_v39  ;;  %8199 = vmatpush1.bf16.msra.mxu1 %v13240_v44 }
 0x2e2   : > { %v16109_v21 = vpop.f32.mrb[21].mxu0  ;;  %v16111_v46 = vpop.f32.mrb[21].mxu1  ;;  %v3376_v32 = vsel %vm3230_vm4, %v3375_v51, %v3374_v9  ;;  %v3416_v3 = vsel %vm3230_vm4, %v3377_v55, %v3415_v59  ;;  %v3158_v43 = vmax.f32 %v3032_v6, %v3035_v26  ;;  %v2473_v26 = vadd.f32 %v15995_v4, %v15836_v8  ;;  %8783 = vmatpush1.bf16.msra.mxu0 %v13243_v17 }
 0x2e3   : > { %v16119_v33 = vpop.f32.mrb[22].mxu0  ;;  %v16121_v54 = vpop.f32.mrb[22].mxu1  ;;  %v16133_v58 = vsel %vm3233_vm6, %v3377_v55, %v3376_v32  ;;  %v16136_v62 = vsel %vm3233_vm6, %v3155_v41, %v3416_v3  ;;  %vm2745_vm3 = vcmp.gt.f32.partialorder %v2316_v19, 0.0  ;;  %v2889_v32 = vmul.f32 0.25, %v2316_v19 }
 0x2e4   : > { %v16127_v45 = vpop.f32.mrb[23].mxu0  ;;  %v16129_v2 = vpop.f32.mrb[23].mxu1  ;;  %19608 = vst [vmem:[#allocation44_spill] sm:$0xff] %v16133_v58  ;;  %19609 = vst [vmem:[#allocation45_spill] sm:$0xff] %v16136_v62  ;;  %v3436_v6 = vsel %vm3212_vm11, %v3158_v43, 0.0  ;;  %v3437_v52 = vrot.slane %v3158_v43, 1  ;;  %v3038_v41 = vsel %vm2750_vm1, %v2318_v18, %v2894_v30  ;;  %v16153_v59 = vsel %vm2739_vm8, %v16076_v42, %v2883_v16 }
 0x2e5   : > { %v3439_v9 = vrot.slane %v3158_v43, 2  ;;  %v3441_v3 = vrot.slane %v3158_v43, 3  ;;  %vm2753_vm5 = vcmp.gt.f32.partialorder %v2473_v26, 0.0  ;;  %v2897_v4 = vmul.f32 0.25, %v2473_v26  ;;  %19610 = vst [vmem:[#allocation46_spill] sm:$0xff] %v16153_v59 }
 0x2e6   : > { %v3438_v61 = vsel %vm3215_vm12, %v3437_v52, %v3436_v6  ;;  %v3481_v55 = vsel %vm3212_vm11, %v3437_v52, 0.0  ;;  %v2324_v51 = vadd.f32 %v16037_v48, %v15829_v50  ;;  %v16166_v30 = vsel %vm2746_vm10, %v16089_v0, %v2890_v31  ;;  %v13248_v58 = vld [vmem:[%s15077_s12 + $0xc4] ss:$16 sps:$4 sm:$0xff]  }
 0x2e7   : > { %v3440_v44 = vsel %vm3218_vm13, %v3439_v9, %v3438_v61  ;;  %v3482_v7 = vsel %vm3215_vm12, %v3439_v9, %v3481_v55  ;;  %19611 = vst [vmem:[#allocation47_spill] sm:$0xff] %v16166_v30  ;;  %v3484_v42 = vrot.slane %v3158_v43, 4  ;;  %v3041_v16 = vsel %vm2753_vm5, %v2473_v26, %v2897_v4  ;;  %8200 = vmatprep.subr.bf16.mxu1 %v13248_v58 }
 0x2e8   : > { %v3483_v6 = vsel %vm3218_vm13, %v3441_v3, %v3482_v7  ;;  %v16174_v9 = vsel %vm2745_vm3, %v2316_v19, %v2889_v32  ;;  %v16176_v48 = vmax.f32 %v3038_v41, %v3041_v16  ;;  %vm2756_vm7 = vcmp.gt.f32.partialorder %v2324_v51, 0.0 }
 0x2e9   : > { %v16159_v18 = vpop.f32.mrb[24].mxu0  ;;  %v16161_v17 = vpop.f32.mrb[24].mxu1  ;;  %19612 = vst [vmem:[#allocation48_spill] sm:$0xff] %v16174_v9  ;;  %v2900_v55 = vmul.f32 0.25, %v2324_v51  ;;  %v3442_v0 = vsel %vm3221_vm14, %v3441_v3, %v3440_v44  ;;  %v3485_v43 = vsel %vm3221_vm14, %v3484_v42, %v3483_v6  ;;  %v2896_v31 = vmul.f32 0.25, %v16140_v60 }
 0x2ea   : > { %v16169_v52 = vpop.f32.mrb[25].mxu0  ;;  %v16171_v61 = vpop.f32.mrb[25].mxu1  ;;  %19613 = vst [vmem:[#allocation49_spill] sm:$0xff] %v16176_v48  ;;  %v2479_v26 = vadd.f32 %v16053_v13, %v15836_v8  ;;  %v2320_v41 = vadd.f32 %v15993_v15, %v15844_v29  ;;  %v3443_v4 = vrot.slane %v16176_v48, 4  ;;  %v3445_v3 = vrot.slane %v16176_v48, 5 }
 0x2eb   : > { %v16178_v10 = vpop.f32.mrb[26].mxu0  ;;  %v16180_v62 = vpop.f32.mrb[26].mxu1  ;;  %v2477_v44 = vadd.f32 %v16039_v37, %v15840_v39  ;;  %v19457_v7 = vrot.slane %v16176_v48, 6  ;;  %v19456_v13 = vrot.slane %v16176_v48, 7  ;;  %v3044_v6 = vsel %vm2756_vm7, %v2324_v51, %v2900_v55  ;;  %v13251_v9 = vld [vmem:[%s15077_s12 + $0xcc] ss:$16 sps:$4 sm:$0xff]  }
 0x2ec   : > { %v16187_v19 = vpop.f32.mrb[27].mxu0  ;;  %v16189_v32 = vpop.f32.mrb[27].mxu1  ;;  %v2326_v42 = vadd.f32 %v16051_v5, %v15844_v29  ;;  %v3444_v15 = vsel %vm3224_vm0, %v3443_v4, %v3442_v0  ;;  %v3486_v16 = vsel %vm3224_vm0, %v3445_v3, %v3485_v43  ;;  %vm2759_vm8 = vcmp.gt.f32.partialorder %v2479_v26, 0.0  ;;  %v13246_v55 = vld [vmem:[%s15077_s12 + $0xc0] ss:$16 sps:$4 sm:$0xff]   ;;  %8784 = vmatprep.subr.bf16.mxu0 %v13251_v9 }
 0x2ed   : > { %v2903_v30 = vmul.f32 0.25, %v2479_v26  ;;  %vm2752_vm9 = vcmp.gt.f32.partialorder %v16140_v60, 0.0  ;;  %v16208_v37 = vsel %vm3227_vm2, %v3445_v3, %v3444_v15  ;;  %v3487_v51 = vsel %vm3227_vm2, %v19457_v7, %v3486_v16  ;;  %v13249_v0 = vld [vmem:[%s15077_s12 + $0xc8] ss:$16 sps:$4 sm:$0xff]   ;;  %8201 = vmatpush1.bf16.msra.mxu1 %v13246_v55 }
 0x2ee   : > { %19614 = vst [vmem:[#allocation50_spill] sm:$0xff] %v16208_v37  ;;  %v2328_v5 = vadd.f32 %v16062_v1, %v15829_v50  ;;  %v2895_v4 = vmul.f32 0.25, %v2320_v41  ;;  %v3488_v43 = vsel %vm3230_vm4, %v19456_v13, %v3487_v51  ;;  %v2902_v36 = vmul.f32 0.25, %v2477_v44  ;;  %8785 = vmatpush1.bf16.msra.mxu0 %v13249_v0 }
 0x2ef   : > { %v3047_v59 = vsel %vm2759_vm8, %v2479_v26, %v2903_v30  ;;  %vm2751_vm10 = vcmp.gt.f32.partialorder %v2320_v41, 0.0  ;;  %v16222_v3 = vsel %vm3233_vm6, %v16176_v48, %v3488_v43  ;;  %vm2758_vm15 = vcmp.gt.f32.partialorder %v2477_v44, 0.0 }
 0x2f0   : > { %19615 = vst [vmem:[#allocation51_spill] sm:$0xff] %v16222_v3  ;;  %v3164_v15 = vmax.f32 %v3044_v6, %v3047_v59  ;;  %v16227_v1 = vsel %vm2752_vm9, %v16140_v60, %v2896_v31  ;;  %vm2757_vm1 = vcmp.gt.f32.partialorder %v2326_v42, 0.0  ;;  %v2901_v16 = vmul.f32 0.25, %v2326_v42 }
 0x2f1   : > { %19616 = vst [vmem:[#allocation52_spill] sm:$0xff] %v16227_v1  ;;  %v2481_v30 = vadd.f32 %v16064_v28, %v15840_v39  ;;  %v2906_v43 = vmul.f32 0.25, %v2328_v5  ;;  %v16232_v13 = vsel %vm2751_vm10, %v2320_v41, %v2895_v4  ;;  %v16234_v59 = vsel %vm2758_vm15, %v2477_v44, %v2902_v36 }
 0x2f2   : > { %v3508_v58 = vsel %vm3212_vm11, %v3164_v15, 0.0  ;;  %v3509_v26 = vrot.slane %v3164_v15, 1  ;;  %v3511_v51 = vrot.slane %v3164_v15, 2  ;;  %19617 = vst [vmem:[#allocation53_spill] sm:$0xff] %v16232_v13  ;;  %19618 = vst [vmem:[#allocation54_spill] sm:$0xff] %v16234_v59  ;;  %vm2762_vm3 = vcmp.gt.f32.partialorder %v2328_v5, 0.0 }
 0x2f3   : > { %v16238_v60 = vadd.f32 %v16078_v14, %v15844_v29  ;;  %v2483_v28 = vadd.f32 %v16080_v23, %v15836_v8  ;;  %v2334_v6 = vadd.f32 %v16103_v25, %v15829_v50  ;;  %v16247_v41 = vsel %vm2757_vm1, %v2326_v42, %v2901_v16  ;;  %v13254_v59 = vld [vmem:[%s15077_s12 + $0xe4] ss:$16 sps:$4 sm:$0xff]   ;;  %v13252_v13 = vld [vmem:[%s15077_s12 + $0xe0] ss:$16 sps:$4 sm:$0xff]  }
 0x2f4   : > { %v3510_v9 = vsel %vm3215_vm12, %v3509_v26, %v3508_v58  ;;  %v3553_v31 = vsel %vm3212_vm11, %v3509_v26, 0.0  ;;  %19619 = vst [vmem:[#allocation55_spill] sm:$0xff] %v16247_v41  ;;  %v3513_v36 = vrot.slane %v3164_v15, 3  ;;  %v2908_v55 = vmul.f32 0.25, %v2481_v30  ;;  %v13257_v41 = vld [vmem:[%s15077_s12 + $0xec] ss:$16 sps:$4 sm:$0xff]   ;;  %8202 = vmatprep.subr.bf16.mxu1 %v13254_v59 }
 0x2f5   : > { %v3554_v44 = vsel %vm3215_vm12, %v3511_v51, %v3553_v31  ;;  %v3050_v4 = vsel %vm2762_vm3, %v2328_v5, %v2906_v43  ;;  %vm2765_vm5 = vcmp.gt.f32.partialorder %v2483_v28, 0.0  ;;  %v2909_v58 = vmul.f32 0.25, %v2483_v28  ;;  %8786 = vmatprep.subr.bf16.mxu0 %v13257_v41  ;;  %8203 = vmatpush1.bf16.msra.mxu1 %v13252_v13  ;;  %v13260_v59 = vld [vmem:[%s15077_s12 + $0x104] ss:$16 sps:$4 sm:$0xff]   ;;  %v13263_v41 = vld [vmem:[%s15077_s12 + $0x10c] ss:$16 sps:$4 sm:$0xff]  }
 0x2f6   : > { %v16256_v23 = vadd.f32 %v16105_v49, %v15840_v39  ;;  %v3512_v42 = vsel %vm3218_vm13, %v3511_v51, %v3510_v9  ;;  %v3555_v16 = vsel %vm3218_vm13, %v3513_v36, %v3554_v44  ;;  %vm2764_vm7 = vcmp.gt.f32.partialorder %v2481_v30, 0.0  ;;  %8204 = vmatprep.subr.bf16.mxu1 %v13260_v59 }
 0x2f7   : > { %v16250_v0 = vpop.f32.mrb[28].mxu0  ;;  %v16252_v14 = vpop.f32.mrb[28].mxu1  ;;  %v2912_v31 = vmul.f32 0.25, %v2334_v6  ;;  %v3556_v43 = vrot.slane %v3164_v15, 4  ;;  %vm2763_vm8 = vcmp.gt.f32.partialorder %v16238_v60, 0.0  ;;  %v3053_v49 = vsel %vm2765_vm5, %v2483_v28, %v2909_v58 }
 0x2f8   : > { %v16258_v26 = vpop.f32.mrb[29].mxu0  ;;  %v16260_v25 = vpop.f32.mrb[29].mxu1  ;;  %vm2768_vm9 = vcmp.gt.f32.partialorder %v2334_v6, 0.0  ;;  %v2907_v51 = vmul.f32 0.25, %v16238_v60  ;;  %v3167_v9 = vmax.f32 %v3050_v4, %v3053_v49  ;;  %v16276_v44 = vadd.f32 %v16109_v21, %v15844_v29 }
 0x2f9   : > { %v16264_v7 = vpop.f32.mrb[30].mxu0  ;;  %v16266_v5 = vpop.f32.mrb[30].mxu1  ;;  %v2489_v37 = vadd.f32 %v16111_v46, %v15836_v8  ;;  %v3514_v15 = vsel %vm3221_vm14, %v3513_v36, %v3512_v42  ;;  %v3557_v28 = vsel %vm3221_vm14, %v3556_v43, %v3555_v16  ;;  %v16283_v58 = vsel %vm2764_vm7, %v2481_v30, %v2908_v55  ;;  %v13255_v30 = vld [vmem:[%s15077_s12 + $0xe8] ss:$16 sps:$4 sm:$0xff]  }
 0x2fa   : > { %v16269_v3 = vpop.f32.mrb[31].mxu0  ;;  %v16271_v48 = vpop.f32.mrb[31].mxu1  ;;  %19620 = vst [vmem:[#allocation56_spill] sm:$0xff] %v16283_v58  ;;  %vm2770_vm10 = vcmp.gt.f32.partialorder %v16256_v23, 0.0  ;;  %v3515_v4 = vrot.slane %v3167_v9, 4  ;;  %v3517_v49 = vrot.slane %v3167_v9, 5  ;;  %v3056_v1 = vsel %vm2768_vm9, %v2334_v6, %v2912_v31  ;;  %8787 = vmatpush1.bf16.msra.mxu0 %v13255_v30 }
 0x2fb   : > { %v2914_v21 = vmul.f32 0.25, %v16256_v23  ;;  %v3519_v56 = vrot.slane %v3167_v9, 6  ;;  %vm2771_vm15 = vcmp.gt.f32.partialorder %v2489_v37, 0.0  ;;  %v2915_v46 = vmul.f32 0.25, %v2489_v37  ;;  %8788 = vmatprep.subr.bf16.mxu0 %v13263_v41 }
 0x2fc   : > { %v2338_v36 = vadd.f32 %v16119_v33, %v15829_v50  ;;  %v3516_v55 = vsel %vm3224_vm0, %v3515_v4, %v3514_v15  ;;  %v3521_v42 = vrot.slane %v3167_v9, 7  ;;  %v3558_v16 = vsel %vm3224_vm0, %v3517_v49, %v3557_v28 }
 0x2fd   : > { %vm2769_vm1 = vcmp.gt.f32.partialorder %v16276_v44, 0.0  ;;  %v3518_v6 = vsel %vm3227_vm2, %v3517_v49, %v3516_v55  ;;  %v3559_v31 = vsel %vm3227_vm2, %v3519_v56, %v3558_v16  ;;  %v2913_v43 = vmul.f32 0.25, %v16276_v44  ;;  %v13258_v55 = vld [vmem:[%s15077_s12 + $0x100] ss:$16 sps:$4 sm:$0xff]   ;;  %v13261_v16 = vld [vmem:[%s15077_s12 + $0x108] ss:$16 sps:$4 sm:$0xff]  }
 0x2fe   : > { %v3059_v33 = vsel %vm2771_vm15, %v2489_v37, %v2915_v46  ;;  %v16304_v15 = vsel %vm2763_vm8, %v16238_v60, %v2907_v51  ;;  %v3520_v28 = vsel %vm3230_vm4, %v3519_v56, %v3518_v6  ;;  %v3560_v4 = vsel %vm3230_vm4, %v3521_v42, %v3559_v31  ;;  %8205 = vmatpush1.bf16.msra.mxu1 %v13258_v55 }
 0x2ff   : > { %19621 = vst [vmem:[#allocation57_spill] sm:$0xff] %v16304_v15  ;;  %v3170_v13 = vmax.f32 %v3056_v1, %v3059_v33  ;;  %v16315_v37 = vsel %vm3233_vm6, %v3521_v42, %v3520_v28  ;;  %v16318_v46 = vsel %vm3233_vm6, %v3167_v9, %v3560_v4  ;;  %vm2774_vm3 = vcmp.gt.f32.partialorder %v2338_v36, 0.0  ;;  %8789 = vmatpush1.bf16.msra.mxu0 %v13261_v16 }
 0x300   : > { %19622 = vst [vmem:[#allocation58_spill] sm:$0xff] %v16315_v37  ;;  %19623 = vst [vmem:[#allocation59_spill] sm:$0xff] %v16318_v46  ;;  %v2918_v60 = vmul.f32 0.25, %v2338_v36  ;;  %v16334_v9 = vsel %vm2770_vm10, %v16256_v23, %v2914_v21  ;;  %v16338_v59 = vadd.f32 %v16121_v54, %v15840_v39  ;;  %v16342_v41 = vadd.f32 %v16127_v45, %v15844_v29 }
 0x301   : > { %v16308_v58 = vpop.f32.mrb[32].mxu0  ;;  %v16310_v49 = vpop.f32.mrb[32].mxu1  ;;  %v3580_v30 = vsel %vm3212_vm11, %v3170_v13, 0.0  ;;  %v3581_v6 = vrot.slane %v3170_v13, 1  ;;  %v3583_v31 = vrot.slane %v3170_v13, 2  ;;  %19624 = vst [vmem:[#allocation60_spill] sm:$0xff] %v16334_v9  ;;  %v2493_v28 = vadd.f32 %v16129_v2, %v15836_v8  ;;  %8206 = vmatprep.subr.bf16.mxu1 %v13266_v12  ;;  %8790 = vmatprep.subr.bf16.mxu0 %v13269_v35 }
 0x302   : > { %v16320_v51 = vpop.f32.mrb[33].mxu0  ;;  %v16322_v56 = vpop.f32.mrb[33].mxu1  ;;  %v3585_v23 = vrot.slane %v3170_v13, 3  ;;  %v2344_v54 = vadd.f32 %v16159_v18, %v15829_v50  ;;  %v3062_v45 = vsel %vm2774_vm3, %v2338_v36, %v2918_v60  ;;  %v2497_v16 = vadd.f32 %v16161_v17, %v15840_v39 }
 0x303   : > { %v16327_v42 = vpop.f32.mrb[34].mxu0  ;;  %v16329_v33 = vpop.f32.mrb[34].mxu1  ;;  %v3582_v55 = vsel %vm3215_vm12, %v3581_v6, %v3580_v30  ;;  %v3625_v21 = vsel %vm3212_vm11, %v3581_v6, 0.0  ;;  %vm2777_vm5 = vcmp.gt.f32.partialorder %v2493_v28, 0.0  ;;  %v2921_v46 = vmul.f32 0.25, %v2493_v28 }
 0x304   : > { %v16346_v4 = vpop.f32.mrb[35].mxu0  ;;  %v16348_v1 = vpop.f32.mrb[35].mxu1  ;;  %v3626_v9 = vsel %vm3215_vm12, %v3583_v31, %v3625_v21  ;;  %v3584_v2 = vsel %vm3218_vm13, %v3583_v31, %v3582_v55  ;;  %v2924_v15 = vmul.f32 0.25, %v2344_v54  ;;  %v16363_v30 = vsel %vm2769_vm1, %v16276_v44, %v2913_v43 }
 0x305   : > { %v3627_v37 = vsel %vm3218_vm13, %v3585_v23, %v3626_v9  ;;  %19625 = vst [vmem:[#allocation61_spill] sm:$0xff] %v16363_v30  ;;  %v3628_v18 = vrot.slane %v3170_v13, 4  ;;  %v3065_v6 = vsel %vm2777_vm5, %v2493_v28, %v2921_v46  ;;  %vm2780_vm7 = vcmp.gt.f32.partialorder %v2344_v54, 0.0 }
 0x306   : > { %vm2776_vm8 = vcmp.gt.f32.partialorder %v16338_v59, 0.0  ;;  %v2920_v36 = vmul.f32 0.25, %v16338_v59  ;;  %v3173_v60 = vmax.f32 %v3062_v45, %v3065_v6  ;;  %v2499_v31 = vadd.f32 %v16171_v61, %v15836_v8 }
 0x307   : > { %v3586_v17 = vsel %vm3221_vm14, %v3585_v23, %v3584_v2  ;;  %v3629_v44 = vsel %vm3221_vm14, %v3628_v18, %v3627_v37  ;;  %vm2775_vm9 = vcmp.gt.f32.partialorder %v16342_v41, 0.0  ;;  %v2919_v43 = vmul.f32 0.25, %v16342_v41 }
 0x308   : > { %v3587_v28 = vrot.slane %v3173_v60, 4  ;;  %v3589_v21 = vrot.slane %v3173_v60, 5  ;;  %v3068_v45 = vsel %vm2780_vm7, %v2344_v54, %v2924_v15  ;;  %vm2782_vm10 = vcmp.gt.f32.partialorder %v2497_v16, 0.0 }
 0x309   : > { %v16369_v9 = vpop.f32.mrb[36].mxu0  ;;  %v16371_v55 = vpop.f32.mrb[36].mxu1  ;;  %v3591_v23 = vrot.slane %v3173_v60, 6  ;;  %vm2783_vm15 = vcmp.gt.f32.partialorder %v2499_v31, 0.0  ;;  %v2927_v37 = vmul.f32 0.25, %v2499_v31  ;;  %v2348_v2 = vadd.f32 %v16178_v10, %v15829_v50 }
 0x30a   : > { %v16377_v13 = vpop.f32.mrb[37].mxu0  ;;  %v16379_v46 = vpop.f32.mrb[37].mxu1  ;;  %v3588_v15 = vsel %vm3224_vm0, %v3587_v28, %v3586_v17  ;;  %v3593_v54 = vrot.slane %v3173_v60, 7  ;;  %v3630_v22 = vsel %vm3224_vm0, %v3589_v21, %v3629_v44  ;;  %v2926_v11 = vmul.f32 0.25, %v2497_v16  ;;  %v13264_v28 = vld [vmem:[%s15077_s12 + $0x120] ss:$16 sps:$4 sm:$0xff]  }
 0x30b   : > { %v16381_v61 = vpop.f32.mrb[38].mxu0  ;;  %v16383_v6 = vpop.f32.mrb[38].mxu1  ;;  %v3590_v57 = vsel %vm3227_vm2, %v3589_v21, %v3588_v15  ;;  %v3631_v27 = vsel %vm3227_vm2, %v3591_v23, %v3630_v22  ;;  %v16397_v20 = vadd.f32 %v16169_v52, %v15844_v29  ;;  %v3071_v10 = vsel %vm2783_vm15, %v2499_v31, %v2927_v37  ;;  %v13267_v21 = vld [vmem:[%s15077_s12 + $0x128] ss:$16 sps:$4 sm:$0xff]   ;;  %8207 = vmatpush1.bf16.msra.mxu1 %v13264_v28  ;;  %v13270_v37 = vld [vmem:[%s15077_s12 + $0x140] ss:$16 sps:$4 sm:$0xff]  }
 0x30c   : > { %v16387_v18 = vpop.f32.mrb[39].mxu0  ;;  %v16389_v30 = vpop.f32.mrb[39].mxu1  ;;  %v3592_v34 = vsel %vm3230_vm4, %v3591_v23, %v3590_v57  ;;  %v3632_v38 = vsel %vm3230_vm4, %v3593_v54, %v3631_v27  ;;  %v16403_v17 = vmax.f32 %v3068_v45, %v3071_v10  ;;  %v2501_v44 = vadd.f32 %v16180_v62, %v15840_v39  ;;  %8791 = vmatpush1.bf16.msra.mxu0 %v13267_v21  ;;  %v13272_v45 = vld [vmem:[%s15077_s12 + $0x144] ss:$16 sps:$4 sm:$0xff]   ;;  %v13273_v15 = vld [vmem:[%s15077_s12 + $0x148] ss:$16 sps:$4 sm:$0xff]  }
 0x30d   : > { %v16410_v22 = vsel %vm3233_vm6, %v3593_v54, %v3592_v34  ;;  %v16413_v52 = vsel %vm3233_vm6, %v3173_v60, %v3632_v38  ;;  %vm2786_vm1 = vcmp.gt.f32.partialorder %v2348_v2, 0.0  ;;  %v2930_v31 = vmul.f32 0.25, %v2348_v2  ;;  %8208 = vmatprep.subr.bf16.mxu1 %v13272_v45 }
 0x30e   : > { %19626 = vst [vmem:[#allocation62_spill] sm:$0xff] %v16410_v22  ;;  %19627 = vst [vmem:[#allocation63_spill] sm:$0xff] %v16413_v52  ;;  %v3652_v27 = vsel %vm3212_vm11, %v16403_v17, 0.0  ;;  %v3653_v62 = vrot.slane %v16403_v17, 1  ;;  %v3655_v34 = vrot.slane %v16403_v17, 2  ;;  %v16424_v38 = vsel %vm2776_vm8, %v16338_v59, %v2920_v36 }
 0x30f   : > { %19628 = vst [vmem:[#allocation64_spill] sm:$0xff] %v16424_v38  ;;  %v16429_v12 = vsel %vm2775_vm9, %v16342_v41, %v2919_v43  ;;  %v16432_v35 = vsel %vm2782_vm10, %v2497_v16, %v2926_v11  ;;  %v2350_v60 = vadd.f32 %v16187_v19, %v15844_v29  ;;  %vm2781_vm3 = vcmp.gt.f32.partialorder %v16397_v20, 0.0  ;;  %v13275_v43 = vld [vmem:[%s15077_s12 + $0x14c] ss:$16 sps:$4 sm:$0xff]   ;;  %8209 = vmatpush1.bf16.msra.mxu1 %v13270_v37  ;;  %v13284_v52 = vld [vmem:[%s15077_s12 + $0x184] ss:$16 sps:$4 sm:$0xff]  }
 0x310   : > { %19629 = vst [vmem:[#allocation65_spill] sm:$0xff] %v16429_v12  ;;  %19630 = vst [vmem:[#allocation66_spill] sm:$0xff] %v16432_v35  ;;  %v3654_v23 = vsel %vm3215_vm12, %v3653_v62, %v3652_v27  ;;  %v3697_v59 = vsel %vm3212_vm11, %v3653_v62, 0.0  ;;  %v2503_v36 = vadd.f32 %v16189_v32, %v15836_v8  ;;  %v2925_v41 = vmul.f32 0.25, %v16397_v20  ;;  %8792 = vmatprep.subr.bf16.mxu0 %v13275_v43  ;;  %v13287_v22 = vld [vmem:[%s15077_s12 + $0x18c] ss:$16 sps:$4 sm:$0xff]  }
 0x311   : > { %v3698_v11 = vsel %vm3215_vm12, %v3655_v34, %v3697_v59  ;;  %v3074_v16 = vsel %vm2786_vm1, %v2348_v2, %v2930_v31  ;;  %v2354_v19 = vadd.f32 %v16250_v0, %v15829_v50  ;;  %v3657_v54 = vrot.slane %v16403_v17, 3  ;;  %8793 = vmatpush1.bf16.msra.mxu0 %v13273_v15  ;;  %v13282_v38 = vld [vmem:[%s15077_s12 + $0x180] ss:$16 sps:$4 sm:$0xff]  }
 0x312   : > { %vm2788_vm5 = vcmp.gt.f32.partialorder %v2501_v44, 0.0  ;;  %v2932_v10 = vmul.f32 0.25, %v2501_v44  ;;  %vm2789_vm7 = vcmp.gt.f32.partialorder %v2503_v36, 0.0  ;;  %v3656_v32 = vsel %vm3218_vm13, %v3655_v34, %v3654_v23 }
 0x313   : > { %v2931_v28 = vmul.f32 0.25, %v2350_v60  ;;  %v2933_v21 = vmul.f32 0.25, %v2503_v36  ;;  %v2936_v27 = vmul.f32 0.25, %v2354_v19  ;;  %v3699_v62 = vsel %vm3218_vm13, %v3657_v54, %v3698_v11 }
 0x314   : > { %vm2792_vm8 = vcmp.gt.f32.partialorder %v2354_v19, 0.0  ;;  %v16455_v0 = vadd.f32 %v16252_v14, %v15840_v39  ;;  %v2509_v2 = vadd.f32 %v16260_v25, %v15836_v8  ;;  %v3700_v34 = vrot.slane %v16403_v17, 4 }
 0x315   : > { %vm2787_vm9 = vcmp.gt.f32.partialorder %v2350_v60, 0.0  ;;  %v3077_v23 = vsel %vm2789_vm7, %v2503_v36, %v2933_v21  ;;  %v2358_v59 = vadd.f32 %v16264_v7, %v15829_v50  ;;  %v16474_v25 = vsel %vm2781_vm3, %v16397_v20, %v2925_v41 }
 0x316   : > { %19631 = vst [vmem:[#allocation67_spill] sm:$0xff] %v16474_v25  ;;  %v3658_v11 = vsel %vm3221_vm14, %v3657_v54, %v3656_v32  ;;  %v16478_v15 = vsel %vm2788_vm5, %v2501_v44, %v2932_v10  ;;  %v16480_v17 = vmax.f32 %v3074_v16, %v3077_v23  ;;  %v3701_v7 = vsel %vm3221_vm14, %v3700_v34, %v3699_v62 }
 0x317   : > { %v16459_v31 = vpop.f32.mrb[40].mxu0  ;;  %v16461_v45 = vpop.f32.mrb[40].mxu1  ;;  %19632 = vst [vmem:[#allocation68_spill] sm:$0xff] %v16478_v15  ;;  %v3080_v21 = vsel %vm2792_vm8, %v2354_v19, %v2936_v27  ;;  %vm2795_vm10 = vcmp.gt.f32.partialorder %v2509_v2, 0.0  ;;  %v2939_v57 = vmul.f32 0.25, %v2509_v2  ;;  %v16493_v41 = vsel %vm2787_vm9, %v2350_v60, %v2931_v28 }
 0x318   : > { %v16467_v37 = vpop.f32.mrb[41].mxu0  ;;  %v16469_v14 = vpop.f32.mrb[41].mxu1  ;;  %19633 = vst [vmem:[#allocation69_spill] sm:$0xff] %v16480_v17  ;;  %19634 = vst [vmem:[#allocation70_spill] sm:$0xff] %v16493_v41  ;;  %v3659_v44 = vrot.slane %v16480_v17, 4  ;;  %v3661_v16 = vrot.slane %v16480_v17, 5  ;;  %v2356_v19 = vadd.f32 %v16258_v26, %v15844_v29  ;;  %v2513_v26 = vadd.f32 %v16271_v48, %v15836_v8 }
 0x319   : > { %v16482_v36 = vpop.f32.mrb[42].mxu0  ;;  %v16484_v43 = vpop.f32.mrb[42].mxu1  ;;  %vm2794_vm15 = vcmp.gt.f32.partialorder %v16455_v0, 0.0  ;;  %v19465_v54 = vrot.slane %v16480_v17, 6  ;;  %v3083_v10 = vsel %vm2795_vm10, %v2509_v2, %v2939_v57  ;;  %vm2798_vm1 = vcmp.gt.f32.partialorder %v2358_v59, 0.0 }
 0x31a   : > { %v16488_v35 = vpop.f32.mrb[43].mxu0  ;;  %v16490_v20 = vpop.f32.mrb[43].mxu1  ;;  %v3660_v32 = vsel %vm3224_vm0, %v3659_v44, %v3658_v11  ;;  %v19464_v27 = vrot.slane %v16480_v17, 7  ;;  %v3702_v60 = vsel %vm3224_vm0, %v3661_v16, %v3701_v7  ;;  %v3182_v28 = vmax.f32 %v3080_v21, %v3083_v10  ;;  %v13278_v21 = vld [vmem:[%s15077_s12 + $0x164] ss:$16 sps:$4 sm:$0xff]  }
 0x31b   : > { %v16505_v62 = vsel %vm3227_vm2, %v3661_v16, %v3660_v32  ;;  %v3703_v34 = vsel %vm3227_vm2, %v19465_v54, %v3702_v60  ;;  %v2942_v23 = vmul.f32 0.25, %v2358_v59  ;;  %v2938_v16 = vmul.f32 0.25, %v16455_v0  ;;  %v13276_v48 = vld [vmem:[%s15077_s12 + $0x160] ss:$16 sps:$4 sm:$0xff]   ;;  %8210 = vmatprep.subr.bf16.mxu1 %v13278_v21 }
 0x31c   : > { %19635 = vst [vmem:[#allocation71_spill] sm:$0xff] %v16505_v62  ;;  %v3704_v57 = vsel %vm3230_vm4, %v19464_v27, %v3703_v34  ;;  %v3724_v2 = vsel %vm3212_vm11, %v3182_v28, 0.0  ;;  %v3725_v11 = vrot.slane %v3182_v28, 1  ;;  %v3727_v7 = vrot.slane %v3182_v28, 2  ;;  %8211 = vmatpush1.bf16.msra.mxu1 %v13276_v48 }
 0x31d   : > { %v16519_v44 = vsel %vm3233_vm6, %v16480_v17, %v3704_v57  ;;  %vm2793_vm3 = vcmp.gt.f32.partialorder %v2356_v19, 0.0  ;;  %v2937_v10 = vmul.f32 0.25, %v2356_v19  ;;  %v3729_v60 = vrot.slane %v3182_v28, 3  ;;  %v13279_v57 = vld [vmem:[%s15077_s12 + $0x168] ss:$16 sps:$4 sm:$0xff]   ;;  %8212 = vmatprep.subr.bf16.mxu1 %v13284_v52 }
 0x31e   : > { %19636 = vst [vmem:[#allocation72_spill] sm:$0xff] %v16519_v44  ;;  %v3726_v32 = vsel %vm3215_vm12, %v3725_v11, %v3724_v2  ;;  %v3769_v34 = vsel %vm3212_vm11, %v3725_v11, 0.0  ;;  %v16527_v27 = vadd.f32 %v16266_v5, %v15840_v39  ;;  %v3086_v17 = vsel %vm2798_vm1, %v2358_v59, %v2942_v23  ;;  %v13281_v5 = vld [vmem:[%s15077_s12 + $0x16c] ss:$16 sps:$4 sm:$0xff]  }
 0x31f   : > { %v3770_v44 = vsel %vm3215_vm12, %v3727_v7, %v3769_v34  ;;  %vm2801_vm5 = vcmp.gt.f32.partialorder %v2513_v26, 0.0  ;;  %v2945_v2 = vmul.f32 0.25, %v2513_v26  ;;  %v3728_v41 = vsel %vm3218_vm13, %v3727_v7, %v3726_v32  ;;  %8794 = vmatprep.subr.bf16.mxu0 %v13281_v5 }
 0x320   : > { %v3771_v21 = vsel %vm3218_vm13, %v3729_v60, %v3770_v44  ;;  %v2360_v25 = vadd.f32 %v16269_v3, %v15844_v29  ;;  %v2364_v34 = vadd.f32 %v16308_v58, %v15829_v50  ;;  %v16556_v48 = vsel %vm2794_vm15, %v16455_v0, %v2938_v16  ;;  %8795 = vmatpush1.bf16.msra.mxu0 %v13279_v57 }
 0x321   : > { %v16529_v54 = vpop.f32.mrb[44].mxu0  ;;  %v16531_v62 = vpop.f32.mrb[44].mxu1  ;;  %19637 = vst [vmem:[#allocation73_spill] sm:$0xff] %v16556_v48  ;;  %v16559_v7 = vsel %vm2793_vm3, %v2356_v19, %v2937_v10  ;;  %v3772_v44 = vrot.slane %v3182_v28, 4  ;;  %v3089_v3 = vsel %vm2801_vm5, %v2513_v26, %v2945_v2  ;;  %vm2800_vm7 = vcmp.gt.f32.partialorder %v16527_v27, 0.0  ;;  %8796 = vmatprep.subr.bf16.mxu0 %v13287_v22  ;;  %8213 = vmatpush1.bf16.msra.mxu1 %v13282_v38 }
 0x322   : > { %v16536_v15 = vpop.f32.mrb[45].mxu0  ;;  %v16538_v11 = vpop.f32.mrb[45].mxu1  ;;  %v3185_v12 = vmax.f32 %v3086_v17, %v3089_v3  ;;  %v2948_v40 = vmul.f32 0.25, %v2364_v34  ;;  %v2519_v0 = vadd.f32 %v16322_v56, %v15836_v8  ;;  %v13285_v19 = vld [vmem:[%s15077_s12 + $0x188] ss:$16 sps:$4 sm:$0xff]   ;;  %v3730_v28 = vsel %vm3221_vm14, %v3729_v60, %v3728_v41 }
 0x323   : > { %v16547_v59 = vpop.f32.mrb[46].mxu0  ;;  %v16549_v23 = vpop.f32.mrb[46].mxu1  ;;  %v3773_v26 = vsel %vm3221_vm14, %v3772_v44, %v3771_v21  ;;  %v2944_v16 = vmul.f32 0.25, %v16527_v27  ;;  %vm2804_vm8 = vcmp.gt.f32.partialorder %v2364_v34, 0.0  ;;  %vm2799_vm9 = vcmp.gt.f32.partialorder %v2360_v25, 0.0 }
 0x324   : > { %v16562_v32 = vpop.f32.mrb[47].mxu0  ;;  %v16564_v58 = vpop.f32.mrb[47].mxu1  ;;  %v2943_v10 = vmul.f32 0.25, %v2360_v25  ;;  %v3731_v2 = vrot.slane %v3185_v12, 4  ;;  %v3733_v17 = vrot.slane %v3185_v12, 5  ;;  %v3735_v5 = vrot.slane %v3185_v12, 6  ;;  %8797 = vmatpush1.bf16.msra.mxu0 %v13285_v19 }
 0x325   : > { %v3737_v3 = vrot.slane %v3185_v12, 7  ;;  %v2517_v56 = vadd.f32 %v16310_v49, %v15840_v39  ;;  %vm2807_vm10 = vcmp.gt.f32.partialorder %v2519_v0, 0.0  ;;  %v3092_v60 = vsel %vm2804_vm8, %v2364_v34, %v2948_v40 }
 0x326   : > { %v3732_v52 = vsel %vm3224_vm0, %v3731_v2, %v3730_v28  ;;  %v3774_v41 = vsel %vm3224_vm0, %v3733_v17, %v3773_v26  ;;  %v2951_v57 = vmul.f32 0.25, %v2519_v0  ;;  %v2366_v44 = vadd.f32 %v16320_v51, %v15844_v29 }
 0x327   : > { %v3734_v22 = vsel %vm3227_vm2, %v3733_v17, %v3732_v52  ;;  %v3775_v38 = vsel %vm3227_vm2, %v3735_v5, %v3774_v41  ;;  %v2368_v49 = vadd.f32 %v16327_v42, %v15829_v50  ;;  %v2521_v19 = vadd.f32 %v16329_v33, %v15840_v39 }
 0x328   : > { %v3736_v28 = vsel %vm3230_vm4, %v3735_v5, %v3734_v22  ;;  %v3776_v40 = vsel %vm3230_vm4, %v3737_v3, %v3775_v38  ;;  %v3095_v34 = vsel %vm2807_vm10, %v2519_v0, %v2951_v57  ;;  %v16597_v2 = vsel %vm2800_vm7, %v16527_v27, %v2944_v16  ;;  %v13290_v38 = vld [vmem:[%s15077_s12 + $0x1a4] ss:$16 sps:$4 sm:$0xff]  }
 0x329   : > { %v16578_v21 = vpop.f32.mrb[48].mxu0  ;;  %19638 = vst [vmem:[#allocation74_spill] sm:$0xff] %v16597_v2  ;;  %v16600_v51 = vsel %vm3233_vm6, %v3737_v3, %v3736_v28  ;;  %v16603_v42 = vsel %vm3233_vm6, %v3185_v12, %v3776_v40  ;;  %v3188_v17 = vmax.f32 %v3092_v60, %v3095_v34  ;;  %v16608_v0 = vsel %vm2799_vm9, %v2360_v25, %v2943_v10  ;;  %v13293_v28 = vld [vmem:[%s15077_s12 + $0x1ac] ss:$16 sps:$4 sm:$0xff]  }
 0x32a   : > { %v16586_v48 = vpop.f32.mrb[49].mxu0  ;;  %19639 = vst [vmem:[#allocation75_spill] sm:$0xff] %v16600_v51  ;;  %19640 = vst [vmem:[#allocation76_spill] sm:$0xff] %v16603_v42  ;;  %vm2806_vm15 = vcmp.gt.f32.partialorder %v2517_v56, 0.0  ;;  %v2950_v27 = vmul.f32 0.25, %v2517_v56  ;;  %v2954_v41 = vmul.f32 0.25, %v2368_v49  ;;  %v2523_v57 = vadd.f32 %v16348_v1, %v15836_v8  ;;  %8214 = vmatprep.subr.bf16.mxu1 %v13290_v38  ;;  %8798 = vmatprep.subr.bf16.mxu0 %v13293_v28 }
 0x32b   : > { %v16592_v26 = vpop.f32.mrb[50].mxu0  ;;  %19641 = vst [vmem:[#allocation77_spill] sm:$0xff] %v16608_v0  ;;  %v3796_v16 = vsel %vm3212_vm11, %v3188_v17, 0.0  ;;  %v3797_v3 = vrot.slane %v3188_v17, 1  ;;  %v3799_v52 = vrot.slane %v3188_v17, 2  ;;  %vm2805_vm1 = vcmp.gt.f32.partialorder %v2366_v44, 0.0 }
 0x32c   : > { %v16605_v5 = vpop.f32.mrb[51].mxu0  ;;  %v2949_v12 = vmul.f32 0.25, %v2366_v44  ;;  %vm2810_vm3 = vcmp.gt.f32.partialorder %v2368_v49, 0.0  ;;  %v2956_v60 = vmul.f32 0.25, %v2521_v19  ;;  %v2374_v22 = vadd.f32 %v16369_v9, %v15829_v50  ;;  %v13291_v51 = vld [vmem:[%s15077_s12 + $0x1a8] ss:$16 sps:$4 sm:$0xff]  }
 0x32d   : > { %v3798_v25 = vsel %vm3215_vm12, %v3797_v3, %v3796_v16  ;;  %v3841_v10 = vsel %vm3212_vm11, %v3797_v3, 0.0  ;;  %v16622_v40 = vsel %vm2806_vm15, %v2517_v56, %v2950_v27  ;;  %v3801_v34 = vrot.slane %v3188_v17, 3  ;;  %v13288_v3 = vld [vmem:[%s15077_s12 + $0x1a0] ss:$16 sps:$4 sm:$0xff]   ;;  %8799 = vmatpush1.bf16.msra.mxu0 %v13291_v51 }
 0x32e   : > { %19642 = vst [vmem:[#allocation78_spill] sm:$0xff] %v16622_v40  ;;  %v3842_v33 = vsel %vm3215_vm12, %v3799_v52, %v3841_v10  ;;  %v16627_v42 = vadd.f32 %v16346_v4, %v15844_v29  ;;  %v3098_v1 = vsel %vm2810_vm3, %v2368_v49, %v2954_v41  ;;  %vm2812_vm5 = vcmp.gt.f32.partialorder %v2521_v19, 0.0  ;;  %8215 = vmatpush1.bf16.msra.mxu1 %v13288_v3  ;;  %v13294_v51 = vld [vmem:[%s15077_s12 + $0x1c0] ss:$16 sps:$4 sm:$0xff]   ;;  %v13297_v3 = vld [vmem:[%s15077_s12 + $0x1c8] ss:$16 sps:$4 sm:$0xff]  }
 0x32f   : > { %vm2813_vm7 = vcmp.gt.f32.partialorder %v2523_v57, 0.0  ;;  %v2957_v9 = vmul.f32 0.25, %v2523_v57  ;;  %v3800_v56 = vsel %vm3218_vm13, %v3799_v52, %v3798_v25  ;;  %v3843_v27 = vsel %vm3218_vm13, %v3801_v34, %v3842_v33  ;;  %v13299_v25 = vld [vmem:[%s15077_s12 + $0x1cc] ss:$16 sps:$4 sm:$0xff]  }
 0x330   : > { %v3844_v4 = vrot.slane %v3188_v17, 4  ;;  %v16639_v10 = vadd.f32 %v16371_v55, %v15840_v39  ;;  %v16644_v41 = vsel %vm2805_vm1, %v2366_v44, %v2949_v12  ;;  %v2960_v28 = vmul.f32 0.25, %v2374_v22  ;;  %v13296_v17 = vld [vmem:[%s15077_s12 + $0x1c4] ss:$16 sps:$4 sm:$0xff]   ;;  %8800 = vmatprep.subr.bf16.mxu0 %v13299_v25 }
 0x331   : > { %v16629_v16 = vpop.f32.mrb[52].mxu0  ;;  %19643 = vst [vmem:[#allocation79_spill] sm:$0xff] %v16644_v41  ;;  %v3101_v38 = vsel %vm2813_vm7, %v2523_v57, %v2957_v9  ;;  %v2529_v52 = vadd.f32 %v16379_v46, %v15836_v8  ;;  %v16653_v55 = vsel %vm2812_vm5, %v2521_v19, %v2956_v60  ;;  %vm2811_vm8 = vcmp.gt.f32.partialorder %v16627_v42, 0.0  ;;  %8216 = vmatprep.subr.bf16.mxu1 %v13296_v17 }
 0x332   : > { %v16633_v2 = vpop.f32.mrb[53].mxu0  ;;  %19644 = vst [vmem:[#allocation80_spill] sm:$0xff] %v16653_v55  ;;  %v3191_v40 = vmax.f32 %v3098_v1, %v3101_v38  ;;  %vm2816_vm9 = vcmp.gt.f32.partialorder %v2374_v22, 0.0  ;;  %v3802_v44 = vsel %vm3221_vm14, %v3801_v34, %v3800_v56  ;;  %v3845_v12 = vsel %vm3221_vm14, %v3844_v4, %v3843_v27  ;;  %8217 = vmatpush1.bf16.msra.mxu1 %v13294_v51 }
 0x333   : > { %v16641_v49 = vpop.f32.mrb[54].mxu0  ;;  %v2955_v57 = vmul.f32 0.25, %v16627_v42  ;;  %v2378_v46 = vadd.f32 %v16381_v61, %v15829_v50  ;;  %vm2818_vm10 = vcmp.gt.f32.partialorder %v16639_v10, 0.0  ;;  %vm2819_vm15 = vcmp.gt.f32.partialorder %v2529_v52, 0.0  ;;  %8801 = vmatpush1.bf16.msra.mxu0 %v13297_v3 }
 0x334   : > { %v16648_v33 = vpop.f32.mrb[55].mxu0  ;;  %v3803_v9 = vrot.slane %v3191_v40, 4  ;;  %v3805_v19 = vrot.slane %v3191_v40, 5  ;;  %v3807_v60 = vrot.slane %v3191_v40, 6  ;;  %v3104_v1 = vsel %vm2816_vm9, %v2374_v22, %v2960_v28 }
 0x335   : > { %v2962_v34 = vmul.f32 0.25, %v16639_v10  ;;  %v2963_v56 = vmul.f32 0.25, %v2529_v52  ;;  %v3809_v4 = vrot.slane %v3191_v40, 7  ;;  %v2376_v38 = vadd.f32 %v16377_v13, %v15844_v29 }
 0x336   : > { %v3804_v27 = vsel %vm3224_vm0, %v3803_v9, %v3802_v44  ;;  %v3846_v61 = vsel %vm3224_vm0, %v3805_v19, %v3845_v12  ;;  %v2966_v55 = vmul.f32 0.25, %v2378_v46  ;;  %vm2822_vm1 = vcmp.gt.f32.partialorder %v2378_v46, 0.0 }
 0x337   : > { %v3806_v25 = vsel %vm3227_vm2, %v3805_v19, %v3804_v27  ;;  %v3847_v51 = vsel %vm3227_vm2, %v3807_v60, %v3846_v61  ;;  %v3107_v3 = vsel %vm2819_vm15, %v2529_v52, %v2963_v56  ;;  %v16688_v52 = vadd.f32 %v16383_v6, %v15840_v39 }
 0x338   : > { %v3808_v28 = vsel %vm3230_vm4, %v3807_v60, %v3806_v25  ;;  %v3848_v44 = vsel %vm3230_vm4, %v3809_v4, %v3847_v51  ;;  %v3194_v9 = vmax.f32 %v3104_v1, %v3107_v3  ;;  %v2533_v19 = vadd.f32 %v16389_v30, %v15836_v8 }
 0x339   : > { %v16670_v17 = vpop.f32.mrb[56].mxu0  ;;  %v16681_v13 = vsel %vm3233_vm6, %v3809_v4, %v3808_v28  ;;  %v16684_v41 = vsel %vm3233_vm6, %v3191_v40, %v3848_v44  ;;  %vm2817_vm3 = vcmp.gt.f32.partialorder %v2376_v38, 0.0  ;;  %v2961_v61 = vmul.f32 0.25, %v2376_v38 }
 0x33a   : > { %v16674_v22 = vpop.f32.mrb[57].mxu0  ;;  %19645 = vst [vmem:[#allocation81_spill] sm:$0xff] %v16681_v13  ;;  %19646 = vst [vmem:[#allocation82_spill] sm:$0xff] %v16684_v41  ;;  %v3868_v56 = vsel %vm3212_vm11, %v3194_v9, 0.0  ;;  %v3869_v27 = vrot.slane %v3194_v9, 1  ;;  %v3871_v4 = vrot.slane %v3194_v9, 2  ;;  %v3110_v25 = vsel %vm2822_vm1, %v2378_v46, %v2966_v55 }
 0x33b   : > { %v16678_v12 = vpop.f32.mrb[58].mxu0  ;;  %v3873_v40 = vrot.slane %v3194_v9, 3  ;;  %vm2825_vm5 = vcmp.gt.f32.partialorder %v2533_v19, 0.0  ;;  %v2969_v30 = vmul.f32 0.25, %v2533_v19  ;;  %v16702_v3 = vsel %vm2811_vm8, %v16627_v42, %v2955_v57 }
 0x33c   : > { %v16692_v60 = vpop.f32.mrb[59].mxu0  ;;  %v3870_v51 = vsel %vm3215_vm12, %v3869_v27, %v3868_v56  ;;  %v3913_v6 = vsel %vm3212_vm11, %v3869_v27, 0.0  ;;  %19647 = vst [vmem:[#allocation83_spill] sm:$0xff] %v16702_v3  ;;  %v2384_v1 = vadd.f32 %v16459_v31, %v15829_v50  ;;  %v16711_v55 = vsel %vm2818_vm10, %v16639_v10, %v2962_v34  ;;  %v19662_v3 = vld [vmem:[#allocation31_spill] sm:$0xff] }
 0x33d   : > { %v3872_v28 = vsel %vm3218_vm13, %v3871_v4, %v3870_v51  ;;  %v3914_v44 = vsel %vm3215_vm12, %v3871_v4, %v3913_v6  ;;  %19648 = vst [vmem:[#allocation84_spill] sm:$0xff] %v16711_v55  ;;  %v3916_v56 = vrot.slane %v3194_v9, 4  ;;  %v3113_v27 = vsel %vm2825_vm5, %v2533_v19, %v2969_v30  ;;  %v13302_v51 = vld [vmem:[%s15077_s12 + $0x1e4] ss:$16 sps:$4 sm:$0xff]  }
 0x33e   : > { %v3915_v46 = vsel %vm3218_vm13, %v3873_v40, %v3914_v44  ;;  %v16717_v42 = vsel %vm2817_vm3, %v2376_v38, %v2961_v61  ;;  %v16719_v57 = vmax.f32 %v3110_v25, %v3113_v27  ;;  %vm2828_vm7 = vcmp.gt.f32.partialorder %v2384_v1, 0.0  ;;  %v13300_v61 = vld [vmem:[%s15077_s12 + $0x1e0] ss:$16 sps:$4 sm:$0xff]   ;;  %8218 = vmatprep.subr.bf16.mxu1 %v13302_v51  ;;  %v13305_v27 = vld [vmem:[%s15077_s12 + $0x1ec] ss:$16 sps:$4 sm:$0xff]  }
 0x33f   : > { %19649 = vst [vmem:[#allocation85_spill] sm:$0xff] %v16717_v42  ;;  %v2972_v4 = vmul.f32 0.25, %v2384_v1  ;;  %v3874_v10 = vsel %vm3221_vm14, %v3873_v40, %v3872_v28  ;;  %v3917_v34 = vsel %vm3221_vm14, %v3916_v56, %v3915_v46  ;;  %v2968_v9 = vmul.f32 0.25, %v16688_v52  ;;  %8219 = vmatpush1.bf16.msra.mxu1 %v13300_v61  ;;  %8802 = vmatprep.subr.bf16.mxu0 %v13305_v27 }
 0x340   : > { %19650 = vst [vmem:[#allocation86_spill] sm:$0xff] %v16719_v57  ;;  %v2539_v19 = vadd.f32 %v16469_v14, %v15836_v8  ;;  %v2380_v25 = vadd.f32 %v16387_v18, %v15844_v29  ;;  %v3875_v6 = vrot.slane %v16719_v57, 4  ;;  %v3877_v30 = vrot.slane %v16719_v57, 5  ;;  %v13303_v18 = vld [vmem:[%s15077_s12 + $0x1e8] ss:$16 sps:$4 sm:$0xff]  }
 0x341   : > { %v16714_v41 = vpop.f32.mrb[60].mxu0  ;;  %v2537_v40 = vadd.f32 %v16461_v45, %v15840_v39  ;;  %v19475_v44 = vrot.slane %v16719_v57, 6  ;;  %v19474_v14 = vrot.slane %v16719_v57, 7  ;;  %v3116_v46 = vsel %vm2828_vm7, %v2384_v1, %v2972_v4  ;;  %8803 = vmatpush1.bf16.msra.mxu0 %v13303_v18 }
 0x342   : > { %v16721_v31 = vpop.f32.mrb[61].mxu0  ;;  %v2386_v56 = vadd.f32 %v16467_v37, %v15844_v29  ;;  %v3876_v55 = vsel %vm3224_vm0, %v3875_v6, %v3874_v10  ;;  %v3918_v13 = vsel %vm3224_vm0, %v3877_v30, %v3917_v34  ;;  %vm2831_vm8 = vcmp.gt.f32.partialorder %v2539_v19, 0.0 }
 0x343   : > { %v16729_v38 = vpop.f32.mrb[62].mxu0  ;;  %v2975_v45 = vmul.f32 0.25, %v2539_v19  ;;  %vm2824_vm9 = vcmp.gt.f32.partialorder %v16688_v52, 0.0  ;;  %v16751_v51 = vsel %vm3227_vm2, %v3877_v30, %v3876_v55  ;;  %v3919_v1 = vsel %vm3227_vm2, %v19475_v44, %v3918_v13 }
 0x344   : > { %v16738_v28 = vpop.f32.mrb[63].mxu0  ;;  %19651 = vst [vmem:[#allocation87_spill] sm:$0xff] %v16751_v51  ;;  %v2388_v37 = vadd.f32 %v16482_v36, %v15829_v50  ;;  %v2967_v4 = vmul.f32 0.25, %v2380_v25  ;;  %v3920_v10 = vsel %vm3230_vm4, %v19474_v14, %v3919_v1  ;;  %v2974_v34 = vmul.f32 0.25, %v2537_v40 }
 0x345   : > { %v3119_v61 = vsel %vm2831_vm8, %v2539_v19, %v2975_v45  ;;  %vm2823_vm10 = vcmp.gt.f32.partialorder %v2380_v25, 0.0  ;;  %v16763_v55 = vsel %vm3233_vm6, %v16719_v57, %v3920_v10  ;;  %vm2830_vm15 = vcmp.gt.f32.partialorder %v2537_v40, 0.0 }
 0x346   : > { %19652 = vst [vmem:[#allocation88_spill] sm:$0xff] %v16763_v55  ;;  %v3200_v6 = vmax.f32 %v3116_v46, %v3119_v61  ;;  %v16768_v36 = vsel %vm2824_vm9, %v16688_v52, %v2968_v9  ;;  %vm2829_vm1 = vcmp.gt.f32.partialorder %v2386_v56, 0.0  ;;  %v2973_v30 = vmul.f32 0.25, %v2386_v56 }
 0x347   : > { %19653 = vst [vmem:[#allocation89_spill] sm:$0xff] %v16768_v36  ;;  %v2541_v27 = vadd.f32 %v16484_v43, %v15840_v39  ;;  %v2978_v10 = vmul.f32 0.25, %v2388_v37  ;;  %v16777_v46 = vsel %vm2823_vm10, %v2380_v25, %v2967_v4  ;;  %v16779_v61 = vsel %vm2830_vm15, %v2537_v40, %v2974_v34 }
 0x348   : > { %v3940_v19 = vsel %vm3212_vm11, %v3200_v6, 0.0  ;;  %v3941_v18 = vrot.slane %v3200_v6, 1  ;;  %v3943_v45 = vrot.slane %v3200_v6, 2  ;;  %19654 = vst [vmem:[#allocation90_spill] sm:$0xff] %v16777_v46  ;;  %19655 = vst [vmem:[#allocation91_spill] sm:$0xff] %v16779_v61  ;;  %vm2834_vm3 = vcmp.gt.f32.partialorder %v2388_v37, 0.0 }
 0x349   : > { %v16765_v13 = vpop.f32.mrb[64].mxu0  ;;  %v2390_v52 = vadd.f32 %v16488_v35, %v15844_v29  ;;  %v2543_v55 = vadd.f32 %v16490_v20, %v15836_v8  ;;  %v2394_v57 = vadd.f32 %v16529_v54, %v15829_v50  ;;  %v16792_v25 = vsel %vm2829_vm1, %v2386_v56, %v2973_v30 }
 0x34a   : > { %v16772_v1 = vpop.f32.mrb[65].mxu0  ;;  %v3942_v43 = vsel %vm3215_vm12, %v3941_v18, %v3940_v19  ;;  %v3985_v44 = vsel %vm3212_vm11, %v3941_v18, 0.0  ;;  %19656 = vst [vmem:[#allocation92_spill] sm:$0xff] %v16792_v25  ;;  %v3945_v40 = vrot.slane %v3200_v6, 3  ;;  %vm2836_vm5 = vcmp.gt.f32.partialorder %v2541_v27, 0.0 }
 0x34b   : > { %v16775_v14 = vpop.f32.mrb[66].mxu0  ;;  %v3986_v4 = vsel %vm3215_vm12, %v3943_v45, %v3985_v44  ;;  %v3122_v35 = vsel %vm2834_vm3, %v2388_v37, %v2978_v10  ;;  %v2980_v34 = vmul.f32 0.25, %v2541_v27  ;;  %vm2837_vm7 = vcmp.gt.f32.partialorder %v2543_v55, 0.0 }
 0x34c   : > { %v16783_v9 = vpop.f32.mrb[67].mxu0  ;;  %v2981_v51 = vmul.f32 0.25, %v2543_v55  ;;  %v3944_v19 = vsel %vm3218_vm13, %v3943_v45, %v3942_v43  ;;  %v3987_v18 = vsel %vm3218_vm13, %v3945_v40, %v3986_v4  ;;  %v2979_v61 = vmul.f32 0.25, %v2390_v52 }
 0x34d   : > { %v16799_v20 = vadd.f32 %v16531_v62, %v15840_v39  ;;  %v3988_v54 = vrot.slane %v3200_v6, 4  ;;  %vm2835_vm8 = vcmp.gt.f32.partialorder %v2390_v52, 0.0  ;;  %v2984_v30 = vmul.f32 0.25, %v2394_v57 }
 0x34e   : > { %v3125_v56 = vsel %vm2837_vm7, %v2543_v55, %v2981_v51  ;;  %vm2840_vm9 = vcmp.gt.f32.partialorder %v2394_v57, 0.0  ;;  %v16805_v37 = vadd.f32 %v16536_v15, %v15844_v29  ;;  %v2549_v45 = vadd.f32 %v16538_v11, %v15836_v8 }
 0x34f   : > { %v3203_v44 = vmax.f32 %v3122_v35, %v3125_v56  ;;  %v3946_v62 = vsel %vm3221_vm14, %v3945_v40, %v3944_v19  ;;  %v3989_v6 = vsel %vm3221_vm14, %v3988_v54, %v3987_v18  ;;  %v16814_v51 = vsel %vm2836_vm5, %v2541_v27, %v2980_v34 }
 0x350   : > { %19657 = vst [vmem:[#allocation93_spill] sm:$0xff] %v16814_v51  ;;  %v2398_v55 = vadd.f32 %v16547_v59, %v15829_v50  ;;  %v16820_v4 = vsel %vm2835_vm8, %v2390_v52, %v2979_v61  ;;  %v16823_v11 = vmul.f32 0.25, %v16799_v20  ;;  %v3128_v19 = vsel %vm2840_vm9, %v2394_v57, %v2984_v30 }
 0x351   : > { %v16801_v25 = vpop.f32.mrb[68].mxu0  ;;  %19658 = vst [vmem:[#allocation94_spill] sm:$0xff] %v16820_v4  ;;  %v3947_v15 = vrot.slane %v3203_v44, 4  ;;  %v3949_v35 = vrot.slane %v3203_v44, 5  ;;  %v3951_v40 = vrot.slane %v3203_v44, 6  ;;  %vm2843_vm10 = vcmp.gt.f32.partialorder %v2549_v45, 0.0 }
 0x352   : > { %v16809_v10 = vpop.f32.mrb[69].mxu0  ;;  %v2987_v18 = vmul.f32 0.25, %v2549_v45  ;;  %v3953_v34 = vrot.slane %v3203_v44, 7  ;;  %v16830_v59 = vmul.f32 0.25, %v16805_v37  ;;  %v2990_v51 = vmul.f32 0.25, %v2398_v55 }
 0x353   : > { %v16818_v43 = vpop.f32.mrb[70].mxu0  ;;  %v3948_v27 = vsel %vm3224_vm0, %v3947_v15, %v3946_v62  ;;  %v3990_v50 = vsel %vm3224_vm0, %v3949_v35, %v3989_v6  ;;  %vm2846_vm15 = vcmp.gt.f32.partialorder %v2398_v55, 0.0  ;;  %v16844_v15 = vadd.f32 %v16549_v23, %v15840_v39 }
 0x354   : > { %v16825_v56 = vpop.f32.mrb[71].mxu0  ;;  %v3950_v61 = vsel %vm3227_vm2, %v3949_v35, %v3948_v27  ;;  %v3991_v52 = vsel %vm3227_vm2, %v3951_v40, %v3990_v50  ;;  %v3131_v54 = vsel %vm2843_vm10, %v2549_v45, %v2987_v18  ;;  %v16848_v45 = vadd.f32 %v16562_v32, %v15844_v29 }
 0x355   : > { %v3952_v4 = vsel %vm3230_vm4, %v3951_v40, %v3950_v61  ;;  %v3992_v57 = vsel %vm3230_vm4, %v3953_v34, %v3991_v52  ;;  %v3206_v30 = vmax.f32 %v3128_v19, %v3131_v54  ;;  %v2553_v39 = vadd.f32 %v16564_v58, %v15836_v8 }
 0x356   : > { %v16837_v62 = vsel %vm3233_vm6, %v3953_v34, %v3952_v4  ;;  %v16840_v6 = vsel %vm3233_vm6, %v3203_v44, %v3992_v57  ;;  %v3134_v34 = vsel %vm2846_vm15, %v2398_v55, %v2990_v51  ;;  %v1709_v32 = vsub.s32 4, %v15820_v24  ;;  %v14202_v55 = vld [vmem:[%s15069_s11] sm:$0x3f] }
 0x357   : > { %19659 = vst [vmem:[#allocation95_spill] sm:$0xff] %v16837_v62  ;;  %19660 = vst [vmem:[#allocation96_spill] sm:$0xff] %v16840_v6  ;;  %v4012_v19 = vsel %vm3212_vm11, %v3206_v30, 0.0  ;;  %v4013_v4 = vrot.slane %v3206_v30, 1  ;;  %v4015_v18 = vrot.slane %v3206_v30, 2  ;;  %v4017_v27 = vrot.slane %v3206_v30, 3 }
 0x358   : > { %v4060_v44 = vrot.slane %v3206_v30, 4  ;;  %v1713_v50 = vsub.s32 5, %v15820_v24  ;;  %vm2849_vm1 = vcmp.gt.f32.partialorder %v2553_v39, 0.0  ;;  %v2993_v57 = vmul.f32 0.25, %v2553_v39 }
 0x359   : > { %v16850_v35 = vpop.f32.mrb[72].mxu0  ;;  %v4014_v23 = vsel %vm3215_vm12, %v4013_v4, %v4012_v19  ;;  %v4057_v29 = vsel %vm3212_vm11, %v4013_v4, 0.0  ;;  %v16869_v58 = vmul.f32 0.25, %v16844_v15  ;;  %v16872_v30 = vrot.slane %v14202_v55, %v1709_v32 }
 0x35a   : > { %v16861_v61 = vpop.f32.mrb[73].mxu0  ;;  %v4016_v52 = vsel %vm3218_vm13, %v4015_v18, %v4014_v23  ;;  %v4058_v54 = vsel %vm3215_vm12, %v4015_v18, %v4057_v29  ;;  %v16874_v19 = vrot.slane %v14202_v55, %v1713_v50  ;;  %v3137_v40 = vsel %vm2849_vm1, %v2553_v39, %v2993_v57 }
 0x35b   : > { %v16865_v51 = vpop.f32.mrb[74].mxu0  ;;  %v4059_v8 = vsel %vm3218_vm13, %v4017_v27, %v4058_v54  ;;  %v4018_v4 = vsel %vm3221_vm14, %v4017_v27, %v4016_v52  ;;  %v19661_v18 = vrot.slane %v15878_v47, 6  ;;  %v3209_v54 = vmax.f32 %v3134_v34, %v3137_v40 }
 0x35c   : > { %v4061_v23 = vsel %vm3221_vm14, %v4060_v44, %v4059_v8  ;;  %v2590_v6 = vadd.f32 %v16578_v21, %v16872_v30  ;;  %v2592_v32 = vadd.f32 %v16586_v48, %v16874_v19  ;;  %v2594_v50 = vadd.f32 %v16592_v26, %v16872_v30  ;;  %v16906_v52 = vpop.f32.mrb[75].mxu0 }
 0x35d   : > { %v16882_v29 = vsel %vm3230_vm4, %v19661_v18, %v15919_v63  ;;  %v16892_v27 = vadd.f32 %v16605_v5, %v16874_v19  ;;  %v16896_v44 = vadd.f32 %v16629_v16, %v16872_v30  ;;  %v16900_v63 = vadd.f32 %v16633_v2, %v16874_v19 }
 0x35e   : > { %v16904_v21 = vadd.f32 %v16641_v49, %v16872_v30  ;;  %v4019_v48 = vrot.slane %v3209_v54, 4  ;;  %v4021_v40 = vrot.slane %v3209_v54, 5  ;;  %v4023_v34 = vrot.slane %v3209_v54, 6 }
 0x35f   : > { %v4025_v26 = vrot.slane %v3209_v54, 7  ;;  %vm2712_vm3 = vcmp.gt.f32.partialorder %v2590_v6, 0.0  ;;  %v2856_v39 = vmul.f32 0.25, %v2590_v6  ;;  %vm2713_vm5 = vcmp.gt.f32.partialorder %v2592_v32, 0.0 }
 0x360   : > { %v2857_v5 = vmul.f32 0.25, %v2592_v32  ;;  %v4020_v16 = vsel %vm3224_vm0, %v4019_v48, %v4018_v4  ;;  %v4062_v57 = vsel %vm3224_vm0, %v4021_v40, %v4061_v23  ;;  %vm2718_vm7 = vcmp.gt.f32.partialorder %v2594_v50, 0.0 }
 0x361   : > { %v2862_v2 = vmul.f32 0.25, %v2594_v50  ;;  %v16910_v8 = vpop.f32.mrb[76].mxu0  ;;  %v4022_v49 = vsel %vm3227_vm2, %v4021_v40, %v4020_v16  ;;  %v4063_v55 = vsel %vm3227_vm2, %v4023_v34, %v4062_v57  ;;  %v3000_v18 = vsel %vm2712_vm3, %v2590_v6, %v2856_v39 }
 0x362   : > { %v3001_v62 = vsel %vm2713_vm5, %v2592_v32, %v2857_v5  ;;  %v4024_v36 = vsel %vm3230_vm4, %v4023_v34, %v4022_v49  ;;  %v4064_v46 = vsel %vm3230_vm4, %v4025_v26, %v4063_v55  ;;  %v3141_v42 = vmax.f32 %v15916_v53, %v3000_v18  ;;  %v16928_v39 = vpop.f32.mrb[77].mxu0 }
 0x363   : > { %v3142_v4 = vmax.f32 %v19662_v3, %v3001_v62  ;;  %v16919_v23 = vsel %vm3233_vm6, %v4025_v26, %v4024_v36  ;;  %v16922_v48 = vsel %vm3233_vm6, %v3209_v54, %v4064_v46  ;;  %v3006_v0 = vsel %vm2718_vm7, %v2594_v50, %v2862_v2 }
 0x364   : > { %19663 = vst [vmem:[#allocation31_spill] sm:$0xff] %v16919_v23  ;;  %19664 = vst [vmem:[#allocation97_spill] sm:$0xff] %v16922_v48  ;;  %vm2719_vm8 = vcmp.gt.f32.partialorder %v16892_v27, 0.0  ;;  %v3235_v32 = vsel %vm3212_vm11, %v3141_v42, 0.0  ;;  %v3236_v40 = vrot.slane %v3141_v42, 1  ;;  %v3238_v34 = vrot.slane %v3141_v42, 2 }
 0x365   : > { %v3240_v53 = vrot.slane %v3141_v42, 3  ;;  %v3277_v3 = vrot.slane %v3141_v42, 4  ;;  %v3250_v36 = vsel %vm3212_vm11, %v3142_v4, 0.0  ;;  %v3251_v62 = vrot.slane %v3142_v4, 1 }
 0x366   : > { %v3237_v46 = vsel %vm3215_vm12, %v3236_v40, %v3235_v32  ;;  %v3274_v54 = vsel %vm3212_vm11, %v3236_v40, 0.0  ;;  %v3253_v50 = vrot.slane %v3142_v4, 2  ;;  %v3255_v26 = vrot.slane %v3142_v4, 3 }
 0x367   : > { %v3239_v5 = vsel %vm3218_vm13, %v3238_v34, %v3237_v46  ;;  %v3275_v16 = vsel %vm3215_vm12, %v3238_v34, %v3274_v54  ;;  %v3252_v57 = vsel %vm3215_vm12, %v3251_v62, %v3250_v36  ;;  %v3283_v2 = vsel %vm3212_vm11, %v3251_v62, 0.0  ;;  %v19665_v34 = vld [vmem:[#allocation33_spill] sm:$0xff]  ;;  %v16950_v62 = vpop.f32.mrb[78].mxu0 }
 0x368   : > { %v3241_v49 = vsel %vm3221_vm14, %v3240_v53, %v3239_v5  ;;  %v3276_v42 = vsel %vm3218_vm13, %v3240_v53, %v3275_v16  ;;  %v3254_v55 = vsel %vm3218_vm13, %v3253_v50, %v3252_v57  ;;  %v3284_v18 = vsel %vm3215_vm12, %v3253_v50, %v3283_v2  ;;  %v16970_v48 = vpop.f32.mrb[79].mxu0 }
 0x369   : > { %v3278_v32 = vsel %vm3221_vm14, %v3277_v3, %v3276_v42  ;;  %v3256_v40 = vsel %vm3221_vm14, %v3255_v26, %v3254_v55  ;;  %v3285_v46 = vsel %vm3218_vm13, %v3255_v26, %v3284_v18  ;;  %v3286_v6 = vrot.slane %v3142_v4, 4  ;;  %v19666_v18 = vld [vmem:[#allocation32_spill] sm:$0xff] }
 0x36a   : > { %v16945_v54 = vmax.f32 %v19665_v34, %v3006_v0  ;;  %v2863_v36 = vmul.f32 0.25, %v16892_v27  ;;  %vm2724_vm9 = vcmp.gt.f32.partialorder %v16896_v44, 0.0  ;;  %v2868_v53 = vmul.f32 0.25, %v16896_v44  ;;  %v19667_v34 = vld [vmem:[#allocation36_spill] sm:$0xff] }
 0x36b   : > { %v3287_v50 = vsel %vm3221_vm14, %v3286_v6, %v3285_v46  ;;  %vm2725_vm10 = vcmp.gt.f32.partialorder %v16900_v63, 0.0  ;;  %v2869_v3 = vmul.f32 0.25, %v16900_v63  ;;  %vm2730_vm15 = vcmp.gt.f32.partialorder %v16904_v21, 0.0 }
 0x36c   : > { %v3242_v4 = vrot.slane %v16945_v54, 4  ;;  %v3244_v0 = vrot.slane %v16945_v54, 5  ;;  %v3007_v16 = vsel %vm2719_vm8, %v16892_v27, %v2863_v36  ;;  %v3012_v6 = vsel %vm2724_vm9, %v16896_v44, %v2868_v53 }
 0x36d   : > { %v3013_v57 = vsel %vm2725_vm10, %v16900_v63, %v2869_v3  ;;  %v2874_v2 = vmul.f32 0.25, %v16904_v21  ;;  %v3145_v46 = vmax.f32 %v19666_v18, %v3007_v16  ;;  %v3147_v26 = vmax.f32 %v19667_v34, %v3012_v6  ;;  %v19669_v63 = vld [vmem:[#allocation35_spill] sm:$0xff] }
 0x36e   : > { %v3243_v42 = vsel %vm3224_vm0, %v3242_v4, %v3241_v49  ;;  %v3279_v55 = vsel %vm3224_vm0, %v3244_v0, %v3278_v32  ;;  %v19668_v27 = vrot.slane %v16945_v54, 6  ;;  %v16979_v36 = vmax.f32 %v19669_v63, %v3013_v57 }
 0x36f   : > { %v16973_v5 = vsel %vm3227_vm2, %v3244_v0, %v3243_v42  ;;  %v3018_v49 = vsel %vm2730_vm15, %v16904_v21, %v2874_v2  ;;  %v19670_v32 = vrot.slane %v16945_v54, 7  ;;  %v3257_v3 = vrot.slane %v3145_v46, 4 }
 0x370   : > { %v3280_v44 = vsel %vm3227_vm2, %v19668_v27, %v3279_v55  ;;  %v3259_v4 = vrot.slane %v3145_v46, 5  ;;  %v3261_v16 = vrot.slane %v3145_v46, 6  ;;  %v3263_v6 = vrot.slane %v3145_v46, 7 }
 0x371   : > { %v3281_v53 = vsel %vm3230_vm4, %v19670_v32, %v3280_v44  ;;  %v3307_v42 = vsel %vm3212_vm11, %v3147_v26, 0.0  ;;  %v3308_v57 = vrot.slane %v3147_v26, 1  ;;  %v3258_v55 = vsel %vm3224_vm0, %v3257_v3, %v3256_v40 }
 0x372   : > { %v16989_v0 = vsel %vm3233_vm6, %v16945_v54, %v3281_v53  ;;  %v3288_v18 = vsel %vm3224_vm0, %v3259_v4, %v3287_v50  ;;  %v3310_v21 = vrot.slane %v3147_v26, 2  ;;  %v3312_v2 = vrot.slane %v3147_v26, 3 }
 0x373   : > { %v3260_v34 = vsel %vm3227_vm2, %v3259_v4, %v3258_v55  ;;  %v3289_v27 = vsel %vm3227_vm2, %v3261_v16, %v3288_v18  ;;  %v3309_v44 = vsel %vm3215_vm12, %v3308_v57, %v3307_v42  ;;  %v3346_v63 = vsel %vm3212_vm11, %v3308_v57, 0.0  ;;  %v17009_v55 = vpop.f32.mrb[80].mxu0 }
 0x374   : > { %v3262_v32 = vsel %vm3230_vm4, %v3261_v16, %v3260_v34  ;;  %v3290_v53 = vsel %vm3230_vm4, %v3263_v6, %v3289_v27  ;;  %v3311_v23 = vsel %vm3218_vm13, %v3310_v21, %v3309_v44  ;;  %v3347_v40 = vsel %vm3215_vm12, %v3310_v21, %v3346_v63  ;;  %19673 = vst [vmem:[#allocation36_spill] sm:$0xff] %v17009_v55  ;;  %v19674_v34 = vld [vmem:[#allocation40_spill] sm:$0xff]  ;;  %v17020_v44 = vpop.f32.mrb[81].mxu0 }
 0x375   : > { %v17003_v50 = vsel %vm3233_vm6, %v3263_v6, %v3262_v32  ;;  %v17006_v3 = vsel %vm3233_vm6, %v3145_v46, %v3290_v53  ;;  %v3348_v4 = vsel %vm3218_vm13, %v3312_v2, %v3347_v40  ;;  %v3349_v16 = vrot.slane %v3147_v26, 4  ;;  %19675 = vst [vmem:[#allocation35_spill] sm:$0xff] %v17020_v44 }
 0x376   : > { %19671 = vst [vmem:[#allocation33_spill] sm:$0xff] %v17003_v50  ;;  %19672 = vst [vmem:[#allocation32_spill] sm:$0xff] %v17006_v3  ;;  %v3322_v57 = vsel %vm3212_vm11, %v16979_v36, 0.0  ;;  %v3323_v18 = vrot.slane %v16979_v36, 1  ;;  %v3313_v21 = vsel %vm3221_vm14, %v3312_v2, %v3311_v23  ;;  %v3325_v6 = vrot.slane %v16979_v36, 2 }
 0x377   : > { %v3327_v46 = vrot.slane %v16979_v36, 3  ;;  %v3150_v27 = vmax.f32 %v19674_v34, %v3018_v49  ;;  %v3350_v63 = vsel %vm3221_vm14, %v3349_v16, %v3348_v4  ;;  %v2606_v53 = vadd.f32 %v16648_v33, %v16874_v19  ;;  %v13308_v33 = vld [vmem:[%s15077_s12 + $0x204] ss:$16 sps:$4 sm:$0xff]  }
 0x378   : > { %v3324_v26 = vsel %vm3215_vm12, %v3323_v18, %v3322_v57  ;;  %v3355_v32 = vsel %vm3212_vm11, %v3323_v18, 0.0  ;;  %v3358_v4 = vrot.slane %v16979_v36, 4  ;;  %8261 = vmatprep.subr.bf16.mxu1 %v13308_v33 }
 0x379   : > { %v3326_v23 = vsel %vm3218_vm13, %v3325_v6, %v3324_v26  ;;  %v3356_v2 = vsel %vm3215_vm12, %v3325_v6, %v3355_v32  ;;  %v3314_v40 = vrot.slane %v3150_v27, 4  ;;  %v3316_v42 = vrot.slane %v3150_v27, 5  ;;  %v17035_v26 = vpop.f32.mrb[82].mxu0 }
 0x37a   : > { %v3328_v49 = vsel %vm3221_vm14, %v3327_v46, %v3326_v23  ;;  %v3357_v34 = vsel %vm3218_vm13, %v3327_v46, %v3356_v2  ;;  %v3318_v16 = vrot.slane %v3150_v27, 6  ;;  %v3320_v18 = vrot.slane %v3150_v27, 7  ;;  %19676 = vst [vmem:[#allocation40_spill] sm:$0xff] %v17035_v26  ;;  %v13311_v46 = vld [vmem:[%s15077_s12 + $0x20c] ss:$16 sps:$4 sm:$0xff]   ;;  %v17053_v33 = vpop.f32.mrb[83].mxu0 }
 0x37b   : > { %v3315_v57 = vsel %vm3224_vm0, %v3314_v40, %v3313_v21  ;;  %v3351_v3 = vsel %vm3224_vm0, %v3316_v42, %v3350_v63  ;;  %vm2731_vm1 = vcmp.gt.f32.partialorder %v2606_v53, 0.0  ;;  %v2875_v50 = vmul.f32 0.25, %v2606_v53  ;;  %8845 = vmatprep.subr.bf16.mxu0 %v13311_v46  ;;  %v19677_v26 = vld [vmem:[#allocation39_spill] sm:$0xff] }
 0x37c   : > { %v3317_v6 = vsel %vm3227_vm2, %v3316_v42, %v3315_v57  ;;  %v3352_v32 = vsel %vm3227_vm2, %v3318_v16, %v3351_v3  ;;  %v14597_v23 = vmov 1983009808   ;;  %v2610_v21 = vadd.f32 %v16670_v17, %v16872_v30  ;;  %19678 = vst [vmem:[#allocation39_spill] sm:$0xff] %v17053_v33  ;;  %v19684_v33 = vld [vmem:[#allocation41_spill] sm:$0xff] }
 0x37d   : > { %v4160_v44 = vunpack.c.l.s4 %v14597_v23  ;;  %v3319_v36 = vsel %vm3230_vm4, %v3318_v16, %v3317_v6  ;;  %v3353_v2 = vsel %vm3230_vm4, %v3320_v18, %v3352_v32  ;;  %v2612_v63 = vadd.f32 %v16674_v22, %v16874_v19 }
 0x37e   : > { %v3321_v40 = vsel %vm3233_vm6, %v3320_v18, %v3319_v36  ;;  %v3354_v42 = vsel %vm3233_vm6, %v3150_v27, %v3353_v2  ;;  %v3019_v3 = vsel %vm2731_vm1, %v2606_v53, %v2875_v50  ;;  %vm2736_vm3 = vcmp.gt.f32.partialorder %v2610_v21, 0.0  ;;  %v19679_v18 = vld [vmem:[#allocation37_spill] sm:$0xff]  ;;  %v19680_v27 = vld [vmem:[#allocation38_spill] sm:$0xff] }
 0x37f   : > { %v4161_v57 = vunpack.c.0.s8 %v4160_v44  ;;  %v4088_v23 = vmax.f32 %v3321_v40, %v3354_v42  ;;  %v3151_v16 = vmax.f32 %v19677_v26, %v3019_v3  ;;  %v2880_v6 = vmul.f32 0.25, %v2610_v21  ;;  %v19683_v42 = vld [vmem:[#allocation42_spill] sm:$0xff] }
 0x380   : > { %v3359_v32 = vsel %vm3221_vm14, %v3358_v4, %v3357_v34  ;;  %vm2737_vm5 = vcmp.gt.f32.partialorder %v2612_v63, 0.0  ;;  %v2881_v17 = vmul.f32 0.25, %v2612_v63  ;;  %v2614_v22 = vadd.f32 %v16678_v12, %v16872_v30 }
 0x381   : > { %v19681_v36 = vmax.f32 %v19679_v18, %v19680_v27  ;;  %v3329_v44 = vrot.slane %v3151_v16, 4  ;;  %v3331_v53 = vrot.slane %v3151_v16, 5  ;;  %v17061_v26 = vsub.s32 %v4161_v57, %v15820_v24 }
 0x382   : > { %v3333_v46 = vrot.slane %v3151_v16, 6  ;;  %v3335_v2 = vrot.slane %v3151_v16, 7  ;;  %v3024_v34 = vsel %vm2736_vm3, %v2610_v21, %v2880_v6  ;;  %v3025_v4 = vsel %vm2737_vm5, %v2612_v63, %v2881_v17 }
 0x383   : > { %v17058_v50 = vpack.c.bf16 %v4088_v23, %v19681_v36  ;;  %19682 = vst [vmem:[#allocation37_spill] sm:$0xff] %v17061_v26  ;;  %v3330_v40 = vsel %vm3224_vm0, %v3329_v44, %v3328_v49  ;;  %v3360_v12 = vsel %vm3224_vm0, %v3331_v53, %v3359_v32  ;;  %v3153_v3 = vmax.f32 %v19683_v42, %v3024_v34 }
 0x384   : > { %v3154_v55 = vmax.f32 %v19684_v33, %v3025_v4  ;;  %v3332_v23 = vsel %vm3227_vm2, %v3331_v53, %v3330_v40  ;;  %v3361_v18 = vsel %vm3227_vm2, %v3333_v46, %v3360_v12  ;;  %vm2742_vm7 = vcmp.gt.f32.partialorder %v2614_v22, 0.0  ;;  %v17083_v12 = vpop.f32.mrb[84].mxu0 }
 0x385   : > { %v2886_v27 = vmul.f32 0.25, %v2614_v22  ;;  %v3334_v57 = vsel %vm3230_vm4, %v3333_v46, %v3332_v23  ;;  %v3362_v36 = vsel %vm3230_vm4, %v3335_v2, %v3361_v18  ;;  %v3379_v21 = vsel %vm3212_vm11, %v3153_v3, 0.0  ;;  %v17088_v18 = vpop.f32.mrb[85].mxu0 }
 0x386   : > { %v3380_v63 = vrot.slane %v3153_v3, 1  ;;  %v3336_v49 = vsel %vm3233_vm6, %v3335_v2, %v3334_v57  ;;  %v3363_v6 = vsel %vm3233_vm6, %v3151_v16, %v3362_v36  ;;  %v3382_v32 = vrot.slane %v3153_v3, 2 }
 0x387   : > { %v2616_v17 = vadd.f32 %v16692_v60, %v16874_v19  ;;  %v17076_v33 = vmax.f32 %v3336_v49, %v3363_v6  ;;  %v3384_v53 = vrot.slane %v3153_v3, 3  ;;  %v3394_v40 = vsel %vm3212_vm11, %v3154_v55, 0.0 }
 0x388   : > { %v3381_v44 = vsel %vm3215_vm12, %v3380_v63, %v3379_v21  ;;  %v3418_v46 = vsel %vm3212_vm11, %v3380_v63, 0.0  ;;  %v3395_v2 = vrot.slane %v3154_v55, 1  ;;  %v3421_v42 = vrot.slane %v3153_v3, 4 }
 0x389   : > { %19685 = vst [vmem:[#allocation38_spill] sm:$0xff] %v17076_v33  ;;  %v3383_v34 = vsel %vm3218_vm13, %v3382_v32, %v3381_v44  ;;  %v3419_v4 = vsel %vm3215_vm12, %v3382_v32, %v3418_v46  ;;  %v3397_v23 = vrot.slane %v3154_v55, 2  ;;  %v3399_v21 = vrot.slane %v3154_v55, 3 }
 0x38a   : > { %v3420_v60 = vsel %vm3218_vm13, %v3384_v53, %v3419_v4  ;;  %v3385_v57 = vsel %vm3221_vm14, %v3384_v53, %v3383_v34  ;;  %v3396_v36 = vsel %vm3215_vm12, %v3395_v2, %v3394_v40  ;;  %v3427_v63 = vsel %vm3212_vm11, %v3395_v2, 0.0  ;;  %v19686_v34 = vld [vmem:[#allocation46_spill] sm:$0xff] }
 0x38b   : > { %v3422_v49 = vsel %vm3221_vm14, %v3421_v42, %v3420_v60  ;;  %v3398_v6 = vsel %vm3218_vm13, %v3397_v23, %v3396_v36  ;;  %v3428_v32 = vsel %vm3215_vm12, %v3397_v23, %v3427_v63  ;;  %v3430_v44 = vrot.slane %v3154_v55, 4 }
 0x38c   : > { %v3400_v46 = vsel %vm3221_vm14, %v3399_v21, %v3398_v6  ;;  %v3429_v3 = vsel %vm3218_vm13, %v3399_v21, %v3428_v32  ;;  %v3030_v4 = vsel %vm2742_vm7, %v2614_v22, %v2886_v27  ;;  %vm2743_vm8 = vcmp.gt.f32.partialorder %v2616_v17, 0.0  ;;  %v19687_v6 = vld [vmem:[#allocation43_spill] sm:$0xff] }
 0x38d   : > { %v3431_v53 = vsel %vm3221_vm14, %v3430_v44, %v3429_v3  ;;  %v3156_v40 = vmax.f32 %v19686_v34, %v3030_v4  ;;  %v2887_v16 = vmul.f32 0.25, %v2616_v17  ;;  %v2620_v2 = vadd.f32 %v16714_v41, %v16872_v30  ;;  %v17120_v4 = vpop.f32.mrb[86].mxu0 }
 0x38e   : > { %v2622_v60 = vadd.f32 %v16721_v31, %v16874_v19  ;;  %v2624_v55 = vadd.f32 %v16729_v38, %v16872_v30  ;;  %v17109_v42 = vadd.f32 %v16738_v28, %v16874_v19  ;;  %v17113_v22 = vadd.f32 %v16765_v13, %v16872_v30  ;;  %19688 = vst [vmem:[#allocation42_spill] sm:$0xff] %v17120_v4 }
 0x38f   : > { %v3386_v27 = vrot.slane %v3156_v40, 4  ;;  %v3388_v23 = vrot.slane %v3156_v40, 5  ;;  %v3390_v36 = vrot.slane %v3156_v40, 6  ;;  %v3392_v21 = vrot.slane %v3156_v40, 7 }
 0x390   : > { %v3031_v63 = vsel %vm2743_vm8, %v2616_v17, %v2887_v16  ;;  %vm2748_vm9 = vcmp.gt.f32.partialorder %v2620_v2, 0.0  ;;  %v2892_v41 = vmul.f32 0.25, %v2620_v2  ;;  %vm2749_vm10 = vcmp.gt.f32.partialorder %v2622_v60, 0.0 }
 0x391   : > { %v3387_v31 = vsel %vm3224_vm0, %v3386_v27, %v3385_v57  ;;  %v3423_v38 = vsel %vm3224_vm0, %v3388_v23, %v3422_v49  ;;  %v3157_v32 = vmax.f32 %v19687_v6, %v3031_v63  ;;  %v2893_v28 = vmul.f32 0.25, %v2622_v60 }
 0x392   : > { %v3389_v44 = vsel %vm3227_vm2, %v3388_v23, %v3387_v31  ;;  %v3424_v13 = vsel %vm3227_vm2, %v3390_v36, %v3423_v38  ;;  %v3036_v3 = vsel %vm2748_vm9, %v2620_v2, %v2892_v41  ;;  %vm2754_vm15 = vcmp.gt.f32.partialorder %v2624_v55, 0.0  ;;  %v19689_v41 = vld [vmem:[#allocation48_spill] sm:$0xff]  ;;  %v17129_v38 = vpop.f32.mrb[87].mxu0 }
 0x393   : > { %v3391_v17 = vsel %vm3230_vm4, %v3390_v36, %v3389_v44  ;;  %v3425_v16 = vsel %vm3230_vm4, %v3392_v21, %v3424_v13  ;;  %v3401_v34 = vrot.slane %v3157_v32, 4  ;;  %v3403_v24 = vrot.slane %v3157_v32, 5 }
 0x394   : > { %v3393_v57 = vsel %vm3233_vm6, %v3392_v21, %v3391_v17  ;;  %v3426_v49 = vsel %vm3233_vm6, %v3156_v40, %v3425_v16  ;;  %v3405_v27 = vrot.slane %v3157_v32, 6  ;;  %v3407_v63 = vrot.slane %v3157_v32, 7  ;;  %v19690_v17 = vld [vmem:[#allocation44_spill] sm:$0xff]  ;;  %v19691_v40 = vld [vmem:[#allocation45_spill] sm:$0xff] }
 0x395   : > { %v4091_v6 = vmax.f32 %v3393_v57, %v3426_v49  ;;  %v3402_v23 = vsel %vm3224_vm0, %v3401_v34, %v3400_v46  ;;  %v3432_v2 = vsel %vm3224_vm0, %v3403_v24, %v3431_v53  ;;  %v3159_v31 = vmax.f32 %v19689_v41, %v3036_v3 }
 0x396   : > { %v3404_v36 = vsel %vm3227_vm2, %v3403_v24, %v3402_v23  ;;  %v3433_v44 = vsel %vm3227_vm2, %v3405_v27, %v3432_v2  ;;  %v3037_v13 = vsel %vm2749_vm10, %v2622_v60, %v2893_v28  ;;  %v2898_v21 = vmul.f32 0.25, %v2624_v55  ;;  %v19693_v23 = vld [vmem:[#allocation47_spill] sm:$0xff] }
 0x397   : > { %v19692_v16 = vmax.f32 %v19690_v17, %v19691_v40  ;;  %v3406_v46 = vsel %vm3230_vm4, %v3405_v27, %v3404_v36  ;;  %v3434_v53 = vsel %vm3230_vm4, %v3407_v63, %v3433_v44  ;;  %v3451_v3 = vsel %vm3212_vm11, %v3159_v31, 0.0 }
 0x398   : > { %v17143_v34 = vsel %vm3233_vm6, %v3407_v63, %v3406_v46  ;;  %v17146_v24 = vsel %vm3233_vm6, %v3157_v32, %v3434_v53  ;;  %v3452_v57 = vrot.slane %v3159_v31, 1  ;;  %v3454_v60 = vrot.slane %v3159_v31, 2 }
 0x399   : > { %v17137_v4 = vpack.c.bf16 %v4091_v6, %v19692_v16  ;;  %v3456_v49 = vrot.slane %v3159_v31, 3  ;;  %v3493_v6 = vrot.slane %v3159_v31, 4  ;;  %v3160_v2 = vmax.f32 %v19693_v23, %v3037_v13 }
 0x39a   : > { %v3453_v27 = vsel %vm3215_vm12, %v3452_v57, %v3451_v3  ;;  %v3490_v41 = vsel %vm3212_vm11, %v3452_v57, 0.0  ;;  %v3042_v36 = vsel %vm2754_vm15, %v2624_v55, %v2898_v21  ;;  %vm2755_vm1 = vcmp.gt.f32.partialorder %v17109_v42, 0.0 }
 0x39b   : > { %v3455_v32 = vsel %vm3218_vm13, %v3454_v60, %v3453_v27  ;;  %v3491_v63 = vsel %vm3215_vm12, %v3454_v60, %v3490_v41  ;;  %v3466_v44 = vsel %vm3212_vm11, %v3160_v2, 0.0  ;;  %v3467_v17 = vrot.slane %v3160_v2, 1  ;;  %v19694_v60 = vld [vmem:[#allocation53_spill] sm:$0xff]  ;;  %v17169_v41 = vpop.f32.mrb[88].mxu0 }
 0x39c   : > { %v3457_v40 = vsel %vm3221_vm14, %v3456_v49, %v3455_v32  ;;  %v3492_v31 = vsel %vm3218_vm13, %v3456_v49, %v3491_v63  ;;  %v3469_v13 = vrot.slane %v3160_v2, 2  ;;  %v3471_v16 = vrot.slane %v3160_v2, 3  ;;  %19695 = vst [vmem:[#allocation41_spill] sm:$0xff] %v17169_v41 }
 0x39d   : > { %v3494_v46 = vsel %vm3221_vm14, %v3493_v6, %v3492_v31  ;;  %v3468_v53 = vsel %vm3215_vm12, %v3467_v17, %v3466_v44  ;;  %v3499_v55 = vsel %vm3212_vm11, %v3467_v17, 0.0  ;;  %v3502_v21 = vrot.slane %v3160_v2, 4  ;;  %v17175_v2 = vpop.f32.mrb[89].mxu0 }
 0x39e   : > { %v3470_v3 = vsel %vm3218_vm13, %v3469_v13, %v3468_v53  ;;  %v3500_v57 = vsel %vm3215_vm12, %v3469_v13, %v3499_v55  ;;  %v17166_v23 = vmax.f32 %v19694_v60, %v3042_v36  ;;  %v2899_v27 = vmul.f32 0.25, %v17109_v42  ;;  %19696 = vst [vmem:[#allocation46_spill] sm:$0xff] %v17175_v2  ;;  %v19698_v60 = vld [vmem:[#allocation55_spill] sm:$0xff] }
 0x39f   : > { %v3472_v49 = vsel %vm3221_vm14, %v3471_v16, %v3470_v3  ;;  %v3501_v6 = vsel %vm3218_vm13, %v3471_v16, %v3500_v57  ;;  %vm2760_vm3 = vcmp.gt.f32.partialorder %v17113_v22, 0.0  ;;  %v2904_v32 = vmul.f32 0.25, %v17113_v22  ;;  %v19697_v3 = vld [vmem:[#allocation52_spill] sm:$0xff] }
 0x3a0   : > { %v3503_v63 = vsel %vm3221_vm14, %v3502_v21, %v3501_v6  ;;  %v3458_v44 = vrot.slane %v17166_v23, 4  ;;  %v3460_v36 = vrot.slane %v17166_v23, 5  ;;  %v19486_v17 = vrot.slane %v17166_v23, 6 }
 0x3a1   : > { %v19487_v31 = vrot.slane %v17166_v23, 7  ;;  %v3043_v13 = vsel %vm2755_vm1, %v17109_v42, %v2899_v27  ;;  %v3048_v16 = vsel %vm2760_vm3, %v17113_v22, %v2904_v32  ;;  %v2632_v53 = vadd.f32 %v16772_v1, %v16874_v19  ;;  %v17198_v27 = vpop.f32.mrb[90].mxu0 }
 0x3a2   : > { %v3459_v55 = vsel %vm3224_vm0, %v3458_v44, %v3457_v40  ;;  %v3495_v21 = vsel %vm3224_vm0, %v3460_v36, %v3494_v46  ;;  %v3163_v57 = vmax.f32 %v19697_v3, %v3043_v13  ;;  %v3165_v6 = vmax.f32 %v19698_v60, %v3048_v16  ;;  %19699 = vst [vmem:[#allocation43_spill] sm:$0xff] %v17198_v27 }
 0x3a3   : > { %v17193_v28 = vsel %vm3227_vm2, %v3460_v36, %v3459_v55  ;;  %v3496_v42 = vsel %vm3227_vm2, %v19486_v17, %v3495_v21  ;;  %vm2761_vm5 = vcmp.gt.f32.partialorder %v2632_v53, 0.0  ;;  %v2905_v22 = vmul.f32 0.25, %v2632_v53 }
 0x3a4   : > { %v3497_v1 = vsel %vm3230_vm4, %v19487_v31, %v3496_v42  ;;  %v3473_v40 = vrot.slane %v3163_v57, 4  ;;  %v3475_v46 = vrot.slane %v3163_v57, 5  ;;  %v3477_v32 = vrot.slane %v3163_v57, 6 }
 0x3a5   : > { %v17205_v44 = vsel %vm3233_vm6, %v17166_v23, %v3497_v1  ;;  %v3479_v36 = vrot.slane %v3163_v57, 7  ;;  %v3523_v13 = vsel %vm3212_vm11, %v3165_v6, 0.0  ;;  %v3524_v16 = vrot.slane %v3165_v6, 1 }
 0x3a6   : > { %v3474_v55 = vsel %vm3224_vm0, %v3473_v40, %v3472_v49  ;;  %v3504_v21 = vsel %vm3224_vm0, %v3475_v46, %v3503_v63  ;;  %v3526_v3 = vrot.slane %v3165_v6, 2  ;;  %v3528_v60 = vrot.slane %v3165_v6, 3  ;;  %v17218_v40 = vpop.f32.mrb[91].mxu0 }
 0x3a7   : > { %v3476_v17 = vsel %vm3227_vm2, %v3475_v46, %v3474_v55  ;;  %v3505_v42 = vsel %vm3227_vm2, %v3477_v32, %v3504_v21  ;;  %v3525_v31 = vsel %vm3215_vm12, %v3524_v16, %v3523_v13  ;;  %v3562_v27 = vsel %vm3212_vm11, %v3524_v16, 0.0 }
 0x3a8   : > { %v3478_v1 = vsel %vm3230_vm4, %v3477_v32, %v3476_v17  ;;  %v3506_v2 = vsel %vm3230_vm4, %v3479_v36, %v3505_v42  ;;  %v3527_v41 = vsel %vm3218_vm13, %v3526_v3, %v3525_v31  ;;  %v3563_v49 = vsel %vm3215_vm12, %v3526_v3, %v3562_v27  ;;  %v19702_v3 = vld [vmem:[#allocation54_spill] sm:$0xff] }
 0x3a9   : > { %v19700_v63 = vpack.c.bf16 %v17076_v33, %v17076_v33  ;;  %v3480_v13 = vsel %vm3233_vm6, %v3479_v36, %v3478_v1  ;;  %v3507_v16 = vsel %vm3233_vm6, %v3163_v57, %v3506_v2  ;;  %v3529_v17 = vsel %vm3221_vm14, %v3528_v60, %v3527_v41 }
 0x3aa   : > { %v17229_v32 = vmax.f32 %v3480_v13, %v3507_v16  ;;  %v3564_v31 = vsel %vm3218_vm13, %v3528_v60, %v3563_v49  ;;  %v3049_v27 = vsel %vm2761_vm5, %v2632_v53, %v2905_v22  ;;  %v2634_v55 = vadd.f32 %v16775_v14, %v16872_v30 }
 0x3ab   : > { %v17224_v46 = vrot.slane %v19700_v63, %v17061_v26  ;;  %v3565_v21 = vrot.slane %v3165_v6, 4  ;;  %v3166_v42 = vmax.f32 %v19702_v3, %v3049_v27  ;;  %v2636_v63 = vadd.f32 %v16783_v9, %v16874_v19  ;;  %v17250_v6 = vpop.f32.mrb[92].mxu0 }
 0x3ac   : > { %19701 = vst [vmem:[#allocation48_spill] sm:$0xff] %v17229_v32  ;;  %v2640_v2 = vadd.f32 %v16801_v25, %v16872_v30  ;;  %v19703_v41 = vmax.f32 %v17143_v34, %v17146_v24  ;;  %vm2766_vm7 = vcmp.gt.f32.partialorder %v2634_v55, 0.0  ;;  %v2910_v53 = vmul.f32 0.25, %v2634_v55  ;;  %v17254_v24 = vpop.f32.mrb[93].mxu0 }
 0x3ad   : > { %v17248_v14 = vadd.f32 %v16809_v10, %v16874_v19  ;;  %v3566_v22 = vsel %vm3221_vm14, %v3565_v21, %v3564_v31  ;;  %v3538_v9 = vsel %vm3212_vm11, %v3166_v42, 0.0  ;;  %v3539_v36 = vrot.slane %v3166_v42, 1  ;;  %19704 = vst [vmem:[#allocation44_spill] sm:$0xff] %v17254_v24  ;;  %v19705_v10 = vld [vmem:[#allocation57_spill] sm:$0xff] }
 0x3ae   : > { %v17244_v57 = vpack.c.bf16 %v17229_v32, %v19703_v41  ;;  %v3541_v25 = vrot.slane %v3166_v42, 2  ;;  %v3543_v60 = vrot.slane %v3166_v42, 3  ;;  %v3574_v1 = vrot.slane %v3166_v42, 4 }
 0x3af   : > { %v3054_v34 = vsel %vm2766_vm7, %v2634_v55, %v2910_v53  ;;  %vm2767_vm8 = vcmp.gt.f32.partialorder %v2636_v63, 0.0  ;;  %v3540_v49 = vsel %vm3215_vm12, %v3539_v36, %v3538_v9  ;;  %v3571_v13 = vsel %vm3212_vm11, %v3539_v36, 0.0 }
 0x3b0   : > { %v3168_v16 = vmax.f32 %v19705_v10, %v3054_v34  ;;  %v2911_v27 = vmul.f32 0.25, %v2636_v63  ;;  %v3542_v3 = vsel %vm3218_vm13, %v3541_v25, %v3540_v49  ;;  %v3572_v31 = vsel %vm3215_vm12, %v3541_v25, %v3571_v13  ;;  %v19706_v10 = vld [vmem:[#allocation56_spill] sm:$0xff] }
 0x3b1   : > { %vm2772_vm9 = vcmp.gt.f32.partialorder %v2640_v2, 0.0  ;;  %v2916_v21 = vmul.f32 0.25, %v2640_v2  ;;  %v3544_v41 = vsel %vm3221_vm14, %v3543_v60, %v3542_v3  ;;  %v3573_v55 = vsel %vm3218_vm13, %v3543_v60, %v3572_v31  ;;  %v19707_v60 = vld [vmem:[#allocation61_spill] sm:$0xff] }
 0x3b2   : > { %v3530_v42 = vrot.slane %v3168_v16, 4  ;;  %v3532_v53 = vrot.slane %v3168_v16, 5  ;;  %v3575_v32 = vsel %vm3221_vm14, %v3574_v1, %v3573_v55  ;;  %v3534_v9 = vrot.slane %v3168_v16, 6  ;;  %v17272_v1 = vpop.f32.mrb[94].mxu0 }
 0x3b3   : > { %v3536_v33 = vrot.slane %v3168_v16, 7  ;;  %v3055_v36 = vsel %vm2767_vm8, %v2636_v63, %v2911_v27  ;;  %v3060_v13 = vsel %vm2772_vm9, %v2640_v2, %v2916_v21  ;;  %vm2773_vm10 = vcmp.gt.f32.partialorder %v17248_v14, 0.0 }
 0x3b4   : > { %v3531_v34 = vsel %vm3224_vm0, %v3530_v42, %v3529_v17  ;;  %v3567_v49 = vsel %vm3224_vm0, %v3532_v53, %v3566_v22  ;;  %v3169_v25 = vmax.f32 %v19706_v10, %v3055_v36  ;;  %v3171_v31 = vmax.f32 %v19707_v60, %v3060_v13  ;;  %v19709_v60 = vld [vmem:[#allocation59_spill] sm:$0xff] }
 0x3b5   : > { %v3533_v24 = vsel %vm3227_vm2, %v3532_v53, %v3531_v34  ;;  %v3568_v3 = vsel %vm3227_vm2, %v3534_v9, %v3567_v49  ;;  %vm2842_vm3 = vcmp.gt.f32.partialorder %v16799_v20, 0.0  ;;  %vm2841_vm5 = vcmp.gt.f32.partialorder %v16805_v37, 0.0 }
 0x3b6   : > { %v3535_v55 = vsel %vm3230_vm4, %v3534_v9, %v3533_v24  ;;  %v3569_v63 = vsel %vm3230_vm4, %v3536_v33, %v3568_v3  ;;  %v3545_v17 = vrot.slane %v3169_v25, 4  ;;  %v3547_v27 = vrot.slane %v3169_v25, 5  ;;  %v19708_v3 = vld [vmem:[#allocation58_spill] sm:$0xff] }
 0x3b7   : > { %v3537_v22 = vsel %vm3233_vm6, %v3536_v33, %v3535_v55  ;;  %v3570_v2 = vsel %vm3233_vm6, %v3168_v16, %v3569_v63  ;;  %v3549_v21 = vrot.slane %v3169_v25, 6  ;;  %v3551_v42 = vrot.slane %v3169_v25, 7 }
 0x3b8   : > { %v4097_v53 = vmax.f32 %v3537_v22, %v3570_v2  ;;  %v3546_v36 = vsel %vm3224_vm0, %v3545_v17, %v3544_v41  ;;  %v3576_v34 = vsel %vm3224_vm0, %v3547_v27, %v3575_v32  ;;  %v3595_v49 = vsel %vm3212_vm11, %v3171_v31, 0.0 }
 0x3b9   : > { %v3548_v10 = vsel %vm3227_vm2, %v3547_v27, %v3546_v36  ;;  %v3577_v24 = vsel %vm3227_vm2, %v3549_v21, %v3576_v34  ;;  %v3596_v9 = vrot.slane %v3171_v31, 1  ;;  %v3598_v13 = vrot.slane %v3171_v31, 2  ;;  %v17302_v34 = vpop.f32.mrb[95].mxu0 }
 0x3ba   : > { %v19710_v33 = vmax.f32 %v19708_v3, %v19709_v60  ;;  %v3550_v16 = vsel %vm3230_vm4, %v3549_v21, %v3548_v10  ;;  %v3578_v63 = vsel %vm3230_vm4, %v3551_v42, %v3577_v24  ;;  %v3600_v41 = vrot.slane %v3171_v31, 3 }
 0x3bb   : > { %v17291_v32 = vsel %vm3233_vm6, %v3551_v42, %v3550_v16  ;;  %v17294_v17 = vsel %vm3233_vm6, %v3169_v25, %v3578_v63  ;;  %v3597_v27 = vsel %vm3215_vm12, %v3596_v9, %v3595_v49  ;;  %v3634_v22 = vsel %vm3212_vm11, %v3596_v9, 0.0  ;;  %v19714_v63 = vld [vmem:[#allocation60_spill] sm:$0xff] }
 0x3bc   : > { %v17286_v55 = vpack.c.bf16 %v4097_v53, %v19710_v33  ;;  %v4098_v2 = vmax.f32 %v17291_v32, %v17294_v17  ;;  %v3599_v53 = vsel %vm3218_vm13, %v3598_v13, %v3597_v27  ;;  %v3635_v21 = vsel %vm3215_vm12, %v3598_v13, %v3634_v22 }
 0x3bd   : > { %v3637_v36 = vrot.slane %v3171_v31, 4  ;;  %v3601_v42 = vsel %vm3221_vm14, %v3600_v41, %v3599_v53  ;;  %v3636_v10 = vsel %vm3218_vm13, %v3600_v41, %v3635_v21  ;;  %v2917_v25 = vmul.f32 0.25, %v17248_v14 }
 0x3be   : > { %v2644_v49 = vadd.f32 %v16818_v43, %v16872_v30  ;;  %v2646_v9 = vadd.f32 %v16825_v56, %v16874_v19  ;;  %v19711_v13 = vrot.slane %v15878_v47, 7  ;;  %v19712_v3 = vrot.slane %v16945_v54, 6 }
 0x3bf   : > { %v3638_v24 = vsel %vm3221_vm14, %v3637_v36, %v3636_v10  ;;  %v3061_v33 = vsel %vm2773_vm10, %v17248_v14, %v2917_v25  ;;  %v19713_v16 = vrot.slane %v16945_v54, 7  ;;  %v17335_v14 = vrot.slane %v17137_v4, %v17061_v26 }
 0x3c0   : > { %v3234_v31 = vsel %vm3233_vm6, %v19711_v13, %v16882_v29  ;;  %v3247_v60 = vsel %vm3230_vm4, %v19712_v3, %v16973_v5  ;;  %vm2778_vm15 = vcmp.gt.f32.partialorder %v2644_v49, 0.0  ;;  %v2922_v43 = vmul.f32 0.25, %v2644_v49  ;;  %v19715_v29 = vld [vmem:[#allocation34_spill] sm:$0xff]  ;;  %v19718_v13 = vld [vmem:[#allocation65_spill] sm:$0xff] }
 0x3c1   : > { %v3249_v56 = vsel %vm3233_vm6, %v19713_v16, %v3247_v60  ;;  %v3172_v41 = vmax.f32 %v19714_v63, %v3061_v33  ;;  %vm2779_vm1 = vcmp.gt.f32.partialorder %v2646_v9, 0.0  ;;  %v2923_v47 = vmul.f32 0.25, %v2646_v9  ;;  %19717 = vst [vmem:[#allocation47_spill] sm:$0xff] %v17335_v14 }
 0x3c2   : > { %v4084_v27 = vmax.f32 %v3234_v31, %v19715_v29  ;;  %v3066_v22 = vsel %vm2778_vm15, %v2644_v49, %v2922_v43  ;;  %v4085_v53 = vmax.f32 %v3249_v56, %v16989_v0  ;;  %v17331_v5 = vrot.slane %v17058_v50, %v17061_v26  ;;  %v19719_v50 = vld [vmem:[#allocation64_spill] sm:$0xff] }
 0x3c3   : > { %v3610_v54 = vsel %vm3212_vm11, %v3172_v41, 0.0  ;;  %v3611_v21 = vrot.slane %v3172_v41, 1  ;;  %v3613_v36 = vrot.slane %v3172_v41, 2  ;;  %v3615_v10 = vrot.slane %v3172_v41, 3 }
 0x3c4   : > { %19716 = vst [vmem:[#allocation45_spill] sm:$0xff] %v17331_v5  ;;  %v3646_v25 = vrot.slane %v3172_v41, 4  ;;  %v3174_v3 = vmax.f32 %v19718_v13, %v3066_v22  ;;  %v3067_v31 = vsel %vm2779_vm1, %v2646_v9, %v2923_v47  ;;  %v11849_v49 = vpack.c.bf16 %v4085_v53, %v4084_v27 }
 0x3c5   : > { %v3612_v0 = vsel %vm3215_vm12, %v3611_v21, %v3610_v54  ;;  %v3643_v60 = vsel %vm3212_vm11, %v3611_v21, 0.0  ;;  %v3175_v33 = vmax.f32 %v19719_v50, %v3067_v31  ;;  %v4190_v4 = vcombine.high %v17331_v5, %v17224_v46 }
 0x3c6   : > { %v3614_v43 = vsel %vm3218_vm13, %v3613_v36, %v3612_v0  ;;  %v3644_v16 = vsel %vm3215_vm12, %v3613_v36, %v3643_v60  ;;  %v3602_v56 = vrot.slane %v3174_v3, 4  ;;  %v3604_v63 = vrot.slane %v3174_v3, 5 }
 0x3c7   : > { %v3616_v41 = vsel %vm3221_vm14, %v3615_v10, %v3614_v43  ;;  %v3645_v9 = vsel %vm3218_vm13, %v3615_v10, %v3644_v16  ;;  %v3606_v47 = vrot.slane %v3174_v3, 6  ;;  %v3608_v29 = vrot.slane %v3174_v3, 7 }
 0x3c8   : > { %v3647_v27 = vsel %vm3221_vm14, %v3646_v25, %v3645_v9  ;;  %v3603_v22 = vsel %vm3224_vm0, %v3602_v56, %v3601_v42  ;;  %v3639_v53 = vsel %vm3224_vm0, %v3604_v63, %v3638_v24  ;;  %v3617_v54 = vrot.slane %v3175_v33, 4 }
 0x3c9   : > { %vm2848_vm7 = vcmp.gt.f32.partialorder %v16844_v15, 0.0  ;;  %v3605_v21 = vsel %vm3227_vm2, %v3604_v63, %v3603_v22  ;;  %v3640_v36 = vsel %vm3227_vm2, %v3606_v47, %v3639_v53  ;;  %v3619_v10 = vrot.slane %v3175_v33, 5  ;;  %v19721_v22 = vld [vmem:[#allocation62_spill] sm:$0xff]  ;;  %v19722_v53 = vld [vmem:[#allocation63_spill] sm:$0xff] }
 0x3ca   : > { %v3621_v13 = vrot.slane %v3175_v33, 6  ;;  %v3607_v31 = vsel %vm3230_vm4, %v3606_v47, %v3605_v21  ;;  %v3641_v0 = vsel %vm3230_vm4, %v3608_v29, %v3640_v36  ;;  %v3618_v60 = vsel %vm3224_vm0, %v3617_v54, %v3616_v41 }
 0x3cb   : > { %v3623_v25 = vrot.slane %v3175_v33, 7  ;;  %v3609_v42 = vsel %vm3233_vm6, %v3608_v29, %v3607_v31  ;;  %v3642_v24 = vsel %vm3233_vm6, %v3174_v3, %v3641_v0  ;;  %v3620_v50 = vsel %vm3227_vm2, %v3619_v10, %v3618_v60 }
 0x3cc   : > { %v3648_v43 = vsel %vm3224_vm0, %v3619_v10, %v3647_v27  ;;  %v4100_v16 = vmax.f32 %v3609_v42, %v3642_v24  ;;  %v3622_v56 = vsel %vm3230_vm4, %v3621_v13, %v3620_v50  ;;  %v17366_v9 = vrot.slane %v11849_v49, %v17061_v26  ;;  %v13309_v42 = vld [vmem:[%s15077_s12 + $0x208] ss:$16 sps:$4 sm:$0xff]  }
 0x3cd   : > { %v3649_v63 = vsel %vm3227_vm2, %v3621_v13, %v3648_v43  ;;  %v3624_v47 = vsel %vm3233_vm6, %v3623_v25, %v3622_v56  ;;  %v11867_v29 = vcombine.low %v4190_v4, %v17335_v14  ;;  %v2650_v3 = vadd.f32 %v16850_v35, %v16872_v30  ;;  %v13317_v56 = vld [vmem:[%s15077_s12 + $0x22c] ss:$16 sps:$4 sm:$0xff]  }
 0x3ce   : > { %19720 = vst [vmem:[#allocation53_spill] sm:$0xff] %v17366_v9  ;;  %v3650_v41 = vsel %vm3230_vm4, %v3623_v25, %v3649_v63  ;;  %v19723_v27 = vmax.f32 %v19721_v22, %v19722_v53  ;;  %v17381_v49 = vrot.slane %v17366_v9, %v17061_v26  ;;  %v2652_v36 = vadd.f32 %v16861_v61, %v16874_v19  ;;  %v13306_v25 = vld [vmem:[%s15077_s12 + $0x200] ss:$16 sps:$4 sm:$0xff]   ;;  %v13315_v53 = vld [vmem:[%s15077_s12 + $0x228] ss:$16 sps:$4 sm:$0xff]  }
 0x3cf   : > { %v3651_v21 = vsel %vm3233_vm6, %v3175_v33, %v3650_v41  ;;  %v17388_v35 = vrot.slane %v11867_v29, %v17061_v26  ;;  %vm2784_vm8 = vcmp.gt.f32.partialorder %v2650_v3, 0.0  ;;  %v2928_v10 = vmul.f32 0.25, %v2650_v3 }
 0x3d0   : > { %v17376_v54 = vpack.c.bf16 %v4100_v16, %v19723_v27  ;;  %v17385_v4 = vmax.f32 %v3624_v47, %v3651_v21  ;;  %v2991_v13 = vmul.f32 0.25, %v16848_v45  ;;  %vm2785_vm9 = vcmp.gt.f32.partialorder %v2652_v36, 0.0  ;;  %v13314_v16 = vld [vmem:[%s15077_s12 + $0x224] ss:$16 sps:$4 sm:$0xff]  }
 0x3d1   : > { %v2929_v33 = vmul.f32 0.25, %v2652_v36  ;;  %v2654_v31 = vadd.f32 %v16865_v51, %v16872_v30  ;;  %vm2847_vm10 = vcmp.gt.f32.partialorder %v16848_v45, 0.0  ;;  %v12617_v0 = vcombine.high %v17381_v49, %v17388_v35 }
 0x3d2   : > { %v4128_v61 = vpack.c.bf16 %v17385_v4, %v4098_v2  ;;  %v11891_v60 = vcombine.low %v17381_v49, %v17388_v35  ;;  %v3072_v24 = vsel %vm2784_vm8, %v2650_v3, %v2928_v10  ;;  %v2656_v51 = vadd.f32 %v16906_v52, %v16874_v19  ;;  %v19724_v2 = vld [vmem:[#allocation67_spill] sm:$0xff] }
 0x3d3   : > { %v3073_v50 = vsel %vm2785_vm9, %v2652_v36, %v2929_v33  ;;  %v2934_v43 = vmul.f32 0.25, %v2654_v31  ;;  %v17412_v32 = vsel %vm2842_vm3, %v16799_v20, %v16823_v11  ;;  %v17418_v17 = vsel %vm2841_vm5, %v16805_v37, %v16830_v59  ;;  %8220 = vmatprep.mubr.bf16.mxu1 %v12617_v0  ;;  %8804 = vmatprep.mubr.bf16.mxu0 %v12617_v0  ;;  %v19725_v37 = vld [vmem:[#allocation66_spill] sm:$0xff]  ;;  %v19730_v33 = vld [vmem:[#allocation77_spill] sm:$0xff] }
 0x3d4   : > { %v3177_v63 = vmax.f32 %v19724_v2, %v3072_v24  ;;  %vm2790_vm15 = vcmp.gt.f32.partialorder %v2654_v31, 0.0  ;;  %v17425_v52 = vsel %vm2848_vm7, %v16844_v15, %v16869_v58  ;;  %v17430_v20 = vsel %vm2847_vm10, %v16848_v45, %v2991_v13  ;;  %8221 = vmatmul.mubr.bf16.vlgmr.msra.gmra.mrb[48].mxu1 %v11891_v60  ;;  %8805 = vmatmul.mubr.bf16.vlgmr.msra.gmra.mrb[96].mxu0 %v11891_v60  ;;  %v13312_v45 = vld [vmem:[%s15077_s12 + $0x220] ss:$16 sps:$4 sm:$0xff]   ;;  %v13323_v13 = vld [vmem:[%s15077_s12 + $0x24c] ss:$16 sps:$4 sm:$0xff]  }
 0x3d5   : > { %v17433_v11 = vmax.f32 %v19725_v37, %v3073_v50  ;;  %v17437_v59 = vrot.slane %v17244_v57, %v17061_v26  ;;  %8262 = vmatpush1.bf16.msra.mxu1 %v13306_v25  ;;  %8846 = vmatpush1.bf16.msra.mxu0 %v13309_v42  ;;  %v3078_v29 = vsel %vm2790_vm15, %v2654_v31, %v2934_v43  ;;  %v2935_v3 = vmul.f32 0.25, %v2656_v51  ;;  %v13320_v57 = vld [vmem:[%s15077_s12 + $0x244] ss:$16 sps:$4 sm:$0xff]   ;;  %v13318_v24 = vld [vmem:[%s15077_s12 + $0x240] ss:$16 sps:$4 sm:$0xff]  }
 0x3d6   : > { %v3667_v47 = vsel %vm3212_vm11, %v3177_v63, 0.0  ;;  %v3668_v15 = vrot.slane %v3177_v63, 1  ;;  %v3670_v58 = vrot.slane %v3177_v63, 2  ;;  %v2660_v22 = vadd.f32 %v16910_v8, %v16872_v30  ;;  %8263 = vmatprep.subr.bf16.mxu1 %v13314_v16  ;;  %8847 = vmatprep.subr.bf16.mxu0 %v13317_v56  ;;  %v19727_v56 = vld [vmem:[#allocation70_spill] sm:$0xff] }
 0x3d7   : > { %19726 = vst [vmem:[#allocation52_spill] sm:$0xff] %v17437_v59  ;;  %v3683_v41 = vrot.slane %v17433_v11, 1  ;;  %v3672_v21 = vrot.slane %v3177_v63, 3  ;;  %v3682_v10 = vsel %vm3212_vm11, %v17433_v11, 0.0  ;;  %vm2791_vm1 = vcmp.gt.f32.partialorder %v2656_v51, 0.0 }
 0x3d8   : > { %v3669_v27 = vsel %vm3215_vm12, %v3668_v15, %v3667_v47  ;;  %v3706_v36 = vsel %vm3212_vm11, %v3668_v15, 0.0  ;;  %v17456_v0 = vrot.slane %v4128_v61, %v17061_v26  ;;  %v3709_v25 = vrot.slane %v3177_v63, 4  ;;  %v13321_v61 = vld [vmem:[%s15077_s12 + $0x248] ss:$16 sps:$4 sm:$0xff]   ;;  %v13326_v15 = vld [vmem:[%s15077_s12 + $0x264] ss:$16 sps:$4 sm:$0xff]  }
 0x3d9   : > { %v3671_v8 = vsel %vm3218_vm13, %v3670_v58, %v3669_v27  ;;  %v3707_v31 = vsel %vm3215_vm12, %v3670_v58, %v3706_v36  ;;  %v3685_v42 = vrot.slane %v17433_v11, 2  ;;  %8264 = vmatpush1.bf16.msra.mxu1 %v13312_v45  ;;  %v3684_v43 = vsel %vm3215_vm12, %v3683_v41, %v3682_v10  ;;  %8848 = vmatpush1.bf16.msra.mxu0 %v13315_v53  ;;  %v13329_v58 = vld [vmem:[%s15077_s12 + $0x26c] ss:$16 sps:$4 sm:$0xff]   ;;  %v13324_v10 = vld [vmem:[%s15077_s12 + $0x260] ss:$16 sps:$4 sm:$0xff]  }
 0x3da   : > { %v3708_v60 = vsel %vm3218_vm13, %v3672_v21, %v3707_v31  ;;  %v3673_v50 = vsel %vm3221_vm14, %v3672_v21, %v3671_v8  ;;  %v17465_v2 = vmax.f32 %v19727_v56, %v3078_v29  ;;  %v3079_v63 = vsel %vm2791_vm1, %v2656_v51, %v2935_v3  ;;  %8265 = vmatprep.subr.bf16.mxu1 %v13320_v57  ;;  %v19728_v51 = vld [vmem:[#allocation68_spill] sm:$0xff] }
 0x3db   : > { %v3710_v37 = vsel %vm3221_vm14, %v3709_v25, %v3708_v60  ;;  %vm2796_vm3 = vcmp.gt.f32.partialorder %v2660_v22, 0.0  ;;  %v2940_v47 = vmul.f32 0.25, %v2660_v22  ;;  %8849 = vmatprep.subr.bf16.mxu0 %v13323_v13  ;;  %v3715_v45 = vsel %vm3212_vm11, %v3683_v41, 0.0  ;;  %v13327_v60 = vld [vmem:[%s15077_s12 + $0x268] ss:$16 sps:$4 sm:$0xff]  }
 0x3dc   : > { %v3674_v27 = vrot.slane %v17465_v2, 4  ;;  %v3676_v29 = vrot.slane %v17465_v2, 5  ;;  %v19491_v53 = vrot.slane %v17465_v2, 6  ;;  %v19490_v21 = vrot.slane %v17465_v2, 7  ;;  %v13332_v25 = vld [vmem:[%s15077_s12 + $0x284] ss:$16 sps:$4 sm:$0xff]  }
 0x3dd   : > { %v17477_v3 = vmax.f32 %v19728_v51, %v3079_v63  ;;  %v3084_v36 = vsel %vm2796_vm3, %v2660_v22, %v2940_v47  ;;  %v2662_v57 = vadd.f32 %v16928_v39, %v16874_v19  ;;  %8266 = vmatpush1.bf16.msra.mxu1 %v13318_v24  ;;  %v2664_v31 = vadd.f32 %v16950_v62, %v16872_v30  ;;  %v13330_v63 = vld [vmem:[%s15077_s12 + $0x280] ss:$16 sps:$4 sm:$0xff]   ;;  %v13350_v16 = vld [vmem:[%s15077_s12 + $0x2e4] ss:$16 sps:$4 sm:$0xff]  }
 0x3de   : > { %v3675_v41 = vsel %vm3224_vm0, %v3674_v27, %v3673_v50  ;;  %v3711_v13 = vsel %vm3224_vm0, %v3676_v29, %v3710_v37  ;;  %v3183_v8 = vmax.f32 %v16559_v7, %v3084_v36  ;;  %8850 = vmatpush1.bf16.msra.mxu0 %v13321_v61  ;;  %v2666_v7 = vadd.f32 %v16970_v48, %v16874_v19  ;;  %v13335_v50 = vld [vmem:[%s15077_s12 + $0x28c] ss:$16 sps:$4 sm:$0xff]   ;;  %v13338_v27 = vld [vmem:[%s15077_s12 + $0x2a4] ss:$16 sps:$4 sm:$0xff]  }
 0x3df   : > { %v17491_v39 = vsel %vm3227_vm2, %v3676_v29, %v3675_v41  ;;  %v3712_v24 = vsel %vm3227_vm2, %v19491_v53, %v3711_v13  ;;  %8267 = vmatprep.subr.bf16.mxu1 %v13326_v15  ;;  %8851 = vmatprep.subr.bf16.mxu0 %v13329_v58  ;;  %v17500_v62 = vsel %vm3218_vm13, %v3685_v42, %v3684_v43  ;;  %v13333_v58 = vld [vmem:[%s15077_s12 + $0x288] ss:$16 sps:$4 sm:$0xff]   ;;  %vm2797_vm5 = vcmp.gt.f32.partialorder %v2662_v57, 0.0  ;;  %v13341_v41 = vld [vmem:[%s15077_s12 + $0x2ac] ss:$16 sps:$4 sm:$0xff]  }
 0x3e0   : > { %v17503_v56 = vsel %vm3215_vm12, %v3685_v42, %v3715_v45  ;;  %v3713_v61 = vsel %vm3230_vm4, %v19490_v21, %v3712_v24  ;;  %v3739_v37 = vsel %vm3212_vm11, %v3183_v8, 0.0  ;;  %v3740_v47 = vrot.slane %v3183_v8, 1  ;;  %v13345_v53 = vld [vmem:[%s15077_s12 + $0x2c8] ss:$16 sps:$4 sm:$0xff]  }
 0x3e1   : > { %v17512_v48 = vsel %vm3233_vm6, %v17465_v2, %v3713_v61  ;;  %v3742_v15 = vrot.slane %v3183_v8, 2  ;;  %v3744_v43 = vrot.slane %v3183_v8, 3  ;;  %8268 = vmatpush1.bf16.msra.mxu1 %v13324_v10  ;;  %v3781_v42 = vrot.slane %v3183_v8, 4  ;;  %v19729_v61 = vld [vmem:[#allocation73_spill] sm:$0xff] }
 0x3e2   : > { %v2941_v45 = vmul.f32 0.25, %v2662_v57  ;;  %vm2802_vm7 = vcmp.gt.f32.partialorder %v2664_v31, 0.0  ;;  %8852 = vmatpush1.bf16.msra.mxu0 %v13327_v60  ;;  %8269 = vmatprep.subr.bf16.mxu1 %v13332_v25  ;;  %v3741_v29 = vsel %vm3215_vm12, %v3740_v47, %v3739_v37  ;;  %v3778_v51 = vsel %vm3212_vm11, %v3740_v47, 0.0  ;;  %v13336_v47 = vld [vmem:[%s15077_s12 + $0x2a0] ss:$16 sps:$4 sm:$0xff]  }
 0x3e3   : > { %v2946_v36 = vmul.f32 0.25, %v2664_v31  ;;  %vm2803_vm8 = vcmp.gt.f32.partialorder %v2666_v7, 0.0  ;;  %8853 = vmatprep.subr.bf16.mxu0 %v13335_v50  ;;  %v3743_v10 = vsel %vm3218_vm13, %v3742_v15, %v3741_v29  ;;  %v3779_v13 = vsel %vm3215_vm12, %v3742_v15, %v3778_v51 }
 0x3e4   : > { %v3085_v8 = vsel %vm2797_vm5, %v2662_v57, %v2941_v45  ;;  %v2947_v24 = vmul.f32 0.25, %v2666_v7  ;;  %v3745_v60 = vsel %vm3221_vm14, %v3744_v43, %v3743_v10  ;;  %v3780_v25 = vsel %vm3218_vm13, %v3744_v43, %v3779_v13  ;;  %v19731_v57 = vld [vmem:[#allocation36_spill] sm:$0xff]  ;;  %v13347_v13 = vld [vmem:[%s15077_s12 + $0x2cc] ss:$16 sps:$4 sm:$0xff]  }
 0x3e5   : > { %v3184_v22 = vmax.f32 %v19729_v61, %v3085_v8  ;;  %v3090_v37 = vsel %vm2802_vm7, %v2664_v31, %v2946_v36  ;;  %8270 = vmatpush1.bf16.msra.mxu1 %v13330_v63  ;;  %v3782_v50 = vsel %vm3221_vm14, %v3781_v42, %v3780_v25  ;;  %v17530_v15 = vadd.f32 %v19731_v57, %v16872_v30  ;;  %v13339_v45 = vld [vmem:[%s15077_s12 + $0x2a8] ss:$16 sps:$4 sm:$0xff]   ;;  %v13344_v63 = vld [vmem:[%s15077_s12 + $0x2c4] ss:$16 sps:$4 sm:$0xff]  }
 0x3e6   : > { %v3186_v21 = vmax.f32 %v19730_v33, %v3090_v37  ;;  %v3091_v29 = vsel %vm2803_vm8, %v2666_v7, %v2947_v24  ;;  %8854 = vmatpush1.bf16.msra.mxu0 %v13333_v58  ;;  %8271 = vmatprep.subr.bf16.mxu1 %v13338_v27  ;;  %v19732_v25 = vld [vmem:[#allocation74_spill] sm:$0xff] }
 0x3e7   : > { %v3754_v43 = vsel %vm3212_vm11, %v3184_v22, 0.0  ;;  %v3755_v51 = vrot.slane %v3184_v22, 1  ;;  %v3757_v10 = vrot.slane %v3184_v22, 2  ;;  %v3759_v31 = vrot.slane %v3184_v22, 3  ;;  %8855 = vmatprep.subr.bf16.mxu0 %v13341_v41  ;;  %v13342_v37 = vld [vmem:[%s15077_s12 + $0x2c0] ss:$16 sps:$4 sm:$0xff]  }
 0x3e8   : > { %v3790_v42 = vrot.slane %v3184_v22, 4  ;;  %v3746_v33 = vrot.slane %v3186_v21, 4  ;;  %v3748_v7 = vrot.slane %v3186_v21, 5  ;;  %v3750_v36 = vrot.slane %v3186_v21, 6 }
 0x3e9   : > { %v3756_v8 = vsel %vm3215_vm12, %v3755_v51, %v3754_v43  ;;  %v3787_v58 = vsel %vm3212_vm11, %v3755_v51, 0.0  ;;  %v3752_v24 = vrot.slane %v3186_v21, 7  ;;  %v3187_v61 = vmax.f32 %v19732_v25, %v3091_v29  ;;  %8272 = vmatpush1.bf16.msra.mxu1 %v13336_v47 }
 0x3ea   : > { %v3758_v27 = vsel %vm3218_vm13, %v3757_v10, %v3756_v8  ;;  %v3788_v22 = vsel %vm3215_vm12, %v3757_v10, %v3787_v58  ;;  %v3747_v41 = vsel %vm3224_vm0, %v3746_v33, %v3745_v60  ;;  %v3783_v57 = vsel %vm3224_vm0, %v3748_v7, %v3782_v50  ;;  %8856 = vmatpush1.bf16.msra.mxu0 %v13339_v45  ;;  %v13353_v8 = vld [vmem:[%s15077_s12 + $0x2ec] ss:$16 sps:$4 sm:$0xff]  }
 0x3eb   : > { %v3760_v43 = vsel %vm3221_vm14, %v3759_v31, %v3758_v27  ;;  %v3789_v51 = vsel %vm3218_vm13, %v3759_v31, %v3788_v22  ;;  %v3749_v29 = vsel %vm3227_vm2, %v3748_v7, %v3747_v41  ;;  %v3784_v47 = vsel %vm3227_vm2, %v3750_v36, %v3783_v57  ;;  %8273 = vmatprep.subr.bf16.mxu1 %v13344_v63  ;;  %v13348_v63 = vld [vmem:[%s15077_s12 + $0x2e0] ss:$16 sps:$4 sm:$0xff]   ;;  %v13356_v22 = vld [vmem:[%s15077_s12 + $0x304] ss:$16 sps:$4 sm:$0xff]   ;;  %v13359_v57 = vld [vmem:[%s15077_s12 + $0x30c] ss:$16 sps:$4 sm:$0xff]  }
 0x3ec   : > { %v3791_v10 = vsel %vm3221_vm14, %v3790_v42, %v3789_v51  ;;  %v3751_v60 = vsel %vm3230_vm4, %v3750_v36, %v3749_v29  ;;  %v3785_v50 = vsel %vm3230_vm4, %v3752_v24, %v3784_v47  ;;  %v3761_v45 = vrot.slane %v3187_v61, 4  ;;  %8857 = vmatprep.subr.bf16.mxu0 %v13347_v13  ;;  %v13351_v36 = vld [vmem:[%s15077_s12 + $0x2e8] ss:$16 sps:$4 sm:$0xff]  }
 0x3ed   : > { %v3753_v33 = vsel %vm3233_vm6, %v3752_v24, %v3751_v60  ;;  %v3786_v31 = vsel %vm3233_vm6, %v3186_v21, %v3785_v50  ;;  %v3763_v58 = vrot.slane %v3187_v61, 5  ;;  %v3765_v7 = vrot.slane %v3187_v61, 6  ;;  %8274 = vmatpush1.bf16.msra.mxu1 %v13342_v37  ;;  %v19733_v37 = vld [vmem:[#allocation35_spill] sm:$0xff]  ;;  %v19735_v51 = vld [vmem:[#allocation76_spill] sm:$0xff] }
 0x3ee   : > { %v4106_v25 = vmax.f32 %v3753_v33, %v3786_v31  ;;  %v3762_v42 = vsel %vm3224_vm0, %v3761_v45, %v3760_v43  ;;  %v3767_v27 = vrot.slane %v3187_v61, 7  ;;  %vm2808_vm9 = vcmp.gt.f32.partialorder %v17530_v15, 0.0  ;;  %8858 = vmatpush1.bf16.msra.mxu0 %v13345_v53  ;;  %8275 = vmatprep.subr.bf16.mxu1 %v13350_v16  ;;  %v19734_v43 = vld [vmem:[#allocation75_spill] sm:$0xff] }
 0x3ef   : > { %v3764_v13 = vsel %vm3227_vm2, %v3763_v58, %v3762_v42  ;;  %v3792_v21 = vsel %vm3224_vm0, %v3763_v58, %v3791_v10  ;;  %v2952_v24 = vmul.f32 0.25, %v17530_v15  ;;  %v2672_v41 = vadd.f32 %v19733_v37, %v16874_v19  ;;  %8859 = vmatprep.subr.bf16.mxu0 %v13353_v8  ;;  %v19737_v10 = vld [vmem:[#allocation40_spill] sm:$0xff]  ;;  %v19738_v58 = vld [vmem:[#allocation79_spill] sm:$0xff] }
 0x3f0   : > { %v19736_v29 = vmax.f32 %v19734_v43, %v19735_v51  ;;  %v3766_v16 = vsel %vm3230_vm4, %v3765_v7, %v3764_v13  ;;  %v3793_v53 = vsel %vm3227_vm2, %v3765_v7, %v3792_v21  ;;  %v2674_v60 = vadd.f32 %v19737_v10, %v16872_v30  ;;  %v13354_v33 = vld [vmem:[%s15077_s12 + $0x300] ss:$16 sps:$4 sm:$0xff]   ;;  %v13357_v42 = vld [vmem:[%s15077_s12 + $0x308] ss:$16 sps:$4 sm:$0xff]   ;;  %v13362_v13 = vld [vmem:[%s15077_s12 + $0x324] ss:$16 sps:$4 sm:$0xff]  }
 0x3f1   : > { %v3768_v50 = vsel %vm3233_vm6, %v3767_v27, %v3766_v16  ;;  %v3794_v45 = vsel %vm3230_vm4, %v3767_v27, %v3793_v53  ;;  %v3096_v8 = vsel %vm2808_vm9, %v17530_v15, %v2952_v24  ;;  %vm2809_vm10 = vcmp.gt.f32.partialorder %v2672_v41, 0.0  ;;  %8276 = vmatpush1.bf16.msra.mxu1 %v13348_v63  ;;  %v13365_v37 = vld [vmem:[%s15077_s12 + $0x32c] ss:$16 sps:$4 sm:$0xff]  }
 0x3f2   : > { %v17570_v47 = vpack.c.bf16 %v4106_v25, %v19736_v29  ;;  %v3795_v31 = vsel %vm3233_vm6, %v3187_v61, %v3794_v45  ;;  %v3189_v25 = vmax.f32 %v19738_v58, %v3096_v8  ;;  %v2953_v7 = vmul.f32 0.25, %v2672_v41  ;;  %8860 = vmatpush1.bf16.msra.mxu0 %v13351_v36  ;;  %8277 = vmatprep.subr.bf16.mxu1 %v13356_v22  ;;  %v19740_v61 = vld [vmem:[#allocation39_spill] sm:$0xff]  ;;  %v19741_v45 = vld [vmem:[#allocation78_spill] sm:$0xff] }
 0x3f3   : > { %vm2814_vm15 = vcmp.gt.f32.partialorder %v2674_v60, 0.0  ;;  %v19739_v27 = vrot.slane %v17433_v11, 3  ;;  %v17592_v21 = vmax.f32 %v3768_v50, %v3795_v31  ;;  %v2958_v63 = vmul.f32 0.25, %v2674_v60  ;;  %8861 = vmatprep.subr.bf16.mxu0 %v13359_v57  ;;  %v13360_v57 = vld [vmem:[%s15077_s12 + $0x320] ss:$16 sps:$4 sm:$0xff]  }
 0x3f4   : > { %v17596_v24 = vadd.f32 %v19740_v61, %v16874_v19  ;;  %v3811_v36 = vsel %vm3212_vm11, %v3189_v25, 0.0  ;;  %v3812_v22 = vrot.slane %v3189_v25, 1  ;;  %v3814_v43 = vrot.slane %v3189_v25, 2  ;;  %v13363_v58 = vld [vmem:[%s15077_s12 + $0x328] ss:$16 sps:$4 sm:$0xff]  }
 0x3f5   : > { %v17590_v15 = vsel %vm3218_vm13, %v19739_v27, %v17503_v56  ;;  %v17602_v51 = vadd.f32 %v17083_v12, %v16872_v30  ;;  %v11860_v56 = vpack.c.bf16 %v17592_v21, %v17592_v21  ;;  %v3816_v29 = vrot.slane %v3189_v25, 3  ;;  %8278 = vmatpush1.bf16.msra.mxu1 %v13354_v33  ;;  %v19742_v12 = vld [vmem:[#allocation83_spill] sm:$0xff]  ;;  %v13368_v27 = vld [vmem:[%s15077_s12 + $0x344] ss:$16 sps:$4 sm:$0xff]  }
 0x3f6   : > { %v3097_v16 = vsel %vm2809_vm10, %v2672_v41, %v2953_v7  ;;  %v3102_v53 = vsel %vm2814_vm15, %v2674_v60, %v2958_v63  ;;  %v3813_v10 = vsel %vm3215_vm12, %v3812_v22, %v3811_v36  ;;  %v3850_v50 = vsel %vm3212_vm11, %v3812_v22, 0.0  ;;  %8862 = vmatpush1.bf16.msra.mxu0 %v13357_v42  ;;  %8279 = vmatprep.subr.bf16.mxu1 %v13362_v13  ;;  %v13371_v63 = vld [vmem:[%s15077_s12 + $0x34c] ss:$16 sps:$4 sm:$0xff]  }
 0x3f7   : > { %v17612_v8 = vmax.f32 %v19741_v45, %v3097_v16  ;;  %v3192_v31 = vmax.f32 %v19742_v12, %v3102_v53  ;;  %v17618_v41 = vrot.slane %v11860_v56, %v17061_v26  ;;  %v3815_v60 = vsel %vm3218_vm13, %v3814_v43, %v3813_v10  ;;  %8863 = vmatprep.subr.bf16.mxu0 %v13365_v37  ;;  %v13366_v37 = vld [vmem:[%s15077_s12 + $0x340] ss:$16 sps:$4 sm:$0xff]   ;;  %v13374_v45 = vld [vmem:[%s15077_s12 + $0x364] ss:$16 sps:$4 sm:$0xff]  }
 0x3f8   : > { %v3851_v33 = vsel %vm3215_vm12, %v3814_v43, %v3850_v50  ;;  %v3853_v7 = vrot.slane %v3189_v25, 4  ;;  %vm2815_vm1 = vcmp.gt.f32.partialorder %v17596_v24, 0.0  ;;  %v3817_v36 = vsel %vm3221_vm14, %v3816_v29, %v3815_v60  ;;  %v13369_v43 = vld [vmem:[%s15077_s12 + $0x348] ss:$16 sps:$4 sm:$0xff]  }
 0x3f9   : > { %v3852_v61 = vsel %vm3218_vm13, %v3816_v29, %v3851_v33  ;;  %v3826_v42 = vsel %vm3212_vm11, %v17612_v8, 0.0  ;;  %v3827_v13 = vrot.slane %v17612_v8, 1  ;;  %v3829_v56 = vrot.slane %v17612_v8, 2  ;;  %8280 = vmatpush1.bf16.msra.mxu1 %v13360_v57  ;;  %v13377_v57 = vld [vmem:[%s15077_s12 + $0x36c] ss:$16 sps:$4 sm:$0xff]  }
 0x3fa   : > { %v3854_v22 = vsel %vm3221_vm14, %v3853_v7, %v3852_v61  ;;  %v3831_v25 = vrot.slane %v17612_v8, 3  ;;  %v3818_v10 = vrot.slane %v3192_v31, 4  ;;  %v3820_v50 = vrot.slane %v3192_v31, 5  ;;  %8864 = vmatpush1.bf16.msra.mxu0 %v13363_v58  ;;  %8281 = vmatprep.subr.bf16.mxu1 %v13368_v27 }
 0x3fb   : > { %v3828_v16 = vsel %vm3215_vm12, %v3827_v13, %v3826_v42  ;;  %v3859_v53 = vsel %vm3212_vm11, %v3827_v13, 0.0  ;;  %v3862_v60 = vrot.slane %v17612_v8, 4  ;;  %v3822_v33 = vrot.slane %v3192_v31, 6  ;;  %8865 = vmatprep.subr.bf16.mxu0 %v13371_v63  ;;  %v13372_v63 = vld [vmem:[%s15077_s12 + $0x360] ss:$16 sps:$4 sm:$0xff]  }
 0x3fc   : > { %v3830_v29 = vsel %vm3218_vm13, %v3829_v56, %v3828_v16  ;;  %v3860_v12 = vsel %vm3215_vm12, %v3829_v56, %v3859_v53  ;;  %v3819_v61 = vsel %vm3224_vm0, %v3818_v10, %v3817_v36  ;;  %v3824_v42 = vrot.slane %v3192_v31, 7 }
 0x3fd   : > { %v3832_v7 = vsel %vm3221_vm14, %v3831_v25, %v3830_v29  ;;  %v3855_v58 = vsel %vm3224_vm0, %v3820_v50, %v3854_v22  ;;  %v3861_v27 = vsel %vm3218_vm13, %v3831_v25, %v3860_v12  ;;  %v3821_v13 = vsel %vm3227_vm2, %v3820_v50, %v3819_v61  ;;  %8282 = vmatpush1.bf16.msra.mxu1 %v13366_v37  ;;  %v13375_v22 = vld [vmem:[%s15077_s12 + $0x368] ss:$16 sps:$4 sm:$0xff]   ;;  %v13380_v25 = vld [vmem:[%s15077_s12 + $0x384] ss:$16 sps:$4 sm:$0xff]   ;;  %v13383_v12 = vld [vmem:[%s15077_s12 + $0x38c] ss:$16 sps:$4 sm:$0xff]  }
 0x3fe   : > { %v3856_v56 = vsel %vm3227_vm2, %v3822_v33, %v3855_v58  ;;  %v2959_v8 = vmul.f32 0.25, %v17596_v24  ;;  %v3823_v16 = vsel %vm3230_vm4, %v3822_v33, %v3821_v13  ;;  %vm2820_vm3 = vcmp.gt.f32.partialorder %v17602_v51, 0.0  ;;  %8866 = vmatpush1.bf16.msra.mxu0 %v13369_v43  ;;  %8283 = vmatprep.subr.bf16.mxu1 %v13374_v45  ;;  %v19743_v61 = vld [vmem:[#allocation80_spill] sm:$0xff]  ;;  %v19744_v58 = vld [vmem:[#allocation50_spill] sm:$0xff]  ;;  %v19745_v13 = vld [vmem:[#allocation49_spill] sm:$0xff] }
 0x3ff   : > { %v3857_v53 = vsel %vm3230_vm4, %v3824_v42, %v3856_v56  ;;  %v2964_v36 = vmul.f32 0.25, %v17602_v51  ;;  %v3825_v10 = vsel %vm3233_vm6, %v3824_v42, %v3823_v16  ;;  %v2682_v29 = vadd.f32 %v17088_v18, %v16874_v19  ;;  %8867 = vmatprep.subr.bf16.mxu0 %v13377_v57  ;;  %v19747_v16 = vld [vmem:[#allocation85_spill] sm:$0xff] }
 0x400   : > { %v3858_v50 = vsel %vm3233_vm6, %v3192_v31, %v3857_v53  ;;  %v3103_v37 = vsel %vm2815_vm1, %v17596_v24, %v2959_v8  ;;  %v19746_v42 = vrot.slane %v19745_v13, 6  ;;  %v3863_v56 = vsel %vm3221_vm14, %v3862_v60, %v3861_v27  ;;  %v13378_v8 = vld [vmem:[%s15077_s12 + $0x380] ss:$16 sps:$4 sm:$0xff]   ;;  %v13381_v27 = vld [vmem:[%s15077_s12 + $0x388] ss:$16 sps:$4 sm:$0xff]  }
 0x401   : > { %v4109_v33 = vmax.f32 %v3825_v10, %v3858_v50  ;;  %v3193_v43 = vmax.f32 %v19743_v61, %v3103_v37  ;;  %v3108_v45 = vsel %vm2820_vm3, %v17602_v51, %v2964_v36  ;;  %vm2821_vm5 = vcmp.gt.f32.partialorder %v2682_v29, 0.0  ;;  %8284 = vmatpush1.bf16.msra.mxu1 %v13372_v63  ;;  %v19749_v53 = vld [vmem:[#allocation81_spill] sm:$0xff]  ;;  %v19750_v51 = vld [vmem:[#allocation82_spill] sm:$0xff] }
 0x402   : > { %v3448_v31 = vsel %vm3230_vm4, %v19746_v42, %v19744_v58  ;;  %v3195_v24 = vmax.f32 %v19747_v16, %v3108_v45  ;;  %v19748_v18 = vrot.slane %v19745_v13, 7  ;;  %v19751_v36 = vmax.f32 %v19749_v53, %v19750_v51  ;;  %8868 = vmatpush1.bf16.msra.mxu0 %v13375_v22  ;;  %8285 = vmatprep.subr.bf16.mxu1 %v13380_v25  ;;  %v13386_v63 = vld [vmem:[%s15077_s12 + $0x3a4] ss:$16 sps:$4 sm:$0xff]  }
 0x403   : > { %v3833_v50 = vrot.slane %v3193_v43, 4  ;;  %v3835_v37 = vrot.slane %v3193_v43, 5  ;;  %v2965_v60 = vmul.f32 0.25, %v2682_v29  ;;  %v3837_v61 = vrot.slane %v3193_v43, 6  ;;  %8869 = vmatprep.subr.bf16.mxu0 %v13383_v12  ;;  %v13384_v12 = vld [vmem:[%s15077_s12 + $0x3a0] ss:$16 sps:$4 sm:$0xff]  }
 0x404   : > { %v17674_v57 = vsel %vm3233_vm6, %v19748_v18, %v3448_v31  ;;  %v17680_v10 = vpack.c.bf16 %v4109_v33, %v19751_v36  ;;  %v3883_v45 = vsel %vm3212_vm11, %v3195_v24, 0.0  ;;  %v3884_v58 = vrot.slane %v3195_v24, 1  ;;  %v13389_v18 = vld [vmem:[%s15077_s12 + $0x3ac] ss:$16 sps:$4 sm:$0xff]  }
 0x405   : > { %v3886_v13 = vrot.slane %v3195_v24, 2  ;;  %v3834_v42 = vsel %vm3224_vm0, %v3833_v50, %v3832_v7  ;;  %v3839_v33 = vrot.slane %v3193_v43, 7  ;;  %v3864_v31 = vsel %vm3224_vm0, %v3835_v37, %v3863_v56  ;;  %8286 = vmatpush1.bf16.msra.mxu1 %v13378_v8 }
 0x406   : > { %v3888_v16 = vrot.slane %v3195_v24, 3  ;;  %v3836_v22 = vsel %vm3227_vm2, %v3835_v37, %v3834_v42  ;;  %v3865_v25 = vsel %vm3227_vm2, %v3837_v61, %v3864_v31  ;;  %v3885_v53 = vsel %vm3215_vm12, %v3884_v58, %v3883_v45  ;;  %8870 = vmatpush1.bf16.msra.mxu0 %v13381_v27  ;;  %v13387_v37 = vld [vmem:[%s15077_s12 + $0x3a8] ss:$16 sps:$4 sm:$0xff]   ;;  %8287 = vmatprep.subr.bf16.mxu1 %v13386_v63  ;;  %v13395_v31 = vld [vmem:[%s15077_s12 + $0x3cc] ss:$16 sps:$4 sm:$0xff]  }
 0x407   : > { %v3922_v51 = vsel %vm3212_vm11, %v3884_v58, 0.0  ;;  %v3838_v7 = vsel %vm3230_vm4, %v3837_v61, %v3836_v22  ;;  %v3866_v36 = vsel %vm3230_vm4, %v3839_v33, %v3865_v25  ;;  %v3887_v56 = vsel %vm3218_vm13, %v3886_v13, %v3885_v53  ;;  %v13392_v61 = vld [vmem:[%s15077_s12 + $0x3c4] ss:$16 sps:$4 sm:$0xff]   ;;  %8871 = vmatprep.subr.bf16.mxu0 %v13389_v18 }
 0x408   : > { %v3923_v50 = vsel %vm3215_vm12, %v3886_v13, %v3922_v51  ;;  %v17699_v42 = vsel %vm3233_vm6, %v3839_v33, %v3838_v7  ;;  %v17702_v45 = vsel %vm3233_vm6, %v3193_v43, %v3866_v36  ;;  %v3925_v58 = vrot.slane %v3195_v24, 4  ;;  %v19753_v63 = vld [vmem:[#allocation84_spill] sm:$0xff]  ;;  %v19757_v18 = vld [vmem:[#allocation42_spill] sm:$0xff] }
 0x409   : > { %v3924_v8 = vsel %vm3218_vm13, %v3888_v16, %v3923_v50  ;;  %v4110_v22 = vmax.f32 %v17699_v42, %v17702_v45  ;;  %v17710_v27 = vsel %vm3221_vm14, %v3888_v16, %v3887_v56  ;;  %v3109_v13 = vsel %vm2821_vm5, %v2682_v29, %v2965_v60  ;;  %v19755_v16 = vld [vmem:[#allocation51_spill] sm:$0xff]  ;;  %8288 = vmatpush1.bf16.msra.mxu1 %v13384_v12  ;;  %v13398_v50 = vld [vmem:[%s15077_s12 + $0x3e4] ss:$16 sps:$4 sm:$0xff]  }
 0x40a   : > { %v19752_v43 = vrot.slane %v17166_v23, 6  ;;  %v17718_v24 = vsel %vm3221_vm14, %v3925_v58, %v3924_v8  ;;  %v3196_v25 = vmax.f32 %v19753_v63, %v3109_v13  ;;  %v19754_v53 = vrot.slane %v17166_v23, 7  ;;  %v13390_v29 = vld [vmem:[%s15077_s12 + $0x3c0] ss:$16 sps:$4 sm:$0xff]   ;;  %8872 = vmatpush1.bf16.msra.mxu0 %v13387_v37  ;;  %v13393_v56 = vld [vmem:[%s15077_s12 + $0x3c8] ss:$16 sps:$4 sm:$0xff]   ;;  %8289 = vmatprep.subr.bf16.mxu1 %v13392_v61 }
 0x40b   : > { %v4093_v7 = vmax.f32 %v17674_v57, %v19755_v16  ;;  %v2684_v36 = vadd.f32 %v19757_v18, %v16872_v30  ;;  %v2686_v23 = vadd.f32 %v17129_v38, %v16874_v19  ;;  %8873 = vmatprep.subr.bf16.mxu0 %v13395_v31  ;;  %v13404_v16 = vld [vmem:[%s15077_s12 + $0x404] ss:$16 sps:$4 sm:$0xff]  }
 0x40c   : > { %v3463_v33 = vsel %vm3230_vm4, %v19752_v43, %v17193_v28  ;;  %v17730_v28 = vrot.slane %v17286_v55, %v17061_v26  ;;  %v3898_v57 = vsel %vm3212_vm11, %v3196_v25, 0.0  ;;  %v3899_v12 = vrot.slane %v3196_v25, 1  ;;  %v13401_v55 = vld [vmem:[%s15077_s12 + $0x3ec] ss:$16 sps:$4 sm:$0xff]  }
 0x40d   : > { %v3465_v51 = vsel %vm3233_vm6, %v19754_v53, %v3463_v33  ;;  %v3901_v8 = vrot.slane %v3196_v25, 2  ;;  %v3903_v58 = vrot.slane %v3196_v25, 3  ;;  %vm2826_vm7 = vcmp.gt.f32.partialorder %v2684_v36, 0.0  ;;  %8290 = vmatpush1.bf16.msra.mxu1 %v13390_v29  ;;  %v13407_v29 = vld [vmem:[%s15077_s12 + $0x40c] ss:$16 sps:$4 sm:$0xff]  }
 0x40e   : > { %v4094_v60 = vmax.f32 %v3465_v51, %v17205_v44  ;;  %19756 = vst [vmem:[#allocation55_spill] sm:$0xff] %v17730_v28  ;;  %v17741_v44 = vrot.slane %v17376_v54, %v17061_v26  ;;  %v4258_v38 = vcombine.high %v17730_v28, %v17456_v0  ;;  %v3900_v37 = vsel %vm3215_vm12, %v3899_v12, %v3898_v57  ;;  %v13396_v54 = vld [vmem:[%s15077_s12 + $0x3e0] ss:$16 sps:$4 sm:$0xff]   ;;  %v13399_v51 = vld [vmem:[%s15077_s12 + $0x3e8] ss:$16 sps:$4 sm:$0xff]  }
 0x40f   : > { %v3931_v43 = vsel %vm3212_vm11, %v3899_v12, 0.0  ;;  %v2970_v33 = vmul.f32 0.25, %v2684_v36  ;;  %vm2827_vm8 = vcmp.gt.f32.partialorder %v2686_v23, 0.0  ;;  %v3902_v61 = vsel %vm3218_vm13, %v3901_v8, %v3900_v37  ;;  %8874 = vmatpush1.bf16.msra.mxu0 %v13393_v56  ;;  %8291 = vmatprep.subr.bf16.mxu1 %v13398_v50  ;;  %v19760_v56 = vld [vmem:[#allocation90_spill] sm:$0xff]  ;;  %v19761_v50 = vld [vmem:[#allocation41_spill] sm:$0xff] }
 0x410   : > { %19758 = vst [vmem:[#allocation54_spill] sm:$0xff] %v17741_v44  ;;  %v11853_v13 = vpack.c.bf16 %v4094_v60, %v4093_v7  ;;  %v3932_v31 = vsel %vm3215_vm12, %v3901_v8, %v3931_v43  ;;  %v11869_v53 = vcombine.low %v4258_v38, %v17741_v44  ;;  %v3934_v60 = vrot.slane %v3196_v25, 4  ;;  %8875 = vmatprep.subr.bf16.mxu0 %v13401_v55  ;;  %v19762_v37 = vld [vmem:[#allocation46_spill] sm:$0xff] }
 0x411   : > { %v3933_v7 = vsel %vm3218_vm13, %v3903_v58, %v3932_v31  ;;  %v3114_v18 = vsel %vm2826_vm7, %v2684_v36, %v2970_v33  ;;  %v2971_v57 = vmul.f32 0.25, %v2686_v23  ;;  %v3904_v12 = vsel %vm3221_vm14, %v3903_v58, %v3902_v61  ;;  %8292 = vmatpush1.bf16.msra.mxu1 %v13396_v54  ;;  %v19763_v31 = vld [vmem:[#allocation43_spill] sm:$0xff] }
 0x412   : > { %v17752_v63 = vrot.slane %v11853_v13, %v17061_v26  ;;  %v17766_v13 = vrot.slane %v11869_v53, %v17061_v26  ;;  %v17769_v38 = vmax.f32 %v19760_v56, %v3114_v18  ;;  %v3935_v25 = vsel %vm3221_vm14, %v3934_v60, %v3933_v7  ;;  %8334 = vmatprep.subr.bf16.mxu1 %v13404_v16  ;;  %v19764_v60 = vld [vmem:[#allocation89_spill] sm:$0xff] }
 0x413   : > { %v3115_v36 = vsel %vm2827_vm8, %v2686_v23, %v2971_v57  ;;  %v2690_v55 = vadd.f32 %v19761_v50, %v16872_v30  ;;  %v2692_v58 = vadd.f32 %v19762_v37, %v16874_v19  ;;  %v2694_v53 = vadd.f32 %v19763_v31, %v16872_v30  ;;  %8876 = vmatpush1.bf16.msra.mxu0 %v13399_v51 }
 0x414   : > { %19759 = vst [vmem:[#allocation57_spill] sm:$0xff] %v17752_v63  ;;  %v17763_v8 = vrot.slane %v17752_v63, %v17061_v26  ;;  %v3890_v33 = vrot.slane %v17769_v38, 4  ;;  %v3892_v61 = vrot.slane %v17769_v38, 5  ;;  %v19493_v23 = vrot.slane %v17769_v38, 6  ;;  %8918 = vmatprep.subr.bf16.mxu0 %v13407_v29  ;;  %v13411_v63 = vld [vmem:[%s15077_s12 + $0x428] ss:$16 sps:$4 sm:$0xff]  }
 0x415   : > { %v3199_v18 = vmax.f32 %v19764_v60, %v3115_v36  ;;  %vm2832_vm9 = vcmp.gt.f32.partialorder %v2690_v55, 0.0  ;;  %v19492_v57 = vrot.slane %v17769_v38, 7  ;;  %v2976_v16 = vmul.f32 0.25, %v2690_v55  ;;  %v19765_v60 = vld [vmem:[#allocation92_spill] sm:$0xff] }
 0x416   : > { %v12619_v43 = vcombine.high %v17763_v8, %v17766_v13  ;;  %v11906_v7 = vcombine.low %v17763_v8, %v17766_v13  ;;  %v3891_v54 = vsel %vm3224_vm0, %v3890_v33, %v17710_v27  ;;  %v3927_v51 = vsel %vm3224_vm0, %v3892_v61, %v17718_v24 }
 0x417   : > { %v17793_v56 = vsel %vm3227_vm2, %v3892_v61, %v3891_v54  ;;  %v3928_v36 = vsel %vm3227_vm2, %v19493_v23, %v3927_v51  ;;  %v3905_v29 = vrot.slane %v3199_v18, 4  ;;  %v3907_v50 = vrot.slane %v3199_v18, 5 }
 0x418   : > { %8230 = vmatprep.mubr.bf16.mxu1 %v12619_v43  ;;  %8814 = vmatprep.mubr.bf16.mxu0 %v12619_v43  ;;  %v3929_v27 = vsel %vm3230_vm4, %v19492_v57, %v3928_v36  ;;  %v3909_v37 = vrot.slane %v3199_v18, 6  ;;  %v3911_v43 = vrot.slane %v3199_v18, 7  ;;  %v3120_v24 = vsel %vm2832_vm9, %v2690_v55, %v2976_v16 }
 0x419   : > { %8231 = vmatmul.mubr.bf16.gmra.mrb[52].mxu1 %v11906_v7  ;;  %8815 = vmatmul.mubr.bf16.gmra.mrb[100].mxu0 %v11906_v7  ;;  %v17804_v33 = vsel %vm3233_vm6, %v17769_v38, %v3929_v27  ;;  %v3906_v61 = vsel %vm3224_vm0, %v3905_v29, %v3904_v12  ;;  %v3936_v31 = vsel %vm3224_vm0, %v3907_v50, %v3935_v25  ;;  %vm2833_vm10 = vcmp.gt.f32.partialorder %v2692_v58, 0.0 }
 0x41a   : > { %v3201_v7 = vmax.f32 %v19765_v60, %v3120_v24  ;;  %v3908_v54 = vsel %vm3227_vm2, %v3907_v50, %v3906_v61  ;;  %v3937_v51 = vsel %vm3227_vm2, %v3909_v37, %v3936_v31  ;;  %v2977_v36 = vmul.f32 0.25, %v2692_v58 }
 0x41b   : > { %v3910_v57 = vsel %vm3230_vm4, %v3909_v37, %v3908_v54  ;;  %v3938_v55 = vsel %vm3230_vm4, %v3911_v43, %v3937_v51  ;;  %vm2838_vm15 = vcmp.gt.f32.partialorder %v2694_v53, 0.0  ;;  %v2982_v54 = vmul.f32 0.25, %v2694_v53 }
 0x41c   : > { %v3955_v16 = vsel %vm3212_vm11, %v3201_v7, 0.0  ;;  %v3956_v27 = vrot.slane %v3201_v7, 1  ;;  %v3912_v23 = vsel %vm3233_vm6, %v3911_v43, %v3910_v57  ;;  %v3939_v12 = vsel %vm3233_vm6, %v3199_v18, %v3938_v55  ;;  %v19766_v43 = vld [vmem:[#allocation91_spill] sm:$0xff] }
 0x41d   : > { %v3958_v25 = vrot.slane %v3201_v7, 2  ;;  %v17816_v29 = vmax.f32 %v3912_v23, %v3939_v12  ;;  %v3960_v24 = vrot.slane %v3201_v7, 3  ;;  %v3121_v60 = vsel %vm2833_vm10, %v2692_v58, %v2977_v36 }
 0x41e   : > { %v3957_v50 = vsel %vm3215_vm12, %v3956_v27, %v3955_v16  ;;  %v3994_v61 = vsel %vm3212_vm11, %v3956_v27, 0.0  ;;  %v3997_v57 = vrot.slane %v3201_v7, 4  ;;  %v3202_v51 = vmax.f32 %v19766_v43, %v3121_v60  ;;  %v19767_v7 = vld [vmem:[#allocation94_spill] sm:$0xff] }
 0x41f   : > { %v3959_v37 = vsel %vm3218_vm13, %v3958_v25, %v3957_v50  ;;  %v3995_v31 = vsel %vm3215_vm12, %v3958_v25, %v3994_v61  ;;  %v17827_v18 = vpack.c.bf16 %v17816_v29, %v4110_v22  ;;  %v3126_v16 = vsel %vm2838_vm15, %v2694_v53, %v2982_v54 }
 0x420   : > { %v3996_v23 = vsel %vm3218_vm13, %v3960_v24, %v3995_v31  ;;  %v3961_v55 = vsel %vm3221_vm14, %v3960_v24, %v3959_v37  ;;  %v2696_v27 = vadd.f32 %v17218_v40, %v16874_v19  ;;  %v2700_v58 = vadd.f32 %v17250_v6, %v16872_v30 }
 0x421   : > { %v3998_v36 = vsel %vm3221_vm14, %v3997_v57, %v3996_v23  ;;  %v3970_v42 = vsel %vm3212_vm11, %v3202_v51, 0.0  ;;  %v3971_v45 = vrot.slane %v3202_v51, 1  ;;  %v3973_v22 = vrot.slane %v3202_v51, 2 }
 0x422   : > { %v3975_v12 = vrot.slane %v3202_v51, 3  ;;  %v4006_v25 = vrot.slane %v3202_v51, 4  ;;  %v3204_v50 = vmax.f32 %v19767_v7, %v3126_v16  ;;  %vm2839_vm1 = vcmp.gt.f32.partialorder %v2696_v27, 0.0  ;;  %v19768_v7 = vld [vmem:[#allocation93_spill] sm:$0xff] }
 0x423   : > { %v3972_v24 = vsel %vm3215_vm12, %v3971_v45, %v3970_v42  ;;  %v4003_v53 = vsel %vm3212_vm11, %v3971_v45, 0.0  ;;  %v2983_v61 = vmul.f32 0.25, %v2696_v27  ;;  %vm2844_vm3 = vcmp.gt.f32.partialorder %v2700_v58, 0.0 }
 0x424   : > { %v3974_v40 = vsel %vm3218_vm13, %v3973_v22, %v3972_v24  ;;  %v4004_v6 = vsel %vm3215_vm12, %v3973_v22, %v4003_v53  ;;  %v3962_v37 = vrot.slane %v3204_v50, 4  ;;  %v3964_v31 = vrot.slane %v3204_v50, 5 }
 0x425   : > { %v3976_v60 = vsel %vm3221_vm14, %v3975_v12, %v3974_v40  ;;  %v4005_v54 = vsel %vm3218_vm13, %v3975_v12, %v4004_v6  ;;  %v3966_v23 = vrot.slane %v3204_v50, 6  ;;  %v3968_v57 = vrot.slane %v3204_v50, 7  ;;  %v19769_v6 = vld [vmem:[#allocation44_spill] sm:$0xff] }
 0x426   : > { %v4007_v43 = vsel %vm3221_vm14, %v4006_v25, %v4005_v54  ;;  %v3963_v51 = vsel %vm3224_vm0, %v3962_v37, %v3961_v55  ;;  %v3999_v16 = vsel %vm3224_vm0, %v3964_v31, %v3998_v36  ;;  %v3127_v42 = vsel %vm2839_vm1, %v2696_v27, %v2983_v61 }
 0x427   : > { %v3965_v45 = vsel %vm3227_vm2, %v3964_v31, %v3963_v51  ;;  %v4000_v22 = vsel %vm3227_vm2, %v3966_v23, %v3999_v16  ;;  %v3205_v24 = vmax.f32 %v19768_v7, %v3127_v42  ;;  %v2988_v53 = vmul.f32 0.25, %v2700_v58 }
 0x428   : > { %v3967_v40 = vsel %vm3230_vm4, %v3966_v23, %v3965_v45  ;;  %v4001_v12 = vsel %vm3230_vm4, %v3968_v57, %v4000_v22  ;;  %v2702_v25 = vadd.f32 %v19769_v6, %v16874_v19  ;;  %v2704_v55 = vadd.f32 %v17272_v1, %v16872_v30  ;;  %v19770_v22 = vld [vmem:[#allocation95_spill] sm:$0xff]  ;;  %v19771_v30 = vld [vmem:[#allocation96_spill] sm:$0xff] }
 0x429   : > { %v3969_v36 = vsel %vm3233_vm6, %v3968_v57, %v3967_v40  ;;  %v4002_v27 = vsel %vm3233_vm6, %v3204_v50, %v4001_v12  ;;  %v3977_v61 = vrot.slane %v3205_v24, 4  ;;  %v3979_v37 = vrot.slane %v3205_v24, 5 }
 0x42a   : > { %v4115_v31 = vmax.f32 %v3969_v36, %v4002_v27  ;;  %v3981_v54 = vrot.slane %v3205_v24, 6  ;;  %v3983_v51 = vrot.slane %v3205_v24, 7  ;;  %v3132_v16 = vsel %vm2844_vm3, %v2700_v58, %v2988_v53 }
 0x42b   : > { %v3978_v23 = vsel %vm3224_vm0, %v3977_v61, %v3976_v60  ;;  %v4008_v42 = vsel %vm3224_vm0, %v3979_v37, %v4007_v43  ;;  %v3207_v45 = vmax.f32 %v17418_v17, %v3132_v16  ;;  %vm2845_vm5 = vcmp.gt.f32.partialorder %v2702_v25, 0.0 }
 0x42c   : > { %v19772_v1 = vmax.f32 %v19770_v22, %v19771_v30  ;;  %v3980_v50 = vsel %vm3227_vm2, %v3979_v37, %v3978_v23  ;;  %v4009_v7 = vsel %vm3227_vm2, %v3981_v54, %v4008_v42  ;;  %v2989_v40 = vmul.f32 0.25, %v2702_v25 }
 0x42d   : > { %v3982_v12 = vsel %vm3230_vm4, %v3981_v54, %v3980_v50  ;;  %v4010_v58 = vsel %vm3230_vm4, %v3983_v51, %v4009_v7  ;;  %v4027_v60 = vsel %vm3212_vm11, %v3207_v45, 0.0  ;;  %v4028_v43 = vrot.slane %v3207_v45, 1  ;;  %v19774_v50 = vld [vmem:[#allocation69_spill] sm:$0xff] }
 0x42e   : > { %v17867_v57 = vpack.c.bf16 %v4115_v31, %v19772_v1  ;;  %v17875_v17 = vsel %vm3233_vm6, %v3983_v51, %v3982_v12  ;;  %v17878_v53 = vsel %vm3233_vm6, %v3205_v24, %v4010_v58  ;;  %v4030_v6 = vrot.slane %v3207_v45, 2 }
 0x42f   : > { %v4032_v36 = vrot.slane %v3207_v45, 3  ;;  %v4116_v27 = vmax.f32 %v17875_v17, %v17878_v53  ;;  %v4029_v61 = vsel %vm3215_vm12, %v4028_v43, %v4027_v60  ;;  %v4066_v37 = vsel %vm3212_vm11, %v4028_v43, 0.0 }
 0x430   : > { %v4069_v31 = vrot.slane %v3207_v45, 4  ;;  %v4031_v54 = vsel %vm3218_vm13, %v4030_v6, %v4029_v61  ;;  %v4067_v16 = vsel %vm3215_vm12, %v4030_v6, %v4066_v37  ;;  %v3133_v51 = vsel %vm2845_vm5, %v2702_v25, %v2989_v40  ;;  %v19773_v45 = vld [vmem:[#allocation71_spill] sm:$0xff] }
 0x431   : > { %vm2850_vm7 = vcmp.gt.f32.partialorder %v2704_v55, 0.0  ;;  %v4033_v24 = vsel %vm3221_vm14, %v4032_v36, %v4031_v54  ;;  %v4068_v23 = vsel %vm3218_vm13, %v4032_v36, %v4067_v16  ;;  %v3208_v42 = vmax.f32 %v17412_v32, %v3133_v51 }
 0x432   : > { %v2994_v22 = vmul.f32 0.25, %v2704_v55  ;;  %v4070_v30 = vsel %vm3221_vm14, %v4069_v31, %v4068_v23  ;;  %v2706_v1 = vadd.f32 %v17302_v34, %v16874_v19  ;;  %v19775_v7 = vrot.slane %v19774_v50, 6 }
 0x433   : > { %v19776_v25 = vrot.slane %v17465_v2, 6  ;;  %v4042_v58 = vsel %vm3212_vm11, %v3208_v42, 0.0  ;;  %v4043_v60 = vrot.slane %v3208_v42, 1  ;;  %v4045_v32 = vrot.slane %v3208_v42, 2 }
 0x434   : > { %v3664_v12 = vsel %vm3230_vm4, %v19775_v7, %v19773_v45  ;;  %v4047_v43 = vrot.slane %v3208_v42, 3  ;;  %v4078_v6 = vrot.slane %v3208_v42, 4  ;;  %v3138_v36 = vsel %vm2850_vm7, %v2704_v55, %v2994_v22 }
 0x435   : > { %v3679_v40 = vsel %vm3230_vm4, %v19776_v25, %v17491_v39  ;;  %vm2851_vm8 = vcmp.gt.f32.partialorder %v2706_v1, 0.0  ;;  %v2995_v61 = vmul.f32 0.25, %v2706_v1  ;;  %v4044_v19 = vsel %vm3215_vm12, %v4043_v60, %v4042_v58 }
 0x436   : > { %v4075_v34 = vsel %vm3212_vm11, %v4043_v60, 0.0  ;;  %v3210_v37 = vmax.f32 %v17430_v20, %v3138_v36  ;;  %v19777_v31 = vrot.slane %v19774_v50, 7  ;;  %v4046_v39 = vsel %vm3218_vm13, %v4045_v32, %v4044_v19  ;;  %v19779_v60 = vld [vmem:[#allocation72_spill] sm:$0xff] }
 0x437   : > { %v4076_v16 = vsel %vm3215_vm12, %v4045_v32, %v4075_v34  ;;  %v3139_v51 = vsel %vm2851_vm8, %v2706_v1, %v2995_v61  ;;  %v19778_v23 = vrot.slane %v17465_v2, 7  ;;  %v4048_v42 = vsel %vm3221_vm14, %v4047_v43, %v4046_v39 }
 0x438   : > { %v3666_v54 = vsel %vm3233_vm6, %v19777_v31, %v3664_v12  ;;  %v4077_v22 = vsel %vm3218_vm13, %v4047_v43, %v4076_v16  ;;  %v4034_v45 = vrot.slane %v3210_v37, 4  ;;  %v4036_v7 = vrot.slane %v3210_v37, 5 }
 0x439   : > { %v3681_v55 = vsel %vm3233_vm6, %v19778_v23, %v3679_v40  ;;  %v4079_v20 = vsel %vm3221_vm14, %v4078_v6, %v4077_v22  ;;  %v4038_v50 = vrot.slane %v3210_v37, 6  ;;  %v4040_v25 = vrot.slane %v3210_v37, 7 }
 0x43a   : > { %v3211_v12 = vmax.f32 %v17425_v52, %v3139_v51  ;;  %v4035_v58 = vsel %vm3224_vm0, %v4034_v45, %v4033_v24  ;;  %v4071_v1 = vsel %vm3224_vm0, %v4036_v7, %v4070_v30  ;;  %v4102_v2 = vmax.f32 %v3666_v54, %v19779_v60  ;;  %v19783_v45 = vld [vmem:[#allocation97_spill] sm:$0xff]  ;;  %v19786_v60 = vld [vmem:[#allocation87_spill] sm:$0xff] }
 0x43b   : > { %v4103_v40 = vmax.f32 %v3681_v55, %v17512_v48  ;;  %v4037_v32 = vsel %vm3227_vm2, %v4036_v7, %v4035_v58  ;;  %v4072_v43 = vsel %vm3227_vm2, %v4038_v50, %v4071_v1  ;;  %v17935_v22 = vrot.slane %v17570_v47, %v17061_v26 }
 0x43c   : > { %v4049_v36 = vrot.slane %v3211_v12, 4  ;;  %v4051_v61 = vrot.slane %v3211_v12, 5  ;;  %v4039_v6 = vsel %vm3230_vm4, %v4038_v50, %v4037_v32  ;;  %v4073_v19 = vsel %vm3230_vm4, %v4040_v25, %v4072_v43 }
 0x43d   : > { %v4053_v34 = vrot.slane %v3211_v12, 6  ;;  %v4055_v52 = vrot.slane %v3211_v12, 7  ;;  %v4041_v24 = vsel %vm3233_vm6, %v4040_v25, %v4039_v6  ;;  %v4074_v30 = vsel %vm3233_vm6, %v3210_v37, %v4073_v19  ;;  %19780 = vst [vmem:[#allocation56_spill] sm:$0xff] %v17935_v22 }
 0x43e   : > { %v4050_v31 = vsel %vm3224_vm0, %v4049_v36, %v4048_v42  ;;  %v4080_v48 = vsel %vm3224_vm0, %v4051_v61, %v4079_v20  ;;  %v4118_v54 = vmax.f32 %v4041_v24, %v4074_v30  ;;  %v11858_v51 = vpack.c.bf16 %v4103_v40, %v4102_v2  ;;  %v19782_v42 = vld [vmem:[#allocation31_spill] sm:$0xff]  ;;  %v19787_v2 = vld [vmem:[#allocation86_spill] sm:$0xff] }
 0x43f   : > { %v4052_v39 = vsel %vm3227_vm2, %v4051_v61, %v4050_v31  ;;  %v4081_v16 = vsel %vm3227_vm2, %v4053_v34, %v4080_v48  ;;  %v17939_v37 = vrot.slane %v17680_v10, %v17061_v26  ;;  %v19784_v7 = vmax.f32 %v19782_v42, %v19783_v45  ;;  %v19796_v31 = vld [vmem:[#allocation88_spill] sm:$0xff]  ;;  %v19803_v45 = vld [vmem:[#allocation38_spill] sm:$0xff] }
 0x440   : > { %v4054_v23 = vsel %vm3230_vm4, %v4053_v34, %v4052_v39  ;;  %v4082_v55 = vsel %vm3230_vm4, %v4055_v52, %v4081_v16  ;;  %v17947_v58 = vrot.slane %v11858_v51, %v17061_v26  ;;  %v4295_v47 = vcombine.high %v17935_v22, %v17618_v41 }
 0x441   : > { %19781 = vst [vmem:[#allocation61_spill] sm:$0xff] %v17939_v37  ;;  %v11865_v20 = vpack.c.bf16 %v4118_v54, %v19784_v7  ;;  %v4056_v50 = vsel %vm3233_vm6, %v4055_v52, %v4054_v23  ;;  %v4083_v25 = vsel %vm3233_vm6, %v3211_v12, %v4082_v55  ;;  %v19788_v10 = vrot.slane %v19787_v2, 6  ;;  %v19800_v23 = vld [vmem:[#allocation33_spill] sm:$0xff]  ;;  %v19801_v55 = vld [vmem:[#allocation32_spill] sm:$0xff] }
 0x442   : > { %19785 = vst [vmem:[#allocation58_spill] sm:$0xff] %v17947_v58  ;;  %v17949_v1 = vmax.f32 %v4056_v50, %v4083_v25  ;;  %v19789_v32 = vrot.slane %v17769_v38, 6  ;;  %v19790_v12 = vpack.c.bf16 %v17385_v4, %v17385_v4  ;;  %v19792_v61 = vrot.slane %v17433_v11, 3 }
 0x443   : > { %v3880_v40 = vsel %vm3230_vm4, %v19788_v10, %v19786_v60  ;;  %v19793_v19 = vrot.slane %v19787_v2, 7  ;;  %v19794_v52 = vrot.slane %v17769_v38, 7  ;;  %v19795_v24 = vrot.slane %v17433_v11, 4 }
 0x444   : > { %v3895_v43 = vsel %vm3230_vm4, %v19789_v32, %v17793_v56  ;;  %v17965_v36 = vrot.slane %v19790_v12, %v17061_v26  ;;  %v17971_v6 = vsel %vm3221_vm14, %v19792_v61, %v17500_v62  ;;  %v4137_v62 = vpack.c.bf16 %v17949_v1, %v4116_v27 }
 0x445   : > { %v3882_v34 = vsel %vm3233_vm6, %v19793_v19, %v3880_v40  ;;  %v3897_v56 = vsel %vm3233_vm6, %v19794_v52, %v3895_v43  ;;  %v17983_v4 = vsel %vm3221_vm14, %v19795_v24, %v17590_v15  ;;  %v11871_v30 = vcombine.low %v4295_v47, %v17939_v37 }
 0x446   : > { %19791 = vst [vmem:[#allocation59_spill] sm:$0xff] %v17965_v36  ;;  %v4111_v48 = vmax.f32 %v3882_v34, %v19796_v31  ;;  %v17993_v38 = vrot.slane %v17947_v58, %v17061_v26  ;;  %v4112_v54 = vmax.f32 %v3897_v56, %v17804_v33  ;;  %v17998_v11 = vcombine.low %v17331_v5, %v17224_v46 }
 0x447   : > { %v4223_v15 = vcombine.high %v17335_v14, %v17437_v59  ;;  %v18003_v17 = vrot.slane %v4137_v62, %v17061_v26  ;;  %v18006_v53 = vrot.slane %v11871_v30, %v17061_v26  ;;  %v18010_v27 = vrot.slane %v17867_v57, %v17061_v26 }
 0x448   : > { %19797 = vst [vmem:[#allocation60_spill] sm:$0xff] %v17998_v11  ;;  %v18013_v39 = vrot.slane %v11865_v20, %v17061_v26  ;;  %v11862_v33 = vpack.c.bf16 %v4112_v54, %v4111_v48  ;;  %v4509_v16 = vrot.slane %v17998_v11, %v17061_v26  ;;  %v19802_v42 = vmax.f32 %v19800_v23, %v19801_v55  ;;  %v19808_v48 = vld [vmem:[#allocation48_spill] sm:$0xff] }
 0x449   : > { %19798 = vst [vmem:[#allocation34_spill] sm:$0xff] %v18010_v27  ;;  %v4527_v51 = vrot.slane %v4223_v15, %v17061_v26  ;;  %v12621_v50 = vcombine.high %v17993_v38, %v18006_v53  ;;  %v11921_v57 = vcombine.low %v17993_v38, %v18006_v53  ;;  %v4363_v20 = vcombine.high %v18010_v27, %v18003_v17 }
 0x44a   : > { %19799 = vst [vmem:[#allocation65_spill] sm:$0xff] %v18013_v39  ;;  %v4122_v7 = vpack.c.bf16 %v19803_v45, %v19802_v42  ;;  %v4222_v25 = vcombine.low %v17335_v14, %v17437_v59  ;;  %v3689_v47 = vrot.slane %v17477_v3, 4  ;;  %v18032_v60 = vrot.slane %v11862_v33, %v17061_v26 }
 0x44b   : > { %v18035_v2 = vcombine.low %v17381_v49, %v4509_v16  ;;  %v18038_v10 = vcombine.low %v17388_v35, %v4527_v51  ;;  %v3691_v40 = vrot.slane %v17477_v3, 5  ;;  %v18044_v43 = vrot.slane %v17827_v18, %v17061_v26  ;;  %8240 = vmatprep.mubr.bf16.mxu1 %v12621_v50  ;;  %8824 = vmatprep.mubr.bf16.mxu0 %v12621_v50 }
 0x44c   : > { %19804 = vst [vmem:[#allocation64_spill] sm:$0xff] %v18032_v60  ;;  %v11873_v12 = vcombine.low %v4363_v20, %v18013_v39  ;;  %v11866_v61 = vpack.c.bf16 %v17949_v1, %v17949_v1  ;;  %8241 = vmatmul.mubr.bf16.gmra.mrb[56].mxu1 %v11921_v57  ;;  %8825 = vmatmul.mubr.bf16.gmra.mrb[104].mxu0 %v11921_v57  ;;  %v3695_v57 = vrot.slane %v17477_v3, 7 }
 0x44d   : > { %19805 = vst [vmem:[#allocation62_spill] sm:$0xff] %v18044_v43  ;;  %v18051_v19 = vrot.slane %v18032_v60, %v17061_v26  ;;  %v19496_v34 = vshll.u32 %v18035_v2, 16  ;;  %v18055_v52 = vrot.slane %v4122_v7, %v17061_v26  ;;  %v19494_v56 = vshll.u32 %v18038_v10, 16 }
 0x44e   : > { %v18058_v18 = vrot.slane %v11873_v12, %v17061_v26  ;;  %v11868_v24 = vcombine.high %v17224_v46, %v4222_v25  ;;  %v18064_v1 = vcombine.low %v17730_v28, %v17456_v0  ;;  %v19497_v62 = vshrl.u32 %v18035_v2, 16  ;;  %v13408_v28 = vld [vmem:[%s15077_s12 + $0x420] ss:$16 sps:$4 sm:$0xff]  }
 0x44f   : > { %19806 = vst [vmem:[#allocation63_spill] sm:$0xff] %v18055_v52  ;;  %v4651_v30 = vrot.slane %v19496_v34, 1  ;;  %v4260_v31 = vcombine.high %v17741_v44, %v17965_v36  ;;  %v11854_v54 = vpack.c.bf16 %v19808_v48, %v19808_v48  ;;  %v19495_v33 = vshrl.u32 %v18038_v10, 16 }
 0x450   : > { %19807 = vst [vmem:[#allocation67_spill] sm:$0xff] %v18064_v1  ;;  %v12623_v15 = vcombine.high %v18051_v19, %v18058_v18  ;;  %v4672_v23 = vrot.slane %v19494_v56, 1  ;;  %v4259_v55 = vcombine.low %v17741_v44, %v17965_v36  ;;  %v11936_v42 = vcombine.low %v18051_v19, %v18058_v18 }
 0x451   : > { %v18083_v45 = vrot.slane %v11868_v24, %v17061_v26  ;;  %v18087_v7 = vrot.slane %v18064_v1, %v17061_v26  ;;  %v18090_v50 = vrot.slane %v4260_v31, %v17061_v26  ;;  %v4652_v20 = vor.u32 %v4651_v30, %v19497_v62 }
 0x452   : > { %8250 = vmatprep.mubr.bf16.mxu1 %v12623_v15  ;;  %8834 = vmatprep.mubr.bf16.mxu0 %v12623_v15  ;;  %v4673_v25 = vor.u32 %v4672_v23, %v19495_v33  ;;  %v18098_v12 = vrot.slane %v11854_v54, %v17061_v26  ;;  %v18101_v24 = vrot.slane %v11866_v61, %v17061_v26 }
 0x453   : > { %v18104_v48 = vcombine.high %v17381_v49, %v4509_v16  ;;  %v18108_v31 = vcombine.low %v17763_v8, %v18087_v7  ;;  %v18112_v15 = vcombine.low %v17766_v13, %v18090_v50  ;;  %v18116_v23 = vrot.slane %v18055_v52, %v17061_v26 }
 0x454   : > { %19809 = vst [vmem:[#allocation66_spill] sm:$0xff] %v18098_v12  ;;  %19810 = vst [vmem:[#allocation70_spill] sm:$0xff] %v18101_v24  ;;  %v11894_v30 = vcombine.low %v4652_v20, %v4673_v25  ;;  %v11870_v54 = vcombine.high %v17456_v0, %v4259_v55  ;;  %v18121_v61 = vcombine.low %v17935_v22, %v17618_v41  ;;  %8251 = vmatmul.mubr.bf16.gmra.mrb[60].mxu1 %v11936_v42 }
 0x455   : > { %8835 = vmatmul.mubr.bf16.gmra.mrb[108].mxu0 %v11936_v42  ;;  %v18124_v49 = vcombine.high %v17388_v35, %v4527_v51  ;;  %v19498_v16 = vshll.u32 %v18108_v31, 16  ;;  %v19499_v56 = vshll.u32 %v18112_v15, 16  ;;  %v11877_v20 = vcombine.low %v17456_v0, %v17456_v0 }
 0x456   : > { %19811 = vst [vmem:[#allocation68_spill] sm:$0xff] %v18121_v61  ;;  %8293 = vmatprep.mubr.bf16.mxu1 %v11894_v30  ;;  %8877 = vmatprep.mubr.bf16.mxu0 %v11894_v30  ;;  %v11893_v55 = vcombine.low %v18116_v23, %v18083_v45  ;;  %v19503_v25 = vshrl.u32 %v18112_v15, 16  ;;  %v4415_v35 = vrot.slane %v18098_v12, %v17061_v26  ;;  %v19512_v44 = vshll.u32 %v18104_v48, 16 }
 0x457   : > { %v11878_v51 = vcombine.high %v17965_v36, %v17965_v36  ;;  %v4693_v42 = vrot.slane %v19498_v16, 1  ;;  %v4714_v0 = vrot.slane %v19499_v56, 1  ;;  %v4328_v30 = vcombine.high %v17939_v37, %v18044_v43 }
 0x458   : > { %v18145_v33 = vrot.slane %v18121_v61, %v17061_v26  ;;  %v18149_v62 = vrot.slane %v11870_v54, %v17061_v26  ;;  %v3690_v16 = vsel %vm3224_vm0, %v3689_v47, %v17971_v6  ;;  %v3720_v56 = vsel %vm3224_vm0, %v3691_v40, %v17983_v4  ;;  %v13402_v6 = vld [vmem:[%s15077_s12 + $0x400] ss:$16 sps:$4 sm:$0xff]   ;;  %v13405_v47 = vld [vmem:[%s15077_s12 + $0x408] ss:$16 sps:$4 sm:$0xff]  }
 0x459   : > { %v4715_v32 = vor.u32 %v4714_v0, %v19503_v25  ;;  %v4552_v34 = vrot.slane %v11877_v20, %v17061_v26  ;;  %v18167_v61 = vrot.slane %v4328_v30, %v17061_v26  ;;  %v3692_v36 = vsel %vm3227_vm2, %v3691_v40, %v3690_v16  ;;  %v13413_v16 = vld [vmem:[%s15077_s12 + $0x42c] ss:$16 sps:$4 sm:$0xff]  }
 0x45a   : > { %v18164_v54 = vcombine.low %v17993_v38, %v18145_v33  ;;  %v19812_v4 = vrot.slane %v17477_v3, 6  ;;  %v4327_v20 = vcombine.low %v17939_v37, %v18044_v43  ;;  %v11879_v0 = vcombine.low %v17618_v41, %v17618_v41 }
 0x45b   : > { %v19813_v25 = vshrl.u32 %v18108_v31, 16  ;;  %v18184_v11 = vrot.slane %v11878_v51, %v17061_v26  ;;  %v18188_v60 = vcombine.low %v18006_v53, %v18167_v61  ;;  %v19814_v37 = vrot.slane %v17477_v3, 6 }
 0x45c   : > { %v3721_v1 = vsel %vm3227_vm2, %v19812_v4, %v3720_v56  ;;  %v13410_v56 = vld [vmem:[%s15077_s12 + $0x424] ss:$16 sps:$4 sm:$0xff]   ;;  %v11908_v4 = vcombine.low %v4415_v35, %v18149_v62  ;;  %v11872_v51 = vcombine.high %v17618_v41, %v4327_v20  ;;  %8294 = vmatmul.mubr.bf16.vlgmr.msra.gmra.mrb[48].mxu1 %v11893_v55  ;;  %v4365_v20 = vcombine.high %v18013_v39, %v18101_v24 }
 0x45d   : > { %v4694_v30 = vor.u32 %v4693_v42, %v19813_v25  ;;  %v3694_v22 = vsel %vm3230_vm4, %v19814_v37, %v3692_v36  ;;  %v3722_v25 = vsel %vm3230_vm4, %v3695_v57, %v3721_v1  ;;  %8878 = vmatmul.mubr.bf16.vlgmr.msra.gmra.mrb[96].mxu0 %v11893_v55  ;;  %v19513_v40 = vshll.u32 %v18188_v60, 16  ;;  %8335 = vmatpush1.bf16.msra.mxu1 %v13402_v6  ;;  %v13416_v55 = vld [vmem:[%s15077_s12 + $0x444] ss:$16 sps:$4 sm:$0xff]  }
 0x45e   : > { %v3696_v58 = vsel %vm3233_vm6, %v3695_v57, %v3694_v22  ;;  %8919 = vmatpush1.bf16.msra.mxu0 %v13405_v47  ;;  %v18204_v37 = vcombine.low %v4415_v35, %v4552_v34  ;;  %v19815_v36 = vshll.u32 %v18164_v54, 16  ;;  %v3723_v1 = vsel %vm3233_vm6, %v17477_v3, %v3722_v25  ;;  %v13419_v22 = vld [vmem:[%s15077_s12 + $0x44c] ss:$16 sps:$4 sm:$0xff]   ;;  %8336 = vmatprep.subr.bf16.mxu1 %v13410_v56  ;;  %v13414_v25 = vld [vmem:[%s15077_s12 + $0x440] ss:$16 sps:$4 sm:$0xff]  }
 0x45f   : > { %v11909_v42 = vcombine.low %v4694_v30, %v4715_v32  ;;  %v4588_v32 = vrot.slane %v11879_v0, %v17061_v26  ;;  %v19514_v57 = vshrl.u32 %v18188_v60, 16  ;;  %v4756_v6 = vrot.slane %v19513_v40, 1  ;;  %8920 = vmatprep.subr.bf16.mxu0 %v13413_v16 }
 0x460   : > { %v4735_v41 = vrot.slane %v19815_v36, 1  ;;  %v4104_v34 = vmax.f32 %v3696_v58, %v3723_v1  ;;  %v18218_v35 = vcombine.low %v18010_v27, %v18003_v17  ;;  %v19515_v3 = vshrl.u32 %v18164_v54, 16 }
 0x461   : > { %8303 = vmatprep.mubr.bf16.mxu1 %v11909_v42  ;;  %8887 = vmatprep.mubr.bf16.mxu0 %v11909_v42  ;;  %v18222_v47 = vrot.slane %v11872_v51, %v17061_v26  ;;  %v11863_v0 = vpack.c.bf16 %v17816_v29, %v17816_v29  ;;  %v4757_v58 = vor.u32 %v4756_v6, %v19514_v57  ;;  %v13417_v51 = vld [vmem:[%s15077_s12 + $0x448] ss:$16 sps:$4 sm:$0xff]   ;;  %v4658_v6 = vrot.slane %v19512_v44, 1 }
 0x462   : > { %19816 = vst [vmem:[#allocation73_spill] sm:$0xff] %v18218_v35  ;;  %v4131_v30 = vpack.c.bf16 %v17592_v21, %v4104_v34  ;;  %v18233_v56 = vrot.slane %v18218_v35, %v17061_v26  ;;  %v4364_v16 = vcombine.low %v18013_v39, %v18101_v24  ;;  %8337 = vmatpush1.bf16.msra.mxu1 %v13408_v28  ;;  %v13422_v34 = vld [vmem:[%s15077_s12 + $0x464] ss:$16 sps:$4 sm:$0xff]   ;;  %v19824_v27 = vshrl.u32 %v18035_v2, 16 }
 0x463   : > { %8921 = vmatpush1.bf16.msra.mxu0 %v13411_v63  ;;  %v11880_v29 = vcombine.high %v18044_v43, %v18044_v43  ;;  %v18242_v42 = vrot.slane %v4365_v20, %v17061_v26  ;;  %v18245_v21 = vrot.slane %v11863_v0, %v17061_v26  ;;  %8338 = vmatprep.subr.bf16.mxu1 %v13416_v55  ;;  %v13425_v20 = vld [vmem:[%s15077_s12 + $0x46c] ss:$16 sps:$4 sm:$0xff]   ;;  %v19845_v5 = vshll.u32 %v18104_v48, 16 }
 0x464   : > { %8922 = vmatprep.subr.bf16.mxu0 %v13419_v22  ;;  %v4736_v1 = vor.u32 %v4735_v41, %v19515_v3  ;;  %v18251_v28 = vrot.slane %v4131_v30, %v17061_v26  ;;  %v18255_v63 = vcombine.low %v18051_v19, %v18233_v56  ;;  %v11874_v41 = vcombine.high %v18003_v17, %v4364_v16  ;;  %v13420_v16 = vld [vmem:[%s15077_s12 + $0x460] ss:$16 sps:$4 sm:$0xff]   ;;  %v13423_v3 = vld [vmem:[%s15077_s12 + $0x468] ss:$16 sps:$4 sm:$0xff]   ;;  %v13431_v0 = vld [vmem:[%s15077_s12 + $0x48c] ss:$16 sps:$4 sm:$0xff]  }
 0x465   : > { %19817 = vst [vmem:[#allocation77_spill] sm:$0xff] %v18245_v21  ;;  %v18263_v55 = vcombine.low %v18058_v18, %v18242_v42  ;;  %v11881_v22 = vcombine.low %v18003_v17, %v18003_v17  ;;  %8304 = vmatmul.mubr.bf16.gmra.mrb[52].mxu1 %v11908_v4  ;;  %8888 = vmatmul.mubr.bf16.gmra.mrb[100].mxu0 %v11908_v4 }
 0x466   : > { %19818 = vst [vmem:[#allocation36_spill] sm:$0xff] %v18251_v28  ;;  %v11924_v30 = vcombine.low %v4736_v1, %v4757_v58  ;;  %v4449_v44 = vrot.slane %v18251_v28, %v17061_v26  ;;  %v4483_v57 = vrot.slane %v18245_v21, %v17061_v26  ;;  %8339 = vmatpush1.bf16.msra.mxu1 %v13414_v25  ;;  %v13428_v1 = vld [vmem:[%s15077_s12 + $0x484] ss:$16 sps:$4 sm:$0xff]   ;;  %v19834_v28 = vshrl.u32 %v18188_v60, 16 }
 0x467   : > { %8923 = vmatpush1.bf16.msra.mxu0 %v13417_v51  ;;  %v4500_v36 = vrot.slane %v11874_v41, %v17061_v26  ;;  %v4624_v4 = vrot.slane %v11881_v22, %v17061_v26  ;;  %v11882_v58 = vcombine.high %v18101_v24, %v18101_v24  ;;  %v19819_v51 = vshll.u32 %v18255_v63, 16  ;;  %8340 = vmatprep.subr.bf16.mxu1 %v13422_v34 }
 0x468   : > { %8313 = vmatprep.mubr.bf16.mxu1 %v11924_v30  ;;  %8897 = vmatprep.mubr.bf16.mxu0 %v11924_v30  ;;  %v18283_v40 = vcombine.low %v4449_v44, %v4588_v32  ;;  %v11923_v25 = vcombine.low %v4449_v44, %v18222_v47  ;;  %v19519_v41 = vshrl.u32 %v18263_v55, 16  ;;  %v19820_v22 = vshll.u32 %v18263_v55, 16 }
 0x469   : > { %v4777_v17 = vrot.slane %v19819_v51, 1  ;;  %8924 = vmatprep.subr.bf16.mxu0 %v13425_v20  ;;  %v18291_v35 = vcombine.low %v4483_v57, %v4624_v4  ;;  %v18293_v30 = vcombine.low %v4483_v57, %v4500_v36  ;;  %v11875_v32 = vcombine.low %v17224_v46, %v17224_v46  ;;  %v13426_v57 = vld [vmem:[%s15077_s12 + $0x480] ss:$16 sps:$4 sm:$0xff]   ;;  %v13429_v4 = vld [vmem:[%s15077_s12 + $0x488] ss:$16 sps:$4 sm:$0xff]  }
 0x46a   : > { %v4798_v24 = vrot.slane %v19820_v22, 1  ;;  %v18299_v44 = vcombine.low %v18149_v62, %v18184_v11  ;;  %v4606_v51 = vrot.slane %v11880_v29, %v17061_v26  ;;  %v19544_v34 = vshrl.u32 %v18255_v63, 16  ;;  %8341 = vmatpush1.bf16.msra.mxu1 %v13420_v16 }
 0x46b   : > { %v11876_v20 = vcombine.high %v17437_v59, %v17437_v59  ;;  %8925 = vmatpush1.bf16.msra.mxu0 %v13423_v3  ;;  %v4516_v22 = vrot.slane %v11875_v32, %v17061_v26  ;;  %v19821_v62 = vshll.u32 %v18124_v49, 16  ;;  %8342 = vmatprep.subr.bf16.mxu1 %v13428_v1  ;;  %v18318_v16 = vcombine.high %v17763_v8, %v18087_v7  ;;  %v13437_v32 = vld [vmem:[%s15077_s12 + $0x4ac] ss:$16 sps:$4 sm:$0xff]   ;;  %v13432_v7 = vld [vmem:[%s15077_s12 + $0x4a0] ss:$16 sps:$4 sm:$0xff]  }
 0x46c   : > { %v4799_v46 = vor.u32 %v4798_v24, %v19519_v41  ;;  %8926 = vmatprep.subr.bf16.mxu0 %v13431_v0  ;;  %v4778_v43 = vor.u32 %v4777_v17, %v19544_v34  ;;  %v13434_v24 = vld [vmem:[%s15077_s12 + $0x4a4] ss:$16 sps:$4 sm:$0xff]   ;;  %v4642_v41 = vrot.slane %v11882_v58, %v17061_v26  ;;  %v19822_v0 = vshrl.u32 %v18104_v48, 16 }
 0x46d   : > { %v4679_v29 = vrot.slane %v19821_v62, 1  ;;  %v4534_v3 = vrot.slane %v11876_v20, %v17061_v26  ;;  %v18324_v11 = vcombine.low %v18116_v23, %v4516_v22  ;;  %v19823_v17 = vshrl.u32 %v18124_v49, 16  ;;  %8314 = vmatmul.mubr.bf16.gmra.mrb[56].mxu1 %v11923_v25  ;;  %8898 = vmatmul.mubr.bf16.gmra.mrb[104].mxu0 %v11923_v25  ;;  %v13440_v22 = vld [vmem:[%s15077_s12 + $0x4c4] ss:$16 sps:$4 sm:$0xff]  }
 0x46e   : > { %v4659_v1 = vor.u32 %v4658_v6, %v19822_v0  ;;  %v11939_v8 = vcombine.low %v4778_v43, %v4799_v46  ;;  %v18336_v58 = vcombine.high %v17766_v13, %v18090_v50  ;;  %v18339_v23 = vcombine.low %v18222_v47, %v4606_v51  ;;  %8343 = vmatpush1.bf16.msra.mxu1 %v13426_v57  ;;  %v13435_v6 = vld [vmem:[%s15077_s12 + $0x4a8] ss:$16 sps:$4 sm:$0xff]   ;;  %v13438_v46 = vld [vmem:[%s15077_s12 + $0x4c0] ss:$16 sps:$4 sm:$0xff]  }
 0x46f   : > { %v4680_v62 = vor.u32 %v4679_v29, %v19823_v17  ;;  %v18332_v20 = vcombine.low %v18083_v45, %v4534_v3  ;;  %8927 = vmatpush1.bf16.msra.mxu0 %v13429_v4  ;;  %v18343_v29 = vcombine.low %v4500_v36, %v4642_v41  ;;  %v19523_v43 = vshll.u32 %v18324_v11, 16  ;;  %v13443_v45 = vld [vmem:[%s15077_s12 + $0x4cc] ss:$16 sps:$4 sm:$0xff]   ;;  %8344 = vmatprep.subr.bf16.mxu1 %v13434_v24 }
 0x470   : > { %8323 = vmatprep.mubr.bf16.mxu1 %v11939_v8  ;;  %8907 = vmatprep.mubr.bf16.mxu0 %v11939_v8  ;;  %v19542_v13 = vshrl.u32 %v18324_v11, 16  ;;  %v19527_v47 = vshrl.u32 %v18318_v16, 16  ;;  %v19521_v51 = vshll.u32 %v18318_v16, 16  ;;  %v19526_v57 = vshrl.u32 %v18336_v58, 16 }
 0x471   : > { %v18346_v25 = vcombine.low %v4659_v1, %v4680_v62  ;;  %v19520_v50 = vshll.u32 %v18332_v20, 16  ;;  %8928 = vmatprep.subr.bf16.mxu0 %v13437_v32  ;;  %v4665_v36 = vrot.slane %v19523_v43, 1  ;;  %v19539_v41 = vshrl.u32 %v18332_v20, 16  ;;  %v13441_v1 = vld [vmem:[%s15077_s12 + $0x4c8] ss:$16 sps:$4 sm:$0xff]  }
 0x472   : > { %v19522_v4 = vshll.u32 %v18336_v58, 16  ;;  %v4700_v0 = vrot.slane %v19521_v51, 1  ;;  %v19535_v24 = vshrl.u32 %v18283_v40, 16  ;;  %v19524_v32 = vshll.u32 %v18283_v40, 16  ;;  %8345 = vmatpush1.bf16.msra.mxu1 %v13432_v7  ;;  %v13449_v43 = vld [vmem:[%s15077_s12 + $0x4ec] ss:$16 sps:$4 sm:$0xff]  }
 0x473   : > { %v4686_v3 = vrot.slane %v19520_v50, 1  ;;  %8929 = vmatpush1.bf16.msra.mxu0 %v13435_v6  ;;  %v4666_v17 = vor.u32 %v4665_v36, %v19542_v13  ;;  %v19529_v8 = vshrl.u32 %v18339_v23, 16  ;;  %v19525_v50 = vshll.u32 %v18339_v23, 16  ;;  %8346 = vmatprep.subr.bf16.mxu1 %v13440_v22 }
 0x474   : > { %v4721_v62 = vrot.slane %v19522_v4, 1  ;;  %8930 = vmatprep.subr.bf16.mxu0 %v13443_v45  ;;  %v4701_v7 = vor.u32 %v4700_v0, %v19527_v47  ;;  %v4749_v6 = vrot.slane %v19524_v32, 1  ;;  %v18380_v36 = vcombine.high %v17993_v38, %v18145_v33  ;;  %v13446_v4 = vld [vmem:[%s15077_s12 + $0x4e4] ss:$16 sps:$4 sm:$0xff]   ;;  %v13444_v33 = vld [vmem:[%s15077_s12 + $0x4e0] ss:$16 sps:$4 sm:$0xff]  }
 0x475   : > { %v4687_v51 = vor.u32 %v4686_v3, %v19539_v41  ;;  %v4770_v45 = vrot.slane %v19525_v50, 1  ;;  %v18390_v3 = vcombine.high %v18006_v53, %v18167_v61  ;;  %v19537_v0 = vshrl.u32 %v18291_v35, 16  ;;  %8324 = vmatmul.mubr.bf16.gmra.mrb[60].mxu1 %v18293_v30  ;;  %8908 = vmatmul.mubr.bf16.gmra.mrb[108].mxu0 %v18293_v30  ;;  %v13447_v53 = vld [vmem:[%s15077_s12 + $0x4e8] ss:$16 sps:$4 sm:$0xff]   ;;  %v13452_v61 = vld [vmem:[%s15077_s12 + $0x504] ss:$16 sps:$4 sm:$0xff]  }
 0x476   : > { %v4722_v22 = vor.u32 %v4721_v62, %v19526_v57  ;;  %v4750_v32 = vor.u32 %v4749_v6, %v19535_v24  ;;  %v19534_v62 = vshrl.u32 %v18380_v36, 16  ;;  %v19528_v50 = vshll.u32 %v18380_v36, 16  ;;  %8347 = vmatpush1.bf16.msra.mxu1 %v13438_v46  ;;  %v13456_v24 = vld [vmem:[%s15077_s12 + $0x520] ss:$16 sps:$4 sm:$0xff]  }
 0x477   : > { %v11896_v38 = vcombine.low %v4666_v17, %v4687_v51  ;;  %8931 = vmatpush1.bf16.msra.mxu0 %v13441_v1  ;;  %v4771_v47 = vor.u32 %v4770_v45, %v19529_v8  ;;  %v19533_v30 = vshrl.u32 %v18390_v3, 16  ;;  %v19531_v51 = vshll.u32 %v18390_v3, 16  ;;  %v13455_v17 = vld [vmem:[%s15077_s12 + $0x50c] ss:$16 sps:$4 sm:$0xff]   ;;  %8348 = vmatprep.subr.bf16.mxu1 %v13446_v4  ;;  %v13450_v8 = vld [vmem:[%s15077_s12 + $0x500] ss:$16 sps:$4 sm:$0xff]  }
 0x478   : > { %v18402_v57 = vcombine.low %v4701_v7, %v4722_v22  ;;  %v4742_v6 = vrot.slane %v19528_v50, 1  ;;  %v19530_v46 = vshll.u32 %v18291_v35, 16  ;;  %v19536_v1 = vshrl.u32 %v18343_v29, 16  ;;  %8932 = vmatprep.subr.bf16.mxu0 %v13449_v43 }
 0x479   : > { %8366 = vmatprep.mubr.bf16.mxu1 %v11896_v38  ;;  %8950 = vmatprep.mubr.bf16.mxu0 %v11896_v38  ;;  %v19532_v7 = vshll.u32 %v18343_v29, 16  ;;  %v18414_v22 = vcombine.low %v4750_v32, %v4771_v47  ;;  %v4763_v45 = vrot.slane %v19531_v51, 1  ;;  %v18420_v38 = vcombine.high %v18051_v19, %v18233_v56  ;;  %v13453_v19 = vld [vmem:[%s15077_s12 + $0x508] ss:$16 sps:$4 sm:$0xff]   ;;  %v13461_v51 = vld [vmem:[%s15077_s12 + $0x52c] ss:$16 sps:$4 sm:$0xff]  }
 0x47a   : > { %v18424_v50 = vcombine.high %v18058_v18, %v18242_v42  ;;  %v4743_v4 = vor.u32 %v4742_v6, %v19534_v62  ;;  %v4791_v43 = vrot.slane %v19530_v46, 1  ;;  %v4815_v32 = vrot.slane %v18104_v48, 1  ;;  %8349 = vmatpush1.bf16.msra.mxu1 %v13444_v33  ;;  %v13458_v46 = vld [vmem:[%s15077_s12 + $0x524] ss:$16 sps:$4 sm:$0xff]  }
 0x47b   : > { %v4812_v47 = vrot.slane %v19532_v7, 1  ;;  %8933 = vmatpush1.bf16.msra.mxu0 %v13447_v53  ;;  %v4764_v18 = vor.u32 %v4763_v45, %v19533_v30  ;;  %v19541_v56 = vshrl.u32 %v18420_v38, 16  ;;  %v19538_v42 = vshll.u32 %v18420_v38, 16  ;;  %8350 = vmatprep.subr.bf16.mxu1 %v13452_v61 }
 0x47c   : > { %v19543_v6 = vshrl.u32 %v18424_v50, 16  ;;  %8934 = vmatprep.subr.bf16.mxu0 %v13455_v17  ;;  %v4792_v33 = vor.u32 %v4791_v43, %v19537_v0  ;;  %v19540_v45 = vshll.u32 %v18424_v50, 16  ;;  %v4818_v7 = vrot.slane %v18124_v49, 1 }
 0x47d   : > { %v4813_v53 = vor.u32 %v4812_v47, %v19536_v1  ;;  %v18448_v30 = vcombine.low %v4743_v4, %v4764_v18  ;;  %v4784_v61 = vrot.slane %v19538_v42, 1  ;;  %v4814_v17 = vrot.slane %v18035_v2, 1  ;;  %v13459_v4 = vld [vmem:[%s15077_s12 + $0x528] ss:$16 sps:$4 sm:$0xff]   ;;  %v13464_v18 = vld [vmem:[%s15077_s12 + $0x544] ss:$16 sps:$4 sm:$0xff]  }
 0x47e   : > { %v4817_v62 = vrot.slane %v18038_v10, 1  ;;  %v4805_v47 = vrot.slane %v19540_v45, 1  ;;  %v18459_v1 = vcombine.low %v4815_v32, %v4818_v7  ;;  %v4821_v0 = vrot.slane %v18318_v16, 1  ;;  %8351 = vmatpush1.bf16.msra.mxu1 %v13450_v8  ;;  %v13467_v7 = vld [vmem:[%s15077_s12 + $0x54c] ss:$16 sps:$4 sm:$0xff]  }
 0x47f   : > { %v18455_v43 = vcombine.low %v4792_v33, %v4813_v53  ;;  %8935 = vmatpush1.bf16.msra.mxu0 %v13453_v19  ;;  %v4785_v42 = vor.u32 %v4784_v61, %v19541_v56  ;;  %v4824_v33 = vrot.slane %v18336_v58, 1  ;;  %v4820_v53 = vrot.slane %v18108_v31, 1  ;;  %8352 = vmatprep.subr.bf16.mxu1 %v13458_v46  ;;  %v13465_v56 = vld [vmem:[%s15077_s12 + $0x548] ss:$16 sps:$4 sm:$0xff]  }
 0x480   : > { %v18466_v41 = vcombine.low %v4814_v17, %v4817_v62  ;;  %8936 = vmatprep.subr.bf16.mxu0 %v13461_v51  ;;  %v4806_v8 = vor.u32 %v4805_v47, %v19543_v6  ;;  %v4823_v32 = vrot.slane %v18112_v15, 1  ;;  %v4827_v19 = vrot.slane %v18380_v36, 1  ;;  %v13462_v51 = vld [vmem:[%s15077_s12 + $0x540] ss:$16 sps:$4 sm:$0xff]  }
 0x481   : > { %v4830_v61 = vrot.slane %v18390_v3, 1  ;;  %v18476_v45 = vcombine.low %v4821_v0, %v4824_v33  ;;  %v4826_v62 = vrot.slane %v18164_v54, 1  ;;  %v4829_v17 = vrot.slane %v18188_v60, 1  ;;  %v13470_v0 = vld [vmem:[%s15077_s12 + $0x564] ss:$16 sps:$4 sm:$0xff]  }
 0x482   : > { %v4833_v46 = vrot.slane %v18420_v38, 1  ;;  %v18483_v13 = vcombine.low %v4785_v42, %v4806_v8  ;;  %v18485_v47 = vcombine.low %v4820_v53, %v4823_v32  ;;  %v4836_v34 = vrot.slane %v18424_v50, 1  ;;  %8353 = vmatpush1.bf16.msra.mxu1 %v13456_v24  ;;  %v13473_v53 = vld [vmem:[%s15077_s12 + $0x56c] ss:$16 sps:$4 sm:$0xff]  }
 0x483   : > { %v18487_v6 = vcombine.low %v4827_v19, %v4830_v61  ;;  %8937 = vmatpush1.bf16.msra.mxu0 %v13459_v4  ;;  %v18491_v33 = vcombine.low %v4826_v62, %v4829_v17  ;;  %v4832_v59 = vrot.slane %v18255_v63, 1  ;;  %v4835_v39 = vrot.slane %v18263_v55, 1  ;;  %8354 = vmatprep.subr.bf16.mxu1 %v13464_v18 }
 0x484   : > { %v4838_v42 = vrot.slane %v19824_v27, 1  ;;  %8938 = vmatprep.subr.bf16.mxu0 %v13467_v7  ;;  %v18498_v8 = vcombine.low %v4833_v46, %v4836_v34  ;;  %v19825_v32 = vshll.u32 %v18035_v2, 16  ;;  %v19826_v4 = vshrl.u32 %v18038_v10, 16  ;;  %v13468_v27 = vld [vmem:[%s15077_s12 + $0x560] ss:$16 sps:$4 sm:$0xff]  }
 0x485   : > { %v19827_v61 = vshll.u32 %v18038_v10, 16  ;;  %v18506_v17 = vcombine.low %v4832_v59, %v4835_v39  ;;  %v4816_v7 = vrot.slane %v18324_v11, 1  ;;  %v4819_v34 = vrot.slane %v18332_v20, 1  ;;  %v13471_v2 = vld [vmem:[%s15077_s12 + $0x568] ss:$16 sps:$4 sm:$0xff]  }
 0x486   : > { %v4839_v24 = vrot.slane %v19825_v32, 2  ;;  %v4847_v19 = vrot.slane %v19826_v4, 1  ;;  %8355 = vmatpush1.bf16.msra.mxu1 %v13462_v51  ;;  %v19828_v46 = vshrl.u32 %v18108_v31, 16  ;;  %v19829_v10 = vshll.u32 %v18108_v31, 16 }
 0x487   : > { %v4848_v62 = vrot.slane %v19827_v61, 2  ;;  %8939 = vmatpush1.bf16.msra.mxu0 %v13465_v56  ;;  %v19830_v59 = vshrl.u32 %v18112_v15, 16  ;;  %8356 = vmatprep.subr.bf16.mxu1 %v13470_v0  ;;  %v13479_v61 = vld [vmem:[%s15077_s12 + $0x58c] ss:$16 sps:$4 sm:$0xff]   ;;  %v18524_v56 = vcombine.low %v4816_v7, %v4819_v34  ;;  %v4825_v31 = vrot.slane %v18299_v44, 1 }
 0x488   : > { %v4840_v21 = vor.u32 %v4839_v24, %v4838_v42  ;;  %v4856_v32 = vrot.slane %v19828_v46, 1  ;;  %v4857_v4 = vrot.slane %v19829_v10, 2  ;;  %v19831_v42 = vshll.u32 %v18112_v15, 16  ;;  %8940 = vmatprep.subr.bf16.mxu0 %v13473_v53  ;;  %v13474_v46 = vld [vmem:[%s15077_s12 + $0x580] ss:$16 sps:$4 sm:$0xff]  }
 0x489   : > { %v4849_v18 = vor.u32 %v4848_v62, %v4847_v19  ;;  %v4865_v39 = vrot.slane %v19830_v59, 1  ;;  %v13476_v19 = vld [vmem:[%s15077_s12 + $0x584] ss:$16 sps:$4 sm:$0xff]   ;;  %v4822_v62 = vrot.slane %v18204_v37, 1  ;;  %v4705_v59 = vshll.u32 %v18204_v37, 16 }
 0x48a   : > { %v4866_v24 = vrot.slane %v19831_v42, 2  ;;  %v4858_v15 = vor.u32 %v4857_v4, %v4856_v32  ;;  %v13477_v53 = vld [vmem:[%s15077_s12 + $0x588] ss:$16 sps:$4 sm:$0xff]   ;;  %v19833_v7 = vshll.u32 %v18164_v54, 16  ;;  %v4883_v12 = vrot.slane %v19834_v28, 1  ;;  %8357 = vmatpush1.bf16.msra.mxu1 %v13468_v27 }
 0x48b   : > { %v18522_v51 = vcombine.low %v4840_v21, %v4849_v18  ;;  %v18532_v42 = vcombine.low %v4822_v62, %v4825_v31  ;;  %v19832_v21 = vshrl.u32 %v18164_v54, 16  ;;  %8941 = vmatpush1.bf16.msra.mxu0 %v13471_v2  ;;  %v13482_v10 = vld [vmem:[%s15077_s12 + $0x5a4] ss:$16 sps:$4 sm:$0xff]   ;;  %v19835_v32 = vshll.u32 %v18188_v60, 16  ;;  %8358 = vmatprep.subr.bf16.mxu1 %v13476_v19  ;;  %v13485_v54 = vld [vmem:[%s15077_s12 + $0x5ac] ss:$16 sps:$4 sm:$0xff]  }
 0x48c   : > { %v4867_v0 = vor.u32 %v4866_v24, %v4865_v39  ;;  %v4875_v34 = vrot.slane %v19833_v7, 2  ;;  %v4828_v39 = vrot.slane %v18283_v40, 1  ;;  %v4831_v24 = vrot.slane %v18339_v23, 1  ;;  %8942 = vmatprep.subr.bf16.mxu0 %v13479_v61  ;;  %v13480_v61 = vld [vmem:[%s15077_s12 + $0x5a0] ss:$16 sps:$4 sm:$0xff]  }
 0x48d   : > { %v4874_v18 = vrot.slane %v19832_v21, 1  ;;  %v4884_v4 = vrot.slane %v19835_v32, 2  ;;  %v19836_v28 = vshrl.u32 %v18255_v63, 16  ;;  %v19837_v2 = vshll.u32 %v18255_v63, 16 }
 0x48e   : > { %v18541_v14 = vcombine.low %v4858_v15, %v4867_v0  ;;  %v19838_v15 = vshrl.u32 %v18263_v55, 16  ;;  %v4724_v60 = vshrl.u32 %v18299_v44, 16  ;;  %v4726_v21 = vshll.u32 %v18299_v44, 16  ;;  %8359 = vmatpush1.bf16.msra.mxu1 %v13474_v46 }
 0x48f   : > { %v4876_v62 = vor.u32 %v4875_v34, %v4874_v18  ;;  %v4892_v27 = vrot.slane %v19836_v28, 1  ;;  %v4893_v31 = vrot.slane %v19837_v2, 2  ;;  %v4885_v7 = vor.u32 %v4884_v4, %v4883_v12  ;;  %8943 = vmatpush1.bf16.msra.mxu0 %v13477_v53  ;;  %v13483_v2 = vld [vmem:[%s15077_s12 + $0x5a8] ss:$16 sps:$4 sm:$0xff]   ;;  %8360 = vmatprep.subr.bf16.mxu1 %v13482_v10 }
 0x490   : > { %v4901_v0 = vrot.slane %v19838_v15, 1  ;;  %v18556_v19 = vcombine.low %v4828_v39, %v4831_v24  ;;  %v19839_v34 = vshll.u32 %v18263_v55, 16  ;;  %v4834_v63 = vrot.slane %v18291_v35, 1  ;;  %8944 = vmatprep.subr.bf16.mxu0 %v13485_v54 }
 0x491   : > { %v4894_v18 = vor.u32 %v4893_v31, %v4892_v27  ;;  %v4837_v28 = vrot.slane %v18343_v29, 1  ;;  %v18564_v15 = vcombine.low %v4876_v62, %v4885_v7  ;;  %v19840_v12 = vshrl.u32 %v18324_v11, 16  ;;  %v13488_v27 = vld [vmem:[%s15077_s12 + $0x5c4] ss:$16 sps:$4 sm:$0xff]   ;;  %v13491_v31 = vld [vmem:[%s15077_s12 + $0x5cc] ss:$16 sps:$4 sm:$0xff]  }
 0x492   : > { %v4902_v32 = vrot.slane %v19839_v34, 2  ;;  %v19841_v4 = vshll.u32 %v18324_v11, 16  ;;  %v19842_v24 = vshrl.u32 %v18332_v20, 16  ;;  %v19843_v62 = vshll.u32 %v18332_v20, 16  ;;  %8361 = vmatpush1.bf16.msra.mxu1 %v13480_v61  ;;  %v13489_v20 = vld [vmem:[%s15077_s12 + $0x5c8] ss:$16 sps:$4 sm:$0xff]  }
 0x493   : > { %v4844_v44 = vrot.slane %v19840_v12, 1  ;;  %v18574_v53 = vcombine.low %v4834_v63, %v4837_v28  ;;  %v19844_v34 = vshrl.u32 %v18104_v48, 16  ;;  %v4707_v26 = vrot.slane %v4705_v59, 1  ;;  %8945 = vmatpush1.bf16.msra.mxu0 %v13483_v2  ;;  %8362 = vmatprep.subr.bf16.mxu1 %v13488_v27  ;;  %v13497_v48 = vld [vmem:[%s15077_s12 + $0x5ec] ss:$16 sps:$4 sm:$0xff]  }
 0x494   : > { %v4845_v39 = vrot.slane %v19841_v4, 2  ;;  %v4853_v55 = vrot.slane %v19842_v24, 1  ;;  %v4903_v46 = vor.u32 %v4902_v32, %v4901_v0  ;;  %v4854_v7 = vrot.slane %v19843_v62, 2  ;;  %v13486_v24 = vld [vmem:[%s15077_s12 + $0x5c0] ss:$16 sps:$4 sm:$0xff]   ;;  %8946 = vmatprep.subr.bf16.mxu0 %v13491_v31 }
 0x495   : > { %v4841_v12 = vrot.slane %v19844_v34, 1  ;;  %v4728_v11 = vrot.slane %v4726_v21, 1  ;;  %v4842_v0 = vrot.slane %v19845_v5, 2  ;;  %v19846_v32 = vshrl.u32 %v18124_v49, 16  ;;  %v13492_v27 = vld [vmem:[%s15077_s12 + $0x5e0] ss:$16 sps:$4 sm:$0xff]  }
 0x496   : > { %v4846_v4 = vor.u32 %v4845_v39, %v4844_v44  ;;  %v18581_v10 = vcombine.low %v4894_v18, %v4903_v46  ;;  %v4855_v54 = vor.u32 %v4854_v7, %v4853_v55  ;;  %v19847_v28 = vshll.u32 %v18124_v49, 16  ;;  %v13494_v55 = vld [vmem:[%s15077_s12 + $0x5e4] ss:$16 sps:$4 sm:$0xff]   ;;  %8363 = vmatpush1.bf16.msra.mxu1 %v13486_v24 }
 0x497   : > { %v4850_v63 = vrot.slane %v19846_v32, 1  ;;  %v19848_v34 = vshrl.u32 %v18204_v37, 16  ;;  %v4863_v39 = vrot.slane %v4705_v59, 2  ;;  %v4871_v18 = vrot.slane %v4724_v60, 1  ;;  %8947 = vmatpush1.bf16.msra.mxu0 %v13489_v20  ;;  %v13495_v37 = vld [vmem:[%s15077_s12 + $0x5e8] ss:$16 sps:$4 sm:$0xff]   ;;  %8364 = vmatprep.subr.bf16.mxu1 %v13494_v55 }
 0x498   : > { %v4851_v62 = vrot.slane %v19847_v28, 2  ;;  %v18594_v5 = vcombine.low %v4846_v4, %v4855_v54  ;;  %v4843_v46 = vor.u32 %v4842_v0, %v4841_v12  ;;  %v4872_v61 = vrot.slane %v4726_v21, 2  ;;  %8948 = vmatprep.subr.bf16.mxu0 %v13497_v48 }
 0x499   : > { %v4862_v44 = vrot.slane %v19848_v34, 1  ;;  %v19849_v2 = vshrl.u32 %v18318_v16, 16  ;;  %v19850_v49 = vmov %v19848_v34  ;;  %v4729_v28 = vor.u32 %v4728_v11, %v4724_v60 }
 0x49a   : > { %v4708_v32 = vor.u32 %v4707_v26, %v19850_v49  ;;  %v4852_v9 = vor.u32 %v4851_v62, %v4850_v63  ;;  %v4873_v31 = vor.u32 %v4872_v61, %v4871_v18  ;;  %v19851_v34 = vshll.u32 %v18318_v16, 16  ;;  %8365 = vmatpush1.bf16.msra.mxu1 %v13492_v27 }
 0x49b   : > { %v4859_v7 = vrot.slane %v19849_v2, 1  ;;  %v4864_v59 = vor.u32 %v4863_v39, %v4862_v44  ;;  %v19852_v4 = vshrl.u32 %v18336_v58, 16  ;;  %v19853_v21 = vshll.u32 %v18336_v58, 16  ;;  %v13500_v44 = vld [vmem:[%s15077_s12 + $0x604] ss:$16 sps:$4 sm:$0xff]   ;;  %8949 = vmatpush1.bf16.msra.mxu0 %v13495_v37 }
 0x49c   : > { %v4860_v52 = vrot.slane %v19851_v34, 2  ;;  %v18608_v26 = vcombine.low %v4843_v46, %v4852_v9  ;;  %v19854_v60 = vshrl.u32 %v18283_v40, 16  ;;  %v19855_v0 = vshll.u32 %v18283_v40, 16  ;;  %v13503_v58 = vld [vmem:[%s15077_s12 + $0x60c] ss:$16 sps:$4 sm:$0xff]   ;;  %8407 = vmatprep.subr.bf16.mxu1 %v13500_v44 }
 0x49d   : > { %v4868_v12 = vrot.slane %v19852_v4, 1  ;;  %v4869_v54 = vrot.slane %v19853_v21, 2  ;;  %v19856_v16 = vshrl.u32 %v18339_v23, 16  ;;  %v18618_v39 = vcombine.low %v4864_v59, %v4873_v31  ;;  %8991 = vmatprep.subr.bf16.mxu0 %v13503_v58  ;;  %8367 = vmatmul.mubr.bf16.vlgmr.msra.gmra.mrb[48].mxu1 %v18346_v25 }
 0x49e   : > { %v4880_v11 = vrot.slane %v19854_v60, 1  ;;  %v4881_v63 = vrot.slane %v19855_v0, 2  ;;  %v4861_v24 = vor.u32 %v4860_v52, %v4859_v7  ;;  %v19857_v9 = vshll.u32 %v18339_v23, 16  ;;  %v13498_v52 = vld [vmem:[%s15077_s12 + $0x600] ss:$16 sps:$4 sm:$0xff]   ;;  %8951 = vmatmul.mubr.bf16.vlgmr.msra.gmra.mrb[96].mxu0 %v18346_v25 }
 0x49f   : > { %v4889_v62 = vrot.slane %v19856_v16, 1  ;;  %v4870_v20 = vor.u32 %v4869_v54, %v4868_v12  ;;  %v11911_v46 = vcombine.low %v4708_v32, %v4729_v28  ;;  %v19858_v49 = vshrl.u32 %v18380_v36, 16  ;;  %v13509_v0 = vld [vmem:[%s15077_s12 + $0x62c] ss:$16 sps:$4 sm:$0xff]   ;;  %8408 = vmatpush1.bf16.msra.mxu1 %v13498_v52  ;;  %v13507_v25 = vld [vmem:[%s15077_s12 + $0x628] ss:$16 sps:$4 sm:$0xff]  }
 0x4a0   : > { %v4890_v18 = vrot.slane %v19857_v9, 2  ;;  %v4882_v61 = vor.u32 %v4881_v63, %v4880_v11  ;;  %v19859_v48 = vshll.u32 %v18380_v36, 16  ;;  %v19860_v23 = vshrl.u32 %v18390_v3, 16  ;;  %v13501_v36 = vld [vmem:[%s15077_s12 + $0x608] ss:$16 sps:$4 sm:$0xff]  }
 0x4a1   : > { %v18622_v40 = vcombine.low %v4861_v24, %v4870_v20  ;;  %v4877_v55 = vrot.slane %v19858_v49, 1  ;;  %v19861_v32 = vshll.u32 %v18390_v3, 16  ;;  %v19862_v59 = vshrl.u32 %v18291_v35, 16  ;;  %v13506_v11 = vld [vmem:[%s15077_s12 + $0x624] ss:$16 sps:$4 sm:$0xff]   ;;  %8376 = vmatprep.mubr.bf16.mxu1 %v11911_v46  ;;  %8960 = vmatprep.mubr.bf16.mxu0 %v11911_v46 }
 0x4a2   : > { %v4891_v2 = vor.u32 %v4890_v18, %v4889_v62  ;;  %v4878_v34 = vrot.slane %v19859_v48, 2  ;;  %v4886_v7 = vrot.slane %v19860_v23, 1  ;;  %v19863_v4 = vshll.u32 %v18291_v35, 16  ;;  %8992 = vmatpush1.bf16.msra.mxu0 %v13501_v36  ;;  %v13512_v49 = vld [vmem:[%s15077_s12 + $0x644] ss:$16 sps:$4 sm:$0xff]   ;;  %8409 = vmatprep.subr.bf16.mxu1 %v13506_v11 }
 0x4a3   : > { %v4887_v28 = vrot.slane %v19861_v32, 2  ;;  %v4898_v31 = vrot.slane %v19862_v59, 1  ;;  %v19864_v54 = vshrl.u32 %v18343_v29, 16  ;;  %v19865_v60 = vshll.u32 %v18343_v29, 16  ;;  %8993 = vmatprep.subr.bf16.mxu0 %v13509_v0  ;;  %v13510_v52 = vld [vmem:[%s15077_s12 + $0x640] ss:$16 sps:$4 sm:$0xff]  }
 0x4a4   : > { %v4899_v12 = vrot.slane %v19863_v4, 2  ;;  %v18638_v21 = vcombine.low %v4882_v61, %v4891_v2  ;;  %v4879_v27 = vor.u32 %v4878_v34, %v4877_v55  ;;  %v19866_v35 = vshrl.u32 %v18420_v38, 16  ;;  %v13504_v61 = vld [vmem:[%s15077_s12 + $0x620] ss:$16 sps:$4 sm:$0xff]   ;;  %v13513_v46 = vld [vmem:[%s15077_s12 + $0x648] ss:$16 sps:$4 sm:$0xff]  }
 0x4a5   : > { %v4907_v37 = vrot.slane %v19864_v54, 1  ;;  %v4908_v3 = vrot.slane %v19865_v60, 2  ;;  %v4888_v63 = vor.u32 %v4887_v28, %v4886_v7  ;;  %v19867_v44 = vshll.u32 %v18420_v38, 16  ;;  %8410 = vmatpush1.bf16.msra.mxu1 %v13504_v61  ;;  %v13518_v23 = vld [vmem:[%s15077_s12 + $0x664] ss:$16 sps:$4 sm:$0xff]  }
 0x4a6   : > { %v4900_v16 = vor.u32 %v4899_v12, %v4898_v31  ;;  %v4895_v62 = vrot.slane %v19866_v35, 1  ;;  %v19868_v29 = vshrl.u32 %v18424_v50, 16  ;;  %v19869_v9 = vshll.u32 %v18424_v50, 16  ;;  %v13515_v50 = vld [vmem:[%s15077_s12 + $0x64c] ss:$16 sps:$4 sm:$0xff]   ;;  %8994 = vmatpush1.bf16.msra.mxu0 %v13507_v25  ;;  %8411 = vmatprep.subr.bf16.mxu1 %v13512_v49 }
 0x4a7   : > { %v4896_v58 = vrot.slane %v19867_v44, 2  ;;  %v4909_v24 = vor.u32 %v4908_v3, %v4907_v37  ;;  %v18657_v2 = vcombine.low %v4879_v27, %v4888_v63  ;;  %8995 = vmatprep.subr.bf16.mxu0 %v13515_v50  ;;  %v13521_v7 = vld [vmem:[%s15077_s12 + $0x66c] ss:$16 sps:$4 sm:$0xff]   ;;  %8377 = vmatmul.mubr.bf16.gmra.mrb[52].mxu1 %v18402_v57  ;;  %v13516_v32 = vld [vmem:[%s15077_s12 + $0x660] ss:$16 sps:$4 sm:$0xff]  }
 0x4a8   : > { %v4904_v20 = vrot.slane %v19868_v29, 1  ;;  %v4905_v18 = vrot.slane %v19869_v9, 2  ;;  %8961 = vmatmul.mubr.bf16.gmra.mrb[100].mxu0 %v18402_v57  ;;  %8386 = vmatprep.mubr.bf16.mxu1 %v18414_v22  ;;  %v13519_v28 = vld [vmem:[%s15077_s12 + $0x668] ss:$16 sps:$4 sm:$0xff]   ;;  %v13524_v59 = vld [vmem:[%s15077_s12 + $0x684] ss:$16 sps:$4 sm:$0xff]  }
 0x4a9   : > { %v4897_v38 = vor.u32 %v4896_v58, %v4895_v62  ;;  %v18661_v55 = vcombine.low %v4900_v16, %v4909_v24  ;;  %8412 = vmatpush1.bf16.msra.mxu1 %v13510_v52  ;;  %8970 = vmatprep.mubr.bf16.mxu0 %v18414_v22  ;;  %v13527_v31 = vld [vmem:[%s15077_s12 + $0x68c] ss:$16 sps:$4 sm:$0xff]   ;;  %v13522_v4 = vld [vmem:[%s15077_s12 + $0x680] ss:$16 sps:$4 sm:$0xff]   ;;  %v13525_v57 = vld [vmem:[%s15077_s12 + $0x688] ss:$16 sps:$4 sm:$0xff]  }
 0x4aa   : > { %v4906_v48 = vor.u32 %v4905_v18, %v4904_v20  ;;  %8996 = vmatpush1.bf16.msra.mxu0 %v13513_v46  ;;  %8413 = vmatprep.subr.bf16.mxu1 %v13518_v23  ;;  %v13530_v12 = vld [vmem:[%s15077_s12 + $0x6a4] ss:$16 sps:$4 sm:$0xff]   ;;  %v13533_v36 = vld [vmem:[%s15077_s12 + $0x6ac] ss:$16 sps:$4 sm:$0xff]   ;;  %v13528_v22 = vld [vmem:[%s15077_s12 + $0x6a0] ss:$16 sps:$4 sm:$0xff]  }
 0x4ab   : > { %8997 = vmatprep.subr.bf16.mxu0 %v13521_v7  ;;  %v13531_v27 = vld [vmem:[%s15077_s12 + $0x6a8] ss:$16 sps:$4 sm:$0xff]   ;;  %v13536_v54 = vld [vmem:[%s15077_s12 + $0x6c4] ss:$16 sps:$4 sm:$0xff]   ;;  %v13539_v37 = vld [vmem:[%s15077_s12 + $0x6cc] ss:$16 sps:$4 sm:$0xff]  }
 0x4ac   : > { %v18664_v34 = vcombine.low %v4897_v38, %v4906_v48  ;;  %v13534_v60 = vld [vmem:[%s15077_s12 + $0x6c0] ss:$16 sps:$4 sm:$0xff]   ;;  %v13542_v3 = vld [vmem:[%s15077_s12 + $0x6e4] ss:$16 sps:$4 sm:$0xff]   ;;  %v13545_v11 = vld [vmem:[%s15077_s12 + $0x6ec] ss:$16 sps:$4 sm:$0xff]  }
 0x4ad   : > { %8414 = vmatpush1.bf16.msra.mxu1 %v13516_v32  ;;  %v13543_v0 = vld [vmem:[%s15077_s12 + $0x6e8] ss:$16 sps:$4 sm:$0xff]   ;;  %v13548_v63 = vld [vmem:[%s15077_s12 + $0x704] ss:$16 sps:$4 sm:$0xff]   ;;  %v13551_v16 = vld [vmem:[%s15077_s12 + $0x70c] ss:$16 sps:$4 sm:$0xff]  }
 0x4ae   : > { %8998 = vmatpush1.bf16.msra.mxu0 %v13519_v28  ;;  %8415 = vmatprep.subr.bf16.mxu1 %v13524_v59  ;;  %v13549_v35 = vld [vmem:[%s15077_s12 + $0x708] ss:$16 sps:$4 sm:$0xff]   ;;  %v13554_v62 = vld [vmem:[%s15077_s12 + $0x724] ss:$16 sps:$4 sm:$0xff]   ;;  %v13557_v44 = vld [vmem:[%s15077_s12 + $0x72c] ss:$16 sps:$4 sm:$0xff]  }
 0x4af   : > { %8999 = vmatprep.subr.bf16.mxu0 %v13527_v31  ;;  %8387 = vmatmul.mubr.bf16.gmra.mrb[56].mxu1 %v18448_v30  ;;  %v13555_v58 = vld [vmem:[%s15077_s12 + $0x728] ss:$16 sps:$4 sm:$0xff]   ;;  %v13560_v24 = vld [vmem:[%s15077_s12 + $0x744] ss:$16 sps:$4 sm:$0xff]   ;;  %v13563_v29 = vld [vmem:[%s15077_s12 + $0x74c] ss:$16 sps:$4 sm:$0xff]  }
 0x4b0   : > { %8971 = vmatmul.mubr.bf16.gmra.mrb[104].mxu0 %v18448_v30  ;;  %8396 = vmatprep.mubr.bf16.mxu1 %v18455_v43  ;;  %v13537_v30 = vld [vmem:[%s15077_s12 + $0x6c8] ss:$16 sps:$4 sm:$0xff]   ;;  %v13558_v20 = vld [vmem:[%s15077_s12 + $0x740] ss:$16 sps:$4 sm:$0xff]   ;;  %v13566_v18 = vld [vmem:[%s15077_s12 + $0x764] ss:$16 sps:$4 sm:$0xff]  }
 0x4b1   : > { %8416 = vmatpush1.bf16.msra.mxu1 %v13522_v4  ;;  %8980 = vmatprep.mubr.bf16.mxu0 %v18455_v43  ;;  %v13540_v43 = vld [vmem:[%s15077_s12 + $0x6e0] ss:$16 sps:$4 sm:$0xff]   ;;  %v13561_v9 = vld [vmem:[%s15077_s12 + $0x748] ss:$16 sps:$4 sm:$0xff]   ;;  %v13569_v61 = vld [vmem:[%s15077_s12 + $0x76c] ss:$16 sps:$4 sm:$0xff]  }
 0x4b2   : > { %9000 = vmatpush1.bf16.msra.mxu0 %v13525_v57  ;;  %8417 = vmatprep.subr.bf16.mxu1 %v13530_v12  ;;  %v13564_v38 = vld [vmem:[%s15077_s12 + $0x760] ss:$16 sps:$4 sm:$0xff]   ;;  %v13567_v25 = vld [vmem:[%s15077_s12 + $0x768] ss:$16 sps:$4 sm:$0xff]   ;;  %v13572_v49 = vld [vmem:[%s15077_s12 + $0x784] ss:$16 sps:$4 sm:$0xff]  }
 0x4b3   : > { %9001 = vmatprep.subr.bf16.mxu0 %v13533_v36  ;;  %v13575_v48 = vld [vmem:[%s15077_s12 + $0x78c] ss:$16 sps:$4 sm:$0xff]   ;;  %v13570_v50 = vld [vmem:[%s15077_s12 + $0x780] ss:$16 sps:$4 sm:$0xff]   ;;  %v13573_v52 = vld [vmem:[%s15077_s12 + $0x788] ss:$16 sps:$4 sm:$0xff]  }
 0x4b4   : > { %v13578_v46 = vld [vmem:[%s15077_s12 + $0x7a4] ss:$16 sps:$4 sm:$0xff]   ;;  %v13581_v23 = vld [vmem:[%s15077_s12 + $0x7ac] ss:$16 sps:$4 sm:$0xff]   ;;  %v13576_v7 = vld [vmem:[%s15077_s12 + $0x7a0] ss:$16 sps:$4 sm:$0xff]  }
 0x4b5   : > { %8418 = vmatpush1.bf16.msra.mxu1 %v13528_v22  ;;  %v13579_v32 = vld [vmem:[%s15077_s12 + $0x7a8] ss:$16 sps:$4 sm:$0xff]   ;;  %v13584_v28 = vld [vmem:[%s15077_s12 + $0x7c4] ss:$16 sps:$4 sm:$0xff]   ;;  %v13587_v59 = vld [vmem:[%s15077_s12 + $0x7cc] ss:$16 sps:$4 sm:$0xff]  }
 0x4b6   : > { %9002 = vmatpush1.bf16.msra.mxu0 %v13531_v27  ;;  %8419 = vmatprep.subr.bf16.mxu1 %v13536_v54  ;;  %v13582_v31 = vld [vmem:[%s15077_s12 + $0x7c0] ss:$16 sps:$4 sm:$0xff]   ;;  %v13585_v4 = vld [vmem:[%s15077_s12 + $0x7c8] ss:$16 sps:$4 sm:$0xff]   ;;  %v13590_v57 = vld [vmem:[%s15077_s12 + $0x7e4] ss:$16 sps:$4 sm:$0xff]  }
 0x4b7   : > { %9003 = vmatprep.subr.bf16.mxu0 %v13539_v37  ;;  %8397 = vmatmul.mubr.bf16.gmra.mrb[60].mxu1 %v18483_v13  ;;  %v13593_v12 = vld [vmem:[%s15077_s12 + $0x7ec] ss:$16 sps:$4 sm:$0xff]   ;;  %v13588_v36 = vld [vmem:[%s15077_s12 + $0x7e0] ss:$16 sps:$4 sm:$0xff]   ;;  %v13591_v22 = vld [vmem:[%s15077_s12 + $0x7e8] ss:$16 sps:$4 sm:$0xff]  }
 0x4b8   : > { %8981 = vmatmul.mubr.bf16.gmra.mrb[108].mxu0 %v18483_v13  ;;  %8439 = vmatprep.mubr.bf16.mxu1 %v18459_v1  ;;  %v13546_v13 = vld [vmem:[%s15077_s12 + $0x700] ss:$16 sps:$4 sm:$0xff]   ;;  %v13596_v27 = vld [vmem:[%s15077_s12 + $0x804] ss:$16 sps:$4 sm:$0xff]   ;;  %v13599_v54 = vld [vmem:[%s15077_s12 + $0x80c] ss:$16 sps:$4 sm:$0xff]  }
 0x4b9   : > { %8420 = vmatpush1.bf16.msra.mxu1 %v13534_v60  ;;  %9023 = vmatprep.mubr.bf16.mxu0 %v18459_v1  ;;  %v13552_v1 = vld [vmem:[%s15077_s12 + $0x720] ss:$16 sps:$4 sm:$0xff]   ;;  %v13597_v60 = vld [vmem:[%s15077_s12 + $0x808] ss:$16 sps:$4 sm:$0xff]  }
 0x4ba   : > { %9004 = vmatpush1.bf16.msra.mxu0 %v13537_v30  ;;  %8421 = vmatprep.subr.bf16.mxu1 %v13542_v3  ;;  %v13594_v37 = vld [vmem:[%s15077_s12 + $0x800] ss:$16 sps:$4 sm:$0xff]   ;;  %v13602_v30 = vld [vmem:[%s15077_s12 + $0x824] ss:$16 sps:$4 sm:$0xff]   ;;  %v13605_v3 = vld [vmem:[%s15077_s12 + $0x82c] ss:$16 sps:$4 sm:$0xff]  }
 0x4bb   : > { %9005 = vmatprep.subr.bf16.mxu0 %v13545_v11  ;;  %v13600_v11 = vld [vmem:[%s15077_s12 + $0x820] ss:$16 sps:$4 sm:$0xff]  }
 0x4bd   : > { %8422 = vmatpush1.bf16.msra.mxu1 %v13540_v43  ;;  %v13603_v43 = vld [vmem:[%s15077_s12 + $0x828] ss:$16 sps:$4 sm:$0xff]  }
 0x4be   : > { %9006 = vmatpush1.bf16.msra.mxu0 %v13543_v0  ;;  %8423 = vmatprep.subr.bf16.mxu1 %v13548_v63  ;;  %v13608_v0 = vld [vmem:[%s15077_s12 + $0x844] ss:$16 sps:$4 sm:$0xff]   ;;  %v13611_v63 = vld [vmem:[%s15077_s12 + $0x84c] ss:$16 sps:$4 sm:$0xff]  }
 0x4bf   : > { %9007 = vmatprep.subr.bf16.mxu0 %v13551_v16  ;;  %v13606_v16 = vld [vmem:[%s15077_s12 + $0x840] ss:$16 sps:$4 sm:$0xff]  }
 0x4c1   : > { %8424 = vmatpush1.bf16.msra.mxu1 %v13546_v13  ;;  %v13614_v13 = vld [vmem:[%s15077_s12 + $0x864] ss:$16 sps:$4 sm:$0xff]  }
 0x4c2   : > { %9008 = vmatpush1.bf16.msra.mxu0 %v13549_v35  ;;  %8425 = vmatprep.subr.bf16.mxu1 %v13554_v62  ;;  %v13612_v35 = vld [vmem:[%s15077_s12 + $0x860] ss:$16 sps:$4 sm:$0xff]   ;;  %v13615_v62 = vld [vmem:[%s15077_s12 + $0x868] ss:$16 sps:$4 sm:$0xff]  }
 0x4c3   : > { %9009 = vmatprep.subr.bf16.mxu0 %v13557_v44  ;;  %v13620_v44 = vld [vmem:[%s15077_s12 + $0x884] ss:$16 sps:$4 sm:$0xff]  }
 0x4c5   : > { %8426 = vmatpush1.bf16.msra.mxu1 %v13552_v1  ;;  %v13623_v1 = vld [vmem:[%s15077_s12 + $0x88c] ss:$16 sps:$4 sm:$0xff]  }
 0x4c6   : > { %9010 = vmatpush1.bf16.msra.mxu0 %v13555_v58  ;;  %8427 = vmatprep.subr.bf16.mxu1 %v13560_v24  ;;  %v13618_v58 = vld [vmem:[%s15077_s12 + $0x880] ss:$16 sps:$4 sm:$0xff]   ;;  %v13626_v24 = vld [vmem:[%s15077_s12 + $0x8a4] ss:$16 sps:$4 sm:$0xff]  }
 0x4c7   : > { %9011 = vmatprep.subr.bf16.mxu0 %v13563_v29  ;;  %v13624_v29 = vld [vmem:[%s15077_s12 + $0x8a0] ss:$16 sps:$4 sm:$0xff]  }
 0x4c9   : > { %8428 = vmatpush1.bf16.msra.mxu1 %v13558_v20  ;;  %v13627_v20 = vld [vmem:[%s15077_s12 + $0x8a8] ss:$16 sps:$4 sm:$0xff]  }
 0x4ca   : > { %9012 = vmatpush1.bf16.msra.mxu0 %v13561_v9  ;;  %8429 = vmatprep.subr.bf16.mxu1 %v13566_v18  ;;  %v13632_v9 = vld [vmem:[%s15077_s12 + $0x8c4] ss:$16 sps:$4 sm:$0xff]   ;;  %v13635_v18 = vld [vmem:[%s15077_s12 + $0x8cc] ss:$16 sps:$4 sm:$0xff]  }
 0x4cb   : > { %9013 = vmatprep.subr.bf16.mxu0 %v13569_v61  ;;  %v13630_v61 = vld [vmem:[%s15077_s12 + $0x8c0] ss:$16 sps:$4 sm:$0xff]  }
 0x4cd   : > { %8430 = vmatpush1.bf16.msra.mxu1 %v13564_v38  ;;  %v13638_v38 = vld [vmem:[%s15077_s12 + $0x8e4] ss:$16 sps:$4 sm:$0xff]  }
 0x4ce   : > { %9014 = vmatpush1.bf16.msra.mxu0 %v13567_v25  ;;  %8431 = vmatprep.subr.bf16.mxu1 %v13572_v49  ;;  %v13636_v25 = vld [vmem:[%s15077_s12 + $0x8e0] ss:$16 sps:$4 sm:$0xff]   ;;  %v13639_v49 = vld [vmem:[%s15077_s12 + $0x8e8] ss:$16 sps:$4 sm:$0xff]  }
 0x4cf   : > { %9015 = vmatprep.subr.bf16.mxu0 %v13575_v48  ;;  %v13644_v48 = vld [vmem:[%s15077_s12 + $0x904] ss:$16 sps:$4 sm:$0xff]  }
 0x4d1   : > { %8432 = vmatpush1.bf16.msra.mxu1 %v13570_v50  ;;  %v13647_v50 = vld [vmem:[%s15077_s12 + $0x90c] ss:$16 sps:$4 sm:$0xff]  }
 0x4d2   : > { %9016 = vmatpush1.bf16.msra.mxu0 %v13573_v52  ;;  %8433 = vmatprep.subr.bf16.mxu1 %v13578_v46  ;;  %v13645_v52 = vld [vmem:[%s15077_s12 + $0x908] ss:$16 sps:$4 sm:$0xff]   ;;  %v13650_v46 = vld [vmem:[%s15077_s12 + $0x924] ss:$16 sps:$4 sm:$0xff]  }
 0x4d3   : > { %9017 = vmatprep.subr.bf16.mxu0 %v13581_v23  ;;  %v13648_v23 = vld [vmem:[%s15077_s12 + $0x920] ss:$16 sps:$4 sm:$0xff]  }
 0x4d5   : > { %8434 = vmatpush1.bf16.msra.mxu1 %v13576_v7  ;;  %v13651_v7 = vld [vmem:[%s15077_s12 + $0x928] ss:$16 sps:$4 sm:$0xff]  }
 0x4d6   : > { %9018 = vmatpush1.bf16.msra.mxu0 %v13579_v32  ;;  %8435 = vmatprep.subr.bf16.mxu1 %v13584_v28  ;;  %v13656_v32 = vld [vmem:[%s15077_s12 + $0x944] ss:$16 sps:$4 sm:$0xff]   ;;  %v13659_v28 = vld [vmem:[%s15077_s12 + $0x94c] ss:$16 sps:$4 sm:$0xff]  }
 0x4d7   : > { %9019 = vmatprep.subr.bf16.mxu0 %v13587_v59  ;;  %v13654_v59 = vld [vmem:[%s15077_s12 + $0x940] ss:$16 sps:$4 sm:$0xff]  }
 0x4d9   : > { %8436 = vmatpush1.bf16.msra.mxu1 %v13582_v31  ;;  %v13657_v31 = vld [vmem:[%s15077_s12 + $0x948] ss:$16 sps:$4 sm:$0xff]  }
 0x4da   : > { %9020 = vmatpush1.bf16.msra.mxu0 %v13585_v4  ;;  %8437 = vmatprep.subr.bf16.mxu1 %v13590_v57  ;;  %v13662_v4 = vld [vmem:[%s15077_s12 + $0x964] ss:$16 sps:$4 sm:$0xff]   ;;  %v13665_v57 = vld [vmem:[%s15077_s12 + $0x96c] ss:$16 sps:$4 sm:$0xff]  }
 0x4db   : > { %9021 = vmatprep.subr.bf16.mxu0 %v13593_v12  ;;  %v13660_v12 = vld [vmem:[%s15077_s12 + $0x960] ss:$16 sps:$4 sm:$0xff]  }
 0x4dd   : > { %8438 = vmatpush1.bf16.msra.mxu1 %v13588_v36  ;;  %v13663_v36 = vld [vmem:[%s15077_s12 + $0x968] ss:$16 sps:$4 sm:$0xff]  }
 0x4de   : > { %9022 = vmatpush1.bf16.msra.mxu0 %v13591_v22  ;;  %8480 = vmatprep.subr.bf16.mxu1 %v13596_v27  ;;  %v13668_v22 = vld [vmem:[%s15077_s12 + $0x984] ss:$16 sps:$4 sm:$0xff]   ;;  %v13671_v27 = vld [vmem:[%s15077_s12 + $0x98c] ss:$16 sps:$4 sm:$0xff]  }
 0x4df   : > { %9064 = vmatprep.subr.bf16.mxu0 %v13599_v54  ;;  %v13666_v54 = vld [vmem:[%s15077_s12 + $0x980] ss:$16 sps:$4 sm:$0xff]  }
 0x4e0   : > { %8440 = vmatmul.mubr.bf16.vlgmr.msra.gmra.mrb[48].mxu1 %v18466_v41 }
 0x4e1   : > { %9024 = vmatmul.mubr.bf16.vlgmr.msra.gmra.mrb[96].mxu0 %v18466_v41  ;;  %8449 = vmatprep.mubr.bf16.mxu1 %v18476_v45  ;;  %v13609_v41 = vld [vmem:[%s15077_s12 + $0x848] ss:$16 sps:$4 sm:$0xff]  }
 0x4e2   : > { %8481 = vmatpush1.bf16.msra.mxu1 %v13594_v37  ;;  %9033 = vmatprep.mubr.bf16.mxu0 %v18476_v45  ;;  %v13617_v45 = vld [vmem:[%s15077_s12 + $0x86c] ss:$16 sps:$4 sm:$0xff]   ;;  %v13669_v37 = vld [vmem:[%s15077_s12 + $0x988] ss:$16 sps:$4 sm:$0xff]  }
 0x4e3   : > { %9065 = vmatpush1.bf16.msra.mxu0 %v13597_v60  ;;  %8482 = vmatprep.subr.bf16.mxu1 %v13602_v30  ;;  %v13674_v60 = vld [vmem:[%s15077_s12 + $0x9a4] ss:$16 sps:$4 sm:$0xff]   ;;  %v13677_v30 = vld [vmem:[%s15077_s12 + $0x9ac] ss:$16 sps:$4 sm:$0xff]  }
 0x4e4   : > { %9066 = vmatprep.subr.bf16.mxu0 %v13605_v3  ;;  %v13672_v3 = vld [vmem:[%s15077_s12 + $0x9a0] ss:$16 sps:$4 sm:$0xff]  }
 0x4e6   : > { %8483 = vmatpush1.bf16.msra.mxu1 %v13600_v11  ;;  %v13675_v11 = vld [vmem:[%s15077_s12 + $0x9a8] ss:$16 sps:$4 sm:$0xff]  }
 0x4e7   : > { %9067 = vmatpush1.bf16.msra.mxu0 %v13603_v43  ;;  %8484 = vmatprep.subr.bf16.mxu1 %v13608_v0  ;;  %v13680_v43 = vld [vmem:[%s15077_s12 + $0x9c4] ss:$16 sps:$4 sm:$0xff]   ;;  %v13683_v0 = vld [vmem:[%s15077_s12 + $0x9cc] ss:$16 sps:$4 sm:$0xff]  }
 0x4e8   : > { %8450 = vmatmul.mubr.bf16.gmra.mrb[52].mxu1 %v18485_v47  ;;  %9068 = vmatprep.subr.bf16.mxu0 %v13611_v63  ;;  %v13678_v63 = vld [vmem:[%s15077_s12 + $0x9c0] ss:$16 sps:$4 sm:$0xff]  }
 0x4e9   : > { %9034 = vmatmul.mubr.bf16.gmra.mrb[100].mxu0 %v18485_v47  ;;  %8459 = vmatprep.mubr.bf16.mxu1 %v18487_v6  ;;  %v13621_v47 = vld [vmem:[%s15077_s12 + $0x888] ss:$16 sps:$4 sm:$0xff]  }
 0x4ea   : > { %8485 = vmatpush1.bf16.msra.mxu1 %v13606_v16  ;;  %9043 = vmatprep.mubr.bf16.mxu0 %v18487_v6  ;;  %v13629_v6 = vld [vmem:[%s15077_s12 + $0x8ac] ss:$16 sps:$4 sm:$0xff]   ;;  %v13681_v16 = vld [vmem:[%s15077_s12 + $0x9c8] ss:$16 sps:$4 sm:$0xff]  }
 0x4eb   : > { %9069 = vmatpush1.bf16.msra.mxu0 %v13609_v41  ;;  %8486 = vmatprep.subr.bf16.mxu1 %v13614_v13  ;;  %v13686_v41 = vld [vmem:[%s15077_s12 + $0x9e4] ss:$16 sps:$4 sm:$0xff]   ;;  %v13689_v13 = vld [vmem:[%s15077_s12 + $0x9ec] ss:$16 sps:$4 sm:$0xff]  }
 0x4ec   : > { %9070 = vmatprep.subr.bf16.mxu0 %v13617_v45  ;;  %v13684_v45 = vld [vmem:[%s15077_s12 + $0x9e0] ss:$16 sps:$4 sm:$0xff]  }
 0x4ee   : > { %8487 = vmatpush1.bf16.msra.mxu1 %v13612_v35  ;;  %v13687_v35 = vld [vmem:[%s15077_s12 + $0x9e8] ss:$16 sps:$4 sm:$0xff]  }
 0x4ef   : > { %9071 = vmatpush1.bf16.msra.mxu0 %v13615_v62  ;;  %8488 = vmatprep.subr.bf16.mxu1 %v13620_v44  ;;  %v13692_v62 = vld [vmem:[%s15077_s12 + $0xa04] ss:$16 sps:$4 sm:$0xff]   ;;  %v13695_v44 = vld [vmem:[%s15077_s12 + $0xa0c] ss:$16 sps:$4 sm:$0xff]  }
 0x4f0   : > { %8460 = vmatmul.mubr.bf16.gmra.mrb[56].mxu1 %v18491_v33  ;;  %9072 = vmatprep.subr.bf16.mxu0 %v13623_v1  ;;  %v13690_v1 = vld [vmem:[%s15077_s12 + $0xa00] ss:$16 sps:$4 sm:$0xff]  }
 0x4f1   : > { %9044 = vmatmul.mubr.bf16.gmra.mrb[104].mxu0 %v18491_v33  ;;  %8469 = vmatprep.mubr.bf16.mxu1 %v18498_v8  ;;  %v13633_v33 = vld [vmem:[%s15077_s12 + $0x8c8] ss:$16 sps:$4 sm:$0xff]  }
 0x4f2   : > { %8489 = vmatpush1.bf16.msra.mxu1 %v13618_v58  ;;  %9053 = vmatprep.mubr.bf16.mxu0 %v18498_v8  ;;  %v13641_v8 = vld [vmem:[%s15077_s12 + $0x8ec] ss:$16 sps:$4 sm:$0xff]   ;;  %v13693_v58 = vld [vmem:[%s15077_s12 + $0xa08] ss:$16 sps:$4 sm:$0xff]  }
 0x4f3   : > { %9073 = vmatpush1.bf16.msra.mxu0 %v13621_v47  ;;  %8490 = vmatprep.subr.bf16.mxu1 %v13626_v24  ;;  %v13698_v47 = vld [vmem:[%s15077_s12 + $0xa24] ss:$16 sps:$4 sm:$0xff]   ;;  %v13701_v24 = vld [vmem:[%s15077_s12 + $0xa2c] ss:$16 sps:$4 sm:$0xff]  }
 0x4f4   : > { %9074 = vmatprep.subr.bf16.mxu0 %v13629_v6  ;;  %v13696_v6 = vld [vmem:[%s15077_s12 + $0xa20] ss:$16 sps:$4 sm:$0xff]  }
 0x4f6   : > { %8491 = vmatpush1.bf16.msra.mxu1 %v13624_v29  ;;  %v13699_v29 = vld [vmem:[%s15077_s12 + $0xa28] ss:$16 sps:$4 sm:$0xff]  }
 0x4f7   : > { %9075 = vmatpush1.bf16.msra.mxu0 %v13627_v20  ;;  %8492 = vmatprep.subr.bf16.mxu1 %v13632_v9  ;;  %v13704_v20 = vld [vmem:[%s15077_s12 + $0xa44] ss:$16 sps:$4 sm:$0xff]   ;;  %v13707_v9 = vld [vmem:[%s15077_s12 + $0xa4c] ss:$16 sps:$4 sm:$0xff]  }
 0x4f8   : > { %8470 = vmatmul.mubr.bf16.gmra.mrb[60].mxu1 %v18506_v17  ;;  %9076 = vmatprep.subr.bf16.mxu0 %v13635_v18  ;;  %v13702_v18 = vld [vmem:[%s15077_s12 + $0xa40] ss:$16 sps:$4 sm:$0xff]  }
 0x4f9   : > { %9054 = vmatmul.mubr.bf16.gmra.mrb[108].mxu0 %v18506_v17  ;;  %8512 = vmatprep.mubr.bf16.mxu1 %v18522_v51  ;;  %v13642_v17 = vld [vmem:[%s15077_s12 + $0x900] ss:$16 sps:$4 sm:$0xff]  }
 0x4fa   : > { %8493 = vmatpush1.bf16.msra.mxu1 %v13630_v61  ;;  %9096 = vmatprep.mubr.bf16.mxu0 %v18522_v51  ;;  %v13653_v51 = vld [vmem:[%s15077_s12 + $0x92c] ss:$16 sps:$4 sm:$0xff]   ;;  %v13710_v61 = vld [vmem:[%s15077_s12 + $0xa64] ss:$16 sps:$4 sm:$0xff]  }
 0x4fb   : > { %9077 = vmatpush1.bf16.msra.mxu0 %v13633_v33  ;;  %8494 = vmatprep.subr.bf16.mxu1 %v13638_v38  ;;  %v13708_v33 = vld [vmem:[%s15077_s12 + $0xa60] ss:$16 sps:$4 sm:$0xff]   ;;  %v13711_v38 = vld [vmem:[%s15077_s12 + $0xa68] ss:$16 sps:$4 sm:$0xff]  }
 0x4fc   : > { %9078 = vmatprep.subr.bf16.mxu0 %v13641_v8  ;;  %v13716_v8 = vld [vmem:[%s15077_s12 + $0xa84] ss:$16 sps:$4 sm:$0xff]  }
 0x4fe   : > { %8495 = vmatpush1.bf16.msra.mxu1 %v13636_v25  ;;  %v13719_v25 = vld [vmem:[%s15077_s12 + $0xa8c] ss:$16 sps:$4 sm:$0xff]  }
 0x4ff   : > { %9079 = vmatpush1.bf16.msra.mxu0 %v13639_v49  ;;  %8496 = vmatprep.subr.bf16.mxu1 %v13644_v48  ;;  %v13714_v49 = vld [vmem:[%s15077_s12 + $0xa80] ss:$16 sps:$4 sm:$0xff]   ;;  %v13722_v48 = vld [vmem:[%s15077_s12 + $0xaa4] ss:$16 sps:$4 sm:$0xff]  }
 0x500   : > { %9080 = vmatprep.subr.bf16.mxu0 %v13647_v50  ;;  %v13720_v50 = vld [vmem:[%s15077_s12 + $0xaa0] ss:$16 sps:$4 sm:$0xff]  }
 0x502   : > { %8497 = vmatpush1.bf16.msra.mxu1 %v13642_v17  ;;  %v13723_v17 = vld [vmem:[%s15077_s12 + $0xaa8] ss:$16 sps:$4 sm:$0xff]  }
 0x503   : > { %9081 = vmatpush1.bf16.msra.mxu0 %v13645_v52  ;;  %8498 = vmatprep.subr.bf16.mxu1 %v13650_v46  ;;  %v13728_v52 = vld [vmem:[%s15077_s12 + $0xac4] ss:$16 sps:$4 sm:$0xff]   ;;  %v13731_v46 = vld [vmem:[%s15077_s12 + $0xacc] ss:$16 sps:$4 sm:$0xff]  }
 0x504   : > { %9082 = vmatprep.subr.bf16.mxu0 %v13653_v51  ;;  %v13726_v51 = vld [vmem:[%s15077_s12 + $0xac0] ss:$16 sps:$4 sm:$0xff]  }
 0x506   : > { %8499 = vmatpush1.bf16.msra.mxu1 %v13648_v23  ;;  %v13734_v23 = vld [vmem:[%s15077_s12 + $0xae4] ss:$16 sps:$4 sm:$0xff]  }
 0x507   : > { %9083 = vmatpush1.bf16.msra.mxu0 %v13651_v7  ;;  %8500 = vmatprep.subr.bf16.mxu1 %v13656_v32  ;;  %v13732_v7 = vld [vmem:[%s15077_s12 + $0xae0] ss:$16 sps:$4 sm:$0xff]   ;;  %v13735_v32 = vld [vmem:[%s15077_s12 + $0xae8] ss:$16 sps:$4 sm:$0xff]  }
 0x508   : > { %9084 = vmatprep.subr.bf16.mxu0 %v13659_v28  ;;  %v13740_v28 = vld [vmem:[%s15077_s12 + $0xb04] ss:$16 sps:$4 sm:$0xff]  }
 0x50a   : > { %8501 = vmatpush1.bf16.msra.mxu1 %v13654_v59  ;;  %v13743_v59 = vld [vmem:[%s15077_s12 + $0xb0c] ss:$16 sps:$4 sm:$0xff]  }
 0x50b   : > { %9085 = vmatpush1.bf16.msra.mxu0 %v13657_v31  ;;  %8502 = vmatprep.subr.bf16.mxu1 %v13662_v4  ;;  %v13741_v31 = vld [vmem:[%s15077_s12 + $0xb08] ss:$16 sps:$4 sm:$0xff]   ;;  %v13746_v4 = vld [vmem:[%s15077_s12 + $0xb24] ss:$16 sps:$4 sm:$0xff]  }
 0x50c   : > { %9086 = vmatprep.subr.bf16.mxu0 %v13665_v57  ;;  %v13744_v57 = vld [vmem:[%s15077_s12 + $0xb20] ss:$16 sps:$4 sm:$0xff]  }
 0x50e   : > { %8503 = vmatpush1.bf16.msra.mxu1 %v13660_v12  ;;  %v13747_v12 = vld [vmem:[%s15077_s12 + $0xb28] ss:$16 sps:$4 sm:$0xff]  }
 0x50f   : > { %9087 = vmatpush1.bf16.msra.mxu0 %v13663_v36  ;;  %8504 = vmatprep.subr.bf16.mxu1 %v13668_v22  ;;  %v13752_v36 = vld [vmem:[%s15077_s12 + $0xb44] ss:$16 sps:$4 sm:$0xff]   ;;  %v13755_v22 = vld [vmem:[%s15077_s12 + $0xb4c] ss:$16 sps:$4 sm:$0xff]  }
 0x510   : > { %9088 = vmatprep.subr.bf16.mxu0 %v13671_v27  ;;  %v13750_v27 = vld [vmem:[%s15077_s12 + $0xb40] ss:$16 sps:$4 sm:$0xff]  }
 0x512   : > { %8505 = vmatpush1.bf16.msra.mxu1 %v13666_v54  ;;  %v13753_v54 = vld [vmem:[%s15077_s12 + $0xb48] ss:$16 sps:$4 sm:$0xff]  }
 0x513   : > { %9089 = vmatpush1.bf16.msra.mxu0 %v13669_v37  ;;  %8506 = vmatprep.subr.bf16.mxu1 %v13674_v60  ;;  %v13758_v37 = vld [vmem:[%s15077_s12 + $0xb64] ss:$16 sps:$4 sm:$0xff]   ;;  %v13761_v60 = vld [vmem:[%s15077_s12 + $0xb6c] ss:$16 sps:$4 sm:$0xff]  }
 0x514   : > { %9090 = vmatprep.subr.bf16.mxu0 %v13677_v30  ;;  %v13756_v30 = vld [vmem:[%s15077_s12 + $0xb60] ss:$16 sps:$4 sm:$0xff]  }
 0x516   : > { %8507 = vmatpush1.bf16.msra.mxu1 %v13672_v3  ;;  %v13759_v3 = vld [vmem:[%s15077_s12 + $0xb68] ss:$16 sps:$4 sm:$0xff]  }
 0x517   : > { %9091 = vmatpush1.bf16.msra.mxu0 %v13675_v11  ;;  %8508 = vmatprep.subr.bf16.mxu1 %v13680_v43  ;;  %v13764_v11 = vld [vmem:[%s15077_s12 + $0xb84] ss:$16 sps:$4 sm:$0xff]   ;;  %v13767_v43 = vld [vmem:[%s15077_s12 + $0xb8c] ss:$16 sps:$4 sm:$0xff]  }
 0x518   : > { %9092 = vmatprep.subr.bf16.mxu0 %v13683_v0  ;;  %v13762_v0 = vld [vmem:[%s15077_s12 + $0xb80] ss:$16 sps:$4 sm:$0xff]  }
 0x51a   : > { %8509 = vmatpush1.bf16.msra.mxu1 %v13678_v63  ;;  %v13765_v63 = vld [vmem:[%s15077_s12 + $0xb88] ss:$16 sps:$4 sm:$0xff]  }
 0x51b   : > { %9093 = vmatpush1.bf16.msra.mxu0 %v13681_v16  ;;  %8510 = vmatprep.subr.bf16.mxu1 %v13686_v41  ;;  %v13770_v16 = vld [vmem:[%s15077_s12 + $0xba4] ss:$16 sps:$4 sm:$0xff]   ;;  %v13773_v41 = vld [vmem:[%s15077_s12 + $0xbac] ss:$16 sps:$4 sm:$0xff]  }
 0x51c   : > { %9094 = vmatprep.subr.bf16.mxu0 %v13689_v13  ;;  %v13768_v13 = vld [vmem:[%s15077_s12 + $0xba0] ss:$16 sps:$4 sm:$0xff]  }
 0x51e   : > { %8511 = vmatpush1.bf16.msra.mxu1 %v13684_v45  ;;  %v13771_v45 = vld [vmem:[%s15077_s12 + $0xba8] ss:$16 sps:$4 sm:$0xff]  }
 0x51f   : > { %9095 = vmatpush1.bf16.msra.mxu0 %v13687_v35  ;;  %8553 = vmatprep.subr.bf16.mxu1 %v13692_v62  ;;  %v13776_v35 = vld [vmem:[%s15077_s12 + $0xbc4] ss:$16 sps:$4 sm:$0xff]   ;;  %v13779_v62 = vld [vmem:[%s15077_s12 + $0xbcc] ss:$16 sps:$4 sm:$0xff]  }
 0x520   : > { %9137 = vmatprep.subr.bf16.mxu0 %v13695_v44  ;;  %v13774_v44 = vld [vmem:[%s15077_s12 + $0xbc0] ss:$16 sps:$4 sm:$0xff]  }
 0x521   : > { %8513 = vmatmul.mubr.bf16.vlgmr.msra.gmra.mrb[48].mxu1 %v18524_v56 }
 0x522   : > { %9097 = vmatmul.mubr.bf16.vlgmr.msra.gmra.mrb[96].mxu0 %v18524_v56  ;;  %8522 = vmatprep.mubr.bf16.mxu1 %v18541_v14  ;;  %v13705_v56 = vld [vmem:[%s15077_s12 + $0xa48] ss:$16 sps:$4 sm:$0xff]  }
 0x523   : > { %8554 = vmatpush1.bf16.msra.mxu1 %v13690_v1  ;;  %9106 = vmatprep.mubr.bf16.mxu0 %v18541_v14  ;;  %v13713_v14 = vld [vmem:[%s15077_s12 + $0xa6c] ss:$16 sps:$4 sm:$0xff]   ;;  %v13777_v1 = vld [vmem:[%s15077_s12 + $0xbc8] ss:$16 sps:$4 sm:$0xff]  }
 0x524   : > { %9138 = vmatpush1.bf16.msra.mxu0 %v13693_v58  ;;  %8555 = vmatprep.subr.bf16.mxu1 %v13698_v47  ;;  %v13782_v58 = vld [vmem:[%s15077_s12 + $0xbe4] ss:$16 sps:$4 sm:$0xff]   ;;  %v13785_v47 = vld [vmem:[%s15077_s12 + $0xbec] ss:$16 sps:$4 sm:$0xff]  }
 0x525   : > { %9139 = vmatprep.subr.bf16.mxu0 %v13701_v24  ;;  %v13780_v24 = vld [vmem:[%s15077_s12 + $0xbe0] ss:$16 sps:$4 sm:$0xff]  }
 0x527   : > { %8556 = vmatpush1.bf16.msra.mxu1 %v13696_v6  ;;  %v13783_v6 = vld [vmem:[%s15077_s12 + $0xbe8] ss:$16 sps:$4 sm:$0xff]  }
 0x528   : > { %9140 = vmatpush1.bf16.msra.mxu0 %v13699_v29  ;;  %8557 = vmatprep.subr.bf16.mxu1 %v13704_v20  ;;  %v13788_v29 = vld [vmem:[%s15077_s12 + $0xc04] ss:$16 sps:$4 sm:$0xff]   ;;  %v13791_v20 = vld [vmem:[%s15077_s12 + $0xc0c] ss:$16 sps:$4 sm:$0xff]  }
 0x529   : > { %8523 = vmatmul.mubr.bf16.gmra.mrb[52].mxu1 %v18532_v42  ;;  %9141 = vmatprep.subr.bf16.mxu0 %v13707_v9  ;;  %v13786_v9 = vld [vmem:[%s15077_s12 + $0xc00] ss:$16 sps:$4 sm:$0xff]  }
 0x52a   : > { %9107 = vmatmul.mubr.bf16.gmra.mrb[100].mxu0 %v18532_v42  ;;  %8532 = vmatprep.mubr.bf16.mxu1 %v18564_v15  ;;  %v13717_v42 = vld [vmem:[%s15077_s12 + $0xa88] ss:$16 sps:$4 sm:$0xff]  }
 0x52b   : > { %8558 = vmatpush1.bf16.msra.mxu1 %v13702_v18  ;;  %9116 = vmatprep.mubr.bf16.mxu0 %v18564_v15  ;;  %v13725_v15 = vld [vmem:[%s15077_s12 + $0xaac] ss:$16 sps:$4 sm:$0xff]   ;;  %v13789_v18 = vld [vmem:[%s15077_s12 + $0xc08] ss:$16 sps:$4 sm:$0xff]  }
 0x52c   : > { %9142 = vmatpush1.bf16.msra.mxu0 %v13705_v56  ;;  %8559 = vmatprep.subr.bf16.mxu1 %v13710_v61  ;;  %v13794_v56 = vld [vmem:[%s15077_s12 + $0xc24] ss:$16 sps:$4 sm:$0xff]   ;;  %v13797_v61 = vld [vmem:[%s15077_s12 + $0xc2c] ss:$16 sps:$4 sm:$0xff]  }
 0x52d   : > { %9143 = vmatprep.subr.bf16.mxu0 %v13713_v14  ;;  %v13792_v14 = vld [vmem:[%s15077_s12 + $0xc20] ss:$16 sps:$4 sm:$0xff]  }
 0x52f   : > { %8560 = vmatpush1.bf16.msra.mxu1 %v13708_v33  ;;  %v13795_v33 = vld [vmem:[%s15077_s12 + $0xc28] ss:$16 sps:$4 sm:$0xff]  }
 0x530   : > { %9144 = vmatpush1.bf16.msra.mxu0 %v13711_v38  ;;  %8561 = vmatprep.subr.bf16.mxu1 %v13716_v8  ;;  %v13800_v38 = vld [vmem:[%s15077_s12 + $0xc44] ss:$16 sps:$4 sm:$0xff]   ;;  %v13803_v8 = vld [vmem:[%s15077_s12 + $0xc4c] ss:$16 sps:$4 sm:$0xff]  }
 0x531   : > { %8533 = vmatmul.mubr.bf16.gmra.mrb[56].mxu1 %v18556_v19  ;;  %9145 = vmatprep.subr.bf16.mxu0 %v13719_v25  ;;  %v13798_v25 = vld [vmem:[%s15077_s12 + $0xc40] ss:$16 sps:$4 sm:$0xff]  }
 0x532   : > { %9117 = vmatmul.mubr.bf16.gmra.mrb[104].mxu0 %v18556_v19  ;;  %8542 = vmatprep.mubr.bf16.mxu1 %v18581_v10  ;;  %v13729_v19 = vld [vmem:[%s15077_s12 + $0xac8] ss:$16 sps:$4 sm:$0xff]  }
 0x533   : > { %8562 = vmatpush1.bf16.msra.mxu1 %v13714_v49  ;;  %9126 = vmatprep.mubr.bf16.mxu0 %v18581_v10  ;;  %v13737_v10 = vld [vmem:[%s15077_s12 + $0xaec] ss:$16 sps:$4 sm:$0xff]   ;;  %v13806_v49 = vld [vmem:[%s15077_s12 + $0xc64] ss:$16 sps:$4 sm:$0xff]  }
 0x534   : > { %9146 = vmatpush1.bf16.msra.mxu0 %v13717_v42  ;;  %8563 = vmatprep.subr.bf16.mxu1 %v13722_v48  ;;  %v13804_v42 = vld [vmem:[%s15077_s12 + $0xc60] ss:$16 sps:$4 sm:$0xff]   ;;  %v13807_v48 = vld [vmem:[%s15077_s12 + $0xc68] ss:$16 sps:$4 sm:$0xff]  }
 0x535   : > { %9147 = vmatprep.subr.bf16.mxu0 %v13725_v15  ;;  %v13812_v15 = vld [vmem:[%s15077_s12 + $0xc84] ss:$16 sps:$4 sm:$0xff]  }
 0x537   : > { %8564 = vmatpush1.bf16.msra.mxu1 %v13720_v50  ;;  %v13815_v50 = vld [vmem:[%s15077_s12 + $0xc8c] ss:$16 sps:$4 sm:$0xff]  }
 0x538   : > { %9148 = vmatpush1.bf16.msra.mxu0 %v13723_v17  ;;  %8565 = vmatprep.subr.bf16.mxu1 %v13728_v52  ;;  %v19870_v17 = vld [vmem:[#allocation63_spill] sm:$0xff]  ;;  %v19871_v52 = vld [vmem:[#allocation53_spill] sm:$0xff] }
 0x539   : > { %8543 = vmatmul.mubr.bf16.gmra.mrb[60].mxu1 %v18574_v53  ;;  %9149 = vmatprep.subr.bf16.mxu0 %v13731_v46  ;;  %v4188_v46 = vcombine.high %v19871_v52, %v19870_v17 }
 0x53a   : > { %9127 = vmatmul.mubr.bf16.gmra.mrb[108].mxu0 %v18574_v53  ;;  %8585 = vmatprep.mubr.bf16.mxu1 %v18594_v5  ;;  %v13738_v53 = vld [vmem:[%s15077_s12 + $0xb00] ss:$16 sps:$4 sm:$0xff]  }
 0x53b   : > { %8566 = vmatpush1.bf16.msra.mxu1 %v13726_v51  ;;  %9169 = vmatprep.mubr.bf16.mxu0 %v18594_v5  ;;  %v13749_v5 = vld [vmem:[%s15077_s12 + $0xb2c] ss:$16 sps:$4 sm:$0xff]   ;;  %v13813_v51 = vld [vmem:[%s15077_s12 + $0xc88] ss:$16 sps:$4 sm:$0xff]  }
 0x53c   : > { %9150 = vmatpush1.bf16.msra.mxu0 %v13729_v19  ;;  %8567 = vmatprep.subr.bf16.mxu1 %v13734_v23  ;;  %v13821_v19 = vld [vmem:[%s15077_s12 + $0xcac] ss:$16 sps:$4 sm:$0xff]  }
 0x53d   : > { %9151 = vmatprep.subr.bf16.mxu0 %v13737_v10  ;;  %v19872_v23 = vld [vmem:[#allocation45_spill] sm:$0xff] }
 0x53e   : > { %v11883_v10 = vcombine.low %v4188_v46, %v19872_v23  ;;  %v13882_v23 = vld [vmem:[%s15077_s12 + $0xe00] ss:$16 sps:$4 sm:$0xff]  }
 0x53f   : > { %8568 = vmatpush1.bf16.msra.mxu1 %v13732_v7  ;;  %v13816_v7 = vld [vmem:[%s15077_s12 + $0xca0] ss:$16 sps:$4 sm:$0xff]  }
 0x540   : > { %9152 = vmatpush1.bf16.msra.mxu0 %v13735_v32  ;;  %8569 = vmatprep.subr.bf16.mxu1 %v13740_v28  ;;  %v13819_v32 = vld [vmem:[%s15077_s12 + $0xca8] ss:$16 sps:$4 sm:$0xff]   ;;  %v13824_v28 = vld [vmem:[%s15077_s12 + $0xcc4] ss:$16 sps:$4 sm:$0xff]  }
 0x541   : > { %9153 = vmatprep.subr.bf16.mxu0 %v13743_v59  ;;  %v19873_v59 = vld [vmem:[#allocation37_spill] sm:$0xff] }
 0x543   : > { %8570 = vmatpush1.bf16.msra.mxu1 %v13738_v53  ;;  %v19874_v53 = vld [vmem:[#allocation47_spill] sm:$0xff] }
 0x544   : > { %9154 = vmatpush1.bf16.msra.mxu0 %v13741_v31  ;;  %8571 = vmatprep.subr.bf16.mxu1 %v13746_v4  ;;  %v18934_v31 = vrot.slane %v19874_v53, %v19873_v59  ;;  %v18938_v4 = vrot.slane %v11883_v10, %v19873_v59  ;;  %v13885_v10 = vld [vmem:[%s15077_s12 + $0xe08] ss:$16 sps:$4 sm:$0xff]  }
 0x545   : > { %9155 = vmatprep.subr.bf16.mxu0 %v13749_v5  ;;  %v13822_v5 = vld [vmem:[%s15077_s12 + $0xcc0] ss:$16 sps:$4 sm:$0xff]  }
 0x546   : > { %v19881_v53 = vld [vmem:[#allocation56_spill] sm:$0xff] }
 0x547   : > { %8572 = vmatpush1.bf16.msra.mxu1 %v13744_v57  ;;  %v12618_v57 = vcombine.high %v18938_v4, %v18934_v31 }
 0x548   : > { %9156 = vmatpush1.bf16.msra.mxu0 %v13747_v12  ;;  %8573 = vmatprep.subr.bf16.mxu1 %v13752_v36  ;;  %v13830_v12 = vld [vmem:[%s15077_s12 + $0xce4] ss:$16 sps:$4 sm:$0xff]   ;;  %v13833_v36 = vld [vmem:[%s15077_s12 + $0xcec] ss:$16 sps:$4 sm:$0xff]  }
 0x549   : > { %9157 = vmatprep.subr.bf16.mxu0 %v13755_v22  ;;  %v13828_v22 = vld [vmem:[%s15077_s12 + $0xce0] ss:$16 sps:$4 sm:$0xff]  }
 0x54b   : > { %8574 = vmatpush1.bf16.msra.mxu1 %v13750_v27  ;;  %v13831_v27 = vld [vmem:[%s15077_s12 + $0xce8] ss:$16 sps:$4 sm:$0xff]  }
 0x54c   : > { %9158 = vmatpush1.bf16.msra.mxu0 %v13753_v54  ;;  %8575 = vmatprep.subr.bf16.mxu1 %v13758_v37  ;;  %v13836_v54 = vld [vmem:[%s15077_s12 + $0xd04] ss:$16 sps:$4 sm:$0xff]   ;;  %v13839_v37 = vld [vmem:[%s15077_s12 + $0xd0c] ss:$16 sps:$4 sm:$0xff]  }
 0x54d   : > { %9159 = vmatprep.subr.bf16.mxu0 %v13761_v60  ;;  %v13834_v60 = vld [vmem:[%s15077_s12 + $0xd00] ss:$16 sps:$4 sm:$0xff]  }
 0x54f   : > { %8576 = vmatpush1.bf16.msra.mxu1 %v13756_v30  ;;  %v13842_v30 = vld [vmem:[%s15077_s12 + $0xd24] ss:$16 sps:$4 sm:$0xff]  }
 0x550   : > { %9160 = vmatpush1.bf16.msra.mxu0 %v13759_v3  ;;  %8577 = vmatprep.subr.bf16.mxu1 %v13764_v11  ;;  %v13845_v3 = vld [vmem:[%s15077_s12 + $0xd2c] ss:$16 sps:$4 sm:$0xff]   ;;  %v13840_v11 = vld [vmem:[%s15077_s12 + $0xd20] ss:$16 sps:$4 sm:$0xff]  }
 0x551   : > { %9161 = vmatprep.subr.bf16.mxu0 %v13767_v43  ;;  %v13843_v43 = vld [vmem:[%s15077_s12 + $0xd28] ss:$16 sps:$4 sm:$0xff]  }
 0x553   : > { %8578 = vmatpush1.bf16.msra.mxu1 %v13762_v0  ;;  %v13848_v0 = vld [vmem:[%s15077_s12 + $0xd44] ss:$16 sps:$4 sm:$0xff]  }
 0x554   : > { %9162 = vmatpush1.bf16.msra.mxu0 %v13765_v63  ;;  %8579 = vmatprep.subr.bf16.mxu1 %v13770_v16  ;;  %v13851_v63 = vld [vmem:[%s15077_s12 + $0xd4c] ss:$16 sps:$4 sm:$0xff]   ;;  %v13846_v16 = vld [vmem:[%s15077_s12 + $0xd40] ss:$16 sps:$4 sm:$0xff]  }
 0x555   : > { %9163 = vmatprep.subr.bf16.mxu0 %v13773_v41  ;;  %v13849_v41 = vld [vmem:[%s15077_s12 + $0xd48] ss:$16 sps:$4 sm:$0xff]  }
 0x557   : > { %8580 = vmatpush1.bf16.msra.mxu1 %v13768_v13  ;;  %v13854_v13 = vld [vmem:[%s15077_s12 + $0xd64] ss:$16 sps:$4 sm:$0xff]  }
 0x558   : > { %9164 = vmatpush1.bf16.msra.mxu0 %v13771_v45  ;;  %8581 = vmatprep.subr.bf16.mxu1 %v13776_v35  ;;  %v13857_v45 = vld [vmem:[%s15077_s12 + $0xd6c] ss:$16 sps:$4 sm:$0xff]   ;;  %v13852_v35 = vld [vmem:[%s15077_s12 + $0xd60] ss:$16 sps:$4 sm:$0xff]  }
 0x559   : > { %9165 = vmatprep.subr.bf16.mxu0 %v13779_v62  ;;  %v13855_v62 = vld [vmem:[%s15077_s12 + $0xd68] ss:$16 sps:$4 sm:$0xff]  }
 0x55b   : > { %8582 = vmatpush1.bf16.msra.mxu1 %v13774_v44  ;;  %v13860_v44 = vld [vmem:[%s15077_s12 + $0xd84] ss:$16 sps:$4 sm:$0xff]  }
 0x55c   : > { %9166 = vmatpush1.bf16.msra.mxu0 %v13777_v1  ;;  %8583 = vmatprep.subr.bf16.mxu1 %v13782_v58  ;;  %v13863_v1 = vld [vmem:[%s15077_s12 + $0xd8c] ss:$16 sps:$4 sm:$0xff]   ;;  %v13858_v58 = vld [vmem:[%s15077_s12 + $0xd80] ss:$16 sps:$4 sm:$0xff]  }
 0x55d   : > { %9167 = vmatprep.subr.bf16.mxu0 %v13785_v47  ;;  %v13861_v47 = vld [vmem:[%s15077_s12 + $0xd88] ss:$16 sps:$4 sm:$0xff]  }
 0x55f   : > { %8584 = vmatpush1.bf16.msra.mxu1 %v13780_v24  ;;  %v13866_v24 = vld [vmem:[%s15077_s12 + $0xda4] ss:$16 sps:$4 sm:$0xff]  }
 0x560   : > { %9168 = vmatpush1.bf16.msra.mxu0 %v13783_v6  ;;  %8626 = vmatprep.subr.bf16.mxu1 %v13788_v29  ;;  %v13869_v6 = vld [vmem:[%s15077_s12 + $0xdac] ss:$16 sps:$4 sm:$0xff]   ;;  %v13864_v29 = vld [vmem:[%s15077_s12 + $0xda0] ss:$16 sps:$4 sm:$0xff]  }
 0x561   : > { %9210 = vmatprep.subr.bf16.mxu0 %v13791_v20  ;;  %v13867_v20 = vld [vmem:[%s15077_s12 + $0xda8] ss:$16 sps:$4 sm:$0xff]  }
 0x562   : > { %8586 = vmatmul.mubr.bf16.vlgmr.msra.gmra.mrb[48].mxu1 %v18608_v26 }
 0x563   : > { %9170 = vmatmul.mubr.bf16.vlgmr.msra.gmra.mrb[96].mxu0 %v18608_v26  ;;  %8595 = vmatprep.mubr.bf16.mxu1 %v18618_v39  ;;  %v13801_v26 = vld [vmem:[%s15077_s12 + $0xc48] ss:$16 sps:$4 sm:$0xff]  }
 0x564   : > { %8627 = vmatpush1.bf16.msra.mxu1 %v13786_v9  ;;  %9179 = vmatprep.mubr.bf16.mxu0 %v18618_v39  ;;  %v13809_v39 = vld [vmem:[%s15077_s12 + $0xc6c] ss:$16 sps:$4 sm:$0xff]   ;;  %v13872_v9 = vld [vmem:[%s15077_s12 + $0xdc4] ss:$16 sps:$4 sm:$0xff]  }
 0x565   : > { %9211 = vmatpush1.bf16.msra.mxu0 %v13789_v18  ;;  %8628 = vmatprep.subr.bf16.mxu1 %v13794_v56  ;;  %v13875_v18 = vld [vmem:[%s15077_s12 + $0xdcc] ss:$16 sps:$4 sm:$0xff]   ;;  %v13870_v56 = vld [vmem:[%s15077_s12 + $0xdc0] ss:$16 sps:$4 sm:$0xff]  }
 0x566   : > { %9212 = vmatprep.subr.bf16.mxu0 %v13797_v61  ;;  %v13873_v61 = vld [vmem:[%s15077_s12 + $0xdc8] ss:$16 sps:$4 sm:$0xff]  }
 0x568   : > { %8629 = vmatpush1.bf16.msra.mxu1 %v13792_v14  ;;  %v13878_v14 = vld [vmem:[%s15077_s12 + $0xde4] ss:$16 sps:$4 sm:$0xff]  }
 0x569   : > { %9213 = vmatpush1.bf16.msra.mxu0 %v13795_v33  ;;  %8630 = vmatprep.subr.bf16.mxu1 %v13800_v38  ;;  %v13881_v33 = vld [vmem:[%s15077_s12 + $0xdec] ss:$16 sps:$4 sm:$0xff]   ;;  %v19875_v38 = vld [vmem:[#allocation66_spill] sm:$0xff] }
 0x56a   : > { %8596 = vmatmul.mubr.bf16.gmra.mrb[52].mxu1 %v18622_v40  ;;  %9214 = vmatprep.subr.bf16.mxu0 %v13803_v8  ;;  %v19876_v8 = vld [vmem:[#allocation57_spill] sm:$0xff] }
 0x56b   : > { %9180 = vmatmul.mubr.bf16.gmra.mrb[100].mxu0 %v18622_v40  ;;  %8605 = vmatprep.mubr.bf16.mxu1 %v18638_v21  ;;  %v13810_v40 = vld [vmem:[%s15077_s12 + $0xc80] ss:$16 sps:$4 sm:$0xff]  }
 0x56c   : > { %8631 = vmatpush1.bf16.msra.mxu1 %v13798_v25  ;;  %9189 = vmatprep.mubr.bf16.mxu0 %v18638_v21  ;;  %v13818_v21 = vld [vmem:[%s15077_s12 + $0xca4] ss:$16 sps:$4 sm:$0xff]   ;;  %v4225_v25 = vcombine.high %v19876_v8, %v19875_v38  ;;  %v13929_v8 = vld [vmem:[%s15077_s12 + $0xeec] ss:$16 sps:$4 sm:$0xff]  }
 0x56d   : > { %9215 = vmatpush1.bf16.msra.mxu0 %v13801_v26  ;;  %8632 = vmatprep.subr.bf16.mxu1 %v13806_v49  ;;  %v13876_v26 = vld [vmem:[%s15077_s12 + $0xde0] ss:$16 sps:$4 sm:$0xff]  }
 0x56e   : > { %9216 = vmatprep.subr.bf16.mxu0 %v13809_v39  ;;  %v19877_v49 = vld [vmem:[#allocation55_spill] sm:$0xff] }
 0x56f   : > { %v11885_v39 = vcombine.low %v4225_v25, %v19877_v49  ;;  %v14598_v25 = vmov 0  }
 0x570   : > { %8633 = vmatpush1.bf16.msra.mxu1 %v13804_v42  ;;  %v13879_v42 = vld [vmem:[%s15077_s12 + $0xde8] ss:$16 sps:$4 sm:$0xff]  }
 0x571   : > { %9217 = vmatpush1.bf16.msra.mxu0 %v13807_v48  ;;  %8634 = vmatprep.subr.bf16.mxu1 %v13812_v15  ;;  %v13884_v48 = vld [vmem:[%s15077_s12 + $0xe04] ss:$16 sps:$4 sm:$0xff]   ;;  %v13887_v15 = vld [vmem:[%s15077_s12 + $0xe0c] ss:$16 sps:$4 sm:$0xff]   ;;  %v4952_v46 = vrot.slane %v11885_v39, %v19873_v59  ;;  %v13924_v39 = vld [vmem:[%s15077_s12 + $0xee0] ss:$16 sps:$4 sm:$0xff]  }
 0x572   : > { %8606 = vmatmul.mubr.bf16.gmra.mrb[56].mxu1 %v18657_v2  ;;  %9218 = vmatprep.subr.bf16.mxu0 %v13815_v50  ;;  %v19878_v50 = vld [vmem:[#allocation54_spill] sm:$0xff] }
 0x573   : > { %9190 = vmatmul.mubr.bf16.gmra.mrb[104].mxu0 %v18657_v2  ;;  %8615 = vmatprep.mubr.bf16.mxu1 %v18661_v55  ;;  %v13827_v2 = vld [vmem:[%s15077_s12 + $0xccc] ss:$16 sps:$4 sm:$0xff]   ;;  %v4969_v52 = vrot.slane %v19878_v50, %v19873_v59 }
 0x574   : > { %8635 = vmatpush1.bf16.msra.mxu1 %v13810_v40  ;;  %9199 = vmatprep.mubr.bf16.mxu0 %v18661_v55  ;;  %v13825_v55 = vld [vmem:[%s15077_s12 + $0xcc8] ss:$16 sps:$4 sm:$0xff]   ;;  %v13932_v50 = vld [vmem:[%s15087_s30 + $0x4] ss:$8 sps:$4 sm:$0xff]  }
 0x575   : > { %9219 = vmatpush1.bf16.msra.mxu0 %v13813_v51  ;;  %8636 = vmatprep.subr.bf16.mxu1 %v13818_v21  ;;  %v19879_v40 = vld [vmem:[#allocation36_spill] sm:$0xff]  ;;  %v19880_v51 = vld [vmem:[#allocation58_spill] sm:$0xff] }
 0x576   : > { %9220 = vmatprep.subr.bf16.mxu0 %v13821_v19  ;;  %v4293_v21 = vcombine.high %v19880_v51, %v19879_v40  ;;  %v11903_v19 = vcombine.low %v18938_v4, %v18934_v31  ;;  %v13888_v31 = vld [vmem:[%s15077_s12 + $0xe20] ss:$16 sps:$4 sm:$0xff]   ;;  %v13891_v4 = vld [vmem:[%s15077_s12 + $0xe28] ss:$16 sps:$4 sm:$0xff]  }
 0x577   : > { %v19889_v51 = vld [vmem:[#allocation67_spill] sm:$0xff] }
 0x578   : > { %8637 = vmatpush1.bf16.msra.mxu1 %v13816_v7  ;;  %v12620_v7 = vcombine.high %v4952_v46, %v4969_v52 }
 0x579   : > { %9221 = vmatpush1.bf16.msra.mxu0 %v13819_v32  ;;  %8638 = vmatprep.subr.bf16.mxu1 %v13824_v28  ;;  %v13890_v32 = vld [vmem:[%s15077_s12 + $0xe24] ss:$16 sps:$4 sm:$0xff]   ;;  %v13893_v28 = vld [vmem:[%s15077_s12 + $0xe2c] ss:$16 sps:$4 sm:$0xff]  }
 0x57a   : > { %8616 = vmatmul.mubr.bf16.gmra.mrb[60].mxu1 %v18664_v34  ;;  %9222 = vmatprep.subr.bf16.mxu0 %v13827_v2  ;;  %v11887_v2 = vcombine.low %v4293_v21, %v19881_v53  ;;  %v11886_v21 = vcombine.high %v19875_v38, %v19889_v51  ;;  %v19892_v38 = vld [vmem:[#allocation62_spill] sm:$0xff] }
 0x57b   : > { %9200 = vmatmul.mubr.bf16.gmra.mrb[108].mxu0 %v18664_v34  ;;  %8658 = vmatprep.mubr.bf16.mxu1 %v12618_v57  ;;  %v13837_v34 = vld [vmem:[%s15077_s12 + $0xd08] ss:$16 sps:$4 sm:$0xff]   ;;  %v5010_v53 = vrot.slane %v19892_v38, %v19873_v59 }
 0x57c   : > { %8639 = vmatpush1.bf16.msra.mxu1 %v13822_v5  ;;  %9242 = vmatprep.mubr.bf16.mxu0 %v12618_v57  ;;  %v13896_v5 = vld [vmem:[%s15077_s12 + $0xe44] ss:$16 sps:$4 sm:$0xff]  }
 0x57d   : > { %9223 = vmatpush1.bf16.msra.mxu0 %v13825_v55  ;;  %8640 = vmatprep.subr.bf16.mxu1 %v13830_v12  ;;  %v19882_v55 = vld [vmem:[#allocation61_spill] sm:$0xff] }
 0x57e   : > { %9224 = vmatprep.subr.bf16.mxu0 %v13833_v36  ;;  %v5003_v57 = vrot.slane %v19882_v55, %v19873_v59  ;;  %v13899_v12 = vld [vmem:[%s15077_s12 + $0xe4c] ss:$16 sps:$4 sm:$0xff]   ;;  %v4986_v36 = vrot.slane %v11887_v2, %v19873_v59  ;;  %v19894_v55 = vld [vmem:[#allocation70_spill] sm:$0xff] }
 0x580   : > { %8641 = vmatpush1.bf16.msra.mxu1 %v13828_v22  ;;  %v11918_v22 = vcombine.low %v4952_v46, %v4969_v52 }
 0x581   : > { %9225 = vmatpush1.bf16.msra.mxu0 %v13831_v27  ;;  %8642 = vmatprep.subr.bf16.mxu1 %v13836_v54  ;;  %v13894_v27 = vld [vmem:[%s15077_s12 + $0xe40] ss:$16 sps:$4 sm:$0xff]   ;;  %v13897_v54 = vld [vmem:[%s15077_s12 + $0xe48] ss:$16 sps:$4 sm:$0xff]  }
 0x582   : > { %9226 = vmatprep.subr.bf16.mxu0 %v13839_v37  ;;  %v12622_v37 = vcombine.high %v4986_v36, %v5003_v57 }
 0x584   : > { %8643 = vmatpush1.bf16.msra.mxu1 %v13834_v60  ;;  %v13902_v60 = vld [vmem:[%s15077_s12 + $0xe64] ss:$16 sps:$4 sm:$0xff]  }
 0x585   : > { %9227 = vmatpush1.bf16.msra.mxu0 %v13837_v34  ;;  %8644 = vmatprep.subr.bf16.mxu1 %v13842_v30  ;;  %v19883_v34 = vld [vmem:[#allocation77_spill] sm:$0xff]  ;;  %v19884_v30 = vld [vmem:[#allocation64_spill] sm:$0xff] }
 0x586   : > { %9228 = vmatprep.subr.bf16.mxu0 %v13845_v3  ;;  %v4330_v3 = vcombine.high %v19884_v30, %v19883_v34  ;;  %v13944_v30 = vld [vmem:[%s15087_s30 + $0x44] ss:$8 sps:$4 sm:$0xff]  }
 0x588   : > { %8645 = vmatpush1.bf16.msra.mxu1 %v13840_v11  ;;  %v13905_v11 = vld [vmem:[%s15077_s12 + $0xe6c] ss:$16 sps:$4 sm:$0xff]  }
 0x589   : > { %9229 = vmatpush1.bf16.msra.mxu0 %v13843_v43  ;;  %8646 = vmatprep.subr.bf16.mxu1 %v13848_v0  ;;  %v19885_v43 = vld [vmem:[#allocation34_spill] sm:$0xff] }
 0x58a   : > { %9230 = vmatprep.subr.bf16.mxu0 %v13851_v63  ;;  %v11889_v0 = vcombine.low %v4330_v3, %v19885_v43  ;;  %v13900_v63 = vld [vmem:[%s15077_s12 + $0xe60] ss:$16 sps:$4 sm:$0xff]  }
 0x58b   : > { %v13945_v3 = vld [vmem:[%s15087_s30 + $0x50] ss:$8 sps:$4 sm:$0xff]   ;;  %v13948_v43 = vld [vmem:[%s15087_s30 + $0x60] ss:$8 sps:$4 sm:$0xff]  }
 0x58c   : > { %8647 = vmatpush1.bf16.msra.mxu1 %v13846_v16  ;;  %v13903_v16 = vld [vmem:[%s15077_s12 + $0xe68] ss:$16 sps:$4 sm:$0xff]  }
 0x58d   : > { %9231 = vmatpush1.bf16.msra.mxu0 %v13849_v41  ;;  %8648 = vmatprep.subr.bf16.mxu1 %v13854_v13  ;;  %v13908_v41 = vld [vmem:[%s15077_s12 + $0xe84] ss:$16 sps:$4 sm:$0xff]   ;;  %v19886_v13 = vld [vmem:[#allocation65_spill] sm:$0xff] }
 0x58e   : > { %9232 = vmatprep.subr.bf16.mxu0 %v13857_v45  ;;  %v5037_v45 = vrot.slane %v19886_v13, %v19873_v59  ;;  %v13956_v13 = vld [vmem:[%s15087_s30 + $0x84] ss:$8 sps:$4 sm:$0xff]  }
 0x590   : > { %8649 = vmatpush1.bf16.msra.mxu1 %v13852_v35  ;;  %v13911_v35 = vld [vmem:[%s15077_s12 + $0xe8c] ss:$16 sps:$4 sm:$0xff]  }
 0x591   : > { %9233 = vmatpush1.bf16.msra.mxu0 %v13855_v62  ;;  %8650 = vmatprep.subr.bf16.mxu1 %v13860_v44  ;;  %v5020_v62 = vrot.slane %v11889_v0, %v19873_v59  ;;  %v11933_v44 = vcombine.low %v4986_v36, %v5003_v57  ;;  %v5044_v57 = vrot.slane %v19894_v55, %v19873_v59  ;;  %v13933_v36 = vld [vmem:[%s15087_s30 + $0x10] ss:$8 sps:$4 sm:$0xff]   ;;  %v13950_v0 = vld [vmem:[%s15087_s30 + $0x64] ss:$8 sps:$4 sm:$0xff]  }
 0x592   : > { %9234 = vmatprep.subr.bf16.mxu0 %v13863_v1  ;;  %v13906_v1 = vld [vmem:[%s15077_s12 + $0xe80] ss:$16 sps:$4 sm:$0xff]  }
 0x594   : > { %8651 = vmatpush1.bf16.msra.mxu1 %v13858_v58  ;;  %v13909_v58 = vld [vmem:[%s15077_s12 + $0xe88] ss:$16 sps:$4 sm:$0xff]  }
 0x595   : > { %9235 = vmatpush1.bf16.msra.mxu0 %v13861_v47  ;;  %8652 = vmatprep.subr.bf16.mxu1 %v13866_v24  ;;  %v12624_v47 = vcombine.high %v5020_v62, %v5037_v45  ;;  %v13914_v24 = vld [vmem:[%s15077_s12 + $0xea4] ss:$16 sps:$4 sm:$0xff]  }
 0x596   : > { %9236 = vmatprep.subr.bf16.mxu0 %v13869_v6  ;;  %v13917_v6 = vld [vmem:[%s15077_s12 + $0xeac] ss:$16 sps:$4 sm:$0xff]  }
 0x598   : > { %8653 = vmatpush1.bf16.msra.mxu1 %v13864_v29  ;;  %v13912_v29 = vld [vmem:[%s15077_s12 + $0xea0] ss:$16 sps:$4 sm:$0xff]  }
 0x599   : > { %9237 = vmatpush1.bf16.msra.mxu0 %v13867_v20  ;;  %8654 = vmatprep.subr.bf16.mxu1 %v13872_v9  ;;  %v13915_v20 = vld [vmem:[%s15077_s12 + $0xea8] ss:$16 sps:$4 sm:$0xff]   ;;  %v13920_v9 = vld [vmem:[%s15077_s12 + $0xec4] ss:$16 sps:$4 sm:$0xff]  }
 0x59a   : > { %9238 = vmatprep.subr.bf16.mxu0 %v13875_v18  ;;  %v13923_v18 = vld [vmem:[%s15077_s12 + $0xecc] ss:$16 sps:$4 sm:$0xff]  }
 0x59c   : > { %8655 = vmatpush1.bf16.msra.mxu1 %v13870_v56  ;;  %v11948_v56 = vcombine.low %v5020_v62, %v5037_v45  ;;  %v13959_v45 = vld [vmem:[%s15087_s30 + $0x94] ss:$8 sps:$4 sm:$0xff]   ;;  %v13962_v62 = vld [vmem:[%s15087_s30 + $0xa4] ss:$8 sps:$4 sm:$0xff]  }
 0x59d   : > { %9239 = vmatpush1.bf16.msra.mxu0 %v13873_v61  ;;  %8656 = vmatprep.subr.bf16.mxu1 %v13878_v14  ;;  %v13918_v61 = vld [vmem:[%s15077_s12 + $0xec0] ss:$16 sps:$4 sm:$0xff]   ;;  %v13921_v14 = vld [vmem:[%s15077_s12 + $0xec8] ss:$16 sps:$4 sm:$0xff]  }
 0x59e   : > { %9240 = vmatprep.subr.bf16.mxu0 %v13881_v33  ;;  %v13926_v33 = vld [vmem:[%s15077_s12 + $0xee4] ss:$16 sps:$4 sm:$0xff]  }
 0x5a0   : > { %8657 = vmatpush1.bf16.msra.mxu1 %v13876_v26  ;;  %v19887_v26 = vld [vmem:[#allocation60_spill] sm:$0xff] }
 0x5a1   : > { %9241 = vmatpush1.bf16.msra.mxu0 %v13879_v42  ;;  %8699 = vmatprep.subr.bf16.mxu1 %v13884_v48  ;;  %v11884_v49 = vcombine.high %v19870_v17, %v19887_v26  ;;  %v13927_v42 = vld [vmem:[%s15077_s12 + $0xee8] ss:$16 sps:$4 sm:$0xff]  }
 0x5a2   : > { %9283 = vmatprep.subr.bf16.mxu0 %v13887_v15  ;;  %v19888_v48 = vld [vmem:[#allocation52_spill] sm:$0xff] }
 0x5a3   : > { %8659 = vmatmul.mubr.bf16.vlgmr.msra.gmra.mrb[48].mxu1 %v11903_v19  ;;  %v4942_v15 = vrot.slane %v19888_v48, %v19873_v59  ;;  %v4925_v52 = vrot.slane %v11884_v49, %v19873_v59  ;;  %v13930_v17 = vld [vmem:[%s15087_s30] ss:$8 sps:$4 sm:$0xff]   ;;  %v19895_v49 = vld [vmem:[#allocation29_spill] sm:$0xff] }
 0x5a4   : > { %9243 = vmatmul.mubr.bf16.vlgmr.msra.gmra.mrb[96].mxu0 %v11903_v19  ;;  %8668 = vmatprep.mubr.bf16.mxu1 %v12620_v7  ;;  %v4959_v19 = vrot.slane %v11886_v21, %v19873_v59 }
 0x5a5   : > { %8700 = vmatpush1.bf16.msra.mxu1 %v13882_v23  ;;  %9252 = vmatprep.mubr.bf16.mxu0 %v12620_v7  ;;  %v11905_v46 = vcombine.low %v4925_v52, %v4942_v15  ;;  %v19890_v23 = vld [vmem:[#allocation59_spill] sm:$0xff] }
 0x5a6   : > { %9284 = vmatpush1.bf16.msra.mxu0 %v13885_v10  ;;  %8701 = vmatprep.subr.bf16.mxu1 %v13890_v32  ;;  %v4976_v10 = vrot.slane %v19890_v23, %v19873_v59  ;;  %v19891_v32 = vld [vmem:[#allocation68_spill] sm:$0xff] }
 0x5a7   : > { %9285 = vmatprep.subr.bf16.mxu0 %v13893_v28  ;;  %v11888_v28 = vcombine.high %v19879_v40, %v19891_v32 }
 0x5a8   : > { %v11920_v7 = vcombine.low %v4959_v19, %v4976_v10 }
 0x5a9   : > { %8702 = vmatpush1.bf16.msra.mxu1 %v13888_v31  ;;  %v4993_v2 = vrot.slane %v11888_v28, %v19873_v59 }
 0x5aa   : > { %9286 = vmatpush1.bf16.msra.mxu0 %v13891_v4  ;;  %8703 = vmatprep.subr.bf16.mxu1 %v13896_v5  ;;  %v19893_v4 = vld [vmem:[#allocation73_spill] sm:$0xff] }
 0x5ab   : > { %8669 = vmatmul.mubr.bf16.gmra.mrb[52].mxu1 %v11918_v22  ;;  %9287 = vmatprep.subr.bf16.mxu0 %v13899_v12  ;;  %v11935_v31 = vcombine.low %v4993_v2, %v5010_v53  ;;  %v11890_v5 = vcombine.high %v19883_v34, %v19893_v4  ;;  %v13942_v34 = vld [vmem:[%s15087_s30 + $0x40] ss:$8 sps:$4 sm:$0xff]  }
 0x5ac   : > { %9253 = vmatmul.mubr.bf16.gmra.mrb[100].mxu0 %v11918_v22  ;;  %8678 = vmatprep.mubr.bf16.mxu1 %v12622_v37  ;;  %v13935_v22 = vld [vmem:[%s15087_s30 + $0x14] ss:$8 sps:$4 sm:$0xff]  }
 0x5ad   : > { %8704 = vmatpush1.bf16.msra.mxu1 %v13894_v27  ;;  %9262 = vmatprep.mubr.bf16.mxu0 %v12622_v37  ;;  %v5027_v40 = vrot.slane %v11890_v5, %v19873_v59  ;;  %v13936_v27 = vld [vmem:[%s15087_s30 + $0x20] ss:$8 sps:$4 sm:$0xff]   ;;  %v13939_v37 = vld [vmem:[%s15087_s30 + $0x30] ss:$8 sps:$4 sm:$0xff]  }
 0x5ae   : > { %9288 = vmatpush1.bf16.msra.mxu0 %v13897_v54  ;;  %8705 = vmatprep.subr.bf16.mxu1 %v13902_v60  ;;  %v13938_v54 = vld [vmem:[%s15087_s30 + $0x24] ss:$8 sps:$4 sm:$0xff]   ;;  %v13941_v60 = vld [vmem:[%s15087_s30 + $0x34] ss:$8 sps:$4 sm:$0xff]  }
 0x5af   : > { %9289 = vmatprep.subr.bf16.mxu0 %v13905_v11  ;;  %v11950_v12 = vcombine.low %v5027_v40, %v5044_v57  ;;  %v13947_v11 = vld [vmem:[%s15087_s30 + $0x54] ss:$8 sps:$4 sm:$0xff]  }
 0x5b1   : > { %8706 = vmatpush1.bf16.msra.mxu1 %v13900_v63  ;;  %v13951_v63 = vld [vmem:[%s15087_s30 + $0x70] ss:$8 sps:$4 sm:$0xff]  }
 0x5b2   : > { %9290 = vmatpush1.bf16.msra.mxu0 %v13903_v16  ;;  %8707 = vmatprep.subr.bf16.mxu1 %v13908_v41  ;;  %v13953_v16 = vld [vmem:[%s15087_s30 + $0x74] ss:$8 sps:$4 sm:$0xff]   ;;  %v13954_v41 = vld [vmem:[%s15087_s30 + $0x80] ss:$8 sps:$4 sm:$0xff]  }
 0x5b3   : > { %8679 = vmatmul.mubr.bf16.gmra.mrb[56].mxu1 %v11933_v44  ;;  %9291 = vmatprep.subr.bf16.mxu0 %v13911_v35  ;;  %v13957_v35 = vld [vmem:[%s15087_s30 + $0x90] ss:$8 sps:$4 sm:$0xff]  }
 0x5b4   : > { %9263 = vmatmul.mubr.bf16.gmra.mrb[104].mxu0 %v11933_v44  ;;  %8688 = vmatprep.mubr.bf16.mxu1 %v12624_v47  ;;  %v13960_v44 = vld [vmem:[%s15087_s30 + $0xa0] ss:$8 sps:$4 sm:$0xff]  }
 0x5b5   : > { %8708 = vmatpush1.bf16.msra.mxu1 %v13906_v1  ;;  %9272 = vmatprep.mubr.bf16.mxu0 %v12624_v47  ;;  %v13965_v1 = vld [vmem:[%s15087_s30 + $0xb4] ss:$8 sps:$4 sm:$0xff]   ;;  %v13968_v47 = vld [vmem:[%s15087_s30 + $0xc4] ss:$8 sps:$4 sm:$0xff]  }
 0x5b6   : > { %9292 = vmatpush1.bf16.msra.mxu0 %v13909_v58  ;;  %8709 = vmatprep.subr.bf16.mxu1 %v13914_v24  ;;  %v13963_v58 = vld [vmem:[%s15087_s30 + $0xb0] ss:$8 sps:$4 sm:$0xff]   ;;  %v13966_v24 = vld [vmem:[%s15087_s30 + $0xc0] ss:$8 sps:$4 sm:$0xff]  }
 0x5b7   : > { %9293 = vmatprep.subr.bf16.mxu0 %v13917_v6  ;;  %v13971_v6 = vld [vmem:[%s15087_s30 + $0xd4] ss:$8 sps:$4 sm:$0xff]  }
 0x5b9   : > { %8710 = vmatpush1.bf16.msra.mxu1 %v13912_v29  ;;  %v13969_v29 = vld [vmem:[%s15087_s30 + $0xd0] ss:$8 sps:$4 sm:$0xff]  }
 0x5ba   : > { %9294 = vmatpush1.bf16.msra.mxu0 %v13915_v20  ;;  %8711 = vmatprep.subr.bf16.mxu1 %v13920_v9  ;;  %v13974_v20 = vld [vmem:[%s15087_s30 + $0xe4] ss:$8 sps:$4 sm:$0xff]   ;;  %v13972_v9 = vld [vmem:[%s15087_s30 + $0xe0] ss:$8 sps:$4 sm:$0xff]  }
 0x5bb   : > { %8689 = vmatmul.mubr.bf16.gmra.mrb[60].mxu1 %v11948_v56  ;;  %9295 = vmatprep.subr.bf16.mxu0 %v13923_v18  ;;  %v13977_v18 = vld [vmem:[%s15087_s30 + $0xf4] ss:$8 sps:$4 sm:$0xff]  }
 0x5bc   : > { %9273 = vmatmul.mubr.bf16.gmra.mrb[108].mxu0 %v11948_v56  ;;  %8731 = vmatprep.mubr.bf16.mxu1 %v14598_v25  ;;  %v13975_v56 = vld [vmem:[%s15087_s30 + $0xf0] ss:$8 sps:$4 sm:$0xff]  }
 0x5bd   : > { %8712 = vmatpush1.bf16.msra.mxu1 %v13918_v61  ;;  %9315 = vmatprep.mubr.bf16.mxu0 %v14598_v25  ;;  %v13980_v61 = vld [vmem:[%s15087_s30 + $0x104] ss:$8 sps:$4 sm:$0xff]  }
 0x5be   : > { %9296 = vmatpush1.bf16.msra.mxu0 %v13921_v14  ;;  %8713 = vmatprep.subr.bf16.mxu1 %v13926_v33  ;;  %v5646_v14 = vld [vmem:[%s15079_s27] sm:$0xf]  ;;  %v14599_v33 = vmov 1966171168   ;;  %s19900_s27 = sld [smem:[#allocation102_spill]] }
 0x5bf   : > { %9297 = vmatprep.subr.bf16.mxu0 %v13929_v8  ;;  %v9517_v8 = vunpack.c.l.s4 %v14599_v33 }
 0x5c1   : > { %8714 = vmatpush1.bf16.msra.mxu1 %v13924_v39  ;;  %v19089_v39 = vrot.slane %v5646_v14, %v19895_v49 }
 0x5c2   : > { %9298 = vmatpush1.bf16.msra.mxu0 %v13927_v42  ;;  %10776 = vmatprep.subr.bf16.mxu1 %v13932_v50  ;;  %v19896_v42 = vld [vmem:[#allocation28_spill] sm:$0xff]  ;;  %v19898_v50 = vld [vmem:[#allocation30_spill] sm:$0xff] }
 0x5c3   : > { %v19897_v48 = vsub.s32 2, %v19896_v42  ;;  %v19096_v52 = vrot.slane %v5646_v14, %v19898_v50  ;;  %v19899_v21 = vsub.s32 3, %v19896_v42 }
 0x5c4   : > { %8732 = vmatmul.mubr.bf16.vlgmr.msra.gmra.mrb[48].mxu1 %v11905_v46 }
 0x5c5   : > { %9316 = vmatmul.mubr.bf16.vlgmr.msra.gmra.mrb[96].mxu0 %v11905_v46  ;;  %8741 = vmatprep.mubr.bf16.mxu1 %v14598_v25  ;;  %v19093_v15 = vrot.slane %v5646_v14, %v19897_v48  ;;  %v9518_v46 = vunpack.c.0.s8 %v9517_v8 }
 0x5c6   : > { %9325 = vmatprep.mubr.bf16.mxu0 %v14598_v25  ;;  %10777 = vmatpush1.bf16.msra.mxu1 %v13930_v17  ;;  %v19100_v17 = vrot.slane %v5646_v14, %v19899_v21 }
 0x5c7   : > { %10778 = vmatprep.subr.bf16.mxu1 %v13935_v22  ;;  %v19106_v53 = vsub.s32 %v9518_v46, %v19896_v42 }
 0x5ca   : > { %10779 = vmatpush1.bf16.msra.mxu1 %v13933_v36 }
 0x5cb   : > { %10780 = vmatprep.subr.bf16.mxu1 %v13938_v54 }
 0x5cc   : > { %8742 = vmatmul.mubr.bf16.gmra.mrb[52].mxu1 %v11920_v7 }
 0x5cd   : > { %9326 = vmatmul.mubr.bf16.gmra.mrb[100].mxu0 %v11920_v7  ;;  %8751 = vmatprep.mubr.bf16.mxu1 %v14598_v25 }
 0x5ce   : > { %9335 = vmatprep.mubr.bf16.mxu0 %v14598_v25  ;;  %10781 = vmatpush1.bf16.msra.mxu1 %v13936_v27 }
 0x5cf   : > { %10782 = vmatprep.subr.bf16.mxu1 %v13941_v60 }
 0x5d2   : > { %10783 = vmatpush1.bf16.msra.mxu1 %v13939_v37 }
 0x5d3   : > { %10784 = vmatprep.subr.bf16.mxu1 %v13944_v30 }
 0x5d4   : > { %8752 = vmatmul.mubr.bf16.gmra.mrb[56].mxu1 %v11935_v31 }
 0x5d5   : > { %9336 = vmatmul.mubr.bf16.gmra.mrb[104].mxu0 %v11935_v31  ;;  %8761 = vmatprep.mubr.bf16.mxu1 %v14598_v25 }
 0x5d6   : > { %9345 = vmatprep.mubr.bf16.mxu0 %v14598_v25  ;;  %10785 = vmatpush1.bf16.msra.mxu1 %v13942_v34  ;;  %v14600_v25 = vmov 1935823168  }
 0x5d7   : > { %10786 = vmatprep.subr.bf16.mxu1 %v13947_v11  ;;  %v9781_v26 = vunpack.c.l.s4 %v14600_v25 }
 0x5d9   : > { %v9782_v51 = vunpack.c.0.s8 %v9781_v26 }
 0x5da   : > { %10787 = vmatpush1.bf16.msra.mxu1 %v13945_v3 }
 0x5db   : > { %10788 = vmatprep.subr.bf16.mxu1 %v13950_v0  ;;  %v19109_v31 = vsub.s32 %v9782_v51, %v19896_v42 }
 0x5dc   : > { %8762 = vmatmul.mubr.bf16.gmra.mrb[60].mxu1 %v11950_v12 }
 0x5dd   : > { %9346 = vmatmul.mubr.bf16.gmra.mrb[108].mxu0 %v11950_v12 }
 0x5de   : > { %10789 = vmatpush1.bf16.msra.mxu1 %v13948_v43 }
 0x5df   : > { %10790 = vmatprep.subr.bf16.mxu1 %v13953_v16 }
 0x5e2   : > { %10791 = vmatpush1.bf16.msra.mxu1 %v13951_v63 }
 0x5e3   : > { %10792 = vmatprep.subr.bf16.mxu1 %v13956_v13 }
 0x5e6   : > { %10793 = vmatpush1.bf16.msra.mxu1 %v13954_v41 }
 0x5e7   : > { %10794 = vmatprep.subr.bf16.mxu1 %v13959_v45 }
 0x5ea   : > { %10795 = vmatpush1.bf16.msra.mxu1 %v13957_v35 }
 0x5eb   : > { %10796 = vmatprep.subr.bf16.mxu1 %v13962_v62 }
 0x5ee   : > { %10797 = vmatpush1.bf16.msra.mxu1 %v13960_v44 }
 0x5ef   : > { %10798 = vmatprep.subr.bf16.mxu1 %v13965_v1 }
 0x5f2   : > { %10799 = vmatpush1.bf16.msra.mxu1 %v13963_v58 }
 0x5f3   : > { %10800 = vmatprep.subr.bf16.mxu1 %v13968_v47 }
 0x5f6   : > { %10801 = vmatpush1.bf16.msra.mxu1 %v13966_v24 }
 0x5f7   : > { %10802 = vmatprep.subr.bf16.mxu1 %v13971_v6 }
 0x5fa   : > { %10803 = vmatpush1.bf16.msra.mxu1 %v13969_v29 }
 0x5fb   : > { %10804 = vmatprep.subr.bf16.mxu1 %v13974_v20 }
 0x5fe   : > { %10805 = vmatpush1.bf16.msra.mxu1 %v13972_v9 }
 0x5ff   : > { %10806 = vmatprep.subr.bf16.mxu1 %v13977_v18 }
 0x602   : > { %10807 = vmatpush1.bf16.msra.mxu1 %v13975_v56 }
 0x603   : > { %10817 = vmatprep.subr.bf16.mxu1 %v13980_v61 }
 0x697   : > { %v8733_v19 = vpop.f32.mrb[48].mxu1 }
 0x698   : > { %v12647_v23 = vadd.f32 %v8733_v19, %v19089_v39  ;;  %v9317_v10 = vpop.f32.mrb[96].mxu0  ;;  %v8735_v7 = vpop.f32.mrb[49].mxu1 }
 0x699   : > { %v12663_v32 = vadd.f32 %v9317_v10, %v19093_v15  ;;  %v12648_v28 = vadd.f32 %v8735_v7, %v19096_v52  ;;  %v9319_v38 = vpop.f32.mrb[97].mxu0  ;;  %v8737_v2 = vpop.f32.mrb[50].mxu1 }
 0x69a   : > { %vm9356_vm11 = vcmp.gt.f32.partialorder %v12647_v23, 0.0  ;;  %v9388_v4 = vmul.f32 0.25, %v12647_v23  ;;  %v12664_v5 = vadd.f32 %v9319_v38, %v19100_v17  ;;  %v12649_v40 = vadd.f32 %v8737_v2, %v19089_v39  ;;  %v9321_v55 = vpop.f32.mrb[98].mxu0  ;;  %v8739_v57 = vpop.f32.mrb[51].mxu1 }
 0x69b   : > { %vm9358_vm12 = vcmp.gt.f32.partialorder %v12663_v32, 0.0  ;;  %v9390_v12 = vmul.f32 0.25, %v12663_v32  ;;  %vm9357_vm13 = vcmp.gt.f32.partialorder %v12648_v28, 0.0  ;;  %v9389_v36 = vmul.f32 0.25, %v12648_v28  ;;  %v9323_v22 = vpop.f32.mrb[99].mxu0 }
 0x69c   : > { %v9420_v27 = vsel %vm9356_vm11, %v12647_v23, %v9388_v4  ;;  %vm9359_vm14 = vcmp.gt.f32.partialorder %v12664_v5, 0.0  ;;  %v9391_v54 = vmul.f32 0.25, %v12664_v5  ;;  %vm9360_vm0 = vcmp.gt.f32.partialorder %v12649_v40, 0.0 }
 0x69d   : > { %v9422_v37 = vsel %vm9358_vm12, %v12663_v32, %v9390_v12  ;;  %v9421_v60 = vsel %vm9357_vm13, %v12648_v28, %v9389_v36  ;;  %v9392_v34 = vmul.f32 0.25, %v12649_v40  ;;  %v12665_v30 = vadd.f32 %v9321_v55, %v19093_v15 }
 0x69e   : > { %v9452_v3 = vmax.f32 %v9420_v27, %v9422_v37  ;;  %v9423_v11 = vsel %vm9359_vm14, %v12664_v5, %v9391_v54  ;;  %v12650_v43 = vadd.f32 %v8739_v57, %v19096_v52  ;;  %v12666_v0 = vadd.f32 %v9323_v22, %v19100_v17 }
 0x69f   : > { %v9453_v63 = vmax.f32 %v9421_v60, %v9423_v11  ;;  %v9424_v16 = vsel %vm9360_vm0, %v12649_v40, %v9392_v34  ;;  %vm9362_vm2 = vcmp.gt.f32.partialorder %v12665_v30, 0.0  ;;  %v9394_v41 = vmul.f32 0.25, %v12665_v30  ;;  %v8743_v13 = vpop.f32.mrb[52].mxu1 }
 0x6a0   : > { %vm9361_vm4 = vcmp.gt.f32.partialorder %v12650_v43, 0.0  ;;  %v9393_v45 = vmul.f32 0.25, %v12650_v43  ;;  %vm9363_vm6 = vcmp.gt.f32.partialorder %v12666_v0, 0.0  ;;  %v9395_v35 = vmul.f32 0.25, %v12666_v0  ;;  %v9327_v62 = vpop.f32.mrb[100].mxu0  ;;  %v8745_v44 = vpop.f32.mrb[53].mxu1 }
 0x6a1   : > { %v9484_v1 = vcombine.low %v9452_v3, %v9453_v63  ;;  %v9485_v58 = vcombine.high %v9452_v3, %v9453_v63  ;;  %v9426_v47 = vsel %vm9362_vm2, %v12665_v30, %v9394_v41  ;;  %v12651_v24 = vadd.f32 %v8743_v13, %v19089_v39  ;;  %v9329_v6 = vpop.f32.mrb[101].mxu0  ;;  %v8747_v29 = vpop.f32.mrb[54].mxu1 }
 0x6a2   : > { %v9454_v20 = vmax.f32 %v9424_v16, %v9426_v47  ;;  %v9425_v9 = vsel %vm9361_vm4, %v12650_v43, %v9393_v45  ;;  %v9427_v18 = vsel %vm9363_vm6, %v12666_v0, %v9395_v35  ;;  %v12667_v56 = vadd.f32 %v9327_v62, %v19093_v15  ;;  %v9331_v61 = vpop.f32.mrb[102].mxu0  ;;  %v8749_v14 = vpop.f32.mrb[55].mxu1 }
 0x6a3   : > { %v9522_v33 = vrot.slane %v9484_v1, %v19106_v53  ;;  %v9529_v8 = vrot.slane %v9485_v58, %v19106_v53  ;;  %v9455_v25 = vmax.f32 %v9425_v9, %v9427_v18  ;;  %vm9364_vm9 = vcmp.gt.f32.partialorder %v12651_v24, 0.0  ;;  %v9333_v26 = vpop.f32.mrb[103].mxu0 }
 0x6a4   : > { %v9396_v42 = vmul.f32 0.25, %v12651_v24  ;;  %vm9366_vm10 = vcmp.gt.f32.partialorder %v12667_v56, 0.0  ;;  %v9398_v48 = vmul.f32 0.25, %v12667_v56  ;;  %v12652_v46 = vadd.f32 %v8745_v44, %v19096_v52 }
 0x6a5   : > { %v9644_v51 = vrot.slane %v9522_v33, 4  ;;  %v9645_v21 = vrot.slane %v9529_v8, 4  ;;  %v9486_v19 = vcombine.low %v9454_v20, %v9455_v25  ;;  %v9487_v23 = vcombine.high %v9454_v20, %v9455_v25 }
 0x6a6   : > { %v9428_v10 = vsel %vm9364_vm9, %v12651_v24, %v9396_v42  ;;  %v9430_v7 = vsel %vm9366_vm10, %v12667_v56, %v9398_v48  ;;  %vm9365_vm15 = vcmp.gt.f32.partialorder %v12652_v46, 0.0  ;;  %v9397_v32 = vmul.f32 0.25, %v12652_v46 }
 0x6a7   : > { %v9676_v28 = vmax.f32 %v9522_v33, %v9644_v51  ;;  %v9677_v38 = vmax.f32 %v9529_v8, %v9645_v21  ;;  %v9536_v2 = vrot.slane %v9486_v19, %v19106_v53  ;;  %v9543_v4 = vrot.slane %v9487_v23, %v19106_v53  ;;  %v8753_v5 = vpop.f32.mrb[56].mxu1 }
 0x6a8   : > { %v9456_v40 = vmax.f32 %v9428_v10, %v9430_v7  ;;  %v9429_v55 = vsel %vm9365_vm15, %v12652_v46, %v9397_v32  ;;  %v12668_v57 = vadd.f32 %v9329_v6, %v19100_v17  ;;  %v12653_v12 = vadd.f32 %v8747_v29, %v19089_v39  ;;  %v9337_v36 = vpop.f32.mrb[104].mxu0  ;;  %v8755_v22 = vpop.f32.mrb[57].mxu1 }
 0x6a9   : > { %v9708_v27 = vcombine.low %v9676_v28, %v9677_v38  ;;  %v9646_v54 = vrot.slane %v9536_v2, 4  ;;  %v9647_v37 = vrot.slane %v9543_v4, 4  ;;  %v12669_v60 = vadd.f32 %v9331_v61, %v19093_v15  ;;  %v9339_v34 = vpop.f32.mrb[105].mxu0  ;;  %v19126_v30 = vpop.f32.mrb[58].mxu1 }
 0x6aa   : > { %vm9367_vm1 = vcmp.gt.f32.partialorder %v12668_v57, 0.0  ;;  %v9399_v3 = vmul.f32 0.25, %v12668_v57  ;;  %vm9368_vm3 = vcmp.gt.f32.partialorder %v12653_v12, 0.0  ;;  %v9400_v11 = vmul.f32 0.25, %v12653_v12  ;;  %v9341_v43 = vpop.f32.mrb[106].mxu0  ;;  %v19128_v0 = vpop.f32.mrb[59].mxu1 }
 0x6ab   : > { %v19131_v63 = vrot.slane %v9708_v27, %v19873_v59  ;;  %v9678_v16 = vmax.f32 %v9536_v2, %v9646_v54  ;;  %v9679_v41 = vmax.f32 %v9543_v4, %v9647_v37  ;;  %vm9370_vm5 = vcmp.gt.f32.partialorder %v12669_v60, 0.0  ;;  %v19133_v13 = vpop.f32.mrb[107].mxu0 }
 0x6ac   : > { %v9431_v45 = vsel %vm9367_vm1, %v12668_v57, %v9399_v3  ;;  %v9432_v35 = vsel %vm9368_vm3, %v12653_v12, %v9400_v11  ;;  %v9402_v62 = vmul.f32 0.25, %v12669_v60  ;;  %v12654_v44 = vadd.f32 %v8749_v14, %v19096_v52 }
 0x6ad   : > { %v9716_v1 = vcombine.low %v9678_v16, %v9679_v41  ;;  %v9457_v58 = vmax.f32 %v9429_v55, %v9431_v45  ;;  %v12670_v47 = vadd.f32 %v9333_v26, %v19100_v17  ;;  %v12655_v24 = vadd.f32 %v8753_v5, %v19089_v39 }
 0x6ae   : > { %v9434_v6 = vsel %vm9370_vm5, %v12669_v60, %v9402_v62  ;;  %vm9369_vm7 = vcmp.gt.f32.partialorder %v12654_v44, 0.0  ;;  %v9401_v29 = vmul.f32 0.25, %v12654_v44  ;;  %v12671_v20 = vadd.f32 %v9337_v36, %v19093_v15 }
 0x6af   : > { %v19140_v9 = vrot.slane %v9716_v1, %v19873_v59  ;;  %v9488_v18 = vcombine.low %v9456_v40, %v9457_v58  ;;  %v9489_v56 = vcombine.high %v9456_v40, %v9457_v58  ;;  %v9458_v61 = vmax.f32 %v9432_v35, %v9434_v6  ;;  %v8763_v33 = vpop.f32.mrb[60].mxu1 }
 0x6b0   : > { %v9433_v8 = vsel %vm9369_vm7, %v12654_v44, %v9401_v29  ;;  %vm9371_vm8 = vcmp.gt.f32.partialorder %v12670_v47, 0.0  ;;  %v9403_v14 = vmul.f32 0.25, %v12670_v47  ;;  %vm9372_vm11 = vcmp.gt.f32.partialorder %v12655_v24, 0.0  ;;  %v19142_v25 = vpop.f32.mrb[108].mxu0  ;;  %v19144_v26 = vpop.f32.mrb[61].mxu1 }
 0x6b1   : > { %v9550_v42 = vrot.slane %v9488_v18, %v19106_v53  ;;  %v9557_v48 = vrot.slane %v9489_v56, %v19106_v53  ;;  %v9404_v46 = vmul.f32 0.25, %v12655_v24  ;;  %vm9374_vm12 = vcmp.gt.f32.partialorder %v12671_v20, 0.0  ;;  %v19148_v51 = vpop.f32.mrb[109].mxu0  ;;  %v19150_v21 = vpop.f32.mrb[62].mxu1 }
 0x6b2   : > { %v9435_v19 = vsel %vm9371_vm8, %v12670_v47, %v9403_v14  ;;  %v9406_v23 = vmul.f32 0.25, %v12671_v20  ;;  %v12656_v10 = vadd.f32 %v8755_v22, %v19096_v52  ;;  %v12672_v7 = vadd.f32 %v9339_v34, %v19100_v17  ;;  %v19154_v32 = vpop.f32.mrb[110].mxu0  ;;  %v19156_v28 = vpop.f32.mrb[63].mxu1 }
 0x6b3   : > { %v9648_v38 = vrot.slane %v9550_v42, 4  ;;  %v9649_v2 = vrot.slane %v9557_v48, 4  ;;  %v9459_v4 = vmax.f32 %v9433_v8, %v9435_v19  ;;  %v9436_v5 = vsel %vm9372_vm11, %v12655_v24, %v9404_v46  ;;  %v19159_v40 = vpop.f32.mrb[111].mxu0 }
 0x6b4   : > { %v9438_v55 = vsel %vm9374_vm12, %v12671_v20, %v9406_v23  ;;  %vm9373_vm13 = vcmp.gt.f32.partialorder %v12656_v10, 0.0  ;;  %v9405_v57 = vmul.f32 0.25, %v12656_v10  ;;  %vm9375_vm14 = vcmp.gt.f32.partialorder %v12672_v7, 0.0 }
 0x6b5   : > { %v9680_v12 = vmax.f32 %v9550_v42, %v9648_v38  ;;  %v9681_v36 = vmax.f32 %v9557_v48, %v9649_v2  ;;  %v9490_v22 = vcombine.low %v9458_v61, %v9459_v4  ;;  %v9491_v27 = vcombine.high %v9458_v61, %v9459_v4 }
 0x6b6   : > { %v9460_v54 = vmax.f32 %v9436_v5, %v9438_v55  ;;  %v9437_v37 = vsel %vm9373_vm13, %v12656_v10, %v9405_v57  ;;  %v9407_v60 = vmul.f32 0.25, %v12672_v7  ;;  %v12657_v34 = vadd.f32 %v19126_v30, %v19089_v39 }
 0x6b7   : > { %v9724_v3 = vcombine.low %v9680_v12, %v9681_v36  ;;  %v9564_v11 = vrot.slane %v9490_v22, %v19106_v53  ;;  %v9571_v16 = vrot.slane %v9491_v27, %v19106_v53  ;;  %v12673_v41 = vadd.f32 %v9341_v43, %v19093_v15 }
 0x6b8   : > { %v9439_v45 = vsel %vm9375_vm14, %v12672_v7, %v9407_v60  ;;  %vm9376_vm0 = vcmp.gt.f32.partialorder %v12657_v34, 0.0  ;;  %v9408_v35 = vmul.f32 0.25, %v12657_v34  ;;  %v12658_v62 = vadd.f32 %v19128_v0, %v19096_v52 }
 0x6b9   : > { %v19169_v44 = vrot.slane %v9724_v3, %v19873_v59  ;;  %v9650_v1 = vrot.slane %v9564_v11, 4  ;;  %v9651_v58 = vrot.slane %v9571_v16, 4  ;;  %v9461_v47 = vmax.f32 %v9437_v37, %v9439_v45 }
 0x6ba   : > { %v9440_v30 = vsel %vm9376_vm0, %v12657_v34, %v9408_v35  ;;  %vm9378_vm2 = vcmp.gt.f32.partialorder %v12673_v41, 0.0  ;;  %v9410_v24 = vmul.f32 0.25, %v12673_v41  ;;  %vm9377_vm4 = vcmp.gt.f32.partialorder %v12658_v62, 0.0 }
 0x6bb   : > { %v9682_v6 = vmax.f32 %v9564_v11, %v9650_v1  ;;  %v9683_v29 = vmax.f32 %v9571_v16, %v9651_v58  ;;  %v9492_v20 = vcombine.low %v9460_v54, %v9461_v47  ;;  %v9493_v43 = vcombine.high %v9460_v54, %v9461_v47 }
 0x6bc   : > { %v9442_v18 = vsel %vm9378_vm2, %v12673_v41, %v9410_v24  ;;  %v9409_v56 = vmul.f32 0.25, %v12658_v62  ;;  %v12674_v61 = vadd.f32 %v19133_v13, %v19100_v17  ;;  %v12659_v0 = vadd.f32 %v8763_v33, %v19089_v39 }
 0x6bd   : > { %v9732_v8 = vcombine.low %v9682_v6, %v9683_v29  ;;  %v9578_v14 = vrot.slane %v9492_v20, %v19106_v53  ;;  %v9585_v42 = vrot.slane %v9493_v43, %v19106_v53  ;;  %v9462_v48 = vmax.f32 %v9440_v30, %v9442_v18 }
 0x6be   : > { %v9441_v46 = vsel %vm9377_vm4, %v12658_v62, %v9409_v56  ;;  %vm9379_vm6 = vcmp.gt.f32.partialorder %v12674_v61, 0.0  ;;  %v9411_v19 = vmul.f32 0.25, %v12674_v61  ;;  %vm9380_vm9 = vcmp.gt.f32.partialorder %v12659_v0, 0.0 }
 0x6bf   : > { %v9739_v23 = vrot.slane %v9732_v8, %v19873_v59  ;;  %v9652_v10 = vrot.slane %v9578_v14, 4  ;;  %v9653_v7 = vrot.slane %v9585_v42, 4  ;;  %v9412_v38 = vmul.f32 0.25, %v12659_v0 }
 0x6c0   : > { %v9443_v2 = vsel %vm9379_vm6, %v12674_v61, %v9411_v19  ;;  %v12675_v13 = vadd.f32 %v19142_v25, %v19093_v15  ;;  %v12660_v33 = vadd.f32 %v19144_v26, %v19096_v52  ;;  %v12676_v4 = vadd.f32 %v19148_v51, %v19100_v17 }
 0x6c1   : > { %v9684_v5 = vmax.f32 %v9578_v14, %v9652_v10  ;;  %v9685_v55 = vmax.f32 %v9585_v42, %v9653_v7  ;;  %v9463_v57 = vmax.f32 %v9441_v46, %v9443_v2  ;;  %v9444_v12 = vsel %vm9380_vm9, %v12659_v0, %v9412_v38 }
 0x6c2   : > { %vm9382_vm10 = vcmp.gt.f32.partialorder %v12675_v13, 0.0  ;;  %v9414_v36 = vmul.f32 0.25, %v12675_v13  ;;  %vm9381_vm15 = vcmp.gt.f32.partialorder %v12660_v33, 0.0  ;;  %v9413_v22 = vmul.f32 0.25, %v12660_v33 }
 0x6c3   : > { %v9740_v27 = vcombine.low %v9684_v5, %v9685_v55  ;;  %v9494_v54 = vcombine.low %v9462_v48, %v9463_v57  ;;  %v9495_v37 = vcombine.high %v9462_v48, %v9463_v57  ;;  %vm9383_vm1 = vcmp.gt.f32.partialorder %v12676_v4, 0.0 }
 0x6c4   : > { %v9446_v60 = vsel %vm9382_vm10, %v12675_v13, %v9414_v36  ;;  %v9445_v25 = vsel %vm9381_vm15, %v12660_v33, %v9413_v22  ;;  %v9415_v34 = vmul.f32 0.25, %v12676_v4  ;;  %v12661_v26 = vadd.f32 %v19150_v21, %v19089_v39 }
 0x6c5   : > { %v9747_v51 = vrot.slane %v9740_v27, %v19873_v59  ;;  %v9592_v3 = vrot.slane %v9494_v54, %v19106_v53  ;;  %v9599_v11 = vrot.slane %v9495_v37, %v19106_v53  ;;  %v9464_v16 = vmax.f32 %v9444_v12, %v9446_v60 }
 0x6c6   : > { %v9447_v41 = vsel %vm9383_vm1, %v12676_v4, %v9415_v34  ;;  %vm9384_vm3 = vcmp.gt.f32.partialorder %v12661_v26, 0.0  ;;  %v9416_v45 = vmul.f32 0.25, %v12661_v26  ;;  %v12677_v35 = vadd.f32 %v19154_v32, %v19093_v15 }
 0x6c7   : > { %v9654_v62 = vrot.slane %v9592_v3, 4  ;;  %v9655_v1 = vrot.slane %v9599_v11, 4  ;;  %v9465_v58 = vmax.f32 %v9445_v25, %v9447_v41  ;;  %v12662_v47 = vadd.f32 %v19156_v28, %v19096_v52 }
 0x6c8   : > { %v9448_v39 = vsel %vm9384_vm3, %v12661_v26, %v9416_v45  ;;  %vm9386_vm5 = vcmp.gt.f32.partialorder %v12677_v35, 0.0  ;;  %v9418_v21 = vmul.f32 0.25, %v12677_v35  ;;  %v12678_v30 = vadd.f32 %v19159_v40, %v19100_v17 }
 0x6c9   : > { %v9686_v24 = vmax.f32 %v9592_v3, %v9654_v62  ;;  %v9687_v6 = vmax.f32 %v9599_v11, %v9655_v1  ;;  %v9496_v29 = vcombine.low %v9464_v16, %v9465_v58  ;;  %v9497_v20 = vcombine.high %v9464_v16, %v9465_v58 }
 0x6ca   : > { %v9450_v43 = vsel %vm9386_vm5, %v12677_v35, %v9418_v21  ;;  %vm9385_vm7 = vcmp.gt.f32.partialorder %v12662_v47, 0.0  ;;  %v9417_v18 = vmul.f32 0.25, %v12662_v47  ;;  %vm9387_vm8 = vcmp.gt.f32.partialorder %v12678_v30, 0.0 }
 0x6cb   : > { %v9748_v15 = vcombine.low %v9686_v24, %v9687_v6  ;;  %v9606_v32 = vrot.slane %v9496_v29, %v19106_v53  ;;  %v9613_v56 = vrot.slane %v9497_v20, %v19106_v53  ;;  %v9466_v52 = vmax.f32 %v9448_v39, %v9450_v43 }
 0x6cc   : > { %v9449_v28 = vsel %vm9385_vm7, %v12662_v47, %v9417_v18  ;;  %v9419_v61 = vmul.f32 0.25, %v12678_v30  ;;  %v9786_v0 = vrot.slane %v19131_v63, %v19109_v31  ;;  %v9793_v17 = vrot.slane %v19140_v9, %v19109_v31 }
 0x6cd   : > { %v9755_v40 = vrot.slane %v9748_v15, %v19873_v59  ;;  %v9656_v8 = vrot.slane %v9606_v32, 4  ;;  %v9657_v14 = vrot.slane %v9613_v56, 4  ;;  %v9800_v42 = vrot.slane %v19169_v44, %v19109_v31 }
 0x6ce   : > { %v9451_v48 = vsel %vm9387_vm8, %v12678_v30, %v9419_v61  ;;  %v9807_v46 = vrot.slane %v9739_v23, %v19109_v31  ;;  %v9814_v19 = vrot.slane %v9747_v51, %v19109_v31  ;;  %v9844_v10 = vcombine.low %v9786_v0, %v9793_v17 }
 0x6cf   : > { %v9688_v7 = vmax.f32 %v9606_v32, %v9656_v8  ;;  %v9689_v38 = vmax.f32 %v9613_v56, %v9657_v14  ;;  %v9467_v2 = vmax.f32 %v9449_v28, %v9451_v48  ;;  %v9821_v63 = vrot.slane %v9755_v40, %v19109_v31  ;;  %v13983_v8 = vld [vmem:[%s15087_s30 + $0x114] ss:$8 sps:$4 sm:$0xff]  }
 0x6d0   : > { %v9846_v13 = vcombine.low %v9800_v42, %v9807_v46  ;;  %v9858_v9 = vrot.slane %v9844_v10, %v19106_v53  ;;  %v9845_v33 = vcombine.high %v9786_v0, %v9793_v17  ;;  %v9847_v4 = vcombine.high %v9800_v42, %v9807_v46  ;;  %v13978_v17 = vld [vmem:[%s15087_s30 + $0x100] ss:$8 sps:$4 sm:$0xff]  }
 0x6d1   : > { %v9756_v5 = vcombine.low %v9688_v7, %v9689_v38  ;;  %v9498_v55 = vcombine.low %v9466_v52, %v9467_v2  ;;  %v9499_v57 = vcombine.high %v9466_v52, %v9467_v2  ;;  %v9848_v44 = vcombine.low %v9814_v19, %v9821_v63  ;;  %v13986_v7 = vld [vmem:[%s15087_s30 + $0x124] ss:$8 sps:$4 sm:$0xff]  }
 0x6d2   : > { %v9872_v12 = vrot.slane %v9846_v13, %v19106_v53  ;;  %v9849_v23 = vcombine.high %v9814_v19, %v9821_v63  ;;  %v9865_v36 = vrot.slane %v9845_v33, %v19106_v53  ;;  %v9879_v22 = vrot.slane %v9847_v4, %v19106_v53  ;;  %v13981_v19 = vld [vmem:[%s15087_s30 + $0x110] ss:$8 sps:$4 sm:$0xff]   ;;  %v13984_v63 = vld [vmem:[%s15087_s30 + $0x120] ss:$8 sps:$4 sm:$0xff]   ;;  %v13995_v4 = vld [vmem:[%s15087_s30 + $0x154] ss:$8 sps:$4 sm:$0xff]  }
 0x6d3   : > { %v9620_v27 = vrot.slane %v9498_v55, %v19106_v53  ;;  %v9627_v54 = vrot.slane %v9499_v57, %v19106_v53  ;;  %v9763_v11 = vrot.slane %v9756_v5, %v19873_v59  ;;  %v9886_v47 = vrot.slane %v9848_v44, %v19106_v53  ;;  %v13987_v13 = vld [vmem:[%s15087_s30 + $0x130] ss:$8 sps:$4 sm:$0xff]   ;;  %v13990_v33 = vld [vmem:[%s15087_s30 + $0x140] ss:$8 sps:$4 sm:$0xff]   ;;  %v13998_v55 = vld [vmem:[%s15087_s30 + $0x164] ss:$8 sps:$4 sm:$0xff]  }
 0x6d4   : > { %v9908_v37 = vcombine.low %v9858_v9, %v9872_v12  ;;  %v9909_v60 = vcombine.high %v9858_v9, %v9872_v12  ;;  %v9911_v25 = vcombine.high %v9865_v36, %v9879_v22  ;;  %v9910_v41 = vcombine.low %v9865_v36, %v9879_v22  ;;  %v13992_v9 = vld [vmem:[%s15087_s30 + $0x144] ss:$8 sps:$4 sm:$0xff]   ;;  %v13993_v5 = vld [vmem:[%s15087_s30 + $0x150] ss:$8 sps:$4 sm:$0xff]   ;;  %v13996_v57 = vld [vmem:[%s15087_s30 + $0x160] ss:$8 sps:$4 sm:$0xff]  }
 0x6d5   : > { %v9658_v34 = vrot.slane %v9620_v27, 4  ;;  %v9659_v26 = vrot.slane %v9627_v54, 4  ;;  %v9828_v35 = vrot.slane %v9763_v11, %v19109_v31  ;;  %v9893_v21 = vrot.slane %v9849_v23, %v19106_v53  ;;  %v14001_v44 = vld [vmem:[%s15087_s30 + $0x174] ss:$8 sps:$4 sm:$0xff]   ;;  %v13999_v12 = vld [vmem:[%s15087_s30 + $0x170] ss:$8 sps:$4 sm:$0xff]  }
 0x6d6   : > { %v9943_v15 = vrot.slane %v9911_v25, %v19106_v53  ;;  %v9929_v48 = vrot.slane %v9910_v41, %v19106_v53  ;;  %v14004_v23 = vld [vmem:[%s15087_s30 + $0x184] ss:$8 sps:$4 sm:$0xff]   ;;  %v14002_v36 = vld [vmem:[%s15087_s30 + $0x180] ss:$8 sps:$4 sm:$0xff]   ;;  %v14007_v22 = vld [vmem:[%s15087_s30 + $0x194] ss:$8 sps:$4 sm:$0xff]  }
 0x6d7   : > { %v9690_v51 = vmax.f32 %v9620_v27, %v9658_v34  ;;  %v9691_v3 = vmax.f32 %v9627_v54, %v9659_v26  ;;  %v14005_v27 = vld [vmem:[%s15087_s30 + $0x190] ss:$8 sps:$4 sm:$0xff]   ;;  %v14010_v54 = vld [vmem:[%s15087_s30 + $0x1a4] ss:$8 sps:$4 sm:$0xff]   ;;  %v14014_v26 = vld [vmem:[%s15087_s30 + $0x1c0] ss:$8 sps:$4 sm:$0xff]  }
 0x6d8   : > { %v14011_v25 = vld [vmem:[%s15087_s30 + $0x1b0] ss:$8 sps:$4 sm:$0xff]   ;;  %v14016_v34 = vld [vmem:[%s15087_s30 + $0x1c4] ss:$8 sps:$4 sm:$0xff]   ;;  %v14025_v41 = vld [vmem:[%s15087_s30 + $0x1f4] ss:$8 sps:$4 sm:$0xff]  }
 0x6d9   : > { %v9764_v16 = vcombine.low %v9690_v51, %v9691_v3  ;;  %v14019_v51 = vld [vmem:[%s15087_s30 + $0x1d4] ss:$8 sps:$4 sm:$0xff]   ;;  %v14017_v3 = vld [vmem:[%s15087_s30 + $0x1d0] ss:$8 sps:$4 sm:$0xff]   ;;  %v14022_v11 = vld [vmem:[%s15087_s30 + $0x1e4] ss:$8 sps:$4 sm:$0xff]  }
 0x6db   : > { %v9771_v45 = vrot.slane %v9764_v16, %v19873_v59  ;;  %v9936_v59 = vrot.slane %v9909_v60, %v19106_v53  ;;  %v14013_v60 = vld [vmem:[%s15087_s30 + $0x1b4] ss:$8 sps:$4 sm:$0xff]   ;;  %v14020_v16 = vld [vmem:[%s15087_s30 + $0x1e0] ss:$8 sps:$4 sm:$0xff]  }
 0x6dd   : > { %v9835_v62 = vrot.slane %v9771_v45, %v19109_v31  ;;  %v9922_v31 = vrot.slane %v9908_v37, %v19106_v53  ;;  %v14008_v37 = vld [vmem:[%s15087_s30 + $0x1a0] ss:$8 sps:$4 sm:$0xff]   ;;  %v14023_v45 = vld [vmem:[%s15087_s30 + $0x1f0] ss:$8 sps:$4 sm:$0xff]  }
 0x6df   : > { %v9850_v1 = vcombine.low %v9828_v35, %v9835_v62  ;;  %v9851_v58 = vcombine.high %v9828_v35, %v9835_v62  ;;  %v14028_v35 = vld [vmem:[%s15087_s30 + $0x204] ss:$8 sps:$4 sm:$0xff]   ;;  %v14026_v62 = vld [vmem:[%s15087_s30 + $0x200] ss:$8 sps:$4 sm:$0xff]  }
 0x6e1   : > { %v9900_v39 = vrot.slane %v9850_v1, %v19106_v53  ;;  %v9907_v30 = vrot.slane %v9851_v58, %v19106_v53  ;;  %v14031_v58 = vld [vmem:[%s15087_s30 + $0x214] ss:$8 sps:$4 sm:$0xff]  }
 0x6e3   : > { %v9912_v24 = vcombine.low %v9886_v47, %v9900_v39  ;;  %v9913_v6 = vcombine.high %v9886_v47, %v9900_v39  ;;  %v9915_v29 = vcombine.high %v9893_v21, %v9907_v30  ;;  %v9914_v14 = vcombine.low %v9893_v21, %v9907_v30  ;;  %v14122_v39 = vld [vmem:[%s15096_s15] ss:$8 sps:$4 sm:$0xff]   ;;  %v14124_v21 = vld [vmem:[%s15096_s15 + $0x4] ss:$8 sps:$4 sm:$0xff]  }
 0x6e4   : > { %v14029_v30 = vld [vmem:[%s15087_s30 + $0x210] ss:$8 sps:$4 sm:$0xff]   ;;  %11152 = vmatprep.subr.bf16.mxu0 %v14124_v21  ;;  %v14079_v21 = vld [vmem:[%s15087_s30 + $0x314] ss:$8 sps:$4 sm:$0xff]  }
 0x6e5   : > { %v9964_v20 = vrot.slane %v9913_v6, %v19106_v53  ;;  %v9950_v43 = vrot.slane %v9912_v24, %v19106_v53  ;;  %v9971_v18 = vrot.slane %v9915_v29, %v19106_v53  ;;  %v9957_v46 = vrot.slane %v9914_v14, %v19106_v53  ;;  %v13989_v53 = vld [vmem:[%s15087_s30 + $0x134] ss:$8 sps:$4 sm:$0xff]   ;;  %v14127_v24 = vld [vmem:[%s15096_s15 + $0x14] ss:$8 sps:$4 sm:$0xff]   ;;  %v14034_v6 = vld [vmem:[%s15087_s30 + $0x224] ss:$8 sps:$4 sm:$0xff]   ;;  %11153 = vmatpush1.bf16.msra.mxu0 %v14122_v39 }
 0x6e6   : > { %v14125_v29 = vld [vmem:[%s15096_s15 + $0x10] ss:$8 sps:$4 sm:$0xff]   ;;  %11154 = vmatprep.subr.bf16.mxu0 %v14127_v24  ;;  %v14077_v24 = vld [vmem:[%s15087_s30 + $0x310] ss:$8 sps:$4 sm:$0xff]  }
 0x6e7   : > { %v9976_v32 = vcombine.low %v9936_v59, %v9964_v20  ;;  %v9972_v56 = vcombine.low %v9922_v31, %v9950_v43  ;;  %v9977_v52 = vcombine.high %v9936_v59, %v9964_v20  ;;  %v19226_v28 = vcombine.high %v9922_v31, %v9950_v43  ;;  %v14130_v59 = vld [vmem:[%s15096_s15 + $0x24] ss:$8 sps:$4 sm:$0xff]   ;;  %v14037_v31 = vld [vmem:[%s15087_s30 + $0x234] ss:$8 sps:$4 sm:$0xff]   ;;  %v14128_v43 = vld [vmem:[%s15096_s15 + $0x20] ss:$8 sps:$4 sm:$0xff]  }
 0x6e8   : > { %v19228_v61 = vcombine.low %v9943_v15, %v9971_v18  ;;  %v19235_v10 = vcombine.high %v9943_v15, %v9971_v18  ;;  %v19238_v38 = vcombine.low %v9929_v48, %v9957_v46  ;;  %v19240_v2 = vcombine.high %v9929_v48, %v9957_v46  ;;  %v14032_v20 = vld [vmem:[%s15087_s30 + $0x220] ss:$8 sps:$4 sm:$0xff]   ;;  %v14035_v15 = vld [vmem:[%s15087_s30 + $0x230] ss:$8 sps:$4 sm:$0xff]   ;;  %v14137_v14 = vld [vmem:[%s15096_s15 + $0x50] ss:$8 sps:$4 sm:$0xff]  }
 0x6e9   : > { %v9989_v0 = vpack.c.bf16 %v9976_v32, %v9976_v32  ;;  %v9988_v40 = vpack.c.bf16 %v9972_v56, %v9972_v56  ;;  %v9991_v42 = vpack.c.bf16 %v9977_v52, %v9977_v52  ;;  %v9990_v1 = vpack.c.bf16 %v19226_v28, %v19226_v28  ;;  %11155 = vmatpush1.bf16.msra.mxu0 %v14125_v29  ;;  %v14133_v18 = vld [vmem:[%s15096_s15 + $0x34] ss:$8 sps:$4 sm:$0xff]   ;;  %v14040_v32 = vld [vmem:[%s15087_s30 + $0x244] ss:$8 sps:$4 sm:$0xff]   ;;  %v14131_v56 = vld [vmem:[%s15096_s15 + $0x30] ss:$8 sps:$4 sm:$0xff]  }
 0x6ea   : > { %v9993_v47 = vpack.c.bf16 %v19228_v61, %v19228_v61  ;;  %11156 = vmatprep.subr.bf16.mxu0 %v14130_v59  ;;  %v14136_v52 = vld [vmem:[%s15096_s15 + $0x44] ss:$8 sps:$4 sm:$0xff]   ;;  %v14043_v61 = vld [vmem:[%s15087_s30 + $0x254] ss:$8 sps:$4 sm:$0xff]   ;;  %v9992_v39 = vpack.c.bf16 %v19238_v38, %v19238_v38 }
 0x6eb   : > { %10808 = vmatprep.mubr.bf16.mxu1 %v9989_v0  ;;  %v14038_v28 = vld [vmem:[%s15087_s30 + $0x240] ss:$8 sps:$4 sm:$0xff]   ;;  %v14134_v0 = vld [vmem:[%s15096_s15 + $0x40] ss:$8 sps:$4 sm:$0xff]   ;;  %v14049_v46 = vld [vmem:[%s15087_s30 + $0x274] ss:$8 sps:$4 sm:$0xff]  }
 0x6ec   : > { %10809 = vmatmul.mubr.bf16.vlgmr.msra.gmra.mrb[64].mxu1 %v9988_v40  ;;  %v14041_v40 = vld [vmem:[%s15087_s30 + $0x250] ss:$8 sps:$4 sm:$0xff]   ;;  %v14044_v48 = vld [vmem:[%s15087_s30 + $0x260] ss:$8 sps:$4 sm:$0xff]   ;;  %v14085_v38 = vld [vmem:[%s15087_s30 + $0x334] ss:$8 sps:$4 sm:$0xff]  }
 0x6ed   : > { %10818 = vmatpush1.bf16.msra.mxu1 %v13978_v17  ;;  %10849 = vmatprep.mubr.bf16.mxu1 %v9991_v42  ;;  %v14139_v17 = vld [vmem:[%s15096_s15 + $0x54] ss:$8 sps:$4 sm:$0xff]   ;;  %v14142_v42 = vld [vmem:[%s15096_s15 + $0x64] ss:$8 sps:$4 sm:$0xff]  }
 0x6ee   : > { %10819 = vmatprep.subr.bf16.mxu1 %v13983_v8  ;;  %11157 = vmatpush1.bf16.msra.mxu0 %v14128_v43  ;;  %v14046_v8 = vld [vmem:[%s15087_s30 + $0x264] ss:$8 sps:$4 sm:$0xff]   ;;  %v14080_v29 = vld [vmem:[%s15087_s30 + $0x320] ss:$8 sps:$4 sm:$0xff]   ;;  %v14083_v59 = vld [vmem:[%s15087_s30 + $0x330] ss:$8 sps:$4 sm:$0xff]  }
 0x6ef   : > { %11158 = vmatprep.subr.bf16.mxu0 %v14133_v18  ;;  %v14089_v43 = vld [vmem:[%s15087_s30 + $0x350] ss:$8 sps:$4 sm:$0xff]   ;;  %v14094_v18 = vld [vmem:[%s15087_s30 + $0x364] ss:$8 sps:$4 sm:$0xff]  }
 0x6f1   : > { %10820 = vmatpush1.bf16.msra.mxu1 %v13981_v19  ;;  %v14140_v19 = vld [vmem:[%s15096_s15 + $0x60] ss:$8 sps:$4 sm:$0xff]  }
 0x6f2   : > { %10821 = vmatprep.subr.bf16.mxu1 %v13986_v7  ;;  %11159 = vmatpush1.bf16.msra.mxu0 %v14131_v56  ;;  %v14145_v7 = vld [vmem:[%s15096_s15 + $0x74] ss:$8 sps:$4 sm:$0xff]  }
 0x6f3   : > { %11160 = vmatprep.subr.bf16.mxu0 %v14136_v52  ;;  %v14095_v56 = vld [vmem:[%s15087_s30 + $0x370] ss:$8 sps:$4 sm:$0xff]   ;;  %v14100_v52 = vld [vmem:[%s15087_s30 + $0x384] ss:$8 sps:$4 sm:$0xff]  }
 0x6f5   : > { %10822 = vmatpush1.bf16.msra.mxu1 %v13984_v63  ;;  %v14047_v63 = vld [vmem:[%s15087_s30 + $0x270] ss:$8 sps:$4 sm:$0xff]  }
 0x6f6   : > { %10823 = vmatprep.subr.bf16.mxu1 %v13989_v53  ;;  %11161 = vmatpush1.bf16.msra.mxu0 %v14134_v0  ;;  %v14052_v53 = vld [vmem:[%s15087_s30 + $0x284] ss:$8 sps:$4 sm:$0xff]   ;;  %v14101_v0 = vld [vmem:[%s15087_s30 + $0x390] ss:$8 sps:$4 sm:$0xff]  }
 0x6f7   : > { %11162 = vmatprep.subr.bf16.mxu0 %v14139_v17  ;;  %v14106_v17 = vld [vmem:[%s15087_s30 + $0x3a4] ss:$8 sps:$4 sm:$0xff]  }
 0x6f9   : > { %10824 = vmatpush1.bf16.msra.mxu1 %v13987_v13  ;;  %v14143_v13 = vld [vmem:[%s15096_s15 + $0x70] ss:$8 sps:$4 sm:$0xff]  }
 0x6fa   : > { %10825 = vmatprep.subr.bf16.mxu1 %v13992_v9  ;;  %11163 = vmatpush1.bf16.msra.mxu0 %v14137_v14  ;;  %v14148_v9 = vld [vmem:[%s15096_s15 + $0x84] ss:$8 sps:$4 sm:$0xff]  }
 0x6fb   : > { %11164 = vmatprep.subr.bf16.mxu0 %v14142_v42  ;;  %v14107_v14 = vld [vmem:[%s15087_s30 + $0x3b0] ss:$8 sps:$4 sm:$0xff]   ;;  %v14112_v42 = vld [vmem:[%s15087_s30 + $0x3c4] ss:$8 sps:$4 sm:$0xff]  }
 0x6fd   : > { %10826 = vmatpush1.bf16.msra.mxu1 %v13990_v33  ;;  %v14050_v33 = vld [vmem:[%s15087_s30 + $0x280] ss:$8 sps:$4 sm:$0xff]  }
 0x6fe   : > { %10827 = vmatprep.subr.bf16.mxu1 %v13995_v4  ;;  %11165 = vmatpush1.bf16.msra.mxu0 %v14140_v19  ;;  %v14055_v4 = vld [vmem:[%s15087_s30 + $0x294] ss:$8 sps:$4 sm:$0xff]   ;;  %v14113_v19 = vld [vmem:[%s15087_s30 + $0x3d0] ss:$8 sps:$4 sm:$0xff]  }
 0x6ff   : > { %11166 = vmatprep.subr.bf16.mxu0 %v14145_v7  ;;  %v14118_v7 = vld [vmem:[%s15087_s30 + $0x3e4] ss:$8 sps:$4 sm:$0xff]  }
 0x701   : > { %10828 = vmatpush1.bf16.msra.mxu1 %v13993_v5  ;;  %v14146_v5 = vld [vmem:[%s15096_s15 + $0x80] ss:$8 sps:$4 sm:$0xff]  }
 0x702   : > { %10829 = vmatprep.subr.bf16.mxu1 %v13998_v55  ;;  %11167 = vmatpush1.bf16.msra.mxu0 %v14143_v13  ;;  %v14151_v55 = vld [vmem:[%s15096_s15 + $0x94] ss:$8 sps:$4 sm:$0xff]  }
 0x703   : > { %11168 = vmatprep.subr.bf16.mxu0 %v14148_v9  ;;  %v14119_v13 = vld [vmem:[%s15087_s30 + $0x3f0] ss:$8 sps:$4 sm:$0xff]   ;;  %v9994_v9 = vpack.c.bf16 %v19240_v2, %v19240_v2 }
 0x705   : > { %10830 = vmatpush1.bf16.msra.mxu1 %v13996_v57  ;;  %v14053_v57 = vld [vmem:[%s15087_s30 + $0x290] ss:$8 sps:$4 sm:$0xff]  }
 0x706   : > { %10831 = vmatprep.subr.bf16.mxu1 %v14001_v44  ;;  %v14058_v44 = vld [vmem:[%s15087_s30 + $0x2a4] ss:$8 sps:$4 sm:$0xff]   ;;  %11169 = vmatpush1.bf16.msra.mxu0 %v14146_v5  ;;  %v14169_v5 = vld [vmem:[%s15096_s15 + $0xf4] ss:$8 sps:$4 sm:$0xff]  }
 0x707   : > { %11170 = vmatprep.subr.bf16.mxu0 %v14151_v55  ;;  %v14167_v55 = vld [vmem:[%s15096_s15 + $0xf0] ss:$8 sps:$4 sm:$0xff]  }
 0x709   : > { %10832 = vmatpush1.bf16.msra.mxu1 %v13999_v12  ;;  %v14149_v12 = vld [vmem:[%s15096_s15 + $0x90] ss:$8 sps:$4 sm:$0xff]  }
 0x70a   : > { %10833 = vmatprep.subr.bf16.mxu1 %v14004_v23  ;;  %v14154_v23 = vld [vmem:[%s15096_s15 + $0xa4] ss:$8 sps:$4 sm:$0xff]   ;;  %11171 = vmatpush1.bf16.msra.mxu0 %v14149_v12 }
 0x70b   : > { %11172 = vmatprep.subr.bf16.mxu0 %v14154_v23 }
 0x70d   : > { %10834 = vmatpush1.bf16.msra.mxu1 %v14002_v36  ;;  %v14056_v36 = vld [vmem:[%s15087_s30 + $0x2a0] ss:$8 sps:$4 sm:$0xff]  }
 0x70e   : > { %10835 = vmatprep.subr.bf16.mxu1 %v14007_v22  ;;  %v14061_v22 = vld [vmem:[%s15087_s30 + $0x2b4] ss:$8 sps:$4 sm:$0xff]  }
 0x711   : > { %10836 = vmatpush1.bf16.msra.mxu1 %v14005_v27  ;;  %v14152_v27 = vld [vmem:[%s15096_s15 + $0xa0] ss:$8 sps:$4 sm:$0xff]  }
 0x712   : > { %10837 = vmatprep.subr.bf16.mxu1 %v14010_v54  ;;  %v14157_v54 = vld [vmem:[%s15096_s15 + $0xb4] ss:$8 sps:$4 sm:$0xff]   ;;  %11173 = vmatpush1.bf16.msra.mxu0 %v14152_v27 }
 0x713   : > { %11174 = vmatprep.subr.bf16.mxu0 %v14157_v54 }
 0x715   : > { %10838 = vmatpush1.bf16.msra.mxu1 %v14008_v37  ;;  %v14059_v37 = vld [vmem:[%s15087_s30 + $0x2b0] ss:$8 sps:$4 sm:$0xff]  }
 0x716   : > { %10839 = vmatprep.subr.bf16.mxu1 %v14013_v60  ;;  %v14064_v60 = vld [vmem:[%s15087_s30 + $0x2c4] ss:$8 sps:$4 sm:$0xff]  }
 0x719   : > { %10840 = vmatpush1.bf16.msra.mxu1 %v14011_v25  ;;  %v14155_v25 = vld [vmem:[%s15096_s15 + $0xb0] ss:$8 sps:$4 sm:$0xff]  }
 0x71a   : > { %10841 = vmatprep.subr.bf16.mxu1 %v14016_v34  ;;  %v14160_v34 = vld [vmem:[%s15096_s15 + $0xc4] ss:$8 sps:$4 sm:$0xff]   ;;  %11175 = vmatpush1.bf16.msra.mxu0 %v14155_v25 }
 0x71b   : > { %11176 = vmatprep.subr.bf16.mxu0 %v14160_v34 }
 0x71d   : > { %10842 = vmatpush1.bf16.msra.mxu1 %v14014_v26  ;;  %v14062_v26 = vld [vmem:[%s15087_s30 + $0x2c0] ss:$8 sps:$4 sm:$0xff]  }
 0x71e   : > { %10843 = vmatprep.subr.bf16.mxu1 %v14019_v51  ;;  %v14067_v51 = vld [vmem:[%s15087_s30 + $0x2d4] ss:$8 sps:$4 sm:$0xff]  }
 0x721   : > { %10844 = vmatpush1.bf16.msra.mxu1 %v14017_v3  ;;  %v14158_v3 = vld [vmem:[%s15096_s15 + $0xc0] ss:$8 sps:$4 sm:$0xff]  }
 0x722   : > { %10845 = vmatprep.subr.bf16.mxu1 %v14022_v11  ;;  %v14163_v11 = vld [vmem:[%s15096_s15 + $0xd4] ss:$8 sps:$4 sm:$0xff]   ;;  %11177 = vmatpush1.bf16.msra.mxu0 %v14158_v3  ;;  %v14171_v3 = vld [vmem:[%s15105_s4] sm:$0xff]  }
 0x723   : > { %11178 = vmatprep.subr.bf16.mxu0 %v14163_v11 }
 0x725   : > { %10846 = vmatpush1.bf16.msra.mxu1 %v14020_v16  ;;  %v14065_v16 = vld [vmem:[%s15087_s30 + $0x2d0] ss:$8 sps:$4 sm:$0xff]  }
 0x726   : > { %10847 = vmatprep.subr.bf16.mxu1 %v14025_v41  ;;  %v14070_v41 = vld [vmem:[%s15087_s30 + $0x2e4] ss:$8 sps:$4 sm:$0xff]  }
 0x729   : > { %10848 = vmatpush1.bf16.msra.mxu1 %v14023_v45  ;;  %v14161_v45 = vld [vmem:[%s15096_s15 + $0xd0] ss:$8 sps:$4 sm:$0xff]  }
 0x72a   : > { %10858 = vmatprep.subr.bf16.mxu1 %v14028_v35  ;;  %v14068_v35 = vld [vmem:[%s15087_s30 + $0x2e0] ss:$8 sps:$4 sm:$0xff]   ;;  %11179 = vmatpush1.bf16.msra.mxu0 %v14161_v45  ;;  %v14174_v45 = vld [vmem:[%s15105_s4 + $0x50] sm:$0xff]  }
 0x72c   : > { %10850 = vmatmul.mubr.bf16.vlgmr.msra.gmra.mrb[64].mxu1 %v9990_v1  ;;  %v14071_v1 = vld [vmem:[%s15087_s30 + $0x2f0] ss:$8 sps:$4 sm:$0xff]  }
 0x72d   : > { %10859 = vmatpush1.bf16.msra.mxu1 %v14026_v62  ;;  %10890 = vmatprep.mubr.bf16.mxu1 %v9993_v47  ;;  %v14073_v62 = vld [vmem:[%s15087_s30 + $0x2f4] ss:$8 sps:$4 sm:$0xff]   ;;  %v14074_v47 = vld [vmem:[%s15087_s30 + $0x300] ss:$8 sps:$4 sm:$0xff]  }
 0x72e   : > { %10860 = vmatprep.subr.bf16.mxu1 %v14031_v58  ;;  %v14076_v58 = vld [vmem:[%s15087_s30 + $0x304] ss:$8 sps:$4 sm:$0xff]  }
 0x731   : > { %10861 = vmatpush1.bf16.msra.mxu1 %v14029_v30  ;;  %v9995_v30 = vpack.c.bf16 %v19235_v10, %v19235_v10  ;;  %v14088_v10 = vld [vmem:[%s15087_s30 + $0x344] ss:$8 sps:$4 sm:$0xff]  }
 0x732   : > { %10862 = vmatprep.subr.bf16.mxu1 %v14034_v6  ;;  %v14082_v6 = vld [vmem:[%s15087_s30 + $0x324] ss:$8 sps:$4 sm:$0xff]  }
 0x735   : > { %10863 = vmatpush1.bf16.msra.mxu1 %v14032_v20  ;;  %v14086_v20 = vld [vmem:[%s15087_s30 + $0x340] ss:$8 sps:$4 sm:$0xff]  }
 0x736   : > { %10864 = vmatprep.subr.bf16.mxu1 %v14037_v31  ;;  %v14091_v31 = vld [vmem:[%s15087_s30 + $0x354] ss:$8 sps:$4 sm:$0xff]  }
 0x739   : > { %10865 = vmatpush1.bf16.msra.mxu1 %v14035_v15  ;;  %v14092_v15 = vld [vmem:[%s15087_s30 + $0x360] ss:$8 sps:$4 sm:$0xff]  }
 0x73a   : > { %10866 = vmatprep.subr.bf16.mxu1 %v14040_v32  ;;  %v14097_v32 = vld [vmem:[%s15087_s30 + $0x374] ss:$8 sps:$4 sm:$0xff]  }
 0x73d   : > { %10867 = vmatpush1.bf16.msra.mxu1 %v14038_v28  ;;  %v14098_v28 = vld [vmem:[%s15087_s30 + $0x380] ss:$8 sps:$4 sm:$0xff]  }
 0x73e   : > { %10868 = vmatprep.subr.bf16.mxu1 %v14043_v61  ;;  %v14103_v61 = vld [vmem:[%s15087_s30 + $0x394] ss:$8 sps:$4 sm:$0xff]  }
 0x741   : > { %10869 = vmatpush1.bf16.msra.mxu1 %v14041_v40  ;;  %v14104_v40 = vld [vmem:[%s15087_s30 + $0x3a0] ss:$8 sps:$4 sm:$0xff]  }
 0x742   : > { %10870 = vmatprep.subr.bf16.mxu1 %v14046_v8  ;;  %v14109_v8 = vld [vmem:[%s15087_s30 + $0x3b4] ss:$8 sps:$4 sm:$0xff]  }
 0x745   : > { %10871 = vmatpush1.bf16.msra.mxu1 %v14044_v48  ;;  %v14110_v48 = vld [vmem:[%s15087_s30 + $0x3c0] ss:$8 sps:$4 sm:$0xff]  }
 0x746   : > { %10872 = vmatprep.subr.bf16.mxu1 %v14049_v46  ;;  %v14115_v46 = vld [vmem:[%s15087_s30 + $0x3d4] ss:$8 sps:$4 sm:$0xff]  }
 0x749   : > { %10873 = vmatpush1.bf16.msra.mxu1 %v14047_v63  ;;  %v14116_v63 = vld [vmem:[%s15087_s30 + $0x3e0] ss:$8 sps:$4 sm:$0xff]  }
 0x74a   : > { %10874 = vmatprep.subr.bf16.mxu1 %v14052_v53  ;;  %v14121_v53 = vld [vmem:[%s15087_s30 + $0x3f4] ss:$8 sps:$4 sm:$0xff]   ;;  %s877_s30 = scalar_lea.vmem %s19900_s27, %s11708_s25 }
 0x74d   : > { %10875 = vmatpush1.bf16.msra.mxu1 %v14050_v33  ;;  %v14164_v33 = vld [vmem:[%s15096_s15 + $0xe0] ss:$8 sps:$4 sm:$0xff]  }
 0x74e   : > { %10876 = vmatprep.subr.bf16.mxu1 %v14055_v4  ;;  %v14166_v4 = vld [vmem:[%s15096_s15 + $0xe4] ss:$8 sps:$4 sm:$0xff]  }
 0x74f   : > { %11180 = vmatprep.subr.bf16.mxu0 %v14166_v4 }
 0x750   : > { %11181 = vmatpush1.bf16.msra.mxu0 %v14164_v33 }
 0x751   : > { %10877 = vmatpush1.bf16.msra.mxu1 %v14053_v57  ;;  %11182 = vmatprep.subr.bf16.mxu0 %v14169_v5  ;;  %v14170_v57 = vld [vmem:[%s15105_s4 + $0x40] sm:$0xff]  }
 0x752   : > { %10878 = vmatprep.subr.bf16.mxu1 %v14058_v44  ;;  %v10124_v44 = vld [vmem:[%s15089_s2] sm:$0x3] }
 0x753   : > { %v10129_v12 = vrot.slane %v10124_v44, %v19895_v49  ;;  %v10133_v23 = vrot.slane %v10124_v44, %v19898_v50 }
 0x754   : > { %11183 = vmatpush1.bf16.msra.mxu0 %v14167_v55 }
 0x755   : > { %10879 = vmatpush1.bf16.msra.mxu1 %v14056_v36  ;;  %12625 = vmatprep.subr.bf16.mxu0 %v14170_v57 }
 0x756   : > { %10880 = vmatprep.subr.bf16.mxu1 %v14061_v22 }
 0x759   : > { %10881 = vmatpush1.bf16.msra.mxu1 %v14059_v37 }
 0x75a   : > { %10882 = vmatprep.subr.bf16.mxu1 %v14064_v60 }
 0x75d   : > { %10883 = vmatpush1.bf16.msra.mxu1 %v14062_v26 }
 0x75e   : > { %10884 = vmatprep.subr.bf16.mxu1 %v14067_v51 }
 0x761   : > { %10885 = vmatpush1.bf16.msra.mxu1 %v14065_v16  ;;  %v14172_v16 = vld [vmem:[%s15105_s4 + $0x48] sm:$0xff]  }
 0x762   : > { %10886 = vmatprep.subr.bf16.mxu1 %v14070_v41  ;;  %v14173_v41 = vld [vmem:[%s15105_s4 + $0x8] sm:$0xff]  }
 0x765   : > { %10887 = vmatpush1.bf16.msra.mxu1 %v14068_v35  ;;  %v14175_v35 = vld [vmem:[%s15105_s4 + $0x10] sm:$0xff]  }
 0x766   : > { %10888 = vmatprep.subr.bf16.mxu1 %v14073_v62  ;;  %v14176_v62 = vld [vmem:[%s15105_s4 + $0x58] sm:$0xff]  }
 0x769   : > { %10889 = vmatpush1.bf16.msra.mxu1 %v14071_v1  ;;  %v14177_v1 = vld [vmem:[%s15105_s4 + $0x18] sm:$0xff]  }
 0x76a   : > { %10899 = vmatprep.subr.bf16.mxu1 %v14076_v58  ;;  %v14178_v58 = vld [vmem:[%s15105_s4 + $0x60] sm:$0xff]  }
 0x76c   : > { %10891 = vmatmul.mubr.bf16.vlgmr.msra.gmra.mrb[64].mxu1 %v9992_v39  ;;  %v14180_v39 = vld [vmem:[%s15105_s4 + $0x68] sm:$0xff]  }
 0x76d   : > { %10900 = vmatpush1.bf16.msra.mxu1 %v14074_v47  ;;  %10931 = vmatprep.mubr.bf16.mxu1 %v9995_v30  ;;  %v14179_v47 = vld [vmem:[%s15105_s4 + $0x20] sm:$0xff]   ;;  %v14182_v30 = vld [vmem:[%s15105_s4 + $0x70] sm:$0xff]  }
 0x76e   : > { %10901 = vmatprep.subr.bf16.mxu1 %v14079_v21  ;;  %v14181_v21 = vld [vmem:[%s15105_s4 + $0x28] sm:$0xff]  }
 0x771   : > { %10902 = vmatpush1.bf16.msra.mxu1 %v14077_v24  ;;  %v14183_v24 = vld [vmem:[%s15105_s4 + $0x30] sm:$0xff]  }
 0x772   : > { %10903 = vmatprep.subr.bf16.mxu1 %v14082_v6  ;;  %v14184_v6 = vld [vmem:[%s15105_s4 + $0x78] sm:$0xff]  }
 0x775   : > { %10904 = vmatpush1.bf16.msra.mxu1 %v14080_v29  ;;  %v14185_v29 = vld [vmem:[%s15105_s4 + $0x38] sm:$0xff]  }
 0x776   : > { %10905 = vmatprep.subr.bf16.mxu1 %v14085_v38  ;;  %v10980_v38 = vld [vmem:[%s15098_s14] sm:$0x3] }
 0x779   : > { %10906 = vmatpush1.bf16.msra.mxu1 %v14083_v59  ;;  %v10985_v59 = vrot.slane %v10980_v38, %v19895_v49 }
 0x77a   : > { %10907 = vmatprep.subr.bf16.mxu1 %v14088_v10  ;;  %v10989_v10 = vrot.slane %v10980_v38, %v19898_v50  ;;  %v12591_v50 = vld [vmem:[%s745_s16] ss:$0 sm:$0xff] }
 0x77d   : > { %10908 = vmatpush1.bf16.msra.mxu1 %v14086_v20 }
 0x77e   : > { %10909 = vmatprep.subr.bf16.mxu1 %v14091_v31 }
 0x781   : > { %10910 = vmatpush1.bf16.msra.mxu1 %v14089_v43 }
 0x782   : > { %10911 = vmatprep.subr.bf16.mxu1 %v14094_v18 }
 0x785   : > { %10912 = vmatpush1.bf16.msra.mxu1 %v14092_v15 }
 0x786   : > { %10913 = vmatprep.subr.bf16.mxu1 %v14097_v32 }
 0x789   : > { %10914 = vmatpush1.bf16.msra.mxu1 %v14095_v56 }
 0x78a   : > { %10915 = vmatprep.subr.bf16.mxu1 %v14100_v52 }
 0x78d   : > { %10916 = vmatpush1.bf16.msra.mxu1 %v14098_v28 }
 0x78e   : > { %10917 = vmatprep.subr.bf16.mxu1 %v14103_v61 }
 0x791   : > { %10918 = vmatpush1.bf16.msra.mxu1 %v14101_v0 }
 0x792   : > { %10919 = vmatprep.subr.bf16.mxu1 %v14106_v17 }
 0x795   : > { %10920 = vmatpush1.bf16.msra.mxu1 %v14104_v40 }
 0x796   : > { %10921 = vmatprep.subr.bf16.mxu1 %v14109_v8 }
 0x799   : > { %10922 = vmatpush1.bf16.msra.mxu1 %v14107_v14 }
 0x79a   : > { %10923 = vmatprep.subr.bf16.mxu1 %v14112_v42 }
 0x79d   : > { %10924 = vmatpush1.bf16.msra.mxu1 %v14110_v48 }
 0x79e   : > { %10925 = vmatprep.subr.bf16.mxu1 %v14115_v46 }
 0x7a1   : > { %10926 = vmatpush1.bf16.msra.mxu1 %v14113_v19 }
 0x7a2   : > { %10927 = vmatprep.subr.bf16.mxu1 %v14118_v7 }
 0x7a5   : > { %10928 = vmatpush1.bf16.msra.mxu1 %v14116_v63 }
 0x7a6   : > { %10929 = vmatprep.subr.bf16.mxu1 %v14121_v53 }
 0x7a9   : > { %10930 = vmatpush1.bf16.msra.mxu1 %v14119_v13 }
 0x7ac   : > { %10932 = vmatmul.mubr.bf16.vlgmr.msra.gmra.mrb[64].mxu1 %v9994_v9 }
 0x87f   : > { %v10933_v36 = vpop.f32.mrb[64].mxu1 }
 0x880   : > { %v12679_v2 = vadd.f32 %v10933_v36, %v10129_v12  ;;  %v10935_v22 = vpop.f32.mrb[65].mxu1 }
 0x881   : > { %v12680_v27 = vadd.f32 %v10935_v22, %v10133_v23  ;;  %v10937_v54 = vpop.f32.mrb[66].mxu1 }
 0x882   : > { %vm10940_vm11 = vcmp.gt.f32.partialorder %v12679_v2, 0.0  ;;  %v10942_v37 = vmul.f32 0.25, %v12679_v2  ;;  %v10938_v60 = vpop.f32.mrb[67].mxu1 }
 0x883   : > { %vm10941_vm12 = vcmp.gt.f32.partialorder %v12680_v27, 0.0  ;;  %v10943_v25 = vmul.f32 0.25, %v12680_v27 }
 0x884   : > { %v10944_v34 = vsel %vm10940_vm11, %v12679_v2, %v10942_v37 }
 0x885   : > { %v10945_v26 = vsel %vm10941_vm12, %v12680_v27, %v10943_v25  ;;  %v10946_v11 = vpack.c.bf16 %v10944_v34, %v10944_v34 }
 0x886   : > { %v10947_v51 = vpack.c.bf16 %v10945_v26, %v10945_v26 }
 0x888   : > { %11184 = vmatprep.mubr.bf16.mxu0 %v10947_v51 }
 0x889   : > { %11185 = vmatmul.mubr.bf16.vlgmr.msra.gmra.mrb[112].mxu0 %v10946_v11 }
 0x88a   : > { %12626 = vmatpush3.bf16.msra.mxu0 %v14171_v3 }
 0x88b   : > { %12627 = vmatprep.subr.bf16.mxu0 %v14172_v16 }
 0x88e   : > { %12628 = vmatpush3.bf16.msra.mxu0 %v14173_v41 }
 0x88f   : > { %12629 = vmatprep.subr.bf16.mxu0 %v14174_v45 }
 0x892   : > { %12630 = vmatpush3.bf16.msra.mxu0 %v14175_v35 }
 0x893   : > { %12631 = vmatprep.subr.bf16.mxu0 %v14176_v62 }
 0x896   : > { %12632 = vmatpush3.bf16.msra.mxu0 %v14177_v1 }
 0x897   : > { %12633 = vmatprep.subr.bf16.mxu0 %v14178_v58 }
 0x89a   : > { %12634 = vmatpush3.bf16.msra.mxu0 %v14179_v47 }
 0x89b   : > { %12635 = vmatprep.subr.bf16.mxu0 %v14180_v39 }
 0x89e   : > { %12636 = vmatpush3.bf16.msra.mxu0 %v14181_v21 }
 0x89f   : > { %12637 = vmatprep.subr.bf16.mxu0 %v14182_v30 }
 0x8a2   : > { %12638 = vmatpush3.bf16.msra.mxu0 %v14183_v24 }
 0x8a3   : > { %12639 = vmatprep.subr.bf16.mxu0 %v14184_v6 }
 0x8a6   : > { %12640 = vmatpush3.bf16.msra.mxu0 %v14185_v29 }
 0x95c   : > { %v11186_v20 = vpop.f32.mrb[112].mxu0 }
 0x95d   : > { %v11187_v31 = vadd.f32 %v11186_v20, %v10985_v59  ;;  %v11188_v43 = vpop.f32.mrb[113].mxu0 }
 0x95e   : > { %v11189_v18 = vadd.f32 %v11188_v43, %v10989_v10  ;;  %v11190_v15 = vpop.f32.mrb[114].mxu0 }
 0x95f   : > { %vm11193_vm13 = vcmp.gt.f32.partialorder %v11187_v31, 0.0  ;;  %v11195_v32 = vmul.f32 0.25, %v11187_v31  ;;  %v11191_v56 = vpop.f32.mrb[115].mxu0 }
 0x960   : > { %vm11194_vm14 = vcmp.gt.f32.partialorder %v11189_v18, 0.0  ;;  %v11196_v52 = vmul.f32 0.25, %v11189_v18 }
 0x961   : > { %v11197_v28 = vsel %vm11193_vm13, %v11187_v31, %v11195_v32 }
 0x962   : > { %v11198_v61 = vsel %vm11194_vm14, %v11189_v18, %v11196_v52  ;;  %v11199_v17 = vpack.c.bf16 %v11197_v28, %v11197_v28 }
 0x963   : > { %v11200_v0 = vpack.c.bf16 %v11198_v61, %v11198_v61 }
 0x965   : > { %11368 = vmatprep.mubr.bf16.mxu0 %v11200_v0 }
 0x966   : > { %11369 = vmatmul.mubr.bf16.vlgmr.msra.gmra.mrb[116].mxu0 %v11199_v17 }
 0xa39   : > { %v12641_v49 = vpop.f32.mrb[116].mxu0 }
 0xa3a   : > { %v12642_v40 = vpop.f32.mrb[117].mxu0 }
 0xa3b   : > { %v12643_v8 = vadd.f32 %v12642_v40, %v12641_v49  ;;  %v12644_v14 = vpop.f32.mrb[118].mxu0 }
 0xa3c   : > { %v12645_v42 = vpop.f32.mrb[119].mxu0 }
 0xa3d   : > { %v11371_v48 = vadd.f32 %v12643_v8, %v12591_v50 }
 0xa3f   : > { %11376 = vst [vmem:[%s877_s30] sm:$0xff] %v11371_v48 }
 0xa40 PF: > { %s39_s22 = sadd.s32 1, %s14573_s22   ;;  %s19901_s2 = sld [smem:[#allocation24_spill]] }
 0xa41   : > { %p36_p1 = scmp.ge.s32.totalorder %s39_s22, 5   ;;  %s19902_s19 = sld [smem:[#allocation27_spill]] }
 0xa42   : > { %s19903_s20 = sld [smem:[#allocation25_spill]]  ;;  %s19904_s21 = sld [smem:[#allocation26_spill]] }
 0xa43   : > { %s19905_s17 = smov %s14557_s18  ;;  %38 = sbr.rel (!%p36_p1) target bundleno = 20 (0x14), region = 216 }
 0xa46   : > { %s19906_s18 = smov %s19901_s2 }
 0xa4a   :  { %11402 = vsyncpa [#allocation3], 1 }
 0xa4b   :  { %11404 = vsyncpa [#allocation3 + $0x1], 1 }
 0xa4c   :  { %11405 = vsyncpa [#allocation5], 1 }
 0xa4d   :  { %11407 = vsyncpa [#allocation5 + $0x1], 1 }
 0xa4e   :  { %11408 = vsyncpa [#allocation8], 1 }
 0xa4f   :  { %11410 = vsyncpa [#allocation8 + $0x1], 1 }
 0xa50   :  { %11411 = vsyncpa [#allocation11], 1 }
 0xa51   :  { %11413 = vsyncpa [#allocation11 + $0x1], 1 }
 0xa52   :  { %11414 = vsyncpa [#allocation14], 1 }
 0xa53   :  { %11416 = vsyncpa [#allocation14 + $0x1], 1 }
 0xa54   :  { %11417 = vsyncpa [#allocation17], 1 }
 0xa55   :  { %11419 = vsyncpa [#allocation17 + $0x1], 1 }

</bundles_post_ra>
